<compile_context>
chip_gen: v5e
topology: v5e:2x2
jax: 0.10.0
libtpu: 0.0.40
codegen_flags: <defaults>
</compile_context>

<pallas_src>
import jax
import jax.numpy as jnp
from jax.experimental import pallas as pl
from jax.experimental.pallas import tpu as pltpu

H = 50      # true hidden size (PyTorch hidden_size=50)
HP = 128    # lane-padded hidden size
D_IN = 5    # input feature size
DP0 = 8     # sublane-padded input feature size (layer-0 weight rows)
BP = 8      # sublane-padded batch size


def lstm_kernel(x_ref, wih0_ref, whh0_ref, b0_ref,
                wcat1_hbm, b1_ref, wlin_ref, blin_ref,
                out_ref,
                xp_ref, wcat1_vmem, dma_sem):
    # x_ref:      (T*BP, DP0)    time-major, batch/feature padded (VMEM)
    # wih0:       (DP0, 4*HP)    whh0: (HP, 4*HP)    b*: (1, 4*HP)   (VMEM)
    # wcat1_hbm:  (2*HP, 4*HP)   fused [wih1; whh1] left in HBM (pl.ANY)
    # wlin:       (1, HP)        blin: (1, 1)
    # out_ref:    (BP, 128)      lane-dense output slab
    # xp_ref:     (T*BP, 4*HP)   VMEM scratch: layer-0 input projection
    # wcat1_vmem: (2*HP, 4*HP)   VMEM scratch: manual-DMA destination
    T = x_ref.shape[0] // BP

    # ---- kick off the fused layer-1 weight DMA; hide it behind layer-0 work ----
    wcat_cp = pltpu.make_async_copy(wcat1_hbm, wcat1_vmem, dma_sem)
    wcat_cp.start()

    # ---- layer-0 input projection for ALL timesteps: one matmul, bias folded ----
    xp_ref[...] = (jnp.dot(x_ref[...], wih0_ref[...],
                           preferred_element_type=jnp.float32)
                   + b0_ref[...])

    # Hoist the layer-1 bias broadcast out of the loop (JAX does not CSE
    # broadcast_in_dim, so an in-loop (1,4HP) add re-broadcasts every step).
    b1b = jnp.broadcast_to(b1_ref[...], (BP, 4 * HP))

    def sigmoid(x):
        # sigmoid(x) == 0.5*tanh(0.5*x)+0.5: one EUP push + two VPU ops
        # (instead of exp + reciprocal).  Padded lanes: x==0 -> 0.5, harmless.
        return 0.5 * jnp.tanh(0.5 * x) + 0.5

    def act(gates, c):
        i = sigmoid(gates[:, 0 * HP:1 * HP])
        f = sigmoid(gates[:, 1 * HP:2 * HP])
        g = jnp.tanh(gates[:, 2 * HP:3 * HP])
        o = sigmoid(gates[:, 3 * HP:4 * HP])
        c_new = f * c + i * g
        h_new = o * jnp.tanh(c_new)
        return h_new, c_new

    # Weight refs are indexed at each use (not hoisted) so operands stream from
    # VMEM per-matmul instead of living in vregs across the unrolled loop.
    def layer0_step(t, h0, c0):
        gates = xp_ref[t * BP:(t + 1) * BP, :] + jnp.dot(
            h0, whh0_ref[...], preferred_element_type=jnp.float32)
        return act(gates, c0)

    def layer1_step(h0, h1, c1):
        # Single fused dot: concat([h0, h1]) @ [wih1; whh1]  (K = 2*HP).
        hcat = jnp.concatenate([h0, h1], axis=-1)
        gates = jnp.dot(hcat, wcat1_vmem[...],
                        preferred_element_type=jnp.float32) + b1b
        return act(gates, c1)

    zeros = jnp.zeros((BP, HP), jnp.float32)

    # ---- skewed (wavefront) recurrence, fully unrolled (T is small & static) ----
    # Layer-0 prologue at t=0: h0 == 0 exactly, so the recurrent dot is skipped.
    h0, c0 = act(xp_ref[0:BP, :], zeros)
    h1, c1 = zeros, zeros
    for t in range(T):
        h0_t = h0                                  # h0(t), consumed by layer1 below
        if t + 1 < T:
            h0, c0 = layer0_step(t + 1, h0, c0)    # advance layer0 (independent chain)
        if t == 0:
            wcat_cp.wait()                          # first use of the fused weight
        h1, c1 = layer1_step(h0_t, h1, c1)

    # ---- final Linear(50->1): VPU multiply + lane reduction, lane-dense store ----
    y = jnp.sum(h1 * wlin_ref[...], axis=-1, keepdims=True) + blin_ref[...]
    out_ref[...] = jnp.broadcast_to(y, (BP, 128))


def _lstm_forward(x, padded_params):
    """x: (B, T, D_IN) batch_first, like PyTorch.  Returns (B, 1)."""
    B, T, D = x.shape
    # time-major, pad batch -> BP sublanes and features -> DP0 (zero padding)
    x_t = jnp.transpose(x, (1, 0, 2))                                   # (T, B, D)
    x_p = jnp.zeros((T, BP, DP0), jnp.float32).at[:, :B, :D].set(x_t)   # (T, BP, DP0)
    x_flat = x_p.reshape(T * BP, DP0)

    vmem = pl.BlockSpec(memory_space=pltpu.MemorySpace.VMEM)
    hbm = pl.BlockSpec(memory_space=pl.ANY)   # fused layer-1 weight: manual DMA
    # arg order: x, wih0, whh0, b0, wcat1(ANY), b1, wlin, blin
    in_specs = [vmem, vmem, vmem, vmem, hbm, vmem, vmem, vmem]

    flops = (2 * (T * BP) * DP0 * 4 * HP            # layer-0 input projection
             + (T - 1) * 2 * BP * HP * 4 * HP       # layer-0 recurrent dots
             + T * 2 * BP * (2 * HP) * 4 * HP       # fused layer-1 dots
             + 2 * T * 10 * BP * HP)                # gate elementwise (rough)
    transcendentals = 2 * T * 5 * BP * HP
    bytes_accessed = 4 * (T * BP * DP0 + DP0 * 4 * HP + HP * 4 * HP
                          + 2 * HP * 4 * HP + 2 * 4 * HP + HP + 1 + BP * 128)

    out_p = pl.pallas_call(
        lstm_kernel,
        out_shape=jax.ShapeDtypeStruct((BP, 128), jnp.float32),
        in_specs=in_specs,
        out_specs=vmem,
        scratch_shapes=[
            pltpu.VMEM((T * BP, 4 * HP), jnp.float32),   # staged input projection
            pltpu.VMEM((2 * HP, 4 * HP), jnp.float32),   # fused layer-1 weight dst
            pltpu.SemaphoreType.DMA(()),                 # its DMA semaphore
        ],
        cost_estimate=pl.CostEstimate(flops=flops,
                                      transcendentals=transcendentals,
                                      bytes_accessed=bytes_accessed),
    )(x_flat, *padded_params)
    return out_p[:B, 0:1]


lstm_forward = jax.jit(_lstm_forward)


# ---------------- parameter construction (deterministic, PyTorch-like init) ----

def init_layer(key, in_dim):
    bound = 1.0 / (H ** 0.5)
    k1, k2, k3, k4 = jax.random.split(key, 4)
    # per-gate layout: gate order (i, f, g, o), each (H, in_dim) / (H, H)
    w_ih = jax.random.uniform(k1, (4, H, in_dim), jnp.float32, -bound, bound)
    w_hh = jax.random.uniform(k2, (4, H, H), jnp.float32, -bound, bound)
    b_ih = jax.random.uniform(k3, (4, H), jnp.float32, -bound, bound)
    b_hh = jax.random.uniform(k4, (4, H), jnp.float32, -bound, bound)
    return w_ih, w_hh, b_ih + b_hh


def pad_layer0(w_ih, w_hh, b):
    wih_p = jnp.zeros((DP0, 4 * HP), jnp.float32)
    whh_p = jnp.zeros((HP, 4 * HP), jnp.float32)
    b_p = jnp.zeros((1, 4 * HP), jnp.float32)
    for g in range(4):
        wih_p = wih_p.at[:D_IN, g * HP:g * HP + H].set(w_ih[g].T)
        whh_p = whh_p.at[:H, g * HP:g * HP + H].set(w_hh[g].T)
        b_p = b_p.at[0, g * HP:g * HP + H].set(b[g])
    return wih_p, whh_p, b_p


def pad_layer1_fused(w_ih, w_hh, b):
    # Stack [wih1; whh1] so layer-1 needs a single dot on concat([h0, h1]).
    wcat_p = jnp.zeros((2 * HP, 4 * HP), jnp.float32)
    b_p = jnp.zeros((1, 4 * HP), jnp.float32)
    for g in range(4):
        wcat_p = wcat_p.at[:H, g * HP:g * HP + H].set(w_ih[g].T)            # h0 rows
        wcat_p = wcat_p.at[HP:HP + H, g * HP:g * HP + H].set(w_hh[g].T)     # h1 rows
        b_p = b_p.at[0, g * HP:g * HP + H].set(b[g])
    return wcat_p, b_p


# ---------------- pure-JAX reference (same math, unpadded) ---------------------

def ref_lstm_layer(x_seq, w_ih, w_hh, b):
    B, T, _ = x_seq.shape
    h = jnp.zeros((B, H), jnp.float32)
    c = jnp.zeros((B, H), jnp.float32)
    outs = []
    for t in range(T):
        xt = x_seq[:, t, :]
        gi = xt @ w_ih[0].T + h @ w_hh[0].T + b[0]
        gf = xt @ w_ih[1].T + h @ w_hh[1].T + b[1]
        gg = xt @ w_ih[2].T + h @ w_hh[2].T + b[2]
        go = xt @ w_ih[3].T + h @ w_hh[3].T + b[3]
        i = jax.nn.sigmoid(gi)
        f = jax.nn.sigmoid(gf)
        g = jnp.tanh(gg)
        o = jax.nn.sigmoid(go)
        c = f * c + i * g
        h = o * jnp.tanh(c)
        outs.append(h)
    return jnp.stack(outs, axis=1)


def ref_forward(x, l0, l1, w_lin, b_lin):
    y0 = ref_lstm_layer(x, *l0)
    y1 = ref_lstm_layer(y0, *l1)
    last = y1[:, -1, :]
    return last @ w_lin.T + b_lin


if __name__ == "__main__":
    key = jax.random.PRNGKey(0)
    kx, k0, k1, klw, klb = jax.random.split(key, 5)

    B, T = 2, 8
    x = jax.random.normal(kx, (B, T, D_IN), jnp.float32)

    # LSTM layer params (layer0 input=5, layer1 input=50)
    l0 = init_layer(k0, D_IN)
    l1 = init_layer(k1, H)

    # Linear(50 -> 1) params
    lbound = 1.0 / (H ** 0.5)
    w_lin = jax.random.uniform(klw, (1, H), jnp.float32, -lbound, lbound)
    b_lin = jax.random.uniform(klb, (1,), jnp.float32, -lbound, lbound)

    # Padded parameters for the kernel
    wih0_p, whh0_p, b0_p = pad_layer0(*l0)
    wcat1_p, b1_p = pad_layer1_fused(*l1)
    wlin_p = jnp.zeros((1, HP), jnp.float32).at[0, :H].set(w_lin[0])
    blin_p = b_lin.reshape(1, 1)

    padded_params = (wih0_p, whh0_p, b0_p, wcat1_p, b1_p, wlin_p, blin_p)

    out = lstm_forward(x, padded_params)
    out = jax.block_until_ready(out)

    ref = ref_forward(x, l0, l1, w_lin, b_lin)
    assert out.shape == (B, 1), out.shape
    assert jnp.allclose(out, ref, atol=1e-4, rtol=1e-4), (out, ref)

    print("KERNEL_OK")
</pallas_src>

<mosaic_0001>
module attributes {stable_mosaic.version = 11 : i64} {
  func.func @lstm_kernel(%arg0: memref<64x8xf32, #tpu.memory_space<vmem>>, %arg1: memref<8x512xf32, #tpu.memory_space<vmem>>, %arg2: memref<128x512xf32, #tpu.memory_space<vmem>>, %arg3: memref<1x512xf32, #tpu.memory_space<vmem>>, %arg4: memref<256x512xf32, #tpu.memory_space<any>>, %arg5: memref<1x512xf32, #tpu.memory_space<vmem>>, %arg6: memref<1x128xf32, #tpu.memory_space<vmem>>, %arg7: memref<1x1xf32, #tpu.memory_space<vmem>>, %arg8: memref<8x128xf32, #tpu.memory_space<vmem>>, %arg9: memref<64x512xf32, #tpu.memory_space<vmem>>, %arg10: memref<256x512xf32, #tpu.memory_space<vmem>>, %arg11: memref<!tpu.dma_semaphore, #tpu.memory_space<semaphore_mem>>) attributes {dimension_semantics = [], scalar_prefetch = 0 : i64, scratch_operands = 3 : i64, tpu.core_type = #tpu.core_type<tc>} {
    tpu.enqueue_dma source(%arg4 : memref<256x512xf32, #tpu.memory_space<any>>) target(%arg10 : memref<256x512xf32, #tpu.memory_space<vmem>>) target_semaphore(%arg11 : memref<!tpu.dma_semaphore, #tpu.memory_space<semaphore_mem>>)
    %c0 = arith.constant 0 : index
    %c0_0 = arith.constant 0 : index
    %0 = vector.load %arg0[%c0, %c0_0] : memref<64x8xf32, #tpu.memory_space<vmem>>, vector<64x8xf32>
    %c0_1 = arith.constant 0 : index
    %c0_2 = arith.constant 0 : index
    %1 = vector.load %arg1[%c0_1, %c0_2] : memref<8x512xf32, #tpu.memory_space<vmem>>, vector<8x512xf32>
    %cst = arith.constant dense<0.000000e+00> : vector<64x512xf32>
    %2 = tpu.matmul %0, %1, %cst {dimension_numbers = #tpu.dot_dimension_numbers<[1], [0], [0], [1], [0, 0, 1, 1], [], []>} : vector<64x8xf32>, vector<8x512xf32>, vector<64x512xf32> -> vector<64x512xf32>
    %c0_3 = arith.constant 0 : index
    %c0_4 = arith.constant 0 : index
    %3 = vector.load %arg3[%c0_3, %c0_4] : memref<1x512xf32, #tpu.memory_space<vmem>>, vector<1x512xf32>
    %4 = vector.broadcast %3 : vector<1x512xf32> to vector<64x512xf32>
    %5 = arith.addf %2, %4 : vector<64x512xf32>
    %c0_5 = arith.constant 0 : index
    %c0_6 = arith.constant 0 : index
    %6 = vector.load %arg9[%c0_5, %c0_6] : memref<64x512xf32, #tpu.memory_space<vmem>>, vector<64x512xf32>
    tpu.vector_store %arg9[%c0_5, %c0_6], %5 {strides = array<i32>} : memref<64x512xf32, #tpu.memory_space<vmem>>, vector<64x512xf32>,
    %c0_7 = arith.constant 0 : index
    %c0_8 = arith.constant 0 : index
    %7 = vector.load %arg5[%c0_7, %c0_8] : memref<1x512xf32, #tpu.memory_space<vmem>>, vector<1x512xf32>
    %8 = vector.shape_cast %7 : vector<1x512xf32> to vector<1x512xf32>
    %9 = vector.broadcast %8 : vector<1x512xf32> to vector<8x512xf32>
    %cst_9 = arith.constant 0.000000e+00 : f32
    %10 = vector.broadcast %cst_9 : f32 to vector<8x128xf32>
    %c0_10 = arith.constant 0 : index
    %c0_11 = arith.constant 0 : index
    %11 = vector.load %arg9[%c0_10, %c0_11] : memref<64x512xf32, #tpu.memory_space<vmem>>, vector<8x512xf32>
    %12 = vector.extract_strided_slice %11 {offsets = [0, 0], sizes = [8, 128], strides = [1, 1]} : vector<8x512xf32> to vector<8x128xf32>
    %cst_12 = arith.constant 5.000000e-01 : f32
    %13 = vector.broadcast %cst_12 : f32 to vector<8x128xf32>
    %14 = arith.mulf %13, %12 : vector<8x128xf32>
    %15 = math.tanh %14 : vector<8x128xf32>
    %cst_13 = arith.constant 5.000000e-01 : f32
    %16 = vector.broadcast %cst_13 : f32 to vector<8x128xf32>
    %17 = arith.mulf %16, %15 : vector<8x128xf32>
    %cst_14 = arith.constant 5.000000e-01 : f32
    %18 = vector.broadcast %cst_14 : f32 to vector<8x128xf32>
    %19 = arith.addf %17, %18 : vector<8x128xf32>
    %20 = vector.extract_strided_slice %11 {offsets = [0, 128], sizes = [8, 128], strides = [1, 1]} : vector<8x512xf32> to vector<8x128xf32>
    %cst_15 = arith.constant 5.000000e-01 : f32
    %21 = vector.broadcast %cst_15 : f32 to vector<8x128xf32>
    %22 = arith.mulf %21, %20 : vector<8x128xf32>
    %23 = math.tanh %22 : vector<8x128xf32>
    %cst_16 = arith.constant 5.000000e-01 : f32
    %24 = vector.broadcast %cst_16 : f32 to vector<8x128xf32>
    %25 = arith.mulf %24, %23 : vector<8x128xf32>
    %cst_17 = arith.constant 5.000000e-01 : f32
    %26 = vector.broadcast %cst_17 : f32 to vector<8x128xf32>
    %27 = arith.addf %25, %26 : vector<8x128xf32>
    %28 = vector.extract_strided_slice %11 {offsets = [0, 256], sizes = [8, 128], strides = [1, 1]} : vector<8x512xf32> to vector<8x128xf32>
    %29 = math.tanh %28 : vector<8x128xf32>
    %30 = vector.extract_strided_slice %11 {offsets = [0, 384], sizes = [8, 128], strides = [1, 1]} : vector<8x512xf32> to vector<8x128xf32>
    %cst_18 = arith.constant 5.000000e-01 : f32
    %31 = vector.broadcast %cst_18 : f32 to vector<8x128xf32>
    %32 = arith.mulf %31, %30 : vector<8x128xf32>
    %33 = math.tanh %32 : vector<8x128xf32>
    %cst_19 = arith.constant 5.000000e-01 : f32
    %34 = vector.broadcast %cst_19 : f32 to vector<8x128xf32>
    %35 = arith.mulf %34, %33 : vector<8x128xf32>
    %cst_20 = arith.constant 5.000000e-01 : f32
    %36 = vector.broadcast %cst_20 : f32 to vector<8x128xf32>
    %37 = arith.addf %35, %36 : vector<8x128xf32>
    %38 = arith.mulf %27, %10 : vector<8x128xf32>
    %39 = arith.mulf %19, %29 : vector<8x128xf32>
    %40 = arith.addf %38, %39 : vector<8x128xf32>
    %41 = math.tanh %40 : vector<8x128xf32>
    %42 = arith.mulf %37, %41 : vector<8x128xf32>
    %c8 = arith.constant 8 : index
    %c0_21 = arith.constant 0 : index
    %43 = vector.load %arg9[%c8, %c0_21] : memref<64x512xf32, #tpu.memory_space<vmem>>, vector<8x512xf32>
    %c0_22 = arith.constant 0 : index
    %c0_23 = arith.constant 0 : index
    %44 = vector.load %arg2[%c0_22, %c0_23] : memref<128x512xf32, #tpu.memory_space<vmem>>, vector<128x512xf32>
    %cst_24 = arith.constant dense<0.000000e+00> : vector<8x512xf32>
    %45 = tpu.matmul %42, %44, %cst_24 {dimension_numbers = #tpu.dot_dimension_numbers<[1], [0], [0], [1], [0, 0, 1, 1], [], []>} : vector<8x128xf32>, vector<128x512xf32>, vector<8x512xf32> -> vector<8x512xf32>
    %46 = arith.addf %43, %45 : vector<8x512xf32>
    %47 = vector.extract_strided_slice %46 {offsets = [0, 0], sizes = [8, 128], strides = [1, 1]} : vector<8x512xf32> to vector<8x128xf32>
    %cst_25 = arith.constant 5.000000e-01 : f32
    %48 = vector.broadcast %cst_25 : f32 to vector<8x128xf32>
    %49 = arith.mulf %48, %47 : vector<8x128xf32>
    %50 = math.tanh %49 : vector<8x128xf32>
    %cst_26 = arith.constant 5.000000e-01 : f32
    %51 = vector.broadcast %cst_26 : f32 to vector<8x128xf32>
    %52 = arith.mulf %51, %50 : vector<8x128xf32>
    %cst_27 = arith.constant 5.000000e-01 : f32
    %53 = vector.broadcast %cst_27 : f32 to vector<8x128xf32>
    %54 = arith.addf %52, %53 : vector<8x128xf32>
    %55 = vector.extract_strided_slice %46 {offsets = [0, 128], sizes = [8, 128], strides = [1, 1]} : vector<8x512xf32> to vector<8x128xf32>
    %cst_28 = arith.constant 5.000000e-01 : f32
    %56 = vector.broadcast %cst_28 : f32 to vector<8x128xf32>
    %57 = arith.mulf %56, %55 : vector<8x128xf32>
    %58 = math.tanh %57 : vector<8x128xf32>
    %cst_29 = arith.constant 5.000000e-01 : f32
    %59 = vector.broadcast %cst_29 : f32 to vector<8x128xf32>
    %60 = arith.mulf %59, %58 : vector<8x128xf32>
    %cst_30 = arith.constant 5.000000e-01 : f32
    %61 = vector.broadcast %cst_30 : f32 to vector<8x128xf32>
    %62 = arith.addf %60, %61 : vector<8x128xf32>
    %63 = vector.extract_strided_slice %46 {offsets = [0, 256], sizes = [8, 128], strides = [1, 1]} : vector<8x512xf32> to vector<8x128xf32>
    %64 = math.tanh %63 : vector<8x128xf32>
    %65 = vector.extract_strided_slice %46 {offsets = [0, 384], sizes = [8, 128], strides = [1, 1]} : vector<8x512xf32> to vector<8x128xf32>
    %cst_31 = arith.constant 5.000000e-01 : f32
    %66 = vector.broadcast %cst_31 : f32 to vector<8x128xf32>
    %67 = arith.mulf %66, %65 : vector<8x128xf32>
    %68 = math.tanh %67 : vector<8x128xf32>
    %cst_32 = arith.constant 5.000000e-01 : f32
    %69 = vector.broadcast %cst_32 : f32 to vector<8x128xf32>
    %70 = arith.mulf %69, %68 : vector<8x128xf32>
    %cst_33 = arith.constant 5.000000e-01 : f32
    %71 = vector.broadcast %cst_33 : f32 to vector<8x128xf32>
    %72 = arith.addf %70, %71 : vector<8x128xf32>
    %73 = arith.mulf %62, %40 : vector<8x128xf32>
    %74 = arith.mulf %54, %64 : vector<8x128xf32>
    %75 = arith.addf %73, %74 : vector<8x128xf32>
    %76 = math.tanh %75 : vector<8x128xf32>
    %77 = arith.mulf %72, %76 : vector<8x128xf32>
    tpu.wait_dma2 semaphore(%arg11 : memref<!tpu.dma_semaphore, #tpu.memory_space<semaphore_mem>>) src(%arg4 : memref<256x512xf32, #tpu.memory_space<any>>) dst(%arg10 : memref<256x512xf32, #tpu.memory_space<vmem>>)
    %78 = tpu.concatenate %42, %10 in 1 : vector<8x128xf32>, vector<8x128xf32> -> vector<8x256xf32>
    %c0_34 = arith.constant 0 : index
    %c0_35 = arith.constant 0 : index
    %79 = vector.load %arg10[%c0_34, %c0_35] : memref<256x512xf32, #tpu.memory_space<vmem>>, vector<256x512xf32>
    %cst_36 = arith.constant dense<0.000000e+00> : vector<8x512xf32>
    %80 = tpu.matmul %78, %79, %cst_36 {dimension_numbers = #tpu.dot_dimension_numbers<[1], [0], [0], [1], [0, 0, 1, 1], [], []>} : vector<8x256xf32>, vector<256x512xf32>, vector<8x512xf32> -> vector<8x512xf32>
    %81 = arith.addf %80, %9 : vector<8x512xf32>
    %82 = vector.extract_strided_slice %81 {offsets = [0, 0], sizes = [8, 128], strides = [1, 1]} : vector<8x512xf32> to vector<8x128xf32>
    %cst_37 = arith.constant 5.000000e-01 : f32
    %83 = vector.broadcast %cst_37 : f32 to vector<8x128xf32>
    %84 = arith.mulf %83, %82 : vector<8x128xf32>
    %85 = math.tanh %84 : vector<8x128xf32>
    %cst_38 = arith.constant 5.000000e-01 : f32
    %86 = vector.broadcast %cst_38 : f32 to vector<8x128xf32>
    %87 = arith.mulf %86, %85 : vector<8x128xf32>
    %cst_39 = arith.constant 5.000000e-01 : f32
    %88 = vector.broadcast %cst_39 : f32 to vector<8x128xf32>
    %89 = arith.addf %87, %88 : vector<8x128xf32>
    %90 = vector.extract_strided_slice %81 {offsets = [0, 128], sizes = [8, 128], strides = [1, 1]} : vector<8x512xf32> to vector<8x128xf32>
    %cst_40 = arith.constant 5.000000e-01 : f32
    %91 = vector.broadcast %cst_40 : f32 to vector<8x128xf32>
    %92 = arith.mulf %91, %90 : vector<8x128xf32>
    %93 = math.tanh %92 : vector<8x128xf32>
    %cst_41 = arith.constant 5.000000e-01 : f32
    %94 = vector.broadcast %cst_41 : f32 to vector<8x128xf32>
    %95 = arith.mulf %94, %93 : vector<8x128xf32>
    %cst_42 = arith.constant 5.000000e-01 : f32
    %96 = vector.broadcast %cst_42 : f32 to vector<8x128xf32>
    %97 = arith.addf %95, %96 : vector<8x128xf32>
    %98 = vector.extract_strided_slice %81 {offsets = [0, 256], sizes = [8, 128], strides = [1, 1]} : vector<8x512xf32> to vector<8x128xf32>
    %99 = math.tanh %98 : vector<8x128xf32>
    %100 = vector.extract_strided_slice %81 {offsets = [0, 384], sizes = [8, 128], strides = [1, 1]} : vector<8x512xf32> to vector<8x128xf32>
    %cst_43 = arith.constant 5.000000e-01 : f32
    %101 = vector.broadcast %cst_43 : f32 to vector<8x128xf32>
    %102 = arith.mulf %101, %100 : vector<8x128xf32>
    %103 = math.tanh %102 : vector<8x128xf32>
    %cst_44 = arith.constant 5.000000e-01 : f32
    %104 = vector.broadcast %cst_44 : f32 to vector<8x128xf32>
    %105 = arith.mulf %104, %103 : vector<8x128xf32>
    %cst_45 = arith.constant 5.000000e-01 : f32
    %106 = vector.broadcast %cst_45 : f32 to vector<8x128xf32>
    %107 = arith.addf %105, %106 : vector<8x128xf32>
    %108 = arith.mulf %97, %10 : vector<8x128xf32>
    %109 = arith.mulf %89, %99 : vector<8x128xf32>
    %110 = arith.addf %108, %109 : vector<8x128xf32>
    %111 = math.tanh %110 : vector<8x128xf32>
    %112 = arith.mulf %107, %111 : vector<8x128xf32>
    %c16 = arith.constant 16 : index
    %c0_46 = arith.constant 0 : index
    %113 = vector.load %arg9[%c16, %c0_46] : memref<64x512xf32, #tpu.memory_space<vmem>>, vector<8x512xf32>
    %c0_47 = arith.constant 0 : index
    %c0_48 = arith.constant 0 : index
    %114 = vector.load %arg2[%c0_47, %c0_48] : memref<128x512xf32, #tpu.memory_space<vmem>>, vector<128x512xf32>
    %cst_49 = arith.constant dense<0.000000e+00> : vector<8x512xf32>
    %115 = tpu.matmul %77, %114, %cst_49 {dimension_numbers = #tpu.dot_dimension_numbers<[1], [0], [0], [1], [0, 0, 1, 1], [], []>} : vector<8x128xf32>, vector<128x512xf32>, vector<8x512xf32> -> vector<8x512xf32>
    %116 = arith.addf %113, %115 : vector<8x512xf32>
    %117 = vector.extract_strided_slice %116 {offsets = [0, 0], sizes = [8, 128], strides = [1, 1]} : vector<8x512xf32> to vector<8x128xf32>
    %cst_50 = arith.constant 5.000000e-01 : f32
    %118 = vector.broadcast %cst_50 : f32 to vector<8x128xf32>
    %119 = arith.mulf %118, %117 : vector<8x128xf32>
    %120 = math.tanh %119 : vector<8x128xf32>
    %cst_51 = arith.constant 5.000000e-01 : f32
    %121 = vector.broadcast %cst_51 : f32 to vector<8x128xf32>
    %122 = arith.mulf %121, %120 : vector<8x128xf32>
    %cst_52 = arith.constant 5.000000e-01 : f32
    %123 = vector.broadcast %cst_52 : f32 to vector<8x128xf32>
    %124 = arith.addf %122, %123 : vector<8x128xf32>
    %125 = vector.extract_strided_slice %116 {offsets = [0, 128], sizes = [8, 128], strides = [1, 1]} : vector<8x512xf32> to vector<8x128xf32>
    %cst_53 = arith.constant 5.000000e-01 : f32
    %126 = vector.broadcast %cst_53 : f32 to vector<8x128xf32>
    %127 = arith.mulf %126, %125 : vector<8x128xf32>
    %128 = math.tanh %127 : vector<8x128xf32>
    %cst_54 = arith.constant 5.000000e-01 : f32
    %129 = vector.broadcast %cst_54 : f32 to vector<8x128xf32>
    %130 = arith.mulf %129, %128 : vector<8x128xf32>
    %cst_55 = arith.constant 5.000000e-01 : f32
    %131 = vector.broadcast %cst_55 : f32 to vector<8x128xf32>
    %132 = arith.addf %130, %131 : vector<8x128xf32>
    %133 = vector.extract_strided_slice %116 {offsets = [0, 256], sizes = [8, 128], strides = [1, 1]} : vector<8x512xf32> to vector<8x128xf32>
    %134 = math.tanh %133 : vector<8x128xf32>
    %135 = vector.extract_strided_slice %116 {offsets = [0, 384], sizes = [8, 128], strides = [1, 1]} : vector<8x512xf32> to vector<8x128xf32>
    %cst_56 = arith.constant 5.000000e-01 : f32
    %136 = vector.broadcast %cst_56 : f32 to vector<8x128xf32>
    %137 = arith.mulf %136, %135 : vector<8x128xf32>
    %138 = math.tanh %137 : vector<8x128xf32>
    %cst_57 = arith.constant 5.000000e-01 : f32
    %139 = vector.broadcast %cst_57 : f32 to vector<8x128xf32>
    %140 = arith.mulf %139, %138 : vector<8x128xf32>
    %cst_58 = arith.constant 5.000000e-01 : f32
    %141 = vector.broadcast %cst_58 : f32 to vector<8x128xf32>
    %142 = arith.addf %140, %141 : vector<8x128xf32>
    %143 = arith.mulf %132, %75 : vector<8x128xf32>
    %144 = arith.mulf %124, %134 : vector<8x128xf32>
    %145 = arith.addf %143, %144 : vector<8x128xf32>
    %146 = math.tanh %145 : vector<8x128xf32>
    %147 = arith.mulf %142, %146 : vector<8x128xf32>
    %148 = tpu.concatenate %77, %112 in 1 : vector<8x128xf32>, vector<8x128xf32> -> vector<8x256xf32>
    %c0_59 = arith.constant 0 : index
    %c0_60 = arith.constant 0 : index
    %149 = vector.load %arg10[%c0_59, %c0_60] : memref<256x512xf32, #tpu.memory_space<vmem>>, vector<256x512xf32>
    %cst_61 = arith.constant dense<0.000000e+00> : vector<8x512xf32>
    %150 = tpu.matmul %148, %149, %cst_61 {dimension_numbers = #tpu.dot_dimension_numbers<[1], [0], [0], [1], [0, 0, 1, 1], [], []>} : vector<8x256xf32>, vector<256x512xf32>, vector<8x512xf32> -> vector<8x512xf32>
    %151 = arith.addf %150, %9 : vector<8x512xf32>
    %152 = vector.extract_strided_slice %151 {offsets = [0, 0], sizes = [8, 128], strides = [1, 1]} : vector<8x512xf32> to vector<8x128xf32>
    %cst_62 = arith.constant 5.000000e-01 : f32
    %153 = vector.broadcast %cst_62 : f32 to vector<8x128xf32>
    %154 = arith.mulf %153, %152 : vector<8x128xf32>
    %155 = math.tanh %154 : vector<8x128xf32>
    %cst_63 = arith.constant 5.000000e-01 : f32
    %156 = vector.broadcast %cst_63 : f32 to vector<8x128xf32>
    %157 = arith.mulf %156, %155 : vector<8x128xf32>
    %cst_64 = arith.constant 5.000000e-01 : f32
    %158 = vector.broadcast %cst_64 : f32 to vector<8x128xf32>
    %159 = arith.addf %157, %158 : vector<8x128xf32>
    %160 = vector.extract_strided_slice %151 {offsets = [0, 128], sizes = [8, 128], strides = [1, 1]} : vector<8x512xf32> to vector<8x128xf32>
    %cst_65 = arith.constant 5.000000e-01 : f32
    %161 = vector.broadcast %cst_65 : f32 to vector<8x128xf32>
    %162 = arith.mulf %161, %160 : vector<8x128xf32>
    %163 = math.tanh %162 : vector<8x128xf32>
    %cst_66 = arith.constant 5.000000e-01 : f32
    %164 = vector.broadcast %cst_66 : f32 to vector<8x128xf32>
    %165 = arith.mulf %164, %163 : vector<8x128xf32>
    %cst_67 = arith.constant 5.000000e-01 : f32
    %166 = vector.broadcast %cst_67 : f32 to vector<8x128xf32>
    %167 = arith.addf %165, %166 : vector<8x128xf32>
    %168 = vector.extract_strided_slice %151 {offsets = [0, 256], sizes = [8, 128], strides = [1, 1]} : vector<8x512xf32> to vector<8x128xf32>
    %169 = math.tanh %168 : vector<8x128xf32>
    %170 = vector.extract_strided_slice %151 {offsets = [0, 384], sizes = [8, 128], strides = [1, 1]} : vector<8x512xf32> to vector<8x128xf32>
    %cst_68 = arith.constant 5.000000e-01 : f32
    %171 = vector.broadcast %cst_68 : f32 to vector<8x128xf32>
    %172 = arith.mulf %171, %170 : vector<8x128xf32>
    %173 = math.tanh %172 : vector<8x128xf32>
    %cst_69 = arith.constant 5.000000e-01 : f32
    %174 = vector.broadcast %cst_69 : f32 to vector<8x128xf32>
    %175 = arith.mulf %174, %173 : vector<8x128xf32>
    %cst_70 = arith.constant 5.000000e-01 : f32
    %176 = vector.broadcast %cst_70 : f32 to vector<8x128xf32>
    %177 = arith.addf %175, %176 : vector<8x128xf32>
    %178 = arith.mulf %167, %110 : vector<8x128xf32>
    %179 = arith.mulf %159, %169 : vector<8x128xf32>
    %180 = arith.addf %178, %179 : vector<8x128xf32>
    %181 = math.tanh %180 : vector<8x128xf32>
    %182 = arith.mulf %177, %181 : vector<8x128xf32>
    %c24 = arith.constant 24 : index
    %c0_71 = arith.constant 0 : index
    %183 = vector.load %arg9[%c24, %c0_71] : memref<64x512xf32, #tpu.memory_space<vmem>>, vector<8x512xf32>
    %c0_72 = arith.constant 0 : index
    %c0_73 = arith.constant 0 : index
    %184 = vector.load %arg2[%c0_72, %c0_73] : memref<128x512xf32, #tpu.memory_space<vmem>>, vector<128x512xf32>
    %cst_74 = arith.constant dense<0.000000e+00> : vector<8x512xf32>
    %185 = tpu.matmul %147, %184, %cst_74 {dimension_numbers = #tpu.dot_dimension_numbers<[1], [0], [0], [1], [0, 0, 1, 1], [], []>} : vector<8x128xf32>, vector<128x512xf32>, vector<8x512xf32> -> vector<8x512xf32>
    %186 = arith.addf %183, %185 : vector<8x512xf32>
    %187 = vector.extract_strided_slice %186 {offsets = [0, 0], sizes = [8, 128], strides = [1, 1]} : vector<8x512xf32> to vector<8x128xf32>
    %cst_75 = arith.constant 5.000000e-01 : f32
    %188 = vector.broadcast %cst_75 : f32 to vector<8x128xf32>
    %189 = arith.mulf %188, %187 : vector<8x128xf32>
    %190 = math.tanh %189 : vector<8x128xf32>
    %cst_76 = arith.constant 5.000000e-01 : f32
    %191 = vector.broadcast %cst_76 : f32 to vector<8x128xf32>
    %192 = arith.mulf %191, %190 : vector<8x128xf32>
    %cst_77 = arith.constant 5.000000e-01 : f32
    %193 = vector.broadcast %cst_77 : f32 to vector<8x128xf32>
    %194 = arith.addf %192, %193 : vector<8x128xf32>
    %195 = vector.extract_strided_slice %186 {offsets = [0, 128], sizes = [8, 128], strides = [1, 1]} : vector<8x512xf32> to vector<8x128xf32>
    %cst_78 = arith.constant 5.000000e-01 : f32
    %196 = vector.broadcast %cst_78 : f32 to vector<8x128xf32>
    %197 = arith.mulf %196, %195 : vector<8x128xf32>
    %198 = math.tanh %197 : vector<8x128xf32>
    %cst_79 = arith.constant 5.000000e-01 : f32
    %199 = vector.broadcast %cst_79 : f32 to vector<8x128xf32>
    %200 = arith.mulf %199, %198 : vector<8x128xf32>
    %cst_80 = arith.constant 5.000000e-01 : f32
    %201 = vector.broadcast %cst_80 : f32 to vector<8x128xf32>
    %202 = arith.addf %200, %201 : vector<8x128xf32>
    %203 = vector.extract_strided_slice %186 {offsets = [0, 256], sizes = [8, 128], strides = [1, 1]} : vector<8x512xf32> to vector<8x128xf32>
    %204 = math.tanh %203 : vector<8x128xf32>
    %205 = vector.extract_strided_slice %186 {offsets = [0, 384], sizes = [8, 128], strides = [1, 1]} : vector<8x512xf32> to vector<8x128xf32>
    %cst_81 = arith.constant 5.000000e-01 : f32
    %206 = vector.broadcast %cst_81 : f32 to vector<8x128xf32>
    %207 = arith.mulf %206, %205 : vector<8x128xf32>
    %208 = math.tanh %207 : vector<8x128xf32>
    %cst_82 = arith.constant 5.000000e-01 : f32
    %209 = vector.broadcast %cst_82 : f32 to vector<8x128xf32>
    %210 = arith.mulf %209, %208 : vector<8x128xf32>
    %cst_83 = arith.constant 5.000000e-01 : f32
    %211 = vector.broadcast %cst_83 : f32 to vector<8x128xf32>
    %212 = arith.addf %210, %211 : vector<8x128xf32>
    %213 = arith.mulf %202, %145 : vector<8x128xf32>
    %214 = arith.mulf %194, %204 : vector<8x128xf32>
    %215 = arith.addf %213, %214 : vector<8x128xf32>
    %216 = math.tanh %215 : vector<8x128xf32>
    %217 = arith.mulf %212, %216 : vector<8x128xf32>
    %218 = tpu.concatenate %147, %182 in 1 : vector<8x128xf32>, vector<8x128xf32> -> vector<8x256xf32>
    %c0_84 = arith.constant 0 : index
    %c0_85 = arith.constant 0 : index
    %219 = vector.load %arg10[%c0_84, %c0_85] : memref<256x512xf32, #tpu.memory_space<vmem>>, vector<256x512xf32>
    %cst_86 = arith.constant dense<0.000000e+00> : vector<8x512xf32>
    %220 = tpu.matmul %218, %219, %cst_86 {dimension_numbers = #tpu.dot_dimension_numbers<[1], [0], [0], [1], [0, 0, 1, 1], [], []>} : vector<8x256xf32>, vector<256x512xf32>, vector<8x512xf32> -> vector<8x512xf32>
    %221 = arith.addf %220, %9 : vector<8x512xf32>
    %222 = vector.extract_strided_slice %221 {offsets = [0, 0], sizes = [8, 128], strides = [1, 1]} : vector<8x512xf32> to vector<8x128xf32>
    %cst_87 = arith.constant 5.000000e-01 : f32
    %223 = vector.broadcast %cst_87 : f32 to vector<8x128xf32>
    %224 = arith.mulf %223, %222 : vector<8x128xf32>
    %225 = math.tanh %224 : vector<8x128xf32>
    %cst_88 = arith.constant 5.000000e-01 : f32
    %226 = vector.broadcast %cst_88 : f32 to vector<8x128xf32>
    %227 = arith.mulf %226, %225 : vector<8x128xf32>
    %cst_89 = arith.constant 5.000000e-01 : f32
    %228 = vector.broadcast %cst_89 : f32 to vector<8x128xf32>
    %229 = arith.addf %227, %228 : vector<8x128xf32>
    %230 = vector.extract_strided_slice %221 {offsets = [0, 128], sizes = [8, 128], strides = [1, 1]} : vector<8x512xf32> to vector<8x128xf32>
    %cst_90 = arith.constant 5.000000e-01 : f32
    %231 = vector.broadcast %cst_90 : f32 to vector<8x128xf32>
    %232 = arith.mulf %231, %230 : vector<8x128xf32>
    %233 = math.tanh %232 : vector<8x128xf32>
    %cst_91 = arith.constant 5.000000e-01 : f32
    %234 = vector.broadcast %cst_91 : f32 to vector<8x128xf32>
    %235 = arith.mulf %234, %233 : vector<8x128xf32>
    %cst_92 = arith.constant 5.000000e-01 : f32
    %236 = vector.broadcast %cst_92 : f32 to vector<8x128xf32>
    %237 = arith.addf %235, %236 : vector<8x128xf32>
    %238 = vector.extract_strided_slice %221 {offsets = [0, 256], sizes = [8, 128], strides = [1, 1]} : vector<8x512xf32> to vector<8x128xf32>
    %239 = math.tanh %238 : vector<8x128xf32>
    %240 = vector.extract_strided_slice %221 {offsets = [0, 384], sizes = [8, 128], strides = [1, 1]} : vector<8x512xf32> to vector<8x128xf32>
    %cst_93 = arith.constant 5.000000e-01 : f32
    %241 = vector.broadcast %cst_93 : f32 to vector<8x128xf32>
    %242 = arith.mulf %241, %240 : vector<8x128xf32>
    %243 = math.tanh %242 : vector<8x128xf32>
    %cst_94 = arith.constant 5.000000e-01 : f32
    %244 = vector.broadcast %cst_94 : f32 to vector<8x128xf32>
    %245 = arith.mulf %244, %243 : vector<8x128xf32>
    %cst_95 = arith.constant 5.000000e-01 : f32
    %246 = vector.broadcast %cst_95 : f32 to vector<8x128xf32>
    %247 = arith.addf %245, %246 : vector<8x128xf32>
    %248 = arith.mulf %237, %180 : vector<8x128xf32>
    %249 = arith.mulf %229, %239 : vector<8x128xf32>
    %250 = arith.addf %248, %249 : vector<8x128xf32>
    %251 = math.tanh %250 : vector<8x128xf32>
    %252 = arith.mulf %247, %251 : vector<8x128xf32>
    %c32 = arith.constant 32 : index
    %c0_96 = arith.constant 0 : index
    %253 = vector.load %arg9[%c32, %c0_96] : memref<64x512xf32, #tpu.memory_space<vmem>>, vector<8x512xf32>
    %c0_97 = arith.constant 0 : index
    %c0_98 = arith.constant 0 : index
    %254 = vector.load %arg2[%c0_97, %c0_98] : memref<128x512xf32, #tpu.memory_space<vmem>>, vector<128x512xf32>
    %cst_99 = arith.constant dense<0.000000e+00> : vector<8x512xf32>
    %255 = tpu.matmul %217, %254, %cst_99 {dimension_numbers = #tpu.dot_dimension_numbers<[1], [0], [0], [1], [0, 0, 1, 1], [], []>} : vector<8x128xf32>, vector<128x512xf32>, vector<8x512xf32> -> vector<8x512xf32>
    %256 = arith.addf %253, %255 : vector<8x512xf32>
    %257 = vector.extract_strided_slice %256 {offsets = [0, 0], sizes = [8, 128], strides = [1, 1]} : vector<8x512xf32> to vector<8x128xf32>
    %cst_100 = arith.constant 5.000000e-01 : f32
    %258 = vector.broadcast %cst_100 : f32 to vector<8x128xf32>
    %259 = arith.mulf %258, %257 : vector<8x128xf32>
    %260 = math.tanh %259 : vector<8x128xf32>
    %cst_101 = arith.constant 5.000000e-01 : f32
    %261 = vector.broadcast %cst_101 : f32 to vector<8x128xf32>
    %262 = arith.mulf %261, %260 : vector<8x128xf32>
    %cst_102 = arith.constant 5.000000e-01 : f32
    %263 = vector.broadcast %cst_102 : f32 to vector<8x128xf32>
    %264 = arith.addf %262, %263 : vector<8x128xf32>
    %265 = vector.extract_strided_slice %256 {offsets = [0, 128], sizes = [8, 128], strides = [1, 1]} : vector<8x512xf32> to vector<8x128xf32>
    %cst_103 = arith.constant 5.000000e-01 : f32
    %266 = vector.broadcast %cst_103 : f32 to vector<8x128xf32>
    %267 = arith.mulf %266, %265 : vector<8x128xf32>
    %268 = math.tanh %267 : vector<8x128xf32>
    %cst_104 = arith.constant 5.000000e-01 : f32
    %269 = vector.broadcast %cst_104 : f32 to vector<8x128xf32>
    %270 = arith.mulf %269, %268 : vector<8x128xf32>
    %cst_105 = arith.constant 5.000000e-01 : f32
    %271 = vector.broadcast %cst_105 : f32 to vector<8x128xf32>
    %272 = arith.addf %270, %271 : vector<8x128xf32>
    %273 = vector.extract_strided_slice %256 {offsets = [0, 256], sizes = [8, 128], strides = [1, 1]} : vector<8x512xf32> to vector<8x128xf32>
    %274 = math.tanh %273 : vector<8x128xf32>
    %275 = vector.extract_strided_slice %256 {offsets = [0, 384], sizes = [8, 128], strides = [1, 1]} : vector<8x512xf32> to vector<8x128xf32>
    %cst_106 = arith.constant 5.000000e-01 : f32
    %276 = vector.broadcast %cst_106 : f32 to vector<8x128xf32>
    %277 = arith.mulf %276, %275 : vector<8x128xf32>
    %278 = math.tanh %277 : vector<8x128xf32>
    %cst_107 = arith.constant 5.000000e-01 : f32
    %279 = vector.broadcast %cst_107 : f32 to vector<8x128xf32>
    %280 = arith.mulf %279, %278 : vector<8x128xf32>
    %cst_108 = arith.constant 5.000000e-01 : f32
    %281 = vector.broadcast %cst_108 : f32 to vector<8x128xf32>
    %282 = arith.addf %280, %281 : vector<8x128xf32>
    %283 = arith.mulf %272, %215 : vector<8x128xf32>
    %284 = arith.mulf %264, %274 : vector<8x128xf32>
    %285 = arith.addf %283, %284 : vector<8x128xf32>
    %286 = math.tanh %285 : vector<8x128xf32>
    %287 = arith.mulf %282, %286 : vector<8x128xf32>
    %288 = tpu.concatenate %217, %252 in 1 : vector<8x128xf32>, vector<8x128xf32> -> vector<8x256xf32>
    %c0_109 = arith.constant 0 : index
    %c0_110 = arith.constant 0 : index
    %289 = vector.load %arg10[%c0_109, %c0_110] : memref<256x512xf32, #tpu.memory_space<vmem>>, vector<256x512xf32>
    %cst_111 = arith.constant dense<0.000000e+00> : vector<8x512xf32>
    %290 = tpu.matmul %288, %289, %cst_111 {dimension_numbers = #tpu.dot_dimension_numbers<[1], [0], [0], [1], [0, 0, 1, 1], [], []>} : vector<8x256xf32>, vector<256x512xf32>, vector<8x512xf32> -> vector<8x512xf32>
    %291 = arith.addf %290, %9 : vector<8x512xf32>
    %292 = vector.extract_strided_slice %291 {offsets = [0, 0], sizes = [8, 128], strides = [1, 1]} : vector<8x512xf32> to vector<8x128xf32>
    %cst_112 = arith.constant 5.000000e-01 : f32
    %293 = vector.broadcast %cst_112 : f32 to vector<8x128xf32>
    %294 = arith.mulf %293, %292 : vector<8x128xf32>
    %295 = math.tanh %294 : vector<8x128xf32>
    %cst_113 = arith.constant 5.000000e-01 : f32
    %296 = vector.broadcast %cst_113 : f32 to vector<8x128xf32>
    %297 = arith.mulf %296, %295 : vector<8x128xf32>
    %cst_114 = arith.constant 5.000000e-01 : f32
    %298 = vector.broadcast %cst_114 : f32 to vector<8x128xf32>
    %299 = arith.addf %297, %298 : vector<8x128xf32>
    %300 = vector.extract_strided_slice %291 {offsets = [0, 128], sizes = [8, 128], strides = [1, 1]} : vector<8x512xf32> to vector<8x128xf32>
    %cst_115 = arith.constant 5.000000e-01 : f32
    %301 = vector.broadcast %cst_115 : f32 to vector<8x128xf32>
    %302 = arith.mulf %301, %300 : vector<8x128xf32>
    %303 = math.tanh %302 : vector<8x128xf32>
    %cst_116 = arith.constant 5.000000e-01 : f32
    %304 = vector.broadcast %cst_116 : f32 to vector<8x128xf32>
    %305 = arith.mulf %304, %303 : vector<8x128xf32>
    %cst_117 = arith.constant 5.000000e-01 : f32
    %306 = vector.broadcast %cst_117 : f32 to vector<8x128xf32>
    %307 = arith.addf %305, %306 : vector<8x128xf32>
    %308 = vector.extract_strided_slice %291 {offsets = [0, 256], sizes = [8, 128], strides = [1, 1]} : vector<8x512xf32> to vector<8x128xf32>
    %309 = math.tanh %308 : vector<8x128xf32>
    %310 = vector.extract_strided_slice %291 {offsets = [0, 384], sizes = [8, 128], strides = [1, 1]} : vector<8x512xf32> to vector<8x128xf32>
    %cst_118 = arith.constant 5.000000e-01 : f32
    %311 = vector.broadcast %cst_118 : f32 to vector<8x128xf32>
    %312 = arith.mulf %311, %310 : vector<8x128xf32>
    %313 = math.tanh %312 : vector<8x128xf32>
    %cst_119 = arith.constant 5.000000e-01 : f32
    %314 = vector.broadcast %cst_119 : f32 to vector<8x128xf32>
    %315 = arith.mulf %314, %313 : vector<8x128xf32>
    %cst_120 = arith.constant 5.000000e-01 : f32
    %316 = vector.broadcast %cst_120 : f32 to vector<8x128xf32>
    %317 = arith.addf %315, %316 : vector<8x128xf32>
    %318 = arith.mulf %307, %250 : vector<8x128xf32>
    %319 = arith.mulf %299, %309 : vector<8x128xf32>
    %320 = arith.addf %318, %319 : vector<8x128xf32>
    %321 = math.tanh %320 : vector<8x128xf32>
    %322 = arith.mulf %317, %321 : vector<8x128xf32>
    %c40 = arith.constant 40 : index
    %c0_121 = arith.constant 0 : index
    %323 = vector.load %arg9[%c40, %c0_121] : memref<64x512xf32, #tpu.memory_space<vmem>>, vector<8x512xf32>
    %c0_122 = arith.constant 0 : index
    %c0_123 = arith.constant 0 : index
    %324 = vector.load %arg2[%c0_122, %c0_123] : memref<128x512xf32, #tpu.memory_space<vmem>>, vector<128x512xf32>
    %cst_124 = arith.constant dense<0.000000e+00> : vector<8x512xf32>
    %325 = tpu.matmul %287, %324, %cst_124 {dimension_numbers = #tpu.dot_dimension_numbers<[1], [0], [0], [1], [0, 0, 1, 1], [], []>} : vector<8x128xf32>, vector<128x512xf32>, vector<8x512xf32> -> vector<8x512xf32>
    %326 = arith.addf %323, %325 : vector<8x512xf32>
    %327 = vector.extract_strided_slice %326 {offsets = [0, 0], sizes = [8, 128], strides = [1, 1]} : vector<8x512xf32> to vector<8x128xf32>
    %cst_125 = arith.constant 5.000000e-01 : f32
    %328 = vector.broadcast %cst_125 : f32 to vector<8x128xf32>
    %329 = arith.mulf %328, %327 : vector<8x128xf32>
    %330 = math.tanh %329 : vector<8x128xf32>
    %cst_126 = arith.constant 5.000000e-01 : f32
    %331 = vector.broadcast %cst_126 : f32 to vector<8x128xf32>
    %332 = arith.mulf %331, %330 : vector<8x128xf32>
    %cst_127 = arith.constant 5.000000e-01 : f32
    %333 = vector.broadcast %cst_127 : f32 to vector<8x128xf32>
    %334 = arith.addf %332, %333 : vector<8x128xf32>
    %335 = vector.extract_strided_slice %326 {offsets = [0, 128], sizes = [8, 128], strides = [1, 1]} : vector<8x512xf32> to vector<8x128xf32>
    %cst_128 = arith.constant 5.000000e-01 : f32
    %336 = vector.broadcast %cst_128 : f32 to vector<8x128xf32>
    %337 = arith.mulf %336, %335 : vector<8x128xf32>
    %338 = math.tanh %337 : vector<8x128xf32>
    %cst_129 = arith.constant 5.000000e-01 : f32
    %339 = vector.broadcast %cst_129 : f32 to vector<8x128xf32>
    %340 = arith.mulf %339, %338 : vector<8x128xf32>
    %cst_130 = arith.constant 5.000000e-01 : f32
    %341 = vector.broadcast %cst_130 : f32 to vector<8x128xf32>
    %342 = arith.addf %340, %341 : vector<8x128xf32>
    %343 = vector.extract_strided_slice %326 {offsets = [0, 256], sizes = [8, 128], strides = [1, 1]} : vector<8x512xf32> to vector<8x128xf32>
    %344 = math.tanh %343 : vector<8x128xf32>
    %345 = vector.extract_strided_slice %326 {offsets = [0, 384], sizes = [8, 128], strides = [1, 1]} : vector<8x512xf32> to vector<8x128xf32>
    %cst_131 = arith.constant 5.000000e-01 : f32
    %346 = vector.broadcast %cst_131 : f32 to vector<8x128xf32>
    %347 = arith.mulf %346, %345 : vector<8x128xf32>
    %348 = math.tanh %347 : vector<8x128xf32>
    %cst_132 = arith.constant 5.000000e-01 : f32
    %349 = vector.broadcast %cst_132 : f32 to vector<8x128xf32>
    %350 = arith.mulf %349, %348 : vector<8x128xf32>
    %cst_133 = arith.constant 5.000000e-01 : f32
    %351 = vector.broadcast %cst_133 : f32 to vector<8x128xf32>
    %352 = arith.addf %350, %351 : vector<8x128xf32>
    %353 = arith.mulf %342, %285 : vector<8x128xf32>
    %354 = arith.mulf %334, %344 : vector<8x128xf32>
    %355 = arith.addf %353, %354 : vector<8x128xf32>
    %356 = math.tanh %355 : vector<8x128xf32>
    %357 = arith.mulf %352, %356 : vector<8x128xf32>
    %358 = tpu.concatenate %287, %322 in 1 : vector<8x128xf32>, vector<8x128xf32> -> vector<8x256xf32>
    %c0_134 = arith.constant 0 : index
    %c0_135 = arith.constant 0 : index
    %359 = vector.load %arg10[%c0_134, %c0_135] : memref<256x512xf32, #tpu.memory_space<vmem>>, vector<256x512xf32>
    %cst_136 = arith.constant dense<0.000000e+00> : vector<8x512xf32>
    %360 = tpu.matmul %358, %359, %cst_136 {dimension_numbers = #tpu.dot_dimension_numbers<[1], [0], [0], [1], [0, 0, 1, 1], [], []>} : vector<8x256xf32>, vector<256x512xf32>, vector<8x512xf32> -> vector<8x512xf32>
    %361 = arith.addf %360, %9 : vector<8x512xf32>
    %362 = vector.extract_strided_slice %361 {offsets = [0, 0], sizes = [8, 128], strides = [1, 1]} : vector<8x512xf32> to vector<8x128xf32>
    %cst_137 = arith.constant 5.000000e-01 : f32
    %363 = vector.broadcast %cst_137 : f32 to vector<8x128xf32>
    %364 = arith.mulf %363, %362 : vector<8x128xf32>
    %365 = math.tanh %364 : vector<8x128xf32>
    %cst_138 = arith.constant 5.000000e-01 : f32
    %366 = vector.broadcast %cst_138 : f32 to vector<8x128xf32>
    %367 = arith.mulf %366, %365 : vector<8x128xf32>
    %cst_139 = arith.constant 5.000000e-01 : f32
    %368 = vector.broadcast %cst_139 : f32 to vector<8x128xf32>
    %369 = arith.addf %367, %368 : vector<8x128xf32>
    %370 = vector.extract_strided_slice %361 {offsets = [0, 128], sizes = [8, 128], strides = [1, 1]} : vector<8x512xf32> to vector<8x128xf32>
    %cst_140 = arith.constant 5.000000e-01 : f32
    %371 = vector.broadcast %cst_140 : f32 to vector<8x128xf32>
    %372 = arith.mulf %371, %370 : vector<8x128xf32>
    %373 = math.tanh %372 : vector<8x128xf32>
    %cst_141 = arith.constant 5.000000e-01 : f32
    %374 = vector.broadcast %cst_141 : f32 to vector<8x128xf32>
    %375 = arith.mulf %374, %373 : vector<8x128xf32>
    %cst_142 = arith.constant 5.000000e-01 : f32
    %376 = vector.broadcast %cst_142 : f32 to vector<8x128xf32>
    %377 = arith.addf %375, %376 : vector<8x128xf32>
    %378 = vector.extract_strided_slice %361 {offsets = [0, 256], sizes = [8, 128], strides = [1, 1]} : vector<8x512xf32> to vector<8x128xf32>
    %379 = math.tanh %378 : vector<8x128xf32>
    %380 = vector.extract_strided_slice %361 {offsets = [0, 384], sizes = [8, 128], strides = [1, 1]} : vector<8x512xf32> to vector<8x128xf32>
    %cst_143 = arith.constant 5.000000e-01 : f32
    %381 = vector.broadcast %cst_143 : f32 to vector<8x128xf32>
    %382 = arith.mulf %381, %380 : vector<8x128xf32>
    %383 = math.tanh %382 : vector<8x128xf32>
    %cst_144 = arith.constant 5.000000e-01 : f32
    %384 = vector.broadcast %cst_144 : f32 to vector<8x128xf32>
    %385 = arith.mulf %384, %383 : vector<8x128xf32>
    %cst_145 = arith.constant 5.000000e-01 : f32
    %386 = vector.broadcast %cst_145 : f32 to vector<8x128xf32>
    %387 = arith.addf %385, %386 : vector<8x128xf32>
    %388 = arith.mulf %377, %320 : vector<8x128xf32>
    %389 = arith.mulf %369, %379 : vector<8x128xf32>
    %390 = arith.addf %388, %389 : vector<8x128xf32>
    %391 = math.tanh %390 : vector<8x128xf32>
    %392 = arith.mulf %387, %391 : vector<8x128xf32>
    %c48 = arith.constant 48 : index
    %c0_146 = arith.constant 0 : index
    %393 = vector.load %arg9[%c48, %c0_146] : memref<64x512xf32, #tpu.memory_space<vmem>>, vector<8x512xf32>
    %c0_147 = arith.constant 0 : index
    %c0_148 = arith.constant 0 : index
    %394 = vector.load %arg2[%c0_147, %c0_148] : memref<128x512xf32, #tpu.memory_space<vmem>>, vector<128x512xf32>
    %cst_149 = arith.constant dense<0.000000e+00> : vector<8x512xf32>
    %395 = tpu.matmul %357, %394, %cst_149 {dimension_numbers = #tpu.dot_dimension_numbers<[1], [0], [0], [1], [0, 0, 1, 1], [], []>} : vector<8x128xf32>, vector<128x512xf32>, vector<8x512xf32> -> vector<8x512xf32>
    %396 = arith.addf %393, %395 : vector<8x512xf32>
    %397 = vector.extract_strided_slice %396 {offsets = [0, 0], sizes = [8, 128], strides = [1, 1]} : vector<8x512xf32> to vector<8x128xf32>
    %cst_150 = arith.constant 5.000000e-01 : f32
    %398 = vector.broadcast %cst_150 : f32 to vector<8x128xf32>
    %399 = arith.mulf %398, %397 : vector<8x128xf32>
    %400 = math.tanh %399 : vector<8x128xf32>
    %cst_151 = arith.constant 5.000000e-01 : f32
    %401 = vector.broadcast %cst_151 : f32 to vector<8x128xf32>
    %402 = arith.mulf %401, %400 : vector<8x128xf32>
    %cst_152 = arith.constant 5.000000e-01 : f32
    %403 = vector.broadcast %cst_152 : f32 to vector<8x128xf32>
    %404 = arith.addf %402, %403 : vector<8x128xf32>
    %405 = vector.extract_strided_slice %396 {offsets = [0, 128], sizes = [8, 128], strides = [1, 1]} : vector<8x512xf32> to vector<8x128xf32>
    %cst_153 = arith.constant 5.000000e-01 : f32
    %406 = vector.broadcast %cst_153 : f32 to vector<8x128xf32>
    %407 = arith.mulf %406, %405 : vector<8x128xf32>
    %408 = math.tanh %407 : vector<8x128xf32>
    %cst_154 = arith.constant 5.000000e-01 : f32
    %409 = vector.broadcast %cst_154 : f32 to vector<8x128xf32>
    %410 = arith.mulf %409, %408 : vector<8x128xf32>
    %cst_155 = arith.constant 5.000000e-01 : f32
    %411 = vector.broadcast %cst_155 : f32 to vector<8x128xf32>
    %412 = arith.addf %410, %411 : vector<8x128xf32>
    %413 = vector.extract_strided_slice %396 {offsets = [0, 256], sizes = [8, 128], strides = [1, 1]} : vector<8x512xf32> to vector<8x128xf32>
    %414 = math.tanh %413 : vector<8x128xf32>
    %415 = vector.extract_strided_slice %396 {offsets = [0, 384], sizes = [8, 128], strides = [1, 1]} : vector<8x512xf32> to vector<8x128xf32>
    %cst_156 = arith.constant 5.000000e-01 : f32
    %416 = vector.broadcast %cst_156 : f32 to vector<8x128xf32>
    %417 = arith.mulf %416, %415 : vector<8x128xf32>
    %418 = math.tanh %417 : vector<8x128xf32>
    %cst_157 = arith.constant 5.000000e-01 : f32
    %419 = vector.broadcast %cst_157 : f32 to vector<8x128xf32>
    %420 = arith.mulf %419, %418 : vector<8x128xf32>
    %cst_158 = arith.constant 5.000000e-01 : f32
    %421 = vector.broadcast %cst_158 : f32 to vector<8x128xf32>
    %422 = arith.addf %420, %421 : vector<8x128xf32>
    %423 = arith.mulf %412, %355 : vector<8x128xf32>
    %424 = arith.mulf %404, %414 : vector<8x128xf32>
    %425 = arith.addf %423, %424 : vector<8x128xf32>
    %426 = math.tanh %425 : vector<8x128xf32>
    %427 = arith.mulf %422, %426 : vector<8x128xf32>
    %428 = tpu.concatenate %357, %392 in 1 : vector<8x128xf32>, vector<8x128xf32> -> vector<8x256xf32>
    %c0_159 = arith.constant 0 : index
    %c0_160 = arith.constant 0 : index
    %429 = vector.load %arg10[%c0_159, %c0_160] : memref<256x512xf32, #tpu.memory_space<vmem>>, vector<256x512xf32>
    %cst_161 = arith.constant dense<0.000000e+00> : vector<8x512xf32>
    %430 = tpu.matmul %428, %429, %cst_161 {dimension_numbers = #tpu.dot_dimension_numbers<[1], [0], [0], [1], [0, 0, 1, 1], [], []>} : vector<8x256xf32>, vector<256x512xf32>, vector<8x512xf32> -> vector<8x512xf32>
    %431 = arith.addf %430, %9 : vector<8x512xf32>
    %432 = vector.extract_strided_slice %431 {offsets = [0, 0], sizes = [8, 128], strides = [1, 1]} : vector<8x512xf32> to vector<8x128xf32>
    %cst_162 = arith.constant 5.000000e-01 : f32
    %433 = vector.broadcast %cst_162 : f32 to vector<8x128xf32>
    %434 = arith.mulf %433, %432 : vector<8x128xf32>
    %435 = math.tanh %434 : vector<8x128xf32>
    %cst_163 = arith.constant 5.000000e-01 : f32
    %436 = vector.broadcast %cst_163 : f32 to vector<8x128xf32>
    %437 = arith.mulf %436, %435 : vector<8x128xf32>
    %cst_164 = arith.constant 5.000000e-01 : f32
    %438 = vector.broadcast %cst_164 : f32 to vector<8x128xf32>
    %439 = arith.addf %437, %438 : vector<8x128xf32>
    %440 = vector.extract_strided_slice %431 {offsets = [0, 128], sizes = [8, 128], strides = [1, 1]} : vector<8x512xf32> to vector<8x128xf32>
    %cst_165 = arith.constant 5.000000e-01 : f32
    %441 = vector.broadcast %cst_165 : f32 to vector<8x128xf32>
    %442 = arith.mulf %441, %440 : vector<8x128xf32>
    %443 = math.tanh %442 : vector<8x128xf32>
    %cst_166 = arith.constant 5.000000e-01 : f32
    %444 = vector.broadcast %cst_166 : f32 to vector<8x128xf32>
    %445 = arith.mulf %444, %443 : vector<8x128xf32>
    %cst_167 = arith.constant 5.000000e-01 : f32
    %446 = vector.broadcast %cst_167 : f32 to vector<8x128xf32>
    %447 = arith.addf %445, %446 : vector<8x128xf32>
    %448 = vector.extract_strided_slice %431 {offsets = [0, 256], sizes = [8, 128], strides = [1, 1]} : vector<8x512xf32> to vector<8x128xf32>
    %449 = math.tanh %448 : vector<8x128xf32>
    %450 = vector.extract_strided_slice %431 {offsets = [0, 384], sizes = [8, 128], strides = [1, 1]} : vector<8x512xf32> to vector<8x128xf32>
    %cst_168 = arith.constant 5.000000e-01 : f32
    %451 = vector.broadcast %cst_168 : f32 to vector<8x128xf32>
    %452 = arith.mulf %451, %450 : vector<8x128xf32>
    %453 = math.tanh %452 : vector<8x128xf32>
    %cst_169 = arith.constant 5.000000e-01 : f32
    %454 = vector.broadcast %cst_169 : f32 to vector<8x128xf32>
    %455 = arith.mulf %454, %453 : vector<8x128xf32>
    %cst_170 = arith.constant 5.000000e-01 : f32
    %456 = vector.broadcast %cst_170 : f32 to vector<8x128xf32>
    %457 = arith.addf %455, %456 : vector<8x128xf32>
    %458 = arith.mulf %447, %390 : vector<8x128xf32>
    %459 = arith.mulf %439, %449 : vector<8x128xf32>
    %460 = arith.addf %458, %459 : vector<8x128xf32>
    %461 = math.tanh %460 : vector<8x128xf32>
    %462 = arith.mulf %457, %461 : vector<8x128xf32>
    %c56 = arith.constant 56 : index
    %c0_171 = arith.constant 0 : index
    %463 = vector.load %arg9[%c56, %c0_171] : memref<64x512xf32, #tpu.memory_space<vmem>>, vector<8x512xf32>
    %c0_172 = arith.constant 0 : index
    %c0_173 = arith.constant 0 : index
    %464 = vector.load %arg2[%c0_172, %c0_173] : memref<128x512xf32, #tpu.memory_space<vmem>>, vector<128x512xf32>
    %cst_174 = arith.constant dense<0.000000e+00> : vector<8x512xf32>
    %465 = tpu.matmul %427, %464, %cst_174 {dimension_numbers = #tpu.dot_dimension_numbers<[1], [0], [0], [1], [0, 0, 1, 1], [], []>} : vector<8x128xf32>, vector<128x512xf32>, vector<8x512xf32> -> vector<8x512xf32>
    %466 = arith.addf %463, %465 : vector<8x512xf32>
    %467 = vector.extract_strided_slice %466 {offsets = [0, 0], sizes = [8, 128], strides = [1, 1]} : vector<8x512xf32> to vector<8x128xf32>
    %cst_175 = arith.constant 5.000000e-01 : f32
    %468 = vector.broadcast %cst_175 : f32 to vector<8x128xf32>
    %469 = arith.mulf %468, %467 : vector<8x128xf32>
    %470 = math.tanh %469 : vector<8x128xf32>
    %cst_176 = arith.constant 5.000000e-01 : f32
    %471 = vector.broadcast %cst_176 : f32 to vector<8x128xf32>
    %472 = arith.mulf %471, %470 : vector<8x128xf32>
    %cst_177 = arith.constant 5.000000e-01 : f32
    %473 = vector.broadcast %cst_177 : f32 to vector<8x128xf32>
    %474 = arith.addf %472, %473 : vector<8x128xf32>
    %475 = vector.extract_strided_slice %466 {offsets = [0, 128], sizes = [8, 128], strides = [1, 1]} : vector<8x512xf32> to vector<8x128xf32>
    %cst_178 = arith.constant 5.000000e-01 : f32
    %476 = vector.broadcast %cst_178 : f32 to vector<8x128xf32>
    %477 = arith.mulf %476, %475 : vector<8x128xf32>
    %478 = math.tanh %477 : vector<8x128xf32>
    %cst_179 = arith.constant 5.000000e-01 : f32
    %479 = vector.broadcast %cst_179 : f32 to vector<8x128xf32>
    %480 = arith.mulf %479, %478 : vector<8x128xf32>
    %cst_180 = arith.constant 5.000000e-01 : f32
    %481 = vector.broadcast %cst_180 : f32 to vector<8x128xf32>
    %482 = arith.addf %480, %481 : vector<8x128xf32>
    %483 = vector.extract_strided_slice %466 {offsets = [0, 256], sizes = [8, 128], strides = [1, 1]} : vector<8x512xf32> to vector<8x128xf32>
    %484 = math.tanh %483 : vector<8x128xf32>
    %485 = vector.extract_strided_slice %466 {offsets = [0, 384], sizes = [8, 128], strides = [1, 1]} : vector<8x512xf32> to vector<8x128xf32>
    %cst_181 = arith.constant 5.000000e-01 : f32
    %486 = vector.broadcast %cst_181 : f32 to vector<8x128xf32>
    %487 = arith.mulf %486, %485 : vector<8x128xf32>
    %488 = math.tanh %487 : vector<8x128xf32>
    %cst_182 = arith.constant 5.000000e-01 : f32
    %489 = vector.broadcast %cst_182 : f32 to vector<8x128xf32>
    %490 = arith.mulf %489, %488 : vector<8x128xf32>
    %cst_183 = arith.constant 5.000000e-01 : f32
    %491 = vector.broadcast %cst_183 : f32 to vector<8x128xf32>
    %492 = arith.addf %490, %491 : vector<8x128xf32>
    %493 = arith.mulf %482, %425 : vector<8x128xf32>
    %494 = arith.mulf %474, %484 : vector<8x128xf32>
    %495 = arith.addf %493, %494 : vector<8x128xf32>
    %496 = math.tanh %495 : vector<8x128xf32>
    %497 = arith.mulf %492, %496 : vector<8x128xf32>
    %498 = tpu.concatenate %427, %462 in 1 : vector<8x128xf32>, vector<8x128xf32> -> vector<8x256xf32>
    %c0_184 = arith.constant 0 : index
    %c0_185 = arith.constant 0 : index
    %499 = vector.load %arg10[%c0_184, %c0_185] : memref<256x512xf32, #tpu.memory_space<vmem>>, vector<256x512xf32>
    %cst_186 = arith.constant dense<0.000000e+00> : vector<8x512xf32>
    %500 = tpu.matmul %498, %499, %cst_186 {dimension_numbers = #tpu.dot_dimension_numbers<[1], [0], [0], [1], [0, 0, 1, 1], [], []>} : vector<8x256xf32>, vector<256x512xf32>, vector<8x512xf32> -> vector<8x512xf32>
    %501 = arith.addf %500, %9 : vector<8x512xf32>
    %502 = vector.extract_strided_slice %501 {offsets = [0, 0], sizes = [8, 128], strides = [1, 1]} : vector<8x512xf32> to vector<8x128xf32>
    %cst_187 = arith.constant 5.000000e-01 : f32
    %503 = vector.broadcast %cst_187 : f32 to vector<8x128xf32>
    %504 = arith.mulf %503, %502 : vector<8x128xf32>
    %505 = math.tanh %504 : vector<8x128xf32>
    %cst_188 = arith.constant 5.000000e-01 : f32
    %506 = vector.broadcast %cst_188 : f32 to vector<8x128xf32>
    %507 = arith.mulf %506, %505 : vector<8x128xf32>
    %cst_189 = arith.constant 5.000000e-01 : f32
    %508 = vector.broadcast %cst_189 : f32 to vector<8x128xf32>
    %509 = arith.addf %507, %508 : vector<8x128xf32>
    %510 = vector.extract_strided_slice %501 {offsets = [0, 128], sizes = [8, 128], strides = [1, 1]} : vector<8x512xf32> to vector<8x128xf32>
    %cst_190 = arith.constant 5.000000e-01 : f32
    %511 = vector.broadcast %cst_190 : f32 to vector<8x128xf32>
    %512 = arith.mulf %511, %510 : vector<8x128xf32>
    %513 = math.tanh %512 : vector<8x128xf32>
    %cst_191 = arith.constant 5.000000e-01 : f32
    %514 = vector.broadcast %cst_191 : f32 to vector<8x128xf32>
    %515 = arith.mulf %514, %513 : vector<8x128xf32>
    %cst_192 = arith.constant 5.000000e-01 : f32
    %516 = vector.broadcast %cst_192 : f32 to vector<8x128xf32>
    %517 = arith.addf %515, %516 : vector<8x128xf32>
    %518 = vector.extract_strided_slice %501 {offsets = [0, 256], sizes = [8, 128], strides = [1, 1]} : vector<8x512xf32> to vector<8x128xf32>
    %519 = math.tanh %518 : vector<8x128xf32>
    %520 = vector.extract_strided_slice %501 {offsets = [0, 384], sizes = [8, 128], strides = [1, 1]} : vector<8x512xf32> to vector<8x128xf32>
    %cst_193 = arith.constant 5.000000e-01 : f32
    %521 = vector.broadcast %cst_193 : f32 to vector<8x128xf32>
    %522 = arith.mulf %521, %520 : vector<8x128xf32>
    %523 = math.tanh %522 : vector<8x128xf32>
    %cst_194 = arith.constant 5.000000e-01 : f32
    %524 = vector.broadcast %cst_194 : f32 to vector<8x128xf32>
    %525 = arith.mulf %524, %523 : vector<8x128xf32>
    %cst_195 = arith.constant 5.000000e-01 : f32
    %526 = vector.broadcast %cst_195 : f32 to vector<8x128xf32>
    %527 = arith.addf %525, %526 : vector<8x128xf32>
    %528 = arith.mulf %517, %460 : vector<8x128xf32>
    %529 = arith.mulf %509, %519 : vector<8x128xf32>
    %530 = arith.addf %528, %529 : vector<8x128xf32>
    %531 = math.tanh %530 : vector<8x128xf32>
    %532 = arith.mulf %527, %531 : vector<8x128xf32>
    %533 = tpu.concatenate %497, %532 in 1 : vector<8x128xf32>, vector<8x128xf32> -> vector<8x256xf32>
    %c0_196 = arith.constant 0 : index
    %c0_197 = arith.constant 0 : index
    %534 = vector.load %arg10[%c0_196, %c0_197] : memref<256x512xf32, #tpu.memory_space<vmem>>, vector<256x512xf32>
    %cst_198 = arith.constant dense<0.000000e+00> : vector<8x512xf32>
    %535 = tpu.matmul %533, %534, %cst_198 {dimension_numbers = #tpu.dot_dimension_numbers<[1], [0], [0], [1], [0, 0, 1, 1], [], []>} : vector<8x256xf32>, vector<256x512xf32>, vector<8x512xf32> -> vector<8x512xf32>
    %536 = arith.addf %535, %9 : vector<8x512xf32>
    %537 = vector.extract_strided_slice %536 {offsets = [0, 0], sizes = [8, 128], strides = [1, 1]} : vector<8x512xf32> to vector<8x128xf32>
    %cst_199 = arith.constant 5.000000e-01 : f32
    %538 = vector.broadcast %cst_199 : f32 to vector<8x128xf32>
    %539 = arith.mulf %538, %537 : vector<8x128xf32>
    %540 = math.tanh %539 : vector<8x128xf32>
    %cst_200 = arith.constant 5.000000e-01 : f32
    %541 = vector.broadcast %cst_200 : f32 to vector<8x128xf32>
    %542 = arith.mulf %541, %540 : vector<8x128xf32>
    %cst_201 = arith.constant 5.000000e-01 : f32
    %543 = vector.broadcast %cst_201 : f32 to vector<8x128xf32>
    %544 = arith.addf %542, %543 : vector<8x128xf32>
    %545 = vector.extract_strided_slice %536 {offsets = [0, 128], sizes = [8, 128], strides = [1, 1]} : vector<8x512xf32> to vector<8x128xf32>
    %cst_202 = arith.constant 5.000000e-01 : f32
    %546 = vector.broadcast %cst_202 : f32 to vector<8x128xf32>
    %547 = arith.mulf %546, %545 : vector<8x128xf32>
    %548 = math.tanh %547 : vector<8x128xf32>
    %cst_203 = arith.constant 5.000000e-01 : f32
    %549 = vector.broadcast %cst_203 : f32 to vector<8x128xf32>
    %550 = arith.mulf %549, %548 : vector<8x128xf32>
    %cst_204 = arith.constant 5.000000e-01 : f32
    %551 = vector.broadcast %cst_204 : f32 to vector<8x128xf32>
    %552 = arith.addf %550, %551 : vector<8x128xf32>
    %553 = vector.extract_strided_slice %536 {offsets = [0, 256], sizes = [8, 128], strides = [1, 1]} : vector<8x512xf32> to vector<8x128xf32>
    %554 = math.tanh %553 : vector<8x128xf32>
    %555 = vector.extract_strided_slice %536 {offsets = [0, 384], sizes = [8, 128], strides = [1, 1]} : vector<8x512xf32> to vector<8x128xf32>
    %cst_205 = arith.constant 5.000000e-01 : f32
    %556 = vector.broadcast %cst_205 : f32 to vector<8x128xf32>
    %557 = arith.mulf %556, %555 : vector<8x128xf32>
    %558 = math.tanh %557 : vector<8x128xf32>
    %cst_206 = arith.constant 5.000000e-01 : f32
    %559 = vector.broadcast %cst_206 : f32 to vector<8x128xf32>
    %560 = arith.mulf %559, %558 : vector<8x128xf32>
    %cst_207 = arith.constant 5.000000e-01 : f32
    %561 = vector.broadcast %cst_207 : f32 to vector<8x128xf32>
    %562 = arith.addf %560, %561 : vector<8x128xf32>
    %563 = arith.mulf %552, %530 : vector<8x128xf32>
    %564 = arith.mulf %544, %554 : vector<8x128xf32>
    %565 = arith.addf %563, %564 : vector<8x128xf32>
    %566 = math.tanh %565 : vector<8x128xf32>
    %567 = arith.mulf %562, %566 : vector<8x128xf32>
    %c0_208 = arith.constant 0 : index
    %c0_209 = arith.constant 0 : index
    %568 = vector.load %arg6[%c0_208, %c0_209] : memref<1x128xf32, #tpu.memory_space<vmem>>, vector<1x128xf32>
    %569 = vector.broadcast %568 : vector<1x128xf32> to vector<8x128xf32>
    %570 = arith.mulf %567, %569 : vector<8x128xf32>
    %cst_210 = arith.constant dense<0.000000e+00> : vector<8xf32>
    %571 = vector.multi_reduction <add>, %570, %cst_210 [1] : vector<8x128xf32> to vector<8xf32>
    %572 = vector.shape_cast %571 : vector<8xf32> to vector<8x1xf32>
    %c0_211 = arith.constant 0 : index
    %c0_212 = arith.constant 0 : index
    %573 = vector.load %arg7[%c0_211, %c0_212] : memref<1x1xf32, #tpu.memory_space<vmem>>, vector<1x1xf32>
    %574 = vector.broadcast %573 : vector<1x1xf32> to vector<8x1xf32>
    %575 = arith.addf %572, %574 : vector<8x1xf32>
    %576 = vector.shape_cast %575 : vector<8x1xf32> to vector<8x1xf32>
    %577 = vector.broadcast %576 : vector<8x1xf32> to vector<8x128xf32>
    %c0_213 = arith.constant 0 : index
    %c0_214 = arith.constant 0 : index
    %578 = vector.load %arg8[%c0_213, %c0_214] : memref<8x128xf32, #tpu.memory_space<vmem>>, vector<8x128xf32>
    tpu.vector_store %arg8[%c0_213, %c0_214], %577 {strides = array<i32>} : memref<8x128xf32, #tpu.memory_space<vmem>>, vector<8x128xf32>,
    return
  }
}

</mosaic_0001>

<bundles_post_ra>
// kernel: _lstm_forward.1
= control target key start
LH: loop header
LB: loop body
LE: loop exit
PB: predicated region body
PF: predicated region fallthrough
CT: control target
= control target key end

     0   :  { %s6655_s0 = inlined_call_operand.vmem [shape: f32[64,8], index: 0, kind: input, shape index: {}]   ;;  %s6656_s1 = inlined_call_operand.vmem [shape: f32[8,512], index: 1, kind: input, shape index: {}]   ;;  %s6657_s2 = inlined_call_operand.hbm [shape: f32[128,512], index: 2, kind: input, shape index: {}]   ;;  %s6658_s3 = inlined_call_operand.vmem [shape: f32[1,512], index: 3, kind: input, shape index: {}]   ;;  %s6659_s4 = inlined_call_operand.hbm [shape: f32[256,512], index: 4, kind: input, shape index: {}]   ;;  %s6660_s5 = inlined_call_operand.vmem [shape: f32[1,512], index: 5, kind: input, shape index: {}]   ;;  %s6661_s6 = inlined_call_operand.vmem [shape: f32[1,128], index: 6, kind: input, shape index: {}]   ;;  %s6662_s7 = inlined_call_operand.<no memory space> [shape: f32[1,1], index: 7, kind: input, shape index: {}]   ;;  %s6663_s8 = inlined_call_operand.vmem [shape: f32[8,128], index: 8, kind: output, shape index: {}]  }
   0x1   :  { %v13_v0 = vstv %s6662_s7 }
   0x2   :  { %14 = vst [vmem:[#allocation5] sm:$0x1] %v13_v0 }
   0x3   :  { %15 = vsyncpa [#allocation7], 0  ;;  %s24_s9 = sshll.u32 %s6657_s2, 4  ;;  %s3538_s10 = smov [#allocation6]   ;;  %s25_s9 = int_to_ptr.hbm [resolvable:$true] %s24_s9 }
   0x4   :  { %s26_s11 = sshll.u32 %s3538_s10, 4  ;;  %s3539_s12 = smov 512   ;;  %s27_s11 = int_to_ptr.vmem [resolvable:$true] %s26_s11 }
   0x5   :  { %s3540_s13 = smov 32  }
   0x6   :  { %32 = dma.hbm_to_vmem [thread:$0]  %s25_s9, 8192, %s27_s11, [#allocation7], %s3539_s12, %s3539_s12, %s3540_s13  }
   0x7   :  { %3534 = dma.done.wait [#allocation7], 8192  }
   0x8   :  { %3535 = vsyncadd [#allocation7], 4294959104  ;;  %vm80_vm0 = vcmask 64512   ;;  %v301_v1 = vld [vmem:[%s6660_s5] sm:$0xf]  ;;  %v67_v3 = vld [vmem:[%s6656_s1 + $0x8] sm:$0xff] }
   0x9   :  { %v66_v2 = vld [vmem:[%s6656_s1] sm:$0xff]  ;;  %v3604_v4 = vperm.slane %v301_v1, 0  ;;  %v3606_v5 = vperm.slane %v301_v1, 1  ;;  %v3608_v6 = vperm.slane %v301_v1, 2  ;;  %v3610_v7 = vperm.slane %v301_v1, 3  ;;  %161 = vmatpush.msra.mxu1 %v67_v3  ;;  %v68_v8 = vld [vmem:[%s6656_s1 + $0x10] sm:$0xff] }
   0xa   :  { %120 = vmatpush.msra.mxu0 %v66_v2  ;;  %v58_v9 = vld [vmem:[%s6655_s0] sm:$0xff]  ;;  %202 = vmatpush.msra.mxu2 %v68_v8  ;;  %v69_v10 = vld [vmem:[%s6656_s1 + $0x18] sm:$0xff]  ;;  %v398_v12 = vld [vmem:[#allocation6 + $0x1e8] sm:$0xff]  ;;  %s52_s7 = sshll.u32 %s6659_s4, 4  ;;  %s3541_s16 = smov [#allocation3]   ;;  %s53_s7 = int_to_ptr.hbm [resolvable:$true] %s52_s7 }
   0xb   :  { %7091 = vst [vmem:[#allocation14_spill] sm:$0xff] %v3604_v4  ;;  %2788 = vmatmul.msk.f32.vlgmr.msra.gmra.mxu0 %vm80_vm0, %v58_v9  ;;  %v397_v11 = vld [vmem:[#allocation6 + $0x1e0] sm:$0xff]  ;;  %2796 = vmatmul.msk.f32.vlgmr.msra.gmra.mxu1 %vm80_vm0, %v58_v9  ;;  %v399_v13 = vld [vmem:[#allocation6 + $0x1f0] sm:$0xff]  ;;  %v394_v15 = vld [vmem:[#allocation6 + $0x1c8] sm:$0xff]  ;;  %s54_s17 = sshll.u32 %s3541_s16, 4  ;;  %s55_s17 = int_to_ptr.vmem [resolvable:$true] %s54_s17 }
   0xc   :  { %7092 = vst [vmem:[#allocation15_spill] sm:$0xff] %v3606_v5  ;;  %2804 = vmatmul.msk.f32.vlgmr.msra.gmra.mxu2 %vm80_vm0, %v58_v9  ;;  %v393_v14 = vld [vmem:[#allocation6 + $0x1c0] sm:$0xff]  ;;  %243 = vmatpush.msra.mxu3 %v69_v10  ;;  %v400_v16 = vld [vmem:[#allocation6 + $0x1f8] sm:$0xff]  ;;  %v395_v17 = vld [vmem:[#allocation6 + $0x1d0] sm:$0xff]  ;;  %57 = dma.hbm_to_vmem [thread:$0]  %s53_s7, 16384, %s55_s17, [#allocation4] }
   0xd   :  { %7093 = vst [vmem:[#allocation16_spill] sm:$0xff] %v3608_v6  ;;  %401 = vmatpush.msrb.mxu0 %v397_v11  ;;  %2812 = vmatmul.msk.f32.vlgmr.msra.gmra.mxu3 %vm80_vm0, %v58_v9  ;;  %v389_v18 = vld [vmem:[#allocation6 + $0x1a0] sm:$0xff]  ;;  %v390_v19 = vld [vmem:[#allocation6 + $0x1a8] sm:$0xff]  ;;  %v396_v20 = vld [vmem:[#allocation6 + $0x1d8] sm:$0xff] }
   0xe   :  { %7094 = vst [vmem:[#allocation17_spill] sm:$0xff] %v3610_v7  ;;  %421 = vmatpush.msrb.mxu1 %v398_v12  ;;  %441 = vmatpush.msrb.mxu2 %v399_v13  ;;  %v59_v21 = vld [vmem:[%s6655_s0 + $0x8] sm:$0xff]  ;;  %v391_v22 = vld [vmem:[#allocation6 + $0x1b0] sm:$0xff]  ;;  %v392_v26 = vld [vmem:[#allocation6 + $0x1b8] sm:$0xff] }
   0xf   :  { %402 = vmatpush.msrb.mxu0 %v393_v14  ;;  %461 = vmatpush.msrb.mxu3 %v400_v16  ;;  %v385_v23 = vld [vmem:[#allocation6 + $0x180] sm:$0xff]  ;;  %v386_v24 = vld [vmem:[#allocation6 + $0x188] sm:$0xff]  ;;  %v387_v25 = vld [vmem:[#allocation6 + $0x190] sm:$0xff] }
  0x10   :  { %422 = vmatpush.msrb.mxu1 %v394_v15  ;;  %442 = vmatpush.msrb.mxu2 %v395_v17  ;;  %v381_v27 = vld [vmem:[#allocation6 + $0x160] sm:$0xff]  ;;  %v382_v28 = vld [vmem:[#allocation6 + $0x168] sm:$0xff]  ;;  %v383_v29 = vld [vmem:[#allocation6 + $0x170] sm:$0xff] }
  0x11   :  { %403 = vmatpush.msrb.mxu0 %v389_v18  ;;  %462 = vmatpush.msrb.mxu3 %v396_v20  ;;  %v388_v30 = vld [vmem:[#allocation6 + $0x198] sm:$0xff]  ;;  %v377_v31 = vld [vmem:[#allocation6 + $0x140] sm:$0xff]  ;;  %v378_v32 = vld [vmem:[#allocation6 + $0x148] sm:$0xff] }
  0x12   :  { %423 = vmatpush.msrb.mxu1 %v390_v19  ;;  %443 = vmatpush.msrb.mxu2 %v391_v22  ;;  %v379_v33 = vld [vmem:[#allocation6 + $0x150] sm:$0xff]  ;;  %v384_v35 = vld [vmem:[#allocation6 + $0x178] sm:$0xff]  ;;  %v373_v36 = vld [vmem:[#allocation6 + $0x120] sm:$0xff] }
  0x13   :  { %2789 = vmatmul.msk.f32.gmra.mxu0 %vm80_vm0, %v59_v21  ;;  %2797 = vmatmul.msk.f32.gmra.mxu1 %vm80_vm0, %v59_v21  ;;  %v60_v34 = vld [vmem:[%s6655_s0 + $0x10] sm:$0xff]  ;;  %v380_v39 = vld [vmem:[#allocation6 + $0x158] sm:$0xff]  ;;  %v369_v40 = vld [vmem:[#allocation6 + $0x100] sm:$0xff] }
  0x14   :  { %2805 = vmatmul.msk.f32.gmra.mxu2 %vm80_vm0, %v59_v21  ;;  %404 = vmatpush.msrb.mxu0 %v385_v23  ;;  %v374_v37 = vld [vmem:[#allocation6 + $0x128] sm:$0xff]  ;;  %v375_v38 = vld [vmem:[#allocation6 + $0x130] sm:$0xff]  ;;  %v376_v43 = vld [vmem:[#allocation6 + $0x138] sm:$0xff] }
  0x15   :  { %424 = vmatpush.msrb.mxu1 %v386_v24  ;;  %2813 = vmatmul.msk.f32.gmra.mxu3 %vm80_vm0, %v59_v21  ;;  %v370_v41 = vld [vmem:[#allocation6 + $0x108] sm:$0xff]  ;;  %v371_v42 = vld [vmem:[#allocation6 + $0x110] sm:$0xff]  ;;  %v365_v44 = vld [vmem:[#allocation6 + $0xe0] sm:$0xff] }
  0x16   :  { %444 = vmatpush.msrb.mxu2 %v387_v25  ;;  %463 = vmatpush.msrb.mxu3 %v392_v26  ;;  %v366_v45 = vld [vmem:[#allocation6 + $0xe8] sm:$0xff]  ;;  %v367_v46 = vld [vmem:[#allocation6 + $0xf0] sm:$0xff]  ;;  %v372_v48 = vld [vmem:[#allocation6 + $0x118] sm:$0xff] }
  0x17   :  { %405 = vmatpush.msrb.mxu0 %v381_v27  ;;  %425 = vmatpush.msrb.mxu1 %v382_v28  ;;  %v61_v47 = vld [vmem:[%s6655_s0 + $0x18] sm:$0xff]  ;;  %v62_v49 = vld [vmem:[%s6655_s0 + $0x20] sm:$0xff]  ;;  %v63_v50 = vld [vmem:[%s6655_s0 + $0x28] sm:$0xff] }
  0x18   :  { %445 = vmatpush.msrb.mxu2 %v383_v29  ;;  %464 = vmatpush.msrb.mxu3 %v388_v30  ;;  %v64_v51 = vld [vmem:[%s6655_s0 + $0x30] sm:$0xff]  ;;  %v368_v52 = vld [vmem:[#allocation6 + $0xf8] sm:$0xff]  ;;  %v361_v53 = vld [vmem:[#allocation6 + $0xc0] sm:$0xff] }
  0x19   :  { %406 = vmatpush.msrb.mxu0 %v377_v31  ;;  %426 = vmatpush.msrb.mxu1 %v378_v32  ;;  %v362_v54 = vld [vmem:[#allocation6 + $0xc8] sm:$0xff]  ;;  %v363_v55 = vld [vmem:[#allocation6 + $0xd0] sm:$0xff]  ;;  %v357_v56 = vld [vmem:[#allocation6 + $0xa0] sm:$0xff] }
  0x1a   :  { %446 = vmatpush.msrb.mxu2 %v379_v33  ;;  %465 = vmatpush.msrb.mxu3 %v384_v35  ;;  %v358_v57 = vld [vmem:[#allocation6 + $0xa8] sm:$0xff]  ;;  %v359_v58 = vld [vmem:[#allocation6 + $0xb0] sm:$0xff]  ;;  %v364_v59 = vld [vmem:[#allocation6 + $0xd8] sm:$0xff] }
  0x1b   :  { %2790 = vmatmul.msk.f32.gmra.mxu0 %vm80_vm0, %v60_v34  ;;  %2798 = vmatmul.msk.f32.gmra.mxu1 %vm80_vm0, %v60_v34  ;;  %v360_v60 = vld [vmem:[#allocation6 + $0xb8] sm:$0xff]  ;;  %v353_v61 = vld [vmem:[#allocation6 + $0x80] sm:$0xff]  ;;  %v354_v62 = vld [vmem:[#allocation6 + $0x88] sm:$0xff] }
  0x1c   :  { %2806 = vmatmul.msk.f32.gmra.mxu2 %vm80_vm0, %v60_v34  ;;  %407 = vmatpush.msrb.mxu0 %v373_v36  ;;  %v355_v63 = vld [vmem:[#allocation6 + $0x90] sm:$0xff]  ;;  %v356_v0 = vld [vmem:[#allocation6 + $0x98] sm:$0xff]  ;;  %v349_v1 = vld [vmem:[#allocation6 + $0x60] sm:$0xff] }
  0x1d   :  { %427 = vmatpush.msrb.mxu1 %v374_v37  ;;  %2814 = vmatmul.msk.f32.gmra.mxu3 %vm80_vm0, %v60_v34  ;;  %v350_v2 = vld [vmem:[#allocation6 + $0x68] sm:$0xff]  ;;  %v351_v3 = vld [vmem:[#allocation6 + $0x70] sm:$0xff]  ;;  %v352_v8 = vld [vmem:[#allocation6 + $0x78] sm:$0xff] }
  0x1e   :  { %447 = vmatpush.msrb.mxu2 %v375_v38  ;;  %466 = vmatpush.msrb.mxu3 %v380_v39  ;;  %v65_v9 = vld [vmem:[%s6655_s0 + $0x38] sm:$0xff]  ;;  %v345_v10 = vld [vmem:[#allocation6 + $0x40] sm:$0xff]  ;;  %v346_v11 = vld [vmem:[#allocation6 + $0x48] sm:$0xff] }
  0x1f   :  { %408 = vmatpush.msrb.mxu0 %v369_v40  ;;  %428 = vmatpush.msrb.mxu1 %v370_v41  ;;  %v347_v12 = vld [vmem:[#allocation6 + $0x50] sm:$0xff]  ;;  %v70_v13 = vld [vmem:[%s6658_s3] sm:$0xf]  ;;  %v342_v15 = vld [vmem:[#allocation6 + $0x28] sm:$0xff] }
  0x20   :  { %448 = vmatpush.msrb.mxu2 %v371_v42  ;;  %467 = vmatpush.msrb.mxu3 %v376_v43  ;;  %v341_v14 = vld [vmem:[#allocation6 + $0x20] sm:$0xff]  ;;  %v343_v16 = vld [vmem:[#allocation6 + $0x30] sm:$0xff]  ;;  %v348_v17 = vld [vmem:[#allocation6 + $0x58] sm:$0xff]  ;;  %v3677_v20 = vperm.slane %v70_v13, 0  ;;  %v3679_v23 = vperm.slane %v70_v13, 1  ;;  %v3683_v31 = vperm.slane %v70_v13, 2 }
  0x21   :  { %409 = vmatpush.msrb.mxu0 %v365_v44  ;;  %429 = vmatpush.msrb.mxu1 %v366_v45  ;;  %v337_v18 = vld [vmem:[#allocation6] sm:$0xff]  ;;  %v338_v19 = vld [vmem:[#allocation6 + $0x8] sm:$0xff]  ;;  %v339_v21 = vld [vmem:[#allocation6 + $0x10] sm:$0xff]  ;;  %v3685_v32 = vperm.slane %v70_v13, 3 }
  0x22   :  { %449 = vmatpush.msrb.mxu2 %v367_v46  ;;  %468 = vmatpush.msrb.mxu3 %v372_v48  ;;  %v344_v22 = vld [vmem:[#allocation6 + $0x38] sm:$0xff] }
  0x23   :  { %2791 = vmatmul.msk.f32.gmra.mxu0 %vm80_vm0, %v61_v47  ;;  %2799 = vmatmul.msk.f32.gmra.mxu1 %vm80_vm0, %v61_v47  ;;  %v340_v24 = vld [vmem:[#allocation6 + $0x18] sm:$0xff] }
  0x24   :  { %2807 = vmatmul.msk.f32.gmra.mxu2 %vm80_vm0, %v61_v47  ;;  %469 = vmatpush.msrb.mxu3 %v368_v52 }
  0x25   :  { %2815 = vmatmul.msk.f32.gmra.mxu3 %vm80_vm0, %v61_v47  ;;  %410 = vmatpush.msrb.mxu0 %v361_v53 }
  0x26   :  { %430 = vmatpush.msrb.mxu1 %v362_v54  ;;  %450 = vmatpush.msrb.mxu2 %v363_v55 }
  0x27   :  { %411 = vmatpush.msrb.mxu0 %v357_v56  ;;  %470 = vmatpush.msrb.mxu3 %v364_v59 }
  0x28   :  { %431 = vmatpush.msrb.mxu1 %v358_v57  ;;  %451 = vmatpush.msrb.mxu2 %v359_v58 }
  0x29   :  { %412 = vmatpush.msrb.mxu0 %v353_v61  ;;  %471 = vmatpush.msrb.mxu3 %v360_v60 }
  0x2a   :  { %432 = vmatpush.msrb.mxu1 %v354_v62  ;;  %452 = vmatpush.msrb.mxu2 %v355_v63 }
  0x2b   :  { %2792 = vmatmul.msk.f32.gmra.mxu0 %vm80_vm0, %v62_v49  ;;  %2800 = vmatmul.msk.f32.gmra.mxu1 %vm80_vm0, %v62_v49 }
  0x2c   :  { %2808 = vmatmul.msk.f32.gmra.mxu2 %vm80_vm0, %v62_v49  ;;  %413 = vmatpush.msrb.mxu0 %v349_v1 }
  0x2d   :  { %2816 = vmatmul.msk.f32.gmra.mxu3 %vm80_vm0, %v62_v49  ;;  %433 = vmatpush.msrb.mxu1 %v350_v2 }
  0x2e   :  { %453 = vmatpush.msrb.mxu2 %v351_v3  ;;  %472 = vmatpush.msrb.mxu3 %v356_v0 }
  0x2f   :  { %414 = vmatpush.msrb.mxu0 %v345_v10  ;;  %434 = vmatpush.msrb.mxu1 %v346_v11 }
  0x30   :  { %454 = vmatpush.msrb.mxu2 %v347_v12  ;;  %473 = vmatpush.msrb.mxu3 %v352_v8 }
  0x31   :  { %415 = vmatpush.msrb.mxu0 %v341_v14  ;;  %435 = vmatpush.msrb.mxu1 %v342_v15 }
  0x32   :  { %455 = vmatpush.msrb.mxu2 %v343_v16  ;;  %474 = vmatpush.msrb.mxu3 %v348_v17 }
  0x33   :  { %2793 = vmatmul.msk.f32.gmra.mxu0 %vm80_vm0, %v63_v50  ;;  %2801 = vmatmul.msk.f32.gmra.mxu1 %vm80_vm0, %v63_v50 }
  0x34   :  { %2809 = vmatmul.msk.f32.gmra.mxu2 %vm80_vm0, %v63_v50  ;;  %416 = vmatpush.msrb.mxu0 %v337_v18 }
  0x35   :  { %2817 = vmatmul.msk.f32.gmra.mxu3 %vm80_vm0, %v63_v50  ;;  %436 = vmatpush.msrb.mxu1 %v338_v19 }
  0x36   :  { %456 = vmatpush.msrb.mxu2 %v339_v21  ;;  %475 = vmatpush.msrb.mxu3 %v344_v22 }
  0x38   :  { %476 = vmatpush.msrb.mxu3 %v340_v24 }
  0x3b   :  { %2794 = vmatmul.msk.f32.gmra.mxu0 %vm80_vm0, %v64_v51  ;;  %2802 = vmatmul.msk.f32.gmra.mxu1 %vm80_vm0, %v64_v51 }
  0x3c   :  { %2810 = vmatmul.msk.f32.gmra.mxu2 %vm80_vm0, %v64_v51 }
  0x3d   :  { %2818 = vmatmul.msk.f32.gmra.mxu3 %vm80_vm0, %v64_v51 }
  0x43   :  { %2795 = vmatmul.msk.f32.gmra.mxu0 %vm80_vm0, %v65_v9  ;;  %2803 = vmatmul.msk.f32.gmra.mxu1 %vm80_vm0, %v65_v9 }
  0x44   :  { %2811 = vmatmul.msk.f32.gmra.mxu2 %vm80_vm0, %v65_v9 }
  0x45   :  { %2819 = vmatmul.msk.f32.gmra.mxu3 %vm80_vm0, %v65_v9 }
  0x88   :  { %v122_v25 = vpop.f32.mrf.mxu0  ;;  %v163_v27 = vpop.f32.mrf.mxu1 }
  0x89   :  { %v123_v26 = vadd.f32 %v122_v25, %v3677_v20  ;;  %v164_v28 = vadd.f32 %v163_v27, %v3679_v23 }
  0x8b   :  { %v315_v29 = vmul.f32 0.5, %v123_v26  ;;  %v319_v30 = vmul.f32 0.5, %v164_v28 }
  0x8d   :  { %2827 = vtanh.f32 %v315_v29 }
  0x8e   :  { %2829 = vtanh.f32 %v319_v30 }
  0x8f   :  { %v204_v33 = vpop.f32.mrf.mxu2 }
  0x90   :  { %v205_v34 = vadd.f32 %v204_v33, %v3683_v31  ;;  %v3688_v35 = vpop.f32.mrf.mxu0  ;;  %v245_v36 = vpop.f32.mrf.mxu3 }
  0x91   :  { %v3690_v37 = vpop.f32.mrf.mxu1  ;;  %v246_v38 = vadd.f32 %v245_v36, %v3685_v32 }
  0x92   :  { %2831 = vtanh.f32 %v205_v34 }
  0x93   :  { %v2828_v39 = vpop.eup %2827  ;;  %v324_v42 = vmul.f32 0.5, %v246_v38 }
  0x94   :  { %v2830_v40 = vpop.eup %2829  ;;  %v317_v41 = vmul.f32 0.5, %v2828_v39 }
  0x95   :  { %v321_v43 = vmul.f32 0.5, %v2830_v40  ;;  %2833 = vtanh.f32 %v324_v42 }
  0x96   :  { %v318_v44 = vadd.f32 0.5, %v317_v41 }
  0x97   :  { %v322_v45 = vadd.f32 0.5, %v321_v43  ;;  %v3693_v46 = vpop.f32.mrf.mxu2 }
  0x98   :  { %v2832_v47 = vpop.eup %2831  ;;  %v128_v48 = vpop.f32.mrf.mxu0 }
  0x99   :  { %v328_v49 = vmul.f32 0.0, %v322_v45  ;;  %v329_v50 = vmul.f32 %v2832_v47, %v318_v44  ;;  %v3695_v51 = vpop.f32.mrf.mxu3  ;;  %v3698_v52 = vadd.f32 %v128_v48, %v3677_v20  ;;  %v169_v53 = vpop.f32.mrf.mxu1 }
  0x9a   :  { %v3701_v54 = vadd.f32 %v169_v53, %v3679_v23 }
  0x9b   :  { %7095 = vst [vmem:[#allocation18_spill] sm:$0xff] %v3698_v52  ;;  %v3703_v55 = vadd.f32 %v329_v50, %v328_v49  ;;  %v2834_v56 = vpop.eup %2833 }
  0x9c   :  { %7096 = vst [vmem:[#allocation19_spill] sm:$0xff] %v3701_v54  ;;  %v326_v57 = vmul.f32 0.5, %v2834_v56  ;;  %v126_v56 = vadd.f32 %v3688_v35, %v3677_v20 }
  0x9d   :  { %2835 = vtanh.f32 %v3703_v55 }
  0x9e   :  { %v327_v59 = vadd.f32 0.5, %v326_v57  ;;  %v167_v57 = vadd.f32 %v3690_v37, %v3679_v23 }
  0x9f   :  { %v210_v58 = vpop.f32.mrf.mxu2 }
  0xa0   :  { %v3707_v60 = vadd.f32 %v210_v58, %v3683_v31  ;;  %v131_v61 = vpop.f32.mrf.mxu0 }
  0xa1   :  { %v251_v62 = vpop.f32.mrf.mxu3  ;;  %v3710_v63 = vadd.f32 %v131_v61, %v3677_v20  ;;  %v172_v0 = vpop.f32.mrf.mxu1 }
  0xa2   :  { %7097 = vst [vmem:[#allocation20_spill] sm:$0xff] %v3707_v60  ;;  %v3713_v1 = vadd.f32 %v251_v62, %v3685_v32  ;;  %v3716_v2 = vadd.f32 %v172_v0, %v3679_v23 }
  0xa3   :  { %7098 = vst [vmem:[#allocation21_spill] sm:$0xff] %v3710_v63  ;;  %v2836_v3 = vpop.eup %2835 }
  0xa4   :  { %7099 = vst [vmem:[#allocation22_spill] sm:$0xff] %v3713_v1  ;;  %v3718_v8 = vmul.f32 %v2836_v3, %v327_v59 }
  0xa5   :  { %7100 = vst [vmem:[#allocation23_spill] sm:$0xff] %v3716_v2 }
  0xa6   :  { %417 = vmatmul.f32.vlgmr.msrb.gmra.mxu0 %v3718_v8  ;;  %437 = vmatmul.f32.vlgmr.msrb.gmra.mxu1 %v3718_v8 }
  0xa7   :  { %457 = vmatmul.f32.vlgmr.msrb.gmra.mxu2 %v3718_v8  ;;  %477 = vmatmul.f32.vlgmr.msrb.gmra.mxu3 %v3718_v8  ;;  %v213_v9 = vpop.f32.mrf.mxu2 }
  0xa8   :  { %v3725_v10 = vadd.f32 %v213_v9, %v3683_v31  ;;  %v134_v11 = vpop.f32.mrf.mxu0  ;;  %v208_v9 = vadd.f32 %v3693_v46, %v3683_v31 }
  0xa9   :  { %v254_v12 = vpop.f32.mrf.mxu3  ;;  %v3728_v13 = vadd.f32 %v134_v11, %v3677_v20  ;;  %v175_v14 = vpop.f32.mrf.mxu1  ;;  %v249_v11 = vadd.f32 %v3695_v51, %v3685_v32 }
  0xaa   :  { %7101 = vst [vmem:[#allocation24_spill] sm:$0xff] %v3725_v10  ;;  %v3731_v15 = vadd.f32 %v254_v12, %v3685_v32  ;;  %v3734_v16 = vadd.f32 %v175_v14, %v3679_v23 }
  0xab   :  { %7102 = vst [vmem:[#allocation25_spill] sm:$0xff] %v3728_v13 }
  0xac   :  { %7103 = vst [vmem:[#allocation26_spill] sm:$0xff] %v3731_v15 }
  0xad   :  { %7104 = vst [vmem:[#allocation27_spill] sm:$0xff] %v3734_v16 }
  0xaf   :  { %v216_v17 = vpop.f32.mrf.mxu2 }
  0xb0   :  { %v3737_v18 = vadd.f32 %v216_v17, %v3683_v31  ;;  %v137_v22 = vpop.f32.mrf.mxu0 }
  0xb1   :  { %v257_v19 = vpop.f32.mrf.mxu3  ;;  %v178_v24 = vpop.f32.mrf.mxu1  ;;  %v3746_v25 = vadd.f32 %v137_v22, %v3677_v20 }
  0xb2   :  { %7105 = vst [vmem:[#allocation28_spill] sm:$0xff] %v3737_v18  ;;  %v3740_v21 = vadd.f32 %v257_v19, %v3685_v32  ;;  %v3749_v26 = vadd.f32 %v178_v24, %v3679_v23 }
  0xb3   :  { %7107 = vst [vmem:[#allocation30_spill] sm:$0xff] %v3746_v25 }
  0xb4   :  { %7106 = vst [vmem:[#allocation29_spill] sm:$0xff] %v3740_v21 }
  0xb5   :  { %7108 = vst [vmem:[#allocation31_spill] sm:$0xff] %v3749_v26 }
  0xb7   :  { %v219_v27 = vpop.f32.mrf.mxu2 }
  0xb8   :  { %v3752_v29 = vadd.f32 %v219_v27, %v3683_v31  ;;  %v140_v33 = vpop.f32.mrf.mxu0 }
  0xb9   :  { %v260_v28 = vpop.f32.mrf.mxu3  ;;  %v181_v34 = vpop.f32.mrf.mxu1  ;;  %v3758_v36 = vadd.f32 %v140_v33, %v3677_v20 }
  0xba   :  { %7109 = vst [vmem:[#allocation32_spill] sm:$0xff] %v3752_v29  ;;  %v3755_v30 = vadd.f32 %v260_v28, %v3685_v32  ;;  %v3761_v38 = vadd.f32 %v181_v34, %v3679_v23 }
  0xbb   :  { %7111 = vst [vmem:[#allocation34_spill] sm:$0xff] %v3758_v36 }
  0xbc   :  { %7110 = vst [vmem:[#allocation33_spill] sm:$0xff] %v3755_v30 }
  0xbd   :  { %7112 = vst [vmem:[#allocation35_spill] sm:$0xff] %v3761_v38 }
  0xbf   :  { %v222_v39 = vpop.f32.mrf.mxu2 }
  0xc0   :  { %v3764_v40 = vadd.f32 %v222_v39, %v3683_v31  ;;  %v143_v43 = vpop.f32.mrf.mxu0 }
  0xc1   :  { %v263_v41 = vpop.f32.mrf.mxu3  ;;  %v184_v44 = vpop.f32.mrf.mxu1  ;;  %v3770_v45 = vadd.f32 %v143_v43, %v3677_v20 }
  0xc2   :  { %7113 = vst [vmem:[#allocation36_spill] sm:$0xff] %v3764_v40  ;;  %v3767_v42 = vadd.f32 %v263_v41, %v3685_v32  ;;  %v3773_v47 = vadd.f32 %v184_v44, %v3679_v23 }
  0xc3   :  { %7115 = vst [vmem:[#allocation38_spill] sm:$0xff] %v3770_v45 }
  0xc4   :  { %7114 = vst [vmem:[#allocation37_spill] sm:$0xff] %v3767_v42 }
  0xc5   :  { %7116 = vst [vmem:[#allocation39_spill] sm:$0xff] %v3773_v47 }
  0xc7   :  { %v225_v48 = vpop.f32.mrf.mxu2 }
  0xc8   :  { %v3776_v50 = vadd.f32 %v225_v48, %v3683_v31 }
  0xc9   :  { %v266_v49 = vpop.f32.mrf.mxu3 }
  0xca   :  { %7117 = vst [vmem:[#allocation40_spill] sm:$0xff] %v3776_v50  ;;  %v3779_v53 = vadd.f32 %v266_v49, %v3685_v32 }
  0xcc   :  { %7118 = vst [vmem:[#allocation41_spill] sm:$0xff] %v3779_v53 }
 0x123   :  { %v418_v58 = vpop.f32.mrf.mxu0  ;;  %v438_v59 = vpop.f32.mrf.mxu1 }
 0x124   :  { %v481_v61 = vadd.f32 %v418_v58, %v126_v56  ;;  %v482_v62 = vadd.f32 %v438_v59, %v167_v57 }
 0x126   :  { %v485_v0 = vmul.f32 0.5, %v481_v61  ;;  %v489_v3 = vmul.f32 0.5, %v482_v62 }
 0x128   :  { %2837 = vtanh.f32 %v485_v0 }
 0x129   :  { %2839 = vtanh.f32 %v489_v3 }
 0x12a   :  { %v458_v12 = vpop.f32.mrf.mxu2  ;;  %v478_v14 = vpop.f32.mrf.mxu3 }
 0x12b   :  { %v483_v20 = vadd.f32 %v458_v12, %v208_v9  ;;  %v484_v35 = vadd.f32 %v478_v14, %v249_v11 }
 0x12d   :  { %2841 = vtanh.f32 %v483_v20  ;;  %v494_v23 = vmul.f32 0.5, %v484_v35 }
 0x12e   :  { %v2838_v37 = vpop.eup %2837 }
 0x12f   :  { %v2840_v17 = vpop.eup %2839  ;;  %v487_v19 = vmul.f32 0.5, %v2838_v37  ;;  %2843 = vtanh.f32 %v494_v23 }
 0x130   :  { %v491_v22 = vmul.f32 0.5, %v2840_v17 }
 0x131   :  { %v488_v24 = vadd.f32 0.5, %v487_v19 }
 0x132   :  { %v492_v27 = vadd.f32 0.5, %v491_v22 }
 0x133   :  { %v2842_v28 = vpop.eup %2841 }
 0x134   :  { %v498_v31 = vmul.f32 %v492_v27, %v3703_v55  ;;  %v499_v46 = vmul.f32 %v2842_v28, %v488_v24 }
 0x135   :  { %v2844_v33 = vpop.eup %2843 }
 0x136   :  { %v3790_v32 = vadd.f32 %v499_v46, %v498_v31  ;;  %v496_v51 = vmul.f32 0.5, %v2844_v33 }
 0x138   :  { %7119 = vst [vmem:[#allocation42_spill] sm:$0xff] %v3790_v32  ;;  %2845 = vtanh.f32 %v3790_v32  ;;  %v497_v34 = vadd.f32 0.5, %v496_v51 }
 0x13e   :  { %v2846_v39 = vpop.eup %2845 }
 0x13f   :  { %v3793_v41 = vmul.f32 %v2846_v39, %v497_v34 }
 0x140   :  { %3536 = dma.done.wait [#allocation4], 16384 }
 0x141   :  { %3537 = vsyncadd [#allocation4], 4294950912  ;;  %v3795_v43 = vld [vmem:[#allocation3 + $0x1e0] sm:$0xff]  ;;  %v3799_v48 = vld [vmem:[#allocation3 + $0x1e8] sm:$0xff] }
 0x142   :  { %v3797_v44 = vld [vmem:[#allocation3 + $0x3e0] sm:$0xff]  ;;  %635 = vmatpush.msra.mxu0 %v3795_v43  ;;  %v3807_v56 = vld [vmem:[#allocation3 + $0x1c8] sm:$0xff]  ;;  %675 = vmatpush.msra.mxu2 %v3799_v48 }
 0x143   :  { %655 = vmatpush.msra.mxu1 %v3797_v44  ;;  %v3803_v55 = vld [vmem:[#allocation3 + $0x1c0] sm:$0xff]  ;;  %v3810_v57 = vld [vmem:[#allocation3 + $0x3e8] sm:$0xff] }
 0x144   :  { %v3805_v49 = vld [vmem:[#allocation3 + $0x3c0] sm:$0xff]  ;;  %636 = vmatpush.msra.mxu0 %v3803_v55  ;;  %v3818_v61 = vld [vmem:[#allocation3 + $0x1a8] sm:$0xff]  ;;  %676 = vmatpush.msra.mxu2 %v3807_v56 }
 0x145   :  { %v3812_v58 = vld [vmem:[#allocation3 + $0x1a0] sm:$0xff]  ;;  %656 = vmatpush.msra.mxu1 %v3805_v49  ;;  %v3820_v62 = vld [vmem:[#allocation3 + $0x3c8] sm:$0xff]  ;;  %695 = vmatpush.msra.mxu3 %v3810_v57 }
 0x146   :  { %v3814_v59 = vld [vmem:[#allocation3 + $0x3a0] sm:$0xff]  ;;  %637 = vmatpush.msra.mxu0 %v3812_v58  ;;  %v3830_v9 = vld [vmem:[#allocation3 + $0x188] sm:$0xff]  ;;  %677 = vmatpush.msra.mxu2 %v3818_v61 }
 0x147   :  { %v3824_v0 = vld [vmem:[#allocation3 + $0x180] sm:$0xff]  ;;  %657 = vmatpush.msra.mxu1 %v3814_v59  ;;  %v3832_v11 = vld [vmem:[#allocation3 + $0x3a8] sm:$0xff]  ;;  %696 = vmatpush.msra.mxu3 %v3820_v62 }
 0x148   :  { %v3826_v3 = vld [vmem:[#allocation3 + $0x380] sm:$0xff]  ;;  %638 = vmatpush.msra.mxu0 %v3824_v0  ;;  %v3842_v20 = vld [vmem:[#allocation3 + $0x168] sm:$0xff]  ;;  %678 = vmatpush.msra.mxu2 %v3830_v9 }
 0x149   :  { %v3836_v12 = vld [vmem:[#allocation3 + $0x160] sm:$0xff]  ;;  %658 = vmatpush.msra.mxu1 %v3826_v3  ;;  %v3844_v35 = vld [vmem:[#allocation3 + $0x388] sm:$0xff]  ;;  %697 = vmatpush.msra.mxu3 %v3832_v11 }
 0x14a   :  { %v3838_v14 = vld [vmem:[#allocation3 + $0x360] sm:$0xff]  ;;  %639 = vmatpush.msra.mxu0 %v3836_v12  ;;  %v3854_v17 = vld [vmem:[#allocation3 + $0x148] sm:$0xff]  ;;  %679 = vmatpush.msra.mxu2 %v3842_v20 }
 0x14b   :  { %v3848_v23 = vld [vmem:[#allocation3 + $0x140] sm:$0xff]  ;;  %659 = vmatpush.msra.mxu1 %v3838_v14  ;;  %v3856_v19 = vld [vmem:[#allocation3 + $0x368] sm:$0xff]  ;;  %698 = vmatpush.msra.mxu3 %v3844_v35 }
 0x14c   :  { %v3850_v37 = vld [vmem:[#allocation3 + $0x340] sm:$0xff]  ;;  %640 = vmatpush.msra.mxu0 %v3848_v23  ;;  %v3866_v27 = vld [vmem:[#allocation3 + $0x128] sm:$0xff]  ;;  %680 = vmatpush.msra.mxu2 %v3854_v17 }
 0x14d   :  { %v3860_v22 = vld [vmem:[#allocation3 + $0x120] sm:$0xff]  ;;  %660 = vmatpush.msra.mxu1 %v3850_v37  ;;  %v3868_v28 = vld [vmem:[#allocation3 + $0x348] sm:$0xff]  ;;  %699 = vmatpush.msra.mxu3 %v3856_v19 }
 0x14e   :  { %v3862_v24 = vld [vmem:[#allocation3 + $0x320] sm:$0xff]  ;;  %641 = vmatpush.msra.mxu0 %v3860_v22  ;;  %v3878_v33 = vld [vmem:[#allocation3 + $0x108] sm:$0xff]  ;;  %681 = vmatpush.msra.mxu2 %v3866_v27 }
 0x14f   :  { %v3872_v31 = vld [vmem:[#allocation3 + $0x100] sm:$0xff]  ;;  %661 = vmatpush.msra.mxu1 %v3862_v24  ;;  %v3880_v51 = vld [vmem:[#allocation3 + $0x328] sm:$0xff]  ;;  %700 = vmatpush.msra.mxu3 %v3868_v28 }
 0x150   :  { %v3874_v46 = vld [vmem:[#allocation3 + $0x300] sm:$0xff]  ;;  %642 = vmatpush.msra.mxu0 %v3872_v31  ;;  %v3890_v53 = vld [vmem:[#allocation3 + $0xe8] sm:$0xff]  ;;  %682 = vmatpush.msra.mxu2 %v3878_v33 }
 0x151   :  { %v3884_v34 = vld [vmem:[#allocation3 + $0xe0] sm:$0xff]  ;;  %662 = vmatpush.msra.mxu1 %v3874_v46  ;;  %v3892_v50 = vld [vmem:[#allocation3 + $0x308] sm:$0xff]  ;;  %701 = vmatpush.msra.mxu3 %v3880_v51 }
 0x152   :  { %v3886_v39 = vld [vmem:[#allocation3 + $0x2e0] sm:$0xff]  ;;  %643 = vmatpush.msra.mxu0 %v3884_v34  ;;  %v3902_v42 = vld [vmem:[#allocation3 + $0xc8] sm:$0xff]  ;;  %683 = vmatpush.msra.mxu2 %v3890_v53 }
 0x153   :  { %v3896_v47 = vld [vmem:[#allocation3 + $0xc0] sm:$0xff]  ;;  %663 = vmatpush.msra.mxu1 %v3886_v39  ;;  %v3904_v40 = vld [vmem:[#allocation3 + $0x2e8] sm:$0xff]  ;;  %702 = vmatpush.msra.mxu3 %v3892_v50 }
 0x154   :  { %v3898_v45 = vld [vmem:[#allocation3 + $0x2c0] sm:$0xff]  ;;  %644 = vmatpush.msra.mxu0 %v3896_v47  ;;  %v3914_v30 = vld [vmem:[#allocation3 + $0xa8] sm:$0xff]  ;;  %684 = vmatpush.msra.mxu2 %v3902_v42 }
 0x155   :  { %v3908_v38 = vld [vmem:[#allocation3 + $0xa0] sm:$0xff]  ;;  %664 = vmatpush.msra.mxu1 %v3898_v45  ;;  %v3916_v29 = vld [vmem:[#allocation3 + $0x2c8] sm:$0xff]  ;;  %703 = vmatpush.msra.mxu3 %v3904_v40 }
 0x156   :  { %v3910_v36 = vld [vmem:[#allocation3 + $0x2a0] sm:$0xff]  ;;  %645 = vmatpush.msra.mxu0 %v3908_v38  ;;  %v3926_v21 = vld [vmem:[#allocation3 + $0x88] sm:$0xff]  ;;  %685 = vmatpush.msra.mxu2 %v3914_v30 }
 0x157   :  { %v3920_v26 = vld [vmem:[#allocation3 + $0x80] sm:$0xff]  ;;  %665 = vmatpush.msra.mxu1 %v3910_v36  ;;  %v3928_v18 = vld [vmem:[#allocation3 + $0x2a8] sm:$0xff]  ;;  %704 = vmatpush.msra.mxu3 %v3916_v29 }
 0x158   :  { %v3922_v25 = vld [vmem:[#allocation3 + $0x280] sm:$0xff]  ;;  %646 = vmatpush.msra.mxu0 %v3920_v26  ;;  %v3938_v15 = vld [vmem:[#allocation3 + $0x68] sm:$0xff]  ;;  %686 = vmatpush.msra.mxu2 %v3926_v21 }
 0x159   :  { %v3932_v16 = vld [vmem:[#allocation3 + $0x60] sm:$0xff]  ;;  %666 = vmatpush.msra.mxu1 %v3922_v25  ;;  %v3940_v10 = vld [vmem:[#allocation3 + $0x288] sm:$0xff]  ;;  %705 = vmatpush.msra.mxu3 %v3928_v18 }
 0x15a   :  { %v3934_v13 = vld [vmem:[#allocation3 + $0x260] sm:$0xff]  ;;  %7120 = vst [vmem:[#allocation43_spill] sm:$0xff] %v3940_v10  ;;  %647 = vmatpush.msra.mxu0 %v3932_v16  ;;  %v3950_v32 = vld [vmem:[#allocation3 + $0x48] sm:$0xff]  ;;  %687 = vmatpush.msra.mxu2 %v3938_v15 }
 0x15b   :  { %v3944_v2 = vld [vmem:[#allocation3 + $0x40] sm:$0xff]  ;;  %667 = vmatpush.msra.mxu1 %v3934_v13  ;;  %7123 = vst [vmem:[#allocation46_spill] sm:$0xff] %v3950_v32  ;;  %v3952_v1 = vld [vmem:[#allocation3 + $0x268] sm:$0xff]  ;;  %706 = vmatpush.msra.mxu3 %v3940_v10 }
 0x15c   :  { %7121 = vst [vmem:[#allocation44_spill] sm:$0xff] %v3944_v2  ;;  %v3946_v63 = vld [vmem:[#allocation3 + $0x240] sm:$0xff]  ;;  %648 = vmatpush.msra.mxu0 %v3944_v2  ;;  %v3962_v52 = vld [vmem:[#allocation3 + $0x28] sm:$0xff]  ;;  %688 = vmatpush.msra.mxu2 %v3950_v32  ;;  %v3982_v32 = vld [vmem:[#allocation3 + $0x3f0] sm:$0xff] }
 0x15d   :  { %7122 = vst [vmem:[#allocation45_spill] sm:$0xff] %v3946_v63  ;;  %v3956_v60 = vld [vmem:[#allocation3 + $0x20] sm:$0xff]  ;;  %668 = vmatpush.msra.mxu1 %v3946_v63  ;;  %v3964_v7 = vld [vmem:[#allocation3 + $0x248] sm:$0xff]  ;;  %707 = vmatpush.msra.mxu3 %v3952_v1  ;;  %v3980_v63 = vld [vmem:[#allocation3 + $0x1f0] sm:$0xff] }
 0x15e   :  { %7124 = vst [vmem:[#allocation47_spill] sm:$0xff] %v3952_v1  ;;  %v3958_v54 = vld [vmem:[#allocation3 + $0x220] sm:$0xff]  ;;  %649 = vmatpush.msra.mxu0 %v3956_v60  ;;  %v3974_v4 = vld [vmem:[#allocation3 + $0x8] sm:$0xff]  ;;  %689 = vmatpush.msra.mxu2 %v3962_v52  ;;  %v3986_v1 = vld [vmem:[#allocation3 + $0x1f8] sm:$0xff] }
 0x15f   :  { %7125 = vst [vmem:[#allocation48_spill] sm:$0xff] %v3956_v60  ;;  %v3968_v6 = vld [vmem:[#allocation3] sm:$0xff]  ;;  %669 = vmatpush.msra.mxu1 %v3958_v54  ;;  %v3976_v10 = vld [vmem:[#allocation3 + $0x228] sm:$0xff]  ;;  %708 = vmatpush.msra.mxu3 %v3964_v7  ;;  %v4168_v2 = vld [vmem:[#allocation3 + $0x18] sm:$0xff] }
 0x160   :  { %7126 = vst [vmem:[#allocation49_spill] sm:$0xff] %v3958_v54  ;;  %v3970_v5 = vld [vmem:[#allocation3 + $0x200] sm:$0xff]  ;;  %650 = vmatpush.msra.mxu0 %v3968_v6  ;;  %v3988_v60 = vld [vmem:[#allocation3 + $0x208] sm:$0xff]  ;;  %690 = vmatpush.msra.mxu2 %v3974_v4  ;;  %v3992_v54 = vld [vmem:[#allocation3 + $0x1d0] sm:$0xff] }
 0x161   :  { %7127 = vst [vmem:[#allocation50_spill] sm:$0xff] %v3962_v52  ;;  %670 = vmatpush.msra.mxu1 %v3970_v5  ;;  %709 = vmatpush.msra.mxu3 %v3976_v10  ;;  %v3994_v52 = vld [vmem:[#allocation3 + $0x3d0] sm:$0xff] }
 0x162   :  { %7128 = vst [vmem:[#allocation51_spill] sm:$0xff] %v3964_v7  ;;  %715 = vmatpush.msrb.mxu0 %v3980_v63  ;;  %v3998_v7 = vld [vmem:[#allocation3 + $0x1d8] sm:$0xff]  ;;  %755 = vmatpush.msrb.mxu2 %v3986_v1 }
 0x163   :  { %7129 = vst [vmem:[#allocation52_spill] sm:$0xff] %v3968_v6  ;;  %735 = vmatpush.msrb.mxu1 %v3982_v32  ;;  %v4000_v6 = vld [vmem:[#allocation3 + $0x3f8] sm:$0xff]  ;;  %710 = vmatpush.msra.mxu3 %v3988_v60 }
 0x164   :  { %7130 = vst [vmem:[#allocation53_spill] sm:$0xff] %v3970_v5  ;;  %v4004_v5 = vld [vmem:[#allocation3 + $0x1b0] sm:$0xff]  ;;  %716 = vmatpush.msrb.mxu0 %v3992_v54  ;;  %756 = vmatpush.msrb.mxu2 %v3998_v7 }
 0x165   :  { %7131 = vst [vmem:[#allocation54_spill] sm:$0xff] %v3974_v4  ;;  %v4006_v4 = vld [vmem:[#allocation3 + $0x3b0] sm:$0xff]  ;;  %736 = vmatpush.msrb.mxu1 %v3994_v52  ;;  %775 = vmatpush.msrb.mxu3 %v4000_v6 }
 0x166   :  { %7132 = vst [vmem:[#allocation55_spill] sm:$0xff] %v3976_v10  ;;  %v4010_v10 = vld [vmem:[#allocation3 + $0x1b8] sm:$0xff]  ;;  %717 = vmatpush.msrb.mxu0 %v4004_v5  ;;  %691 = vmatmul.f32.vlgmr.msra.gmra.mxu2 %v3718_v8 }
 0x167   :  { %7133 = vst [vmem:[#allocation56_spill] sm:$0xff] %v3980_v63  ;;  %v4012_v63 = vld [vmem:[#allocation3 + $0x3d8] sm:$0xff]  ;;  %737 = vmatpush.msrb.mxu1 %v4006_v4  ;;  %757 = vmatpush.msrb.mxu2 %v4010_v10 }
 0x168   :  { %7134 = vst [vmem:[#allocation57_spill] sm:$0xff] %v3982_v32  ;;  %v4016_v32 = vld [vmem:[#allocation3 + $0x190] sm:$0xff]  ;;  %776 = vmatpush.msrb.mxu3 %v4012_v63  ;;  %651 = vmatmul.f32.vlgmr.msra.gmra.mxu0 %v3718_v8 }
 0x169   :  { %7135 = vst [vmem:[#allocation58_spill] sm:$0xff] %v3986_v1  ;;  %v4018_v1 = vld [vmem:[#allocation3 + $0x390] sm:$0xff]  ;;  %718 = vmatpush.msrb.mxu0 %v4016_v32 }
 0x16a   :  { %7136 = vst [vmem:[#allocation59_spill] sm:$0xff] %v3988_v60  ;;  %v4022_v60 = vld [vmem:[#allocation3 + $0x198] sm:$0xff]  ;;  %738 = vmatpush.msrb.mxu1 %v4018_v1 }
 0x16b   :  { %7137 = vst [vmem:[#allocation60_spill] sm:$0xff] %v3992_v54  ;;  %v4024_v54 = vld [vmem:[#allocation3 + $0x3b8] sm:$0xff]  ;;  %758 = vmatpush.msrb.mxu2 %v4022_v60 }
 0x16c   :  { %7138 = vst [vmem:[#allocation61_spill] sm:$0xff] %v3994_v52  ;;  %v4028_v52 = vld [vmem:[#allocation3 + $0x170] sm:$0xff]  ;;  %777 = vmatpush.msrb.mxu3 %v4024_v54 }
 0x16d   :  { %7139 = vst [vmem:[#allocation62_spill] sm:$0xff] %v3998_v7  ;;  %v4030_v7 = vld [vmem:[#allocation3 + $0x370] sm:$0xff]  ;;  %719 = vmatpush.msrb.mxu0 %v4028_v52 }
 0x16e   :  { %7140 = vst [vmem:[#allocation63_spill] sm:$0xff] %v4000_v6  ;;  %v4034_v6 = vld [vmem:[#allocation3 + $0x178] sm:$0xff]  ;;  %739 = vmatpush.msrb.mxu1 %v4030_v7 }
 0x16f   :  { %7141 = vst [vmem:[#allocation64_spill] sm:$0xff] %v4004_v5  ;;  %v4036_v5 = vld [vmem:[#allocation3 + $0x398] sm:$0xff]  ;;  %759 = vmatpush.msrb.mxu2 %v4034_v6 }
 0x170   :  { %7142 = vst [vmem:[#allocation65_spill] sm:$0xff] %v4006_v4  ;;  %v4040_v4 = vld [vmem:[#allocation3 + $0x150] sm:$0xff]  ;;  %778 = vmatpush.msrb.mxu3 %v4036_v5 }
 0x171   :  { %7143 = vst [vmem:[#allocation66_spill] sm:$0xff] %v4010_v10  ;;  %v4042_v10 = vld [vmem:[#allocation3 + $0x350] sm:$0xff]  ;;  %720 = vmatpush.msrb.mxu0 %v4040_v4 }
 0x172   :  { %7144 = vst [vmem:[#allocation67_spill] sm:$0xff] %v4012_v63  ;;  %v4046_v63 = vld [vmem:[#allocation3 + $0x158] sm:$0xff]  ;;  %740 = vmatpush.msrb.mxu1 %v4042_v10 }
 0x173   :  { %7145 = vst [vmem:[#allocation68_spill] sm:$0xff] %v4016_v32  ;;  %v4048_v32 = vld [vmem:[#allocation3 + $0x378] sm:$0xff]  ;;  %760 = vmatpush.msrb.mxu2 %v4046_v63 }
 0x174   :  { %7146 = vst [vmem:[#allocation69_spill] sm:$0xff] %v4018_v1  ;;  %v4052_v1 = vld [vmem:[#allocation3 + $0x130] sm:$0xff]  ;;  %779 = vmatpush.msrb.mxu3 %v4048_v32 }
 0x175   :  { %7147 = vst [vmem:[#allocation70_spill] sm:$0xff] %v4022_v60  ;;  %v4054_v60 = vld [vmem:[#allocation3 + $0x330] sm:$0xff]  ;;  %721 = vmatpush.msrb.mxu0 %v4052_v1 }
 0x176   :  { %7148 = vst [vmem:[#allocation71_spill] sm:$0xff] %v4024_v54  ;;  %v4058_v54 = vld [vmem:[#allocation3 + $0x138] sm:$0xff]  ;;  %741 = vmatpush.msrb.mxu1 %v4054_v60 }
 0x177   :  { %7149 = vst [vmem:[#allocation72_spill] sm:$0xff] %v4028_v52  ;;  %v4060_v52 = vld [vmem:[#allocation3 + $0x358] sm:$0xff]  ;;  %761 = vmatpush.msrb.mxu2 %v4058_v54 }
 0x178   :  { %7150 = vst [vmem:[#allocation73_spill] sm:$0xff] %v4030_v7  ;;  %v4064_v7 = vld [vmem:[#allocation3 + $0x110] sm:$0xff]  ;;  %780 = vmatpush.msrb.mxu3 %v4060_v52 }
 0x179   :  { %7151 = vst [vmem:[#allocation74_spill] sm:$0xff] %v4034_v6  ;;  %v4066_v6 = vld [vmem:[#allocation3 + $0x310] sm:$0xff]  ;;  %722 = vmatpush.msrb.mxu0 %v4064_v7 }
 0x17a   :  { %7152 = vst [vmem:[#allocation75_spill] sm:$0xff] %v4036_v5  ;;  %v4070_v5 = vld [vmem:[#allocation3 + $0x118] sm:$0xff]  ;;  %742 = vmatpush.msrb.mxu1 %v4066_v6 }
 0x17b   :  { %7153 = vst [vmem:[#allocation76_spill] sm:$0xff] %v4040_v4  ;;  %v4072_v4 = vld [vmem:[#allocation3 + $0x338] sm:$0xff]  ;;  %762 = vmatpush.msrb.mxu2 %v4070_v5 }
 0x17c   :  { %7154 = vst [vmem:[#allocation77_spill] sm:$0xff] %v4042_v10  ;;  %v4076_v10 = vld [vmem:[#allocation3 + $0xf0] sm:$0xff]  ;;  %781 = vmatpush.msrb.mxu3 %v4072_v4 }
 0x17d   :  { %7155 = vst [vmem:[#allocation78_spill] sm:$0xff] %v4046_v63  ;;  %v4078_v63 = vld [vmem:[#allocation3 + $0x2f0] sm:$0xff]  ;;  %723 = vmatpush.msrb.mxu0 %v4076_v10 }
 0x17e   :  { %7156 = vst [vmem:[#allocation79_spill] sm:$0xff] %v4048_v32  ;;  %v4082_v32 = vld [vmem:[#allocation3 + $0xf8] sm:$0xff]  ;;  %743 = vmatpush.msrb.mxu1 %v4078_v63 }
 0x17f   :  { %7157 = vst [vmem:[#allocation80_spill] sm:$0xff] %v4052_v1  ;;  %v4084_v1 = vld [vmem:[#allocation3 + $0x318] sm:$0xff]  ;;  %763 = vmatpush.msrb.mxu2 %v4082_v32 }
 0x180   :  { %7158 = vst [vmem:[#allocation81_spill] sm:$0xff] %v4054_v60  ;;  %v4088_v60 = vld [vmem:[#allocation3 + $0xd0] sm:$0xff]  ;;  %782 = vmatpush.msrb.mxu3 %v4084_v1 }
 0x181   :  { %7159 = vst [vmem:[#allocation82_spill] sm:$0xff] %v4058_v54  ;;  %v4090_v54 = vld [vmem:[#allocation3 + $0x2d0] sm:$0xff]  ;;  %724 = vmatpush.msrb.mxu0 %v4088_v60 }
 0x182   :  { %7160 = vst [vmem:[#allocation83_spill] sm:$0xff] %v4060_v52  ;;  %v4094_v52 = vld [vmem:[#allocation3 + $0xd8] sm:$0xff]  ;;  %744 = vmatpush.msrb.mxu1 %v4090_v54 }
 0x183   :  { %7161 = vst [vmem:[#allocation84_spill] sm:$0xff] %v4064_v7  ;;  %v4096_v7 = vld [vmem:[#allocation3 + $0x2f8] sm:$0xff]  ;;  %764 = vmatpush.msrb.mxu2 %v4094_v52 }
 0x184   :  { %7162 = vst [vmem:[#allocation85_spill] sm:$0xff] %v4066_v6  ;;  %v4100_v6 = vld [vmem:[#allocation3 + $0xb0] sm:$0xff]  ;;  %783 = vmatpush.msrb.mxu3 %v4096_v7 }
 0x185   :  { %7163 = vst [vmem:[#allocation86_spill] sm:$0xff] %v4070_v5  ;;  %v4106_v5 = vld [vmem:[#allocation3 + $0xb8] sm:$0xff]  ;;  %725 = vmatpush.msrb.mxu0 %v4100_v6 }
 0x186   :  { %7164 = vst [vmem:[#allocation87_spill] sm:$0xff] %v4072_v4  ;;  %v4104_v4 = vld [vmem:[#allocation3 + $0x2b0] sm:$0xff]  ;;  %765 = vmatpush.msrb.mxu2 %v4106_v5 }
 0x187   :  { %7165 = vst [vmem:[#allocation88_spill] sm:$0xff] %v4076_v10  ;;  %v4112_v10 = vld [vmem:[#allocation3 + $0x90] sm:$0xff]  ;;  %745 = vmatpush.msrb.mxu1 %v4104_v4 }
 0x188   :  { %7166 = vst [vmem:[#allocation89_spill] sm:$0xff] %v4078_v63  ;;  %v4110_v63 = vld [vmem:[#allocation3 + $0x2d8] sm:$0xff]  ;;  %726 = vmatpush.msrb.mxu0 %v4112_v10 }
 0x189   :  { %7167 = vst [vmem:[#allocation90_spill] sm:$0xff] %v4082_v32  ;;  %784 = vmatpush.msrb.mxu3 %v4110_v63  ;;  %v4131_v32 = vld [vmem:[#allocation3 + $0x78] sm:$0xff] }
 0x18a   :  { %7168 = vst [vmem:[#allocation91_spill] sm:$0xff] %v4084_v1  ;;  %v4116_v1 = vld [vmem:[#allocation3 + $0x290] sm:$0xff] }
 0x18b   :  { %7169 = vst [vmem:[#allocation92_spill] sm:$0xff] %v4088_v60  ;;  %v4122_v60 = vld [vmem:[#allocation3 + $0x2b8] sm:$0xff]  ;;  %746 = vmatpush.msrb.mxu1 %v4116_v1 }
 0x18c   :  { %7170 = vst [vmem:[#allocation93_spill] sm:$0xff] %v4090_v54  ;;  %v4120_v54 = vld [vmem:[#allocation3 + $0x98] sm:$0xff]  ;;  %785 = vmatpush.msrb.mxu3 %v4122_v60 }
 0x18d   :  { %7171 = vst [vmem:[#allocation94_spill] sm:$0xff] %v4094_v52  ;;  %v3542_v52 = vmov 0.0   ;;  %766 = vmatpush.msrb.mxu2 %v4120_v54 }
 0x18e   :  { %7172 = vst [vmem:[#allocation95_spill] sm:$0xff] %v4096_v7  ;;  %v4126_v7 = vld [vmem:[#allocation3 + $0x270] sm:$0xff]  ;;  %711 = vmatmul.f32.vlgmr.msra.gmra.mxu3 %v3542_v52  ;;  %671 = vmatmul.f32.vlgmr.msra.gmra.mxu1 %v3542_v52 }
 0x18f   :  { %7173 = vst [vmem:[#allocation96_spill] sm:$0xff] %v4100_v6  ;;  %v4129_v6 = vld [vmem:[#allocation3 + $0x70] sm:$0xff]  ;;  %747 = vmatpush.msrb.mxu1 %v4126_v7  ;;  %767 = vmatpush.msrb.mxu2 %v4131_v32 }
 0x190   :  { %7174 = vst [vmem:[#allocation97_spill] sm:$0xff] %v4104_v4  ;;  %727 = vmatpush.msrb.mxu0 %v4129_v6  ;;  %v4147_v4 = vld [vmem:[#allocation3 + $0x278] sm:$0xff] }
 0x191   :  { %7175 = vst [vmem:[#allocation98_spill] sm:$0xff] %v4106_v5  ;;  %v4135_v5 = vld [vmem:[#allocation3 + $0x298] sm:$0xff] }
 0x192   :  { %7176 = vst [vmem:[#allocation99_spill] sm:$0xff] %v4110_v63  ;;  %v4139_v63 = vld [vmem:[#allocation3 + $0x50] sm:$0xff]  ;;  %786 = vmatpush.msrb.mxu3 %v4135_v5 }
 0x193   :  { %7177 = vst [vmem:[#allocation100_spill] sm:$0xff] %v4112_v10  ;;  %v4141_v10 = vld [vmem:[#allocation3 + $0x250] sm:$0xff]  ;;  %728 = vmatpush.msrb.mxu0 %v4139_v63 }
 0x194   :  { %7178 = vst [vmem:[#allocation101_spill] sm:$0xff] %v4116_v1  ;;  %v4145_v1 = vld [vmem:[#allocation3 + $0x58] sm:$0xff]  ;;  %748 = vmatpush.msrb.mxu1 %v4141_v10  ;;  %787 = vmatpush.msrb.mxu3 %v4147_v4 }
 0x195   :  { %7179 = vst [vmem:[#allocation102_spill] sm:$0xff] %v4120_v54  ;;  %v4152_v54 = vld [vmem:[#allocation3 + $0x230] sm:$0xff]  ;;  %768 = vmatpush.msrb.mxu2 %v4145_v1 }
 0x196   :  { %7180 = vst [vmem:[#allocation103_spill] sm:$0xff] %v4122_v60  ;;  %v4150_v60 = vld [vmem:[#allocation3 + $0x30] sm:$0xff]  ;;  %749 = vmatpush.msrb.mxu1 %v4152_v54 }
 0x197   :  { %7181 = vst [vmem:[#allocation104_spill] sm:$0xff] %v4126_v7  ;;  %v4156_v7 = vld [vmem:[#allocation3 + $0x38] sm:$0xff]  ;;  %729 = vmatpush.msrb.mxu0 %v4150_v60 }
 0x198   :  { %7182 = vst [vmem:[#allocation105_spill] sm:$0xff] %v4129_v6  ;;  %v4158_v6 = vld [vmem:[#allocation3 + $0x258] sm:$0xff]  ;;  %769 = vmatpush.msrb.mxu2 %v4156_v7 }
 0x199   :  { %7183 = vst [vmem:[#allocation106_spill] sm:$0xff] %v4131_v32  ;;  %v4162_v32 = vld [vmem:[#allocation3 + $0x10] sm:$0xff]  ;;  %788 = vmatpush.msrb.mxu3 %v4158_v6 }
 0x19a   :  { %7184 = vst [vmem:[#allocation107_spill] sm:$0xff] %v4135_v5  ;;  %v4164_v5 = vld [vmem:[#allocation3 + $0x210] sm:$0xff]  ;;  %730 = vmatpush.msrb.mxu0 %v4162_v32  ;;  %770 = vmatpush.msrb.mxu2 %v4168_v2 }
 0x19b   :  { %7185 = vst [vmem:[#allocation108_spill] sm:$0xff] %v4139_v63  ;;  %v4170_v63 = vld [vmem:[#allocation3 + $0x238] sm:$0xff]  ;;  %750 = vmatpush.msrb.mxu1 %v4164_v5  ;;  %731 = vmatmul.f32.vlgmr.msrb.gmra.mxu0 %v3718_v8 }
 0x19c   :  { %7186 = vst [vmem:[#allocation109_spill] sm:$0xff] %v4145_v1  ;;  %v4178_v1 = vld [vmem:[#allocation6 + $0x1e8] sm:$0xff]  ;;  %789 = vmatpush.msrb.mxu3 %v4170_v63  ;;  %771 = vmatmul.f32.vlgmr.msrb.gmra.mxu2 %v3718_v8 }
 0x19d   :  { %7187 = vst [vmem:[#allocation110_spill] sm:$0xff] %v4147_v4  ;;  %v4176_v4 = vld [vmem:[#allocation6 + $0x1e0] sm:$0xff]  ;;  %901 = vmatpush.msra.mxu1 %v4178_v1  ;;  %v4202_v8 = vld [vmem:[#allocation6 + $0x1a8] sm:$0xff] }
 0x19e   :  { %7188 = vst [vmem:[#allocation111_spill] sm:$0xff] %v4150_v60  ;;  %v4184_v60 = vld [vmem:[#allocation3 + $0x218] sm:$0xff]  ;;  %881 = vmatpush.msra.mxu0 %v4176_v4  ;;  %751 = vmatmul.f32.vlgmr.msrb.gmra.mxu1 %v3542_v52 }
 0x19f   :  { %7189 = vst [vmem:[#allocation112_spill] sm:$0xff] %v4152_v54  ;;  %v4182_v54 = vld [vmem:[#allocation6 + $0x1f0] sm:$0xff]  ;;  %790 = vmatpush.msrb.mxu3 %v4184_v60 }
 0x1a0   :  { %7190 = vst [vmem:[#allocation113_spill] sm:$0xff] %v4158_v6  ;;  %v4190_v6 = vld [vmem:[#allocation6 + $0x1c0] sm:$0xff]  ;;  %921 = vmatpush.msra.mxu2 %v4182_v54  ;;  %791 = vmatmul.f32.vlgmr.msrb.gmra.mxu3 %v3542_v52  ;;  %v4218_v52 = vld [vmem:[#allocation6 + $0x190] sm:$0xff] }
 0x1a1   :  { %7191 = vst [vmem:[#allocation114_spill] sm:$0xff] %v4162_v32  ;;  %v4200_v32 = vld [vmem:[#allocation6 + $0x1a0] sm:$0xff]  ;;  %882 = vmatpush.msra.mxu0 %v4190_v6 }
 0x1a2   :  { %7192 = vst [vmem:[#allocation115_spill] sm:$0xff] %v4164_v5  ;;  %v4192_v5 = vld [vmem:[#allocation6 + $0x1c8] sm:$0xff] }
 0x1a3   :  { %7193 = vst [vmem:[#allocation116_spill] sm:$0xff] %v4168_v2  ;;  %v4198_v2 = vld [vmem:[#allocation6 + $0x1f8] sm:$0xff]  ;;  %902 = vmatpush.msra.mxu1 %v4192_v5  ;;  %883 = vmatpush.msra.mxu0 %v4200_v32 }
 0x1a4   :  { %7194 = vst [vmem:[#allocation117_spill] sm:$0xff] %v4170_v63  ;;  %v4196_v63 = vld [vmem:[#allocation6 + $0x1d0] sm:$0xff]  ;;  %941 = vmatpush.msra.mxu3 %v4198_v2 }
 0x1a5   :  { %7195 = vst [vmem:[#allocation118_spill] sm:$0xff] %v4176_v4  ;;  %v4208_v4 = vld [vmem:[#allocation6 + $0x1d8] sm:$0xff]  ;;  %922 = vmatpush.msra.mxu2 %v4196_v63  ;;  %903 = vmatpush.msra.mxu1 %v4202_v8 }
 0x1a6   :  { %7196 = vst [vmem:[#allocation119_spill] sm:$0xff] %v4178_v1  ;;  %v4206_v1 = vld [vmem:[#allocation6 + $0x1b0] sm:$0xff]  ;;  %942 = vmatpush.msra.mxu3 %v4208_v4 }
 0x1a7   :  { %7197 = vst [vmem:[#allocation120_spill] sm:$0xff] %v4182_v54  ;;  %v4214_v54 = vld [vmem:[#allocation6 + $0x188] sm:$0xff]  ;;  %923 = vmatpush.msra.mxu2 %v4206_v1 }
 0x1a8   :  { %7198 = vst [vmem:[#allocation121_spill] sm:$0xff] %v4184_v60  ;;  %v4212_v60 = vld [vmem:[#allocation6 + $0x180] sm:$0xff]  ;;  %904 = vmatpush.msra.mxu1 %v4214_v54 }
 0x1a9   :  { %7199 = vst [vmem:[#allocation122_spill] sm:$0xff] %v4190_v6  ;;  %v4220_v6 = vld [vmem:[#allocation6 + $0x1b8] sm:$0xff]  ;;  %884 = vmatpush.msra.mxu0 %v4212_v60  ;;  %924 = vmatpush.msra.mxu2 %v4218_v52 }
 0x1aa   :  { %7200 = vst [vmem:[#allocation123_spill] sm:$0xff] %v4192_v5  ;;  %v4224_v5 = vld [vmem:[#allocation6 + $0x160] sm:$0xff]  ;;  %943 = vmatpush.msra.mxu3 %v4220_v6 }
 0x1ab   :  { %7201 = vst [vmem:[#allocation124_spill] sm:$0xff] %v4196_v63  ;;  %v4226_v63 = vld [vmem:[#allocation6 + $0x168] sm:$0xff]  ;;  %885 = vmatpush.msra.mxu0 %v4224_v5 }
 0x1ac   :  { %7202 = vst [vmem:[#allocation125_spill] sm:$0xff] %v4198_v2  ;;  %v4230_v2 = vld [vmem:[#allocation6 + $0x170] sm:$0xff]  ;;  %905 = vmatpush.msra.mxu1 %v4226_v63 }
 0x1ad   :  { %7203 = vst [vmem:[#allocation126_spill] sm:$0xff] %v4200_v32  ;;  %v4232_v32 = vld [vmem:[#allocation6 + $0x198] sm:$0xff]  ;;  %925 = vmatpush.msra.mxu2 %v4230_v2 }
 0x1ae   :  { %7204 = vst [vmem:[#allocation127_spill] sm:$0xff] %v4202_v8  ;;  %v4236_v8 = vld [vmem:[#allocation6 + $0x140] sm:$0xff]  ;;  %944 = vmatpush.msra.mxu3 %v4232_v32 }
 0x1af   :  { %7205 = vst [vmem:[#allocation128_spill] sm:$0xff] %v4206_v1  ;;  %v4238_v1 = vld [vmem:[#allocation6 + $0x148] sm:$0xff]  ;;  %886 = vmatpush.msra.mxu0 %v4236_v8 }
 0x1b0   :  { %7206 = vst [vmem:[#allocation129_spill] sm:$0xff] %v4208_v4  ;;  %v4242_v4 = vld [vmem:[#allocation6 + $0x150] sm:$0xff]  ;;  %906 = vmatpush.msra.mxu1 %v4238_v1 }
 0x1b1   :  { %7207 = vst [vmem:[#allocation130_spill] sm:$0xff] %v4212_v60  ;;  %v4244_v60 = vld [vmem:[#allocation6 + $0x178] sm:$0xff]  ;;  %926 = vmatpush.msra.mxu2 %v4242_v4 }
 0x1b2   :  { %7208 = vst [vmem:[#allocation131_spill] sm:$0xff] %v4214_v54  ;;  %v4248_v54 = vld [vmem:[#allocation6 + $0x120] sm:$0xff]  ;;  %945 = vmatpush.msra.mxu3 %v4244_v60 }
 0x1b3   :  { %7209 = vst [vmem:[#allocation132_spill] sm:$0xff] %v4218_v52  ;;  %v4250_v52 = vld [vmem:[#allocation6 + $0x128] sm:$0xff]  ;;  %887 = vmatpush.msra.mxu0 %v4248_v54 }
 0x1b4   :  { %7210 = vst [vmem:[#allocation133_spill] sm:$0xff] %v4220_v6  ;;  %v4254_v6 = vld [vmem:[#allocation6 + $0x130] sm:$0xff]  ;;  %907 = vmatpush.msra.mxu1 %v4250_v52 }
 0x1b5   :  { %7211 = vst [vmem:[#allocation134_spill] sm:$0xff] %v4224_v5  ;;  %v4256_v5 = vld [vmem:[#allocation6 + $0x158] sm:$0xff]  ;;  %927 = vmatpush.msra.mxu2 %v4254_v6 }
 0x1b6   :  { %7212 = vst [vmem:[#allocation135_spill] sm:$0xff] %v4226_v63  ;;  %v4260_v63 = vld [vmem:[#allocation6 + $0x100] sm:$0xff]  ;;  %946 = vmatpush.msra.mxu3 %v4256_v5 }
 0x1b7   :  { %7213 = vst [vmem:[#allocation136_spill] sm:$0xff] %v4230_v2  ;;  %v4262_v2 = vld [vmem:[#allocation6 + $0x108] sm:$0xff]  ;;  %888 = vmatpush.msra.mxu0 %v4260_v63 }
 0x1b8   :  { %7214 = vst [vmem:[#allocation137_spill] sm:$0xff] %v4232_v32  ;;  %v4266_v32 = vld [vmem:[#allocation6 + $0x110] sm:$0xff]  ;;  %908 = vmatpush.msra.mxu1 %v4262_v2 }
 0x1b9   :  { %7215 = vst [vmem:[#allocation138_spill] sm:$0xff] %v4236_v8  ;;  %v4268_v8 = vld [vmem:[#allocation6 + $0x138] sm:$0xff]  ;;  %928 = vmatpush.msra.mxu2 %v4266_v32 }
 0x1ba   :  { %7216 = vst [vmem:[#allocation139_spill] sm:$0xff] %v4238_v1  ;;  %v4272_v1 = vld [vmem:[#allocation6 + $0xe0] sm:$0xff]  ;;  %947 = vmatpush.msra.mxu3 %v4268_v8 }
 0x1bb   :  { %7217 = vst [vmem:[#allocation140_spill] sm:$0xff] %v4242_v4  ;;  %v4274_v4 = vld [vmem:[#allocation6 + $0xe8] sm:$0xff]  ;;  %889 = vmatpush.msra.mxu0 %v4272_v1 }
 0x1bc   :  { %7218 = vst [vmem:[#allocation141_spill] sm:$0xff] %v4244_v60  ;;  %v4278_v60 = vld [vmem:[#allocation6 + $0xf0] sm:$0xff]  ;;  %909 = vmatpush.msra.mxu1 %v4274_v4 }
 0x1bd   :  { %7219 = vst [vmem:[#allocation142_spill] sm:$0xff] %v4248_v54  ;;  %v4280_v54 = vld [vmem:[#allocation6 + $0x118] sm:$0xff]  ;;  %929 = vmatpush.msra.mxu2 %v4278_v60 }
 0x1be   :  { %7220 = vst [vmem:[#allocation143_spill] sm:$0xff] %v4250_v52  ;;  %v4284_v52 = vld [vmem:[#allocation6 + $0xc0] sm:$0xff]  ;;  %948 = vmatpush.msra.mxu3 %v4280_v54 }
 0x1bf   :  { %7221 = vst [vmem:[#allocation144_spill] sm:$0xff] %v4254_v6  ;;  %v4286_v6 = vld [vmem:[#allocation6 + $0xc8] sm:$0xff]  ;;  %890 = vmatpush.msra.mxu0 %v4284_v52 }
 0x1c0   :  { %7222 = vst [vmem:[#allocation145_spill] sm:$0xff] %v4256_v5  ;;  %v4290_v5 = vld [vmem:[#allocation6 + $0xd0] sm:$0xff]  ;;  %910 = vmatpush.msra.mxu1 %v4286_v6 }
 0x1c1   :  { %7223 = vst [vmem:[#allocation146_spill] sm:$0xff] %v4260_v63  ;;  %v4292_v63 = vld [vmem:[#allocation6 + $0xf8] sm:$0xff]  ;;  %930 = vmatpush.msra.mxu2 %v4290_v5 }
 0x1c2   :  { %7224 = vst [vmem:[#allocation147_spill] sm:$0xff] %v4262_v2  ;;  %v4296_v2 = vld [vmem:[#allocation6 + $0xa0] sm:$0xff]  ;;  %949 = vmatpush.msra.mxu3 %v4292_v63 }
 0x1c3   :  { %7225 = vst [vmem:[#allocation148_spill] sm:$0xff] %v4266_v32  ;;  %v4298_v32 = vld [vmem:[#allocation6 + $0xa8] sm:$0xff]  ;;  %891 = vmatpush.msra.mxu0 %v4296_v2 }
 0x1c4   :  { %7226 = vst [vmem:[#allocation149_spill] sm:$0xff] %v4268_v8  ;;  %v4302_v8 = vld [vmem:[#allocation6 + $0xb0] sm:$0xff]  ;;  %911 = vmatpush.msra.mxu1 %v4298_v32 }
 0x1c5   :  { %7227 = vst [vmem:[#allocation150_spill] sm:$0xff] %v4272_v1  ;;  %v4304_v1 = vld [vmem:[#allocation6 + $0xd8] sm:$0xff]  ;;  %931 = vmatpush.msra.mxu2 %v4302_v8 }
 0x1c6   :  { %7228 = vst [vmem:[#allocation151_spill] sm:$0xff] %v4274_v4  ;;  %v4308_v4 = vld [vmem:[#allocation6 + $0x80] sm:$0xff]  ;;  %950 = vmatpush.msra.mxu3 %v4304_v1 }
 0x1c7   :  { %7229 = vst [vmem:[#allocation152_spill] sm:$0xff] %v4278_v60  ;;  %v4310_v60 = vld [vmem:[#allocation6 + $0x88] sm:$0xff]  ;;  %892 = vmatpush.msra.mxu0 %v4308_v4 }
 0x1c8   :  { %7230 = vst [vmem:[#allocation153_spill] sm:$0xff] %v4280_v54  ;;  %v4314_v54 = vld [vmem:[#allocation6 + $0x90] sm:$0xff]  ;;  %912 = vmatpush.msra.mxu1 %v4310_v60 }
 0x1c9   :  { %7231 = vst [vmem:[#allocation154_spill] sm:$0xff] %v4284_v52  ;;  %v4316_v52 = vld [vmem:[#allocation6 + $0xb8] sm:$0xff]  ;;  %932 = vmatpush.msra.mxu2 %v4314_v54 }
 0x1ca   :  { %7232 = vst [vmem:[#allocation155_spill] sm:$0xff] %v4286_v6  ;;  %v4320_v6 = vld [vmem:[#allocation6 + $0x60] sm:$0xff]  ;;  %951 = vmatpush.msra.mxu3 %v4316_v52 }
 0x1cb   :  { %7233 = vst [vmem:[#allocation156_spill] sm:$0xff] %v4290_v5  ;;  %v4322_v5 = vld [vmem:[#allocation6 + $0x68] sm:$0xff]  ;;  %893 = vmatpush.msra.mxu0 %v4320_v6 }
 0x1cc   :  { %7234 = vst [vmem:[#allocation157_spill] sm:$0xff] %v4292_v63  ;;  %v4326_v63 = vld [vmem:[#allocation6 + $0x70] sm:$0xff]  ;;  %913 = vmatpush.msra.mxu1 %v4322_v5 }
 0x1cd   :  { %7235 = vst [vmem:[#allocation158_spill] sm:$0xff] %v4296_v2  ;;  %v4328_v2 = vld [vmem:[#allocation6 + $0x98] sm:$0xff]  ;;  %933 = vmatpush.msra.mxu2 %v4326_v63 }
 0x1ce   :  { %7236 = vst [vmem:[#allocation159_spill] sm:$0xff] %v4298_v32  ;;  %v4332_v32 = vld [vmem:[#allocation6 + $0x40] sm:$0xff]  ;;  %952 = vmatpush.msra.mxu3 %v4328_v2 }
 0x1cf   :  { %7237 = vst [vmem:[#allocation160_spill] sm:$0xff] %v4302_v8  ;;  %v4334_v8 = vld [vmem:[#allocation6 + $0x48] sm:$0xff]  ;;  %894 = vmatpush.msra.mxu0 %v4332_v32 }
 0x1d0   :  { %7238 = vst [vmem:[#allocation161_spill] sm:$0xff] %v4304_v1  ;;  %v4338_v1 = vld [vmem:[#allocation6 + $0x50] sm:$0xff]  ;;  %914 = vmatpush.msra.mxu1 %v4334_v8 }
 0x1d1   :  { %7239 = vst [vmem:[#allocation162_spill] sm:$0xff] %v4308_v4  ;;  %v4340_v4 = vld [vmem:[#allocation6 + $0x78] sm:$0xff]  ;;  %934 = vmatpush.msra.mxu2 %v4338_v1 }
 0x1d2   :  { %7240 = vst [vmem:[#allocation163_spill] sm:$0xff] %v4310_v60  ;;  %v4344_v60 = vld [vmem:[#allocation6 + $0x20] sm:$0xff]  ;;  %953 = vmatpush.msra.mxu3 %v4340_v4 }
 0x1d3   :  { %7241 = vst [vmem:[#allocation164_spill] sm:$0xff] %v4314_v54  ;;  %v4346_v54 = vld [vmem:[#allocation6 + $0x28] sm:$0xff]  ;;  %895 = vmatpush.msra.mxu0 %v4344_v60 }
 0x1d4   :  { %7242 = vst [vmem:[#allocation165_spill] sm:$0xff] %v4316_v52  ;;  %v4350_v52 = vld [vmem:[#allocation6 + $0x30] sm:$0xff]  ;;  %915 = vmatpush.msra.mxu1 %v4346_v54 }
 0x1d5   :  { %7243 = vst [vmem:[#allocation166_spill] sm:$0xff] %v4320_v6  ;;  %v4352_v6 = vld [vmem:[#allocation6 + $0x58] sm:$0xff]  ;;  %935 = vmatpush.msra.mxu2 %v4350_v52 }
 0x1d6   :  { %7244 = vst [vmem:[#allocation167_spill] sm:$0xff] %v4322_v5  ;;  %v4356_v5 = vld [vmem:[#allocation6] sm:$0xff]  ;;  %954 = vmatpush.msra.mxu3 %v4352_v6 }
 0x1d7   :  { %7245 = vst [vmem:[#allocation168_spill] sm:$0xff] %v4326_v63  ;;  %v4358_v63 = vld [vmem:[#allocation6 + $0x8] sm:$0xff]  ;;  %896 = vmatpush.msra.mxu0 %v4356_v5 }
 0x1d8   :  { %7246 = vst [vmem:[#allocation169_spill] sm:$0xff] %v4328_v2  ;;  %v4362_v2 = vld [vmem:[#allocation6 + $0x10] sm:$0xff]  ;;  %916 = vmatpush.msra.mxu1 %v4358_v63  ;;  %897 = vmatmul.f32.vlgmr.msra.gmra.mxu0 %v3793_v41 }
 0x1d9   :  { %7247 = vst [vmem:[#allocation170_spill] sm:$0xff] %v4334_v8  ;;  %v4368_v8 = vld [vmem:[#allocation6 + $0x38] sm:$0xff]  ;;  %936 = vmatpush.msra.mxu2 %v4362_v2  ;;  %917 = vmatmul.f32.vlgmr.msra.gmra.mxu1 %v3793_v41 }
 0x1da   :  { %7248 = vst [vmem:[#allocation171_spill] sm:$0xff] %v4346_v54  ;;  %937 = vmatmul.f32.vlgmr.msra.gmra.mxu2 %v3793_v41  ;;  %v4374_v54 = vld [vmem:[#allocation6 + $0x18] sm:$0xff]  ;;  %955 = vmatpush.msra.mxu3 %v4368_v8 }
 0x1db   :  { %983 = vmatpush.msrb.mxu0 %v3795_v43  ;;  %1003 = vmatpush.msrb.mxu1 %v3797_v44  ;;  %v7266_v43 = vld [vmem:[#allocation61_spill] sm:$0xff]  ;;  %v7267_v44 = vld [vmem:[#allocation62_spill] sm:$0xff] }
 0x1dc   :  { %1023 = vmatpush.msrb.mxu2 %v3799_v48  ;;  %956 = vmatpush.msra.mxu3 %v4374_v54  ;;  %v7268_v48 = vld [vmem:[#allocation59_spill] sm:$0xff] }
 0x1dd   :  { %984 = vmatpush.msrb.mxu0 %v3803_v55  ;;  %957 = vmatmul.f32.vlgmr.msra.gmra.mxu3 %v3793_v41  ;;  %v7269_v55 = vld [vmem:[#allocation64_spill] sm:$0xff] }
 0x1de   :  { %1004 = vmatpush.msrb.mxu1 %v3805_v49  ;;  %1024 = vmatpush.msrb.mxu2 %v3807_v56  ;;  %v7270_v49 = vld [vmem:[#allocation65_spill] sm:$0xff]  ;;  %v7271_v56 = vld [vmem:[#allocation66_spill] sm:$0xff] }
 0x1df   :  { %985 = vmatpush.msrb.mxu0 %v3812_v58  ;;  %1043 = vmatpush.msrb.mxu3 %v3810_v57  ;;  %v7272_v57 = vld [vmem:[#allocation63_spill] sm:$0xff]  ;;  %v7273_v58 = vld [vmem:[#allocation68_spill] sm:$0xff] }
 0x1e0   :  { %1005 = vmatpush.msrb.mxu1 %v3814_v59  ;;  %1025 = vmatpush.msrb.mxu2 %v3818_v61  ;;  %v7274_v59 = vld [vmem:[#allocation69_spill] sm:$0xff]  ;;  %v7275_v61 = vld [vmem:[#allocation70_spill] sm:$0xff] }
 0x1e1   :  { %986 = vmatpush.msrb.mxu0 %v3824_v0  ;;  %1044 = vmatpush.msrb.mxu3 %v3820_v62  ;;  %v7276_v62 = vld [vmem:[#allocation67_spill] sm:$0xff]  ;;  %v7277_v0 = vld [vmem:[#allocation72_spill] sm:$0xff] }
 0x1e2   :  { %1006 = vmatpush.msrb.mxu1 %v3826_v3  ;;  %1026 = vmatpush.msrb.mxu2 %v3830_v9  ;;  %v7278_v3 = vld [vmem:[#allocation73_spill] sm:$0xff]  ;;  %v7279_v9 = vld [vmem:[#allocation74_spill] sm:$0xff] }
 0x1e3   :  { %987 = vmatpush.msrb.mxu0 %v3836_v12  ;;  %1045 = vmatpush.msrb.mxu3 %v3832_v11  ;;  %v7280_v11 = vld [vmem:[#allocation71_spill] sm:$0xff]  ;;  %v7281_v12 = vld [vmem:[#allocation76_spill] sm:$0xff] }
 0x1e4   :  { %1007 = vmatpush.msrb.mxu1 %v3838_v14  ;;  %1027 = vmatpush.msrb.mxu2 %v3842_v20  ;;  %v7282_v14 = vld [vmem:[#allocation77_spill] sm:$0xff]  ;;  %v7283_v20 = vld [vmem:[#allocation78_spill] sm:$0xff] }
 0x1e5   :  { %988 = vmatpush.msrb.mxu0 %v3848_v23  ;;  %1046 = vmatpush.msrb.mxu3 %v3844_v35  ;;  %v7284_v35 = vld [vmem:[#allocation75_spill] sm:$0xff]  ;;  %v7285_v23 = vld [vmem:[#allocation80_spill] sm:$0xff] }
 0x1e6   :  { %1008 = vmatpush.msrb.mxu1 %v3850_v37  ;;  %1028 = vmatpush.msrb.mxu2 %v3854_v17  ;;  %v7286_v37 = vld [vmem:[#allocation81_spill] sm:$0xff]  ;;  %v7287_v17 = vld [vmem:[#allocation82_spill] sm:$0xff] }
 0x1e7   :  { %989 = vmatpush.msrb.mxu0 %v3860_v22  ;;  %1047 = vmatpush.msrb.mxu3 %v3856_v19  ;;  %v7288_v19 = vld [vmem:[#allocation79_spill] sm:$0xff]  ;;  %v7289_v22 = vld [vmem:[#allocation84_spill] sm:$0xff] }
 0x1e8   :  { %1009 = vmatpush.msrb.mxu1 %v3862_v24  ;;  %1029 = vmatpush.msrb.mxu2 %v3866_v27  ;;  %v7290_v24 = vld [vmem:[#allocation85_spill] sm:$0xff]  ;;  %v7291_v27 = vld [vmem:[#allocation86_spill] sm:$0xff] }
 0x1e9   :  { %990 = vmatpush.msrb.mxu0 %v3872_v31  ;;  %1048 = vmatpush.msrb.mxu3 %v3868_v28  ;;  %v7292_v28 = vld [vmem:[#allocation83_spill] sm:$0xff]  ;;  %v7293_v31 = vld [vmem:[#allocation88_spill] sm:$0xff] }
 0x1ea   :  { %1010 = vmatpush.msrb.mxu1 %v3874_v46  ;;  %1030 = vmatpush.msrb.mxu2 %v3878_v33  ;;  %v7294_v46 = vld [vmem:[#allocation89_spill] sm:$0xff]  ;;  %v7295_v33 = vld [vmem:[#allocation90_spill] sm:$0xff] }
 0x1eb   :  { %991 = vmatpush.msrb.mxu0 %v3884_v34  ;;  %1049 = vmatpush.msrb.mxu3 %v3880_v51  ;;  %v7296_v51 = vld [vmem:[#allocation87_spill] sm:$0xff]  ;;  %v7297_v34 = vld [vmem:[#allocation92_spill] sm:$0xff] }
 0x1ec   :  { %1011 = vmatpush.msrb.mxu1 %v3886_v39  ;;  %1031 = vmatpush.msrb.mxu2 %v3890_v53  ;;  %v7265_v53 = vld [vmem:[#allocation60_spill] sm:$0xff]  ;;  %v7298_v39 = vld [vmem:[#allocation93_spill] sm:$0xff] }
 0x1ed   :  { %992 = vmatpush.msrb.mxu0 %v3896_v47  ;;  %1050 = vmatpush.msrb.mxu3 %v3892_v50  ;;  %v7263_v47 = vld [vmem:[#allocation58_spill] sm:$0xff]  ;;  %v7264_v50 = vld [vmem:[#allocation55_spill] sm:$0xff] }
 0x1ee   :  { %1012 = vmatpush.msrb.mxu1 %v3898_v45  ;;  %1032 = vmatpush.msrb.mxu2 %v3902_v42  ;;  %v7261_v42 = vld [vmem:[#allocation56_spill] sm:$0xff]  ;;  %v7262_v45 = vld [vmem:[#allocation57_spill] sm:$0xff] }
 0x1ef   :  { %993 = vmatpush.msrb.mxu0 %v3908_v38  ;;  %1051 = vmatpush.msrb.mxu3 %v3904_v40  ;;  %v7250_v38 = vld [vmem:[#allocation45_spill] sm:$0xff]  ;;  %v7260_v40 = vld [vmem:[#allocation54_spill] sm:$0xff] }
 0x1f0   :  { %1013 = vmatpush.msrb.mxu1 %v3910_v36  ;;  %1033 = vmatpush.msrb.mxu2 %v3914_v30  ;;  %v7249_v36 = vld [vmem:[#allocation44_spill] sm:$0xff]  ;;  %v7251_v30 = vld [vmem:[#allocation43_spill] sm:$0xff] }
 0x1f1   :  { %994 = vmatpush.msrb.mxu0 %v3920_v26  ;;  %1052 = vmatpush.msrb.mxu3 %v3916_v29  ;;  %v7252_v26 = vld [vmem:[#allocation46_spill] sm:$0xff]  ;;  %v7254_v29 = vld [vmem:[#allocation49_spill] sm:$0xff] }
 0x1f2   :  { %1014 = vmatpush.msrb.mxu1 %v3922_v25  ;;  %1034 = vmatpush.msrb.mxu2 %v3926_v21  ;;  %v7253_v25 = vld [vmem:[#allocation48_spill] sm:$0xff]  ;;  %v7255_v21 = vld [vmem:[#allocation47_spill] sm:$0xff] }
 0x1f3   :  { %995 = vmatpush.msrb.mxu0 %v3932_v16  ;;  %1053 = vmatpush.msrb.mxu3 %v3928_v18  ;;  %v7256_v16 = vld [vmem:[#allocation50_spill] sm:$0xff]  ;;  %v7258_v18 = vld [vmem:[#allocation53_spill] sm:$0xff] }
 0x1f4   :  { %1015 = vmatpush.msrb.mxu1 %v3934_v13  ;;  %1035 = vmatpush.msrb.mxu2 %v3938_v15  ;;  %v7257_v13 = vld [vmem:[#allocation52_spill] sm:$0xff]  ;;  %v7259_v15 = vld [vmem:[#allocation51_spill] sm:$0xff] }
 0x1f5   :  { %996 = vmatpush.msrb.mxu0 %v7249_v36  ;;  %1054 = vmatpush.msrb.mxu3 %v7251_v30  ;;  %v7299_v36 = vld [vmem:[#allocation94_spill] sm:$0xff]  ;;  %v7301_v30 = vld [vmem:[#allocation96_spill] sm:$0xff] }
 0x1f6   :  { %1016 = vmatpush.msrb.mxu1 %v7250_v38  ;;  %1036 = vmatpush.msrb.mxu2 %v7252_v26  ;;  %v7300_v38 = vld [vmem:[#allocation91_spill] sm:$0xff]  ;;  %v7302_v26 = vld [vmem:[#allocation97_spill] sm:$0xff] }
 0x1f7   :  { %997 = vmatpush.msrb.mxu0 %v7253_v25  ;;  %1055 = vmatpush.msrb.mxu3 %v7255_v21  ;;  %v7303_v25 = vld [vmem:[#allocation98_spill] sm:$0xff]  ;;  %v7305_v21 = vld [vmem:[#allocation100_spill] sm:$0xff] }
 0x1f8   :  { %1017 = vmatpush.msrb.mxu1 %v7254_v29  ;;  %1037 = vmatpush.msrb.mxu2 %v7256_v16  ;;  %v7304_v29 = vld [vmem:[#allocation95_spill] sm:$0xff]  ;;  %v7306_v16 = vld [vmem:[#allocation101_spill] sm:$0xff] }
 0x1f9   :  { %998 = vmatpush.msrb.mxu0 %v7257_v13  ;;  %1056 = vmatpush.msrb.mxu3 %v7259_v15  ;;  %v7307_v13 = vld [vmem:[#allocation102_spill] sm:$0xff]  ;;  %v7309_v15 = vld [vmem:[#allocation105_spill] sm:$0xff] }
 0x1fa   :  { %1018 = vmatpush.msrb.mxu1 %v7258_v18  ;;  %1038 = vmatpush.msrb.mxu2 %v7260_v40  ;;  %v7308_v18 = vld [vmem:[#allocation99_spill] sm:$0xff]  ;;  %v7310_v40 = vld [vmem:[#allocation104_spill] sm:$0xff] }
 0x1fb   :  { %1063 = vmatpush.msra.mxu0 %v7261_v42  ;;  %1057 = vmatpush.msrb.mxu3 %v7264_v50  ;;  %v7311_v42 = vld [vmem:[#allocation106_spill] sm:$0xff]  ;;  %v7314_v50 = vld [vmem:[#allocation109_spill] sm:$0xff] }
 0x1fc   :  { %1083 = vmatpush.msra.mxu1 %v7262_v45  ;;  %1103 = vmatpush.msra.mxu2 %v7263_v47  ;;  %v7312_v45 = vld [vmem:[#allocation103_spill] sm:$0xff]  ;;  %v7313_v47 = vld [vmem:[#allocation108_spill] sm:$0xff] }
 0x1fd   :  { %1064 = vmatpush.msra.mxu0 %v7265_v53  ;;  %1058 = vmatpush.msrb.mxu3 %v7268_v48  ;;  %v7315_v53 = vld [vmem:[#allocation107_spill] sm:$0xff]  ;;  %v7318_v48 = vld [vmem:[#allocation110_spill] sm:$0xff] }
 0x1fe   :  { %1084 = vmatpush.msra.mxu1 %v7266_v43  ;;  %1104 = vmatpush.msra.mxu2 %v7267_v44  ;;  %v7316_v43 = vld [vmem:[#allocation111_spill] sm:$0xff]  ;;  %v7317_v44 = vld [vmem:[#allocation112_spill] sm:$0xff] }
 0x1ff   :  { %1065 = vmatpush.msra.mxu0 %v7269_v55  ;;  %1123 = vmatpush.msra.mxu3 %v7272_v57  ;;  %v7319_v55 = vld [vmem:[#allocation114_spill] sm:$0xff]  ;;  %v7322_v57 = vld [vmem:[#allocation113_spill] sm:$0xff] }
 0x200   :  { %1085 = vmatpush.msra.mxu1 %v7270_v49  ;;  %1105 = vmatpush.msra.mxu2 %v7271_v56  ;;  %v7320_v49 = vld [vmem:[#allocation115_spill] sm:$0xff]  ;;  %v7321_v56 = vld [vmem:[#allocation116_spill] sm:$0xff] }
 0x201   :  { %1066 = vmatpush.msra.mxu0 %v7273_v58  ;;  %1124 = vmatpush.msra.mxu3 %v7276_v62  ;;  %v7324_v58 = vld [vmem:[#allocation120_spill] sm:$0xff]  ;;  %v7328_v62 = vld [vmem:[#allocation121_spill] sm:$0xff] }
 0x202   :  { %1086 = vmatpush.msra.mxu1 %v7274_v59  ;;  %1106 = vmatpush.msra.mxu2 %v7275_v61  ;;  %v7325_v59 = vld [vmem:[#allocation117_spill] sm:$0xff]  ;;  %v7326_v61 = vld [vmem:[#allocation122_spill] sm:$0xff] }
 0x203   :  { %1067 = vmatpush.msra.mxu0 %v7277_v0  ;;  %1125 = vmatpush.msra.mxu3 %v7280_v11  ;;  %v7329_v0 = vld [vmem:[#allocation126_spill] sm:$0xff]  ;;  %v7332_v11 = vld [vmem:[#allocation132_spill] sm:$0xff] }
 0x204   :  { %1087 = vmatpush.msra.mxu1 %v7278_v3  ;;  %1107 = vmatpush.msra.mxu2 %v7279_v9  ;;  %v7330_v3 = vld [vmem:[#allocation128_spill] sm:$0xff]  ;;  %v7331_v9 = vld [vmem:[#allocation130_spill] sm:$0xff] }
 0x205   :  { %1068 = vmatpush.msra.mxu0 %v7281_v12  ;;  %1126 = vmatpush.msra.mxu3 %v7284_v35  ;;  %v7333_v12 = vld [vmem:[#allocation134_spill] sm:$0xff]  ;;  %v7336_v35 = vld [vmem:[#allocation140_spill] sm:$0xff] }
 0x206   :  { %1088 = vmatpush.msra.mxu1 %v7282_v14  ;;  %1108 = vmatpush.msra.mxu2 %v7283_v20  ;;  %v7334_v14 = vld [vmem:[#allocation136_spill] sm:$0xff]  ;;  %v7335_v20 = vld [vmem:[#allocation138_spill] sm:$0xff] }
 0x207   :  { %1069 = vmatpush.msra.mxu0 %v7285_v23  ;;  %1127 = vmatpush.msra.mxu3 %v7288_v19  ;;  %v7337_v23 = vld [vmem:[#allocation142_spill] sm:$0xff]  ;;  %v652_v19 = vpop.f32.mrf.mxu0 }
 0x208   :  { %1089 = vmatpush.msra.mxu1 %v7286_v37  ;;  %1109 = vmatpush.msra.mxu2 %v7287_v17  ;;  %v7339_v37 = vld [vmem:[#allocation146_spill] sm:$0xff]  ;;  %v7340_v17 = vld [vmem:[#allocation148_spill] sm:$0xff] }
 0x209   :  { %1070 = vmatpush.msra.mxu0 %v7289_v22  ;;  %1128 = vmatpush.msra.mxu3 %v7292_v28  ;;  %v7341_v22 = vld [vmem:[#allocation14_spill] sm:$0xff] }
 0x20a   :  { %1090 = vmatpush.msra.mxu1 %v7290_v24  ;;  %1110 = vmatpush.msra.mxu2 %v7291_v27  ;;  %v653_v24 = vadd.f32 %v652_v19, %v7341_v22  ;;  %v692_v27 = vpop.f32.mrf.mxu2  ;;  %v7342_v28 = vld [vmem:[#allocation150_spill] sm:$0xff] }
 0x20b   :  { %1071 = vmatpush.msra.mxu0 %v7293_v31  ;;  %1129 = vmatpush.msra.mxu3 %v7296_v51  ;;  %v7343_v31 = vld [vmem:[#allocation152_spill] sm:$0xff]  ;;  %v4620_v22 = vld [vmem:[#allocation3 + $0x80] sm:$0xff] }
 0x20c   :  { %1091 = vmatpush.msra.mxu1 %v7294_v46  ;;  %1111 = vmatpush.msra.mxu2 %v7295_v33  ;;  %v672_v46 = vpop.f32.mrf.mxu1  ;;  %v7344_v33 = vld [vmem:[#allocation15_spill] sm:$0xff]  ;;  %7372 = vst [vmem:[#allocation57_spill] sm:$0xff] %v4620_v22 }
 0x20d   :  { %1072 = vmatpush.msra.mxu0 %v7297_v34  ;;  %1130 = vmatpush.msra.mxu3 %v7300_v38  ;;  %v693_v51 = vadd.f32 %v692_v27, %v7344_v33  ;;  %v673_v34 = vadd.f32 %v672_v46, %v653_v24  ;;  %v4553_v24 = vld [vmem:[#allocation3 + $0x1c0] sm:$0xff]  ;;  %v4556_v27 = vld [vmem:[#allocation3 + $0x1c8] sm:$0xff] }
 0x20e   :  { %1092 = vmatpush.msra.mxu1 %v7298_v39  ;;  %1112 = vmatpush.msra.mxu2 %v7299_v36  ;;  %v7345_v39 = vld [vmem:[#allocation154_spill] sm:$0xff]  ;;  %v7346_v36 = vld [vmem:[#allocation156_spill] sm:$0xff] }
 0x20f   :  { %1073 = vmatpush.msra.mxu0 %v7301_v30  ;;  %1131 = vmatpush.msra.mxu3 %v7304_v29  ;;  %v795_v30 = vmul.f32 0.5, %v673_v34  ;;  %v7348_v29 = vld [vmem:[#allocation160_spill] sm:$0xff]  ;;  %v4559_v34 = vld [vmem:[#allocation3 + $0x1a0] sm:$0xff]  ;;  %v4615_v33 = vld [vmem:[#allocation3 + $0xa8] sm:$0xff] }
 0x210   :  { %1093 = vmatpush.msra.mxu1 %v7302_v26  ;;  %1113 = vmatpush.msra.mxu2 %v7303_v25  ;;  %v7347_v25 = vld [vmem:[#allocation158_spill] sm:$0xff]  ;;  %7369 = vst [vmem:[#allocation56_spill] sm:$0xff] %v4615_v33 }
 0x211   :  { %1074 = vmatpush.msra.mxu0 %v7305_v21  ;;  %1132 = vmatpush.msra.mxu3 %v7308_v18  ;;  %v712_v38 = vpop.f32.mrf.mxu3  ;;  %2850 = vtanh.f32 %v795_v30 }
 0x212   :  { %1094 = vmatpush.msra.mxu1 %v7306_v16  ;;  %1114 = vmatpush.msra.mxu2 %v7307_v13  ;;  %v713_v26 = vadd.f32 %v712_v38, %v693_v51  ;;  %v7349_v16 = vld [vmem:[#allocation162_spill] sm:$0xff]  ;;  %v7350_v13 = vld [vmem:[#allocation164_spill] sm:$0xff] }
 0x213   :  { %1075 = vmatpush.msra.mxu0 %v7309_v15  ;;  %1133 = vmatpush.msra.mxu3 %v7312_v45  ;;  %v7351_v15 = vld [vmem:[#allocation166_spill] sm:$0xff] }
 0x214   :  { %1095 = vmatpush.msra.mxu1 %v7310_v40  ;;  %1115 = vmatpush.msra.mxu2 %v7311_v42  ;;  %v799_v21 = vmul.f32 0.5, %v713_v26  ;;  %v7352_v40 = vld [vmem:[#allocation168_spill] sm:$0xff]  ;;  %v4562_v38 = vld [vmem:[#allocation3 + $0x1a8] sm:$0xff] }
 0x215   :  { %999 = vmatmul.f32.vlgmr.msrb.gmra.mxu0 %v3793_v41  ;;  %1039 = vmatmul.f32.vlgmr.msrb.gmra.mxu2 %v3793_v41  ;;  %v7353_v42 = vld [vmem:[#allocation16_spill] sm:$0xff] }
 0x216   :  { %1076 = vmatpush.msra.mxu0 %v7313_v47  ;;  %1096 = vmatpush.msra.mxu1 %v4141_v10  ;;  %v7323_v10 = vld [vmem:[#allocation118_spill] sm:$0xff]  ;;  %2852 = vtanh.f32 %v799_v21 }
 0x217   :  { %1116 = vmatpush.msra.mxu2 %v7314_v50  ;;  %1134 = vmatpush.msra.mxu3 %v7315_v53  ;;  %v2851_v50 = vpop.eup %2850 }
 0x218   :  { %1077 = vmatpush.msra.mxu0 %v7316_v43  ;;  %1097 = vmatpush.msra.mxu1 %v7317_v44  ;;  %v732_v18 = vpop.f32.mrf.mxu0  ;;  %v797_v43 = vmul.f32 0.5, %v2851_v50  ;;  %v4573_v50 = vld [vmem:[#allocation3 + $0x160] sm:$0xff] }
 0x219   :  { %1117 = vmatpush.msra.mxu2 %v4156_v7  ;;  %1135 = vmatpush.msra.mxu3 %v7318_v48  ;;  %v7327_v7 = vld [vmem:[#allocation124_spill] sm:$0xff]  ;;  %v733_v45 = vadd.f32 %v732_v18, %v7353_v42  ;;  %v4565_v18 = vld [vmem:[#allocation3 + $0x180] sm:$0xff] }
 0x21a   :  { %1078 = vmatpush.msra.mxu0 %v7319_v55  ;;  %1098 = vmatpush.msra.mxu1 %v7320_v49  ;;  %v7354_v49 = vld [vmem:[#allocation17_spill] sm:$0xff] }
 0x21b   :  { %1118 = vmatpush.msra.mxu2 %v7321_v56  ;;  %1136 = vmatpush.msra.mxu3 %v7322_v57  ;;  %v752_v47 = vpop.f32.mrf.mxu1  ;;  %v4547_v57 = vld [vmem:[#allocation3 + $0x1e0] sm:$0xff] }
 0x21c   :  { %1165 = vmatpush.msrb.mxu0 %v7323_v10  ;;  %v753_v53 = vadd.f32 %v752_v47, %v733_v45  ;;  %v2853_v44 = vpop.eup %2852  ;;  %v4550_v10 = vld [vmem:[#allocation3 + $0x1e8] sm:$0xff]  ;;  %v4612_v42 = vld [vmem:[#allocation3 + $0xa0] sm:$0xff] }
 0x21d   :  { %1205 = vmatpush.msrb.mxu2 %v7324_v58  ;;  %1079 = vmatmul.f32.vlgmr.msra.gmra.mxu0 %v3793_v41  ;;  %v801_v55 = vmul.f32 0.5, %v2853_v44  ;;  %v4568_v45 = vld [vmem:[#allocation3 + $0x188] sm:$0xff]  ;;  %7368 = vst [vmem:[#allocation54_spill] sm:$0xff] %v4612_v42 }
 0x21e   :  { %1137 = vmatpush.msra.mxu3 %v7325_v59  ;;  %1166 = vmatpush.msrb.mxu0 %v7326_v61  ;;  %2854 = vtanh.f32 %v753_v53  ;;  %v798_v59 = vadd.f32 0.5, %v797_v43  ;;  %v4576_v53 = vld [vmem:[#allocation3 + $0x168] sm:$0xff]  ;;  %v4580_v43 = vld [vmem:[#allocation3 + $0x140] sm:$0xff] }
 0x21f   :  { %1206 = vmatpush.msrb.mxu2 %v7327_v7  ;;  %v772_v48 = vpop.f32.mrf.mxu2  ;;  %7356 = vst [vmem:[#allocation45_spill] sm:$0xff] %v4580_v43  ;;  %v4583_v44 = vld [vmem:[#allocation3 + $0x148] sm:$0xff] }
 0x220   :  { %1119 = vmatmul.f32.vlgmr.msra.gmra.mxu2 %v3793_v41  ;;  %1138 = vmatpush.msra.mxu3 %v7328_v62  ;;  %v7338_v41 = vld [vmem:[#allocation144_spill] sm:$0xff]  ;;  %v773_v56 = vadd.f32 %v772_v48, %v7354_v49  ;;  %v802_v62 = vadd.f32 0.5, %v801_v55  ;;  %7357 = vst [vmem:[#allocation43_spill] sm:$0xff] %v4583_v44  ;;  %v4586_v48 = vld [vmem:[#allocation3 + $0x120] sm:$0xff]  ;;  %v4589_v55 = vld [vmem:[#allocation3 + $0x128] sm:$0xff] }
 0x221   :  { %1167 = vmatpush.msrb.mxu0 %v7329_v0  ;;  %1207 = vmatpush.msrb.mxu2 %v7330_v3  ;;  %7358 = vst [vmem:[#allocation46_spill] sm:$0xff] %v4586_v48  ;;  %v7367_v49 = vld [vmem:[#allocation125_spill] sm:$0xff] }
 0x222   :  { %v808_v51 = vmul.f32 0.0, %v802_v62  ;;  %7359 = vst [vmem:[#allocation48_spill] sm:$0xff] %v4589_v55  ;;  %v4592_v62 = vld [vmem:[#allocation3 + $0x100] sm:$0xff] }
 0x223   :  { %1168 = vmatpush.msrb.mxu0 %v7331_v9  ;;  %1208 = vmatpush.msrb.mxu2 %v7332_v11  ;;  %v792_v19 = vpop.f32.mrf.mxu3  ;;  %7360 = vst [vmem:[#allocation49_spill] sm:$0xff] %v4592_v62 }
 0x224   :  { %v793_v46 = vadd.f32 %v792_v19, %v773_v56  ;;  %v2855_v30 = vpop.eup %2854  ;;  %v4595_v19 = vld [vmem:[#allocation3 + $0x108] sm:$0xff] }
 0x225   :  { %1169 = vmatpush.msrb.mxu0 %v7333_v12  ;;  %1209 = vmatpush.msrb.mxu2 %v7334_v14  ;;  %v809_v21 = vmul.f32 %v2855_v30, %v798_v59  ;;  %7361 = vst [vmem:[#allocation47_spill] sm:$0xff] %v4595_v19  ;;  %v4598_v30 = vld [vmem:[#allocation3 + $0xe0] sm:$0xff] }
 0x226   :  { %v804_v26 = vmul.f32 0.5, %v793_v46  ;;  %7362 = vst [vmem:[#allocation50_spill] sm:$0xff] %v4598_v30 }
 0x227   :  { %1170 = vmatpush.msrb.mxu0 %v7335_v20  ;;  %1210 = vmatpush.msrb.mxu2 %v7336_v35  ;;  %v4571_v47 = vadd.f32 %v809_v21, %v808_v51 }
 0x228   :  { %2856 = vtanh.f32 %v804_v26  ;;  %v4601_v26 = vld [vmem:[#allocation3 + $0xe8] sm:$0xff] }
 0x229   :  { %1171 = vmatpush.msrb.mxu0 %v7337_v23  ;;  %1211 = vmatpush.msrb.mxu2 %v7338_v41  ;;  %7355 = vst [vmem:[#allocation44_spill] sm:$0xff] %v4571_v47  ;;  %2858 = vtanh.f32 %v4571_v47  ;;  %v4607_v47 = vld [vmem:[#allocation3 + $0xc8] sm:$0xff] }
 0x22a   :  { %7363 = vst [vmem:[#allocation52_spill] sm:$0xff] %v4601_v26 }
 0x22b   :  { %1172 = vmatpush.msrb.mxu0 %v7339_v37  ;;  %1212 = vmatpush.msrb.mxu2 %v7340_v17  ;;  %7365 = vst [vmem:[#allocation51_spill] sm:$0xff] %v4607_v47 }
 0x22d   :  { %1173 = vmatpush.msrb.mxu0 %v7342_v28  ;;  %1213 = vmatpush.msrb.mxu2 %v7343_v31 }
 0x22e   :  { %v2857_v56 = vpop.eup %2856 }
 0x22f   :  { %1174 = vmatpush.msrb.mxu0 %v7345_v39  ;;  %1214 = vmatpush.msrb.mxu2 %v7346_v36  ;;  %v806_v59 = vmul.f32 0.5, %v2857_v56  ;;  %v2859_v46 = vpop.eup %2858  ;;  %v4604_v56 = vld [vmem:[#allocation3 + $0xc0] sm:$0xff] }
 0x230   :  { %7364 = vst [vmem:[#allocation53_spill] sm:$0xff] %v4604_v56 }
 0x231   :  { %1175 = vmatpush.msrb.mxu0 %v7347_v25  ;;  %1215 = vmatpush.msrb.mxu2 %v7348_v29  ;;  %v807_v51 = vadd.f32 0.5, %v806_v59  ;;  %v7366_v59 = vld [vmem:[#allocation119_spill] sm:$0xff] }
 0x233   :  { %1176 = vmatpush.msrb.mxu0 %v7349_v16  ;;  %1216 = vmatpush.msrb.mxu2 %v7350_v13  ;;  %v812_v21 = vmul.f32 %v2859_v46, %v807_v51  ;;  %v7370_v46 = vld [vmem:[#allocation123_spill] sm:$0xff]  ;;  %v7371_v51 = vld [vmem:[#allocation129_spill] sm:$0xff] }
 0x235   :  { %1177 = vmatpush.msrb.mxu0 %v7351_v15  ;;  %1217 = vmatpush.msrb.mxu2 %v7352_v40 }
 0x236   :  { %1019 = vmatmul.f32.vlgmr.msrb.gmra.mxu1 %v812_v21  ;;  %1059 = vmatmul.f32.vlgmr.msrb.gmra.mxu3 %v812_v21 }
 0x237   :  { %1178 = vmatpush.msrb.mxu0 %v4332_v32  ;;  %1218 = vmatpush.msrb.mxu2 %v4338_v1 }
 0x238   :  { %1185 = vmatpush.msrb.mxu1 %v7366_v59  ;;  %1225 = vmatpush.msrb.mxu3 %v7367_v49  ;;  %v7374_v49 = vld [vmem:[#allocation127_spill] sm:$0xff]  ;;  %v7375_v59 = vld [vmem:[#allocation133_spill] sm:$0xff] }
 0x239   :  { %1179 = vmatpush.msrb.mxu0 %v4344_v60  ;;  %1219 = vmatpush.msrb.mxu2 %v4350_v52 }
 0x23a   :  { %1186 = vmatpush.msrb.mxu1 %v7370_v46  ;;  %1226 = vmatpush.msrb.mxu3 %v7371_v51  ;;  %v4631_v46 = vld [vmem:[#allocation3 + $0x68] sm:$0xff] }
 0x23b   :  { %1180 = vmatpush.msrb.mxu0 %v4356_v5  ;;  %1220 = vmatpush.msrb.mxu2 %v4362_v2  ;;  %7377 = vst [vmem:[#allocation60_spill] sm:$0xff] %v4631_v46  ;;  %v7378_v51 = vld [vmem:[#allocation18_spill] sm:$0xff] }
 0x23c   :  { %1187 = vmatpush.msrb.mxu1 %v7374_v49  ;;  %1227 = vmatpush.msrb.mxu3 %v7375_v59 }
 0x23d   :  { %1267 = vmatpush.msra.mxu0 %v4547_v57  ;;  %1307 = vmatpush.msra.mxu2 %v4550_v10 }
 0x23e   :  { %1099 = vmatmul.f32.vlgmr.msra.gmra.mxu1 %v812_v21  ;;  %1139 = vmatmul.f32.vlgmr.msra.gmra.mxu3 %v812_v21  ;;  %v7392_v21 = vld [vmem:[#allocation20_spill] sm:$0xff] }
 0x23f   :  { %1268 = vmatpush.msra.mxu0 %v4553_v24  ;;  %1308 = vmatpush.msra.mxu2 %v4556_v27 }
 0x241   :  { %1269 = vmatpush.msra.mxu0 %v4559_v34  ;;  %1309 = vmatpush.msra.mxu2 %v4562_v38 }
 0x243   :  { %1270 = vmatpush.msra.mxu0 %v4565_v18  ;;  %1310 = vmatpush.msra.mxu2 %v4568_v45 }
 0x245   :  { %1271 = vmatpush.msra.mxu0 %v4573_v50  ;;  %1311 = vmatpush.msra.mxu2 %v4576_v53 }
 0x247   :  { %1272 = vmatpush.msra.mxu0 %v4580_v43  ;;  %1312 = vmatpush.msra.mxu2 %v4583_v44 }
 0x249   :  { %1273 = vmatpush.msra.mxu0 %v4586_v48  ;;  %1313 = vmatpush.msra.mxu2 %v4589_v55  ;;  %v4640_v55 = vld [vmem:[#allocation3 + $0x40] sm:$0xff] }
 0x24a   :  { %7384 = vst [vmem:[#allocation61_spill] sm:$0xff] %v4640_v55 }
 0x24b   :  { %1274 = vmatpush.msra.mxu0 %v4592_v62  ;;  %1314 = vmatpush.msra.mxu2 %v4595_v19  ;;  %v7382_v19 = vld [vmem:[#allocation135_spill] sm:$0xff]  ;;  %v7383_v62 = vld [vmem:[#allocation141_spill] sm:$0xff] }
 0x24d   :  { %1275 = vmatpush.msra.mxu0 %v4598_v30  ;;  %1315 = vmatpush.msra.mxu2 %v4601_v26  ;;  %v7379_v26 = vld [vmem:[#allocation131_spill] sm:$0xff]  ;;  %v7380_v30 = vld [vmem:[#allocation137_spill] sm:$0xff] }
 0x24e   :  { %1188 = vmatpush.msrb.mxu1 %v7379_v26  ;;  %1228 = vmatpush.msrb.mxu3 %v7380_v30  ;;  %v7386_v30 = vld [vmem:[#allocation139_spill] sm:$0xff]  ;;  %v7391_v26 = vld [vmem:[#allocation149_spill] sm:$0xff] }
 0x24f   :  { %1276 = vmatpush.msra.mxu0 %v4604_v56  ;;  %1316 = vmatpush.msra.mxu2 %v4607_v47  ;;  %v4623_v47 = vld [vmem:[#allocation3 + $0x88] sm:$0xff]  ;;  %v4628_v56 = vld [vmem:[#allocation3 + $0x60] sm:$0xff] }
 0x250   :  { %7373 = vst [vmem:[#allocation58_spill] sm:$0xff] %v4623_v47  ;;  %1189 = vmatpush.msrb.mxu1 %v7382_v19  ;;  %1229 = vmatpush.msrb.mxu3 %v7383_v62  ;;  %v7390_v19 = vld [vmem:[#allocation143_spill] sm:$0xff] }
 0x251   :  { %1277 = vmatpush.msra.mxu0 %v4612_v42  ;;  %1317 = vmatpush.msra.mxu2 %v4615_v33  ;;  %7376 = vst [vmem:[#allocation55_spill] sm:$0xff] %v4628_v56 }
 0x252   :  { %1190 = vmatpush.msrb.mxu1 %v7386_v30  ;;  %v7396_v30 = vld [vmem:[#allocation153_spill] sm:$0xff] }
 0x253   :  { %1278 = vmatpush.msra.mxu0 %v4620_v22  ;;  %1318 = vmatpush.msra.mxu2 %v4623_v47  ;;  %v7381_v47 = vld [vmem:[#allocation19_spill] sm:$0xff] }
 0x254   :  { %1191 = vmatpush.msrb.mxu1 %v7390_v19  ;;  %v7397_v19 = vld [vmem:[#allocation151_spill] sm:$0xff] }
 0x255   :  { %v898_v42 = vpop.f32.mrf.mxu0  ;;  %1279 = vmatpush.msra.mxu0 %v4628_v56  ;;  %1319 = vmatpush.msra.mxu2 %v4631_v46  ;;  %v7401_v46 = vld [vmem:[#allocation161_spill] sm:$0xff] }
 0x256   :  { %v961_v33 = vadd.f32 %v898_v42, %v7378_v51  ;;  %v918_v22 = vpop.f32.mrf.mxu1  ;;  %v4643_v42 = vld [vmem:[#allocation3 + $0x48] sm:$0xff] }
 0x257   :  { %v962_v49 = vadd.f32 %v918_v22, %v7381_v47  ;;  %1280 = vmatpush.msra.mxu0 %v4640_v55  ;;  %7385 = vst [vmem:[#allocation62_spill] sm:$0xff] %v4643_v42  ;;  %1320 = vmatpush.msra.mxu2 %v4643_v42  ;;  %v7387_v22 = vld [vmem:[#allocation145_spill] sm:$0xff]  ;;  %v4651_v47 = vld [vmem:[#allocation3 + $0x28] sm:$0xff] }
 0x258   :  { %v965_v59 = vmul.f32 0.5, %v961_v33  ;;  %1230 = vmatpush.msrb.mxu3 %v7387_v22  ;;  %v4648_v33 = vld [vmem:[#allocation3 + $0x20] sm:$0xff]  ;;  %7389 = vst [vmem:[#allocation64_spill] sm:$0xff] %v4651_v47  ;;  %v7400_v55 = vld [vmem:[#allocation155_spill] sm:$0xff] }
 0x259   :  { %v969_v56 = vmul.f32 0.5, %v962_v49  ;;  %7388 = vst [vmem:[#allocation59_spill] sm:$0xff] %v4648_v33  ;;  %1281 = vmatpush.msra.mxu0 %v4648_v33  ;;  %1321 = vmatpush.msra.mxu2 %v4651_v47  ;;  %v4657_v49 = vld [vmem:[#allocation3] sm:$0xff] }
 0x25a   :  { %2860 = vtanh.f32 %v965_v59  ;;  %1231 = vmatpush.msrb.mxu3 %v7391_v26  ;;  %7393 = vst [vmem:[#allocation65_spill] sm:$0xff] %v4657_v49  ;;  %v7395_v59 = vld [vmem:[#allocation147_spill] sm:$0xff]  ;;  %v7398_v26 = vld [vmem:[#allocation157_spill] sm:$0xff]  ;;  %v7399_v33 = vld [vmem:[#allocation22_spill] sm:$0xff] }
 0x25b   :  { %2862 = vtanh.f32 %v969_v56  ;;  %1282 = vmatpush.msra.mxu0 %v4657_v49  ;;  %v4660_v56 = vld [vmem:[#allocation3 + $0x8] sm:$0xff]  ;;  %1192 = vmatpush.msrb.mxu1 %v7395_v59 }
 0x25c   :  { %7394 = vst [vmem:[#allocation66_spill] sm:$0xff] %v4660_v56  ;;  %1322 = vmatpush.msra.mxu2 %v4660_v56  ;;  %1232 = vmatpush.msrb.mxu3 %v7396_v30  ;;  %v7402_v30 = vld [vmem:[#allocation159_spill] sm:$0xff] }
 0x25d   :  { %v938_v62 = vpop.f32.mrf.mxu2  ;;  %1193 = vmatpush.msrb.mxu1 %v7397_v19  ;;  %v7404_v19 = vld [vmem:[#allocation42_spill] sm:$0xff] }
 0x25e   :  { %v963_v51 = vadd.f32 %v938_v62, %v7392_v21  ;;  %1233 = vmatpush.msrb.mxu3 %v7398_v26 }
 0x25f   :  { %1194 = vmatpush.msrb.mxu1 %v7400_v55  ;;  %v7407_v55 = vld [vmem:[#allocation167_spill] sm:$0xff] }
 0x260   :  { %2864 = vtanh.f32 %v963_v51  ;;  %v2861_v22 = vpop.eup %2860  ;;  %v958_v47 = vpop.f32.mrf.mxu3  ;;  %1234 = vmatpush.msrb.mxu3 %v7401_v46  ;;  %v7403_v51 = vld [vmem:[#allocation165_spill] sm:$0xff]  ;;  %v7408_v46 = vld [vmem:[#allocation170_spill] sm:$0xff] }
 0x261   :  { %v2863_v62 = vpop.eup %2862  ;;  %v967_v21 = vmul.f32 0.5, %v2861_v22  ;;  %v964_v42 = vadd.f32 %v958_v47, %v7399_v33  ;;  %1195 = vmatpush.msrb.mxu1 %v7402_v30  ;;  %v7405_v22 = vld [vmem:[#allocation163_spill] sm:$0xff]  ;;  %v7406_v33 = vld [vmem:[#allocation169_spill] sm:$0xff] }
 0x262   :  { %v971_v49 = vmul.f32 0.5, %v2863_v62  ;;  %1235 = vmatpush.msrb.mxu3 %v7403_v51  ;;  %v4694_v62 = vld [vmem:[#allocation3 + $0x3c0] sm:$0xff]  ;;  %v4716_v30 = vld [vmem:[#allocation3 + $0x1d0] sm:$0xff]  ;;  %v4719_v51 = vld [vmem:[#allocation3 + $0x1d8] sm:$0xff] }
 0x263   :  { %v968_v56 = vadd.f32 0.5, %v967_v21  ;;  %v974_v59 = vmul.f32 0.5, %v964_v42  ;;  %1196 = vmatpush.msrb.mxu1 %v7405_v22  ;;  %v4710_v21 = vld [vmem:[#allocation3 + $0x3a0] sm:$0xff]  ;;  %v4728_v22 = vld [vmem:[#allocation3 + $0x1b0] sm:$0xff] }
 0x264   :  { %v972_v48 = vadd.f32 0.5, %v971_v49  ;;  %1236 = vmatpush.msrb.mxu3 %v7406_v33  ;;  %7410 = vst [vmem:[#allocation63_spill] sm:$0xff] %v4710_v21  ;;  %v4731_v33 = vld [vmem:[#allocation3 + $0x1b8] sm:$0xff] }
 0x265   :  { %2866 = vtanh.f32 %v974_v59  ;;  %1197 = vmatpush.msrb.mxu1 %v7407_v55  ;;  %v4713_v59 = vld [vmem:[#allocation3 + $0x3a8] sm:$0xff]  ;;  %v4734_v55 = vld [vmem:[#allocation3 + $0x360] sm:$0xff] }
 0x266   :  { %v2865_v44 = vpop.eup %2864  ;;  %v978_v26 = vmul.f32 %v972_v48, %v7404_v19  ;;  %1237 = vmatpush.msrb.mxu3 %v4340_v4  ;;  %v7409_v48 = vld [vmem:[#allocation171_spill] sm:$0xff]  ;;  %7411 = vst [vmem:[#allocation68_spill] sm:$0xff] %v4713_v59  ;;  %v4722_v19 = vld [vmem:[#allocation3 + $0x380] sm:$0xff] }
 0x267   :  { %v979_v43 = vmul.f32 %v2865_v44, %v968_v56  ;;  %1198 = vmatpush.msrb.mxu1 %v7408_v46  ;;  %v4689_v4 = vld [vmem:[#allocation3 + $0x3e8] sm:$0xff]  ;;  %7412 = vst [vmem:[#allocation69_spill] sm:$0xff] %v4722_v19 }
 0x268   :  { %1238 = vmatpush.msrb.mxu3 %v4352_v6  ;;  %7414 = vst [vmem:[#allocation67_spill] sm:$0xff] %v4734_v55  ;;  %v4737_v46 = vld [vmem:[#allocation3 + $0x368] sm:$0xff] }
 0x269   :  { %v4675_v47 = vadd.f32 %v979_v43, %v978_v26  ;;  %1199 = vmatpush.msrb.mxu1 %v7409_v48  ;;  %v4686_v43 = vld [vmem:[#allocation3 + $0x3e0] sm:$0xff]  ;;  %v4725_v26 = vld [vmem:[#allocation3 + $0x388] sm:$0xff]  ;;  %7415 = vst [vmem:[#allocation72_spill] sm:$0xff] %v4737_v46 }
 0x26a   :  { %1239 = vmatpush.msrb.mxu3 %v4368_v8  ;;  %v4697_v8 = vld [vmem:[#allocation3 + $0x3c8] sm:$0xff]  ;;  %7413 = vst [vmem:[#allocation70_spill] sm:$0xff] %v4725_v26  ;;  %v4746_v48 = vld [vmem:[#allocation3 + $0x340] sm:$0xff] }
 0x26b   :  { %2868 = vtanh.f32 %v4675_v47  ;;  %v2867_v42 = vpop.eup %2866  ;;  %1200 = vmatpush.msrb.mxu1 %v4358_v63  ;;  %v4707_v63 = vld [vmem:[#allocation3 + $0x1f8] sm:$0xff]  ;;  %7416 = vst [vmem:[#allocation73_spill] sm:$0xff] %v4746_v48 }
 0x26c   :  { %v976_v49 = vmul.f32 0.5, %v2867_v42  ;;  %1240 = vmatpush.msrb.mxu3 %v4374_v54  ;;  %v4704_v54 = vld [vmem:[#allocation3 + $0x1f0] sm:$0xff] }
 0x26d   :  { %1287 = vmatpush.msra.mxu1 %v4686_v43  ;;  %v4740_v42 = vld [vmem:[#allocation3 + $0x190] sm:$0xff] }
 0x26e   :  { %v977_v44 = vadd.f32 0.5, %v976_v49  ;;  %1327 = vmatpush.msra.mxu3 %v4689_v4  ;;  %v4743_v49 = vld [vmem:[#allocation3 + $0x198] sm:$0xff] }
 0x26f   :  { %1288 = vmatpush.msra.mxu1 %v4694_v62 }
 0x270   :  { %1328 = vmatpush.msra.mxu3 %v4697_v8 }
 0x271   :  { %v2869_v6 = vpop.eup %2868  ;;  %1289 = vmatpush.msra.mxu1 %v4710_v21  ;;  %v4782_v21 = vld [vmem:[#allocation3 + $0x2e0] sm:$0xff] }
 0x272   :  { %v4692_v56 = vmul.f32 %v2869_v6, %v977_v44  ;;  %1329 = vmatpush.msra.mxu3 %v4713_v59  ;;  %v4749_v44 = vld [vmem:[#allocation3 + $0x348] sm:$0xff]  ;;  %v4752_v6 = vld [vmem:[#allocation3 + $0x170] sm:$0xff]  ;;  %7425 = vst [vmem:[#allocation82_spill] sm:$0xff] %v4782_v21 }
 0x273   :  { %1290 = vmatpush.msra.mxu1 %v4722_v19  ;;  %7417 = vst [vmem:[#allocation74_spill] sm:$0xff] %v4749_v44  ;;  %v4770_v19 = vld [vmem:[#allocation3 + $0x300] sm:$0xff]  ;;  %v4773_v59 = vld [vmem:[#allocation3 + $0x308] sm:$0xff] }
 0x274   :  { %1181 = vmatmul.f32.vlgmr.msrb.gmra.mxu0 %v4692_v56  ;;  %1201 = vmatmul.f32.vlgmr.msrb.gmra.mxu1 %v4692_v56  ;;  %7421 = vst [vmem:[#allocation78_spill] sm:$0xff] %v4770_v19 }
 0x275   :  { %1221 = vmatmul.f32.vlgmr.msrb.gmra.mxu2 %v4692_v56  ;;  %1241 = vmatmul.f32.vlgmr.msrb.gmra.mxu3 %v4692_v56  ;;  %7422 = vst [vmem:[#allocation75_spill] sm:$0xff] %v4773_v59 }
 0x276   :  { %1347 = vmatpush.msrb.mxu0 %v4704_v54  ;;  %1387 = vmatpush.msrb.mxu2 %v4707_v63 }
 0x277   :  { %1330 = vmatpush.msra.mxu3 %v4725_v26  ;;  %1291 = vmatpush.msra.mxu1 %v4734_v55  ;;  %v4758_v55 = vld [vmem:[#allocation3 + $0x320] sm:$0xff]  ;;  %v4761_v26 = vld [vmem:[#allocation3 + $0x328] sm:$0xff] }
 0x278   :  { %1348 = vmatpush.msrb.mxu0 %v4716_v30  ;;  %1388 = vmatpush.msrb.mxu2 %v4719_v51  ;;  %7418 = vst [vmem:[#allocation71_spill] sm:$0xff] %v4758_v55 }
 0x279   :  { %1331 = vmatpush.msra.mxu3 %v4737_v46  ;;  %1292 = vmatpush.msra.mxu1 %v4746_v48  ;;  %v4755_v46 = vld [vmem:[#allocation3 + $0x178] sm:$0xff]  ;;  %7419 = vst [vmem:[#allocation76_spill] sm:$0xff] %v4761_v26  ;;  %v4764_v48 = vld [vmem:[#allocation3 + $0x150] sm:$0xff] }
 0x27a   :  { %1349 = vmatpush.msrb.mxu0 %v4728_v22  ;;  %1389 = vmatpush.msrb.mxu2 %v4731_v33 }
 0x27b   :  { %1332 = vmatpush.msra.mxu3 %v4749_v44  ;;  %1293 = vmatpush.msra.mxu1 %v4758_v55  ;;  %v4767_v44 = vld [vmem:[#allocation3 + $0x158] sm:$0xff]  ;;  %v4776_v55 = vld [vmem:[#allocation3 + $0x130] sm:$0xff] }
 0x27c   :  { %1350 = vmatpush.msrb.mxu0 %v4740_v42  ;;  %1390 = vmatpush.msrb.mxu2 %v4743_v49  ;;  %7420 = vst [vmem:[#allocation77_spill] sm:$0xff] %v4767_v44 }
 0x27d   :  { %1333 = vmatpush.msra.mxu3 %v4761_v26  ;;  %1294 = vmatpush.msra.mxu1 %v4770_v19  ;;  %7423 = vst [vmem:[#allocation80_spill] sm:$0xff] %v4776_v55  ;;  %v4779_v26 = vld [vmem:[#allocation3 + $0x138] sm:$0xff]  ;;  %v4788_v19 = vld [vmem:[#allocation3 + $0x110] sm:$0xff] }
 0x27e   :  { %1351 = vmatpush.msrb.mxu0 %v4752_v6  ;;  %1391 = vmatpush.msrb.mxu2 %v4755_v46  ;;  %7424 = vst [vmem:[#allocation81_spill] sm:$0xff] %v4779_v26 }
 0x27f   :  { %1334 = vmatpush.msra.mxu3 %v4773_v59  ;;  %1295 = vmatpush.msra.mxu1 %v4782_v21  ;;  %7427 = vst [vmem:[#allocation84_spill] sm:$0xff] %v4788_v19  ;;  %v4791_v59 = vld [vmem:[#allocation3 + $0x118] sm:$0xff]  ;;  %v4800_v21 = vld [vmem:[#allocation3 + $0xf0] sm:$0xff] }
 0x280   :  { %1352 = vmatpush.msrb.mxu0 %v4764_v48  ;;  %1392 = vmatpush.msrb.mxu2 %v4767_v44  ;;  %v4785_v44 = vld [vmem:[#allocation3 + $0x2e8] sm:$0xff]  ;;  %7428 = vst [vmem:[#allocation85_spill] sm:$0xff] %v4791_v59 }
 0x281   :  { %7426 = vst [vmem:[#allocation79_spill] sm:$0xff] %v4785_v44  ;;  %1335 = vmatpush.msra.mxu3 %v4785_v44  ;;  %v4803_v44 = vld [vmem:[#allocation3 + $0xf8] sm:$0xff]  ;;  %1283 = vmatmul.f32.vlgmr.msra.gmra.mxu0 %v4692_v56 }
 0x282   :  { %1353 = vmatpush.msrb.mxu0 %v4776_v55  ;;  %1393 = vmatpush.msrb.mxu2 %v4779_v26  ;;  %v4794_v55 = vld [vmem:[#allocation3 + $0x2c0] sm:$0xff]  ;;  %v4797_v26 = vld [vmem:[#allocation3 + $0x2c8] sm:$0xff]  ;;  %7431 = vst [vmem:[#allocation88_spill] sm:$0xff] %v4800_v21 }
 0x283   :  { %7429 = vst [vmem:[#allocation86_spill] sm:$0xff] %v4794_v55  ;;  %1296 = vmatpush.msra.mxu1 %v4794_v55  ;;  %1336 = vmatpush.msra.mxu3 %v4797_v26  ;;  %v4812_v55 = vld [vmem:[#allocation3 + $0xd0] sm:$0xff] }
 0x284   :  { %1354 = vmatpush.msrb.mxu0 %v4788_v19  ;;  %1394 = vmatpush.msrb.mxu2 %v4791_v59  ;;  %7430 = vst [vmem:[#allocation83_spill] sm:$0xff] %v4797_v26  ;;  %v4806_v19 = vld [vmem:[#allocation3 + $0x2a0] sm:$0xff]  ;;  %v4809_v59 = vld [vmem:[#allocation3 + $0x2a8] sm:$0xff]  ;;  %v4815_v26 = vld [vmem:[#allocation3 + $0xd8] sm:$0xff] }
 0x285   :  { %7432 = vst [vmem:[#allocation89_spill] sm:$0xff] %v4803_v44  ;;  %1297 = vmatpush.msra.mxu1 %v4806_v19  ;;  %1337 = vmatpush.msra.mxu3 %v4809_v59 }
 0x286   :  { %1355 = vmatpush.msrb.mxu0 %v4800_v21  ;;  %1395 = vmatpush.msrb.mxu2 %v4803_v44  ;;  %7433 = vst [vmem:[#allocation90_spill] sm:$0xff] %v4806_v19  ;;  %v4818_v21 = vld [vmem:[#allocation3 + $0x280] sm:$0xff]  ;;  %v4821_v44 = vld [vmem:[#allocation3 + $0x288] sm:$0xff]  ;;  %v4824_v19 = vld [vmem:[#allocation3 + $0xb0] sm:$0xff] }
 0x287   :  { %7434 = vst [vmem:[#allocation87_spill] sm:$0xff] %v4809_v59  ;;  %1298 = vmatpush.msra.mxu1 %v4818_v21  ;;  %1338 = vmatpush.msra.mxu3 %v4821_v44  ;;  %v4827_v59 = vld [vmem:[#allocation3 + $0xb8] sm:$0xff] }
 0x288   :  { %7435 = vst [vmem:[#allocation92_spill] sm:$0xff] %v4812_v55  ;;  %1356 = vmatpush.msrb.mxu0 %v4812_v55  ;;  %1396 = vmatpush.msrb.mxu2 %v4815_v26  ;;  %v4847_v55 = vld [vmem:[#allocation3 + $0x78] sm:$0xff] }
 0x289   :  { %7436 = vst [vmem:[#allocation93_spill] sm:$0xff] %v4815_v26  ;;  %1323 = vmatmul.f32.vlgmr.msra.gmra.mxu2 %v4692_v56  ;;  %v4832_v26 = vld [vmem:[#allocation3 + $0x90] sm:$0xff] }
 0x28a   :  { %7437 = vst [vmem:[#allocation94_spill] sm:$0xff] %v4818_v21  ;;  %1357 = vmatpush.msrb.mxu0 %v4824_v19  ;;  %1397 = vmatpush.msrb.mxu2 %v4827_v59  ;;  %v4835_v21 = vld [vmem:[#allocation3 + $0x98] sm:$0xff] }
 0x28b   :  { %7438 = vst [vmem:[#allocation91_spill] sm:$0xff] %v4821_v44  ;;  %v4838_v44 = vld [vmem:[#allocation3 + $0x260] sm:$0xff] }
 0x28c   :  { %7439 = vst [vmem:[#allocation96_spill] sm:$0xff] %v4824_v19  ;;  %1358 = vmatpush.msrb.mxu0 %v4832_v26  ;;  %1398 = vmatpush.msrb.mxu2 %v4835_v21  ;;  %v4841_v19 = vld [vmem:[#allocation3 + $0x268] sm:$0xff] }
 0x28d   :  { %7440 = vst [vmem:[#allocation97_spill] sm:$0xff] %v4827_v59  ;;  %1299 = vmatpush.msra.mxu1 %v4838_v44  ;;  %1339 = vmatpush.msra.mxu3 %v4841_v19  ;;  %v4844_v59 = vld [vmem:[#allocation3 + $0x70] sm:$0xff] }
 0x28e   :  { %7441 = vst [vmem:[#allocation98_spill] sm:$0xff] %v4832_v26  ;;  %1359 = vmatpush.msrb.mxu0 %v4844_v59  ;;  %1399 = vmatpush.msrb.mxu2 %v4847_v55  ;;  %v4850_v26 = vld [vmem:[#allocation3 + $0x240] sm:$0xff] }
 0x28f   :  { %7442 = vst [vmem:[#allocation95_spill] sm:$0xff] %v4835_v21  ;;  %1300 = vmatpush.msra.mxu1 %v4850_v26  ;;  %v4853_v21 = vld [vmem:[#allocation3 + $0x248] sm:$0xff] }
 0x290   :  { %7443 = vst [vmem:[#allocation100_spill] sm:$0xff] %v4838_v44  ;;  %1340 = vmatpush.msra.mxu3 %v4853_v21  ;;  %v4856_v44 = vld [vmem:[#allocation3 + $0x50] sm:$0xff] }
 0x291   :  { %7444 = vst [vmem:[#allocation101_spill] sm:$0xff] %v4841_v19  ;;  %1360 = vmatpush.msrb.mxu0 %v4856_v44  ;;  %v4859_v19 = vld [vmem:[#allocation3 + $0x58] sm:$0xff] }
 0x292   :  { %7445 = vst [vmem:[#allocation102_spill] sm:$0xff] %v4844_v59  ;;  %1400 = vmatpush.msrb.mxu2 %v4859_v19  ;;  %v4862_v59 = vld [vmem:[#allocation3 + $0x220] sm:$0xff] }
 0x293   :  { %7446 = vst [vmem:[#allocation99_spill] sm:$0xff] %v4847_v55  ;;  %1301 = vmatpush.msra.mxu1 %v4862_v59  ;;  %v4865_v55 = vld [vmem:[#allocation3 + $0x228] sm:$0xff] }
 0x294   :  { %7447 = vst [vmem:[#allocation105_spill] sm:$0xff] %v4850_v26  ;;  %1341 = vmatpush.msra.mxu3 %v4865_v55  ;;  %v4868_v26 = vld [vmem:[#allocation3 + $0x30] sm:$0xff] }
 0x295   :  { %7448 = vst [vmem:[#allocation104_spill] sm:$0xff] %v4853_v21  ;;  %1361 = vmatpush.msrb.mxu0 %v4868_v26  ;;  %v4871_v21 = vld [vmem:[#allocation3 + $0x38] sm:$0xff] }
 0x296   :  { %7449 = vst [vmem:[#allocation106_spill] sm:$0xff] %v4856_v44  ;;  %1401 = vmatpush.msrb.mxu2 %v4871_v21  ;;  %v4874_v44 = vld [vmem:[#allocation3 + $0x200] sm:$0xff] }
 0x297   :  { %7450 = vst [vmem:[#allocation103_spill] sm:$0xff] %v4859_v19  ;;  %1302 = vmatpush.msra.mxu1 %v4874_v44  ;;  %v4877_v19 = vld [vmem:[#allocation3 + $0x208] sm:$0xff] }
 0x298   :  { %7451 = vst [vmem:[#allocation108_spill] sm:$0xff] %v4862_v59  ;;  %1342 = vmatpush.msra.mxu3 %v4877_v19  ;;  %v4880_v59 = vld [vmem:[#allocation3 + $0x10] sm:$0xff] }
 0x299   :  { %7452 = vst [vmem:[#allocation109_spill] sm:$0xff] %v4865_v55  ;;  %1362 = vmatpush.msrb.mxu0 %v4880_v59  ;;  %v4883_v55 = vld [vmem:[#allocation3 + $0x18] sm:$0xff] }
 0x29a   :  { %7453 = vst [vmem:[#allocation107_spill] sm:$0xff] %v4868_v26  ;;  %1402 = vmatpush.msrb.mxu2 %v4883_v55  ;;  %v4886_v26 = vld [vmem:[#allocation6 + $0x1e0] sm:$0xff]  ;;  %1363 = vmatmul.f32.vlgmr.msrb.gmra.mxu0 %v4692_v56 }
 0x29b   :  { %7454 = vst [vmem:[#allocation111_spill] sm:$0xff] %v4874_v44  ;;  %1449 = vmatpush.msra.mxu0 %v4886_v26  ;;  %v4891_v44 = vld [vmem:[#allocation3 + $0x3f0] sm:$0xff]  ;;  %1403 = vmatmul.f32.vlgmr.msrb.gmra.mxu2 %v4692_v56 }
 0x29c   :  { %7455 = vst [vmem:[#allocation112_spill] sm:$0xff] %v4877_v19  ;;  %1489 = vmatpush.msra.mxu2 %v7324_v58  ;;  %1367 = vmatpush.msrb.mxu1 %v4891_v44  ;;  %v4897_v19 = vld [vmem:[#allocation3 + $0x3f8] sm:$0xff]  ;;  %v4902_v58 = vld [vmem:[#allocation3 + $0x3d0] sm:$0xff] }
 0x29d   :  { %7456 = vst [vmem:[#allocation110_spill] sm:$0xff] %v4886_v26  ;;  %1450 = vmatpush.msra.mxu0 %v7326_v61  ;;  %1407 = vmatpush.msrb.mxu3 %v4897_v19  ;;  %v4905_v26 = vld [vmem:[#allocation3 + $0x3d8] sm:$0xff]  ;;  %v4910_v61 = vld [vmem:[#allocation3 + $0x3b0] sm:$0xff] }
 0x29e   :  { %1490 = vmatpush.msra.mxu2 %v7327_v7  ;;  %1368 = vmatpush.msrb.mxu1 %v4902_v58  ;;  %v4913_v7 = vld [vmem:[#allocation3 + $0x3b8] sm:$0xff] }
 0x29f   :  { %1451 = vmatpush.msra.mxu0 %v7329_v0  ;;  %1408 = vmatpush.msrb.mxu3 %v4905_v26  ;;  %v4918_v0 = vld [vmem:[#allocation3 + $0x390] sm:$0xff] }
 0x2a0   :  { %1491 = vmatpush.msra.mxu2 %v7330_v3  ;;  %1369 = vmatpush.msrb.mxu1 %v4910_v61  ;;  %v4921_v3 = vld [vmem:[#allocation3 + $0x398] sm:$0xff] }
 0x2a1   :  { %1452 = vmatpush.msra.mxu0 %v7331_v9  ;;  %1409 = vmatpush.msrb.mxu3 %v4913_v7  ;;  %v4926_v9 = vld [vmem:[#allocation3 + $0x370] sm:$0xff] }
 0x2a2   :  { %1492 = vmatpush.msra.mxu2 %v7332_v11  ;;  %1370 = vmatpush.msrb.mxu1 %v4918_v0  ;;  %v4929_v11 = vld [vmem:[#allocation3 + $0x378] sm:$0xff] }
 0x2a3   :  { %1453 = vmatpush.msra.mxu0 %v7333_v12  ;;  %1410 = vmatpush.msrb.mxu3 %v4921_v3  ;;  %v4934_v12 = vld [vmem:[#allocation3 + $0x350] sm:$0xff] }
 0x2a4   :  { %1493 = vmatpush.msra.mxu2 %v7334_v14  ;;  %1371 = vmatpush.msrb.mxu1 %v4926_v9  ;;  %v4937_v14 = vld [vmem:[#allocation3 + $0x358] sm:$0xff] }
 0x2a5   :  { %1454 = vmatpush.msra.mxu0 %v7335_v20  ;;  %1411 = vmatpush.msrb.mxu3 %v4929_v11  ;;  %v4942_v20 = vld [vmem:[#allocation3 + $0x330] sm:$0xff] }
 0x2a6   :  { %1494 = vmatpush.msra.mxu2 %v7336_v35  ;;  %1372 = vmatpush.msrb.mxu1 %v4934_v12  ;;  %v4945_v35 = vld [vmem:[#allocation3 + $0x338] sm:$0xff] }
 0x2a7   :  { %1455 = vmatpush.msra.mxu0 %v7337_v23  ;;  %1412 = vmatpush.msrb.mxu3 %v4937_v14  ;;  %v4950_v23 = vld [vmem:[#allocation3 + $0x310] sm:$0xff] }
 0x2a8   :  { %1495 = vmatpush.msra.mxu2 %v7338_v41  ;;  %1373 = vmatpush.msrb.mxu1 %v4942_v20  ;;  %v4953_v41 = vld [vmem:[#allocation3 + $0x318] sm:$0xff] }
 0x2a9   :  { %1456 = vmatpush.msra.mxu0 %v7339_v37  ;;  %1413 = vmatpush.msrb.mxu3 %v4945_v35  ;;  %v4958_v37 = vld [vmem:[#allocation3 + $0x2f0] sm:$0xff] }
 0x2aa   :  { %1496 = vmatpush.msra.mxu2 %v7340_v17  ;;  %1374 = vmatpush.msrb.mxu1 %v4950_v23  ;;  %v4961_v17 = vld [vmem:[#allocation3 + $0x2f8] sm:$0xff] }
 0x2ab   :  { %1457 = vmatpush.msra.mxu0 %v7342_v28  ;;  %1414 = vmatpush.msrb.mxu3 %v4953_v41  ;;  %v4966_v28 = vld [vmem:[#allocation3 + $0x2d0] sm:$0xff] }
 0x2ac   :  { %1497 = vmatpush.msra.mxu2 %v7343_v31  ;;  %1375 = vmatpush.msrb.mxu1 %v4958_v37  ;;  %v4969_v31 = vld [vmem:[#allocation3 + $0x2d8] sm:$0xff] }
 0x2ad   :  { %1458 = vmatpush.msra.mxu0 %v7345_v39  ;;  %1415 = vmatpush.msrb.mxu3 %v4961_v17  ;;  %v4974_v39 = vld [vmem:[#allocation3 + $0x2b0] sm:$0xff] }
 0x2ae   :  { %1498 = vmatpush.msra.mxu2 %v7346_v36  ;;  %1376 = vmatpush.msrb.mxu1 %v4966_v28  ;;  %v4977_v36 = vld [vmem:[#allocation3 + $0x2b8] sm:$0xff] }
 0x2af   :  { %1459 = vmatpush.msra.mxu0 %v7347_v25  ;;  %1416 = vmatpush.msrb.mxu3 %v4969_v31  ;;  %v4982_v25 = vld [vmem:[#allocation3 + $0x290] sm:$0xff] }
 0x2b0   :  { %1499 = vmatpush.msra.mxu2 %v7348_v29  ;;  %1377 = vmatpush.msrb.mxu1 %v4974_v39  ;;  %v4985_v29 = vld [vmem:[#allocation3 + $0x298] sm:$0xff] }
 0x2b1   :  { %1460 = vmatpush.msra.mxu0 %v7349_v16  ;;  %1417 = vmatpush.msrb.mxu3 %v4977_v36  ;;  %v4990_v16 = vld [vmem:[#allocation3 + $0x270] sm:$0xff] }
 0x2b2   :  { %1500 = vmatpush.msra.mxu2 %v7350_v13  ;;  %1378 = vmatpush.msrb.mxu1 %v4982_v25  ;;  %7457 = vst [vmem:[#allocation114_spill] sm:$0xff] %v4990_v16  ;;  %v4993_v13 = vld [vmem:[#allocation3 + $0x278] sm:$0xff] }
 0x2b3   :  { %1461 = vmatpush.msra.mxu0 %v7351_v15  ;;  %1418 = vmatpush.msrb.mxu3 %v4985_v29  ;;  %7458 = vst [vmem:[#allocation115_spill] sm:$0xff] %v4993_v13  ;;  %v4998_v15 = vld [vmem:[#allocation3 + $0x250] sm:$0xff] }
 0x2b4   :  { %1501 = vmatpush.msra.mxu2 %v7352_v40  ;;  %1379 = vmatpush.msrb.mxu1 %v4990_v16  ;;  %7459 = vst [vmem:[#allocation116_spill] sm:$0xff] %v4998_v15  ;;  %v5001_v40 = vld [vmem:[#allocation3 + $0x258] sm:$0xff] }
 0x2b5   :  { %1462 = vmatpush.msra.mxu0 %v4332_v32  ;;  %1419 = vmatpush.msrb.mxu3 %v4993_v13  ;;  %7460 = vst [vmem:[#allocation113_spill] sm:$0xff] %v5001_v40  ;;  %v5009_v32 = vld [vmem:[#allocation3 + $0x238] sm:$0xff] }
 0x2b6   :  { %1502 = vmatpush.msra.mxu2 %v4338_v1  ;;  %1380 = vmatpush.msrb.mxu1 %v4998_v15  ;;  %v5006_v1 = vld [vmem:[#allocation3 + $0x230] sm:$0xff]  ;;  %7462 = vst [vmem:[#allocation120_spill] sm:$0xff] %v5009_v32 }
 0x2b7   :  { %1463 = vmatpush.msra.mxu0 %v4344_v60  ;;  %1420 = vmatpush.msrb.mxu3 %v5001_v40  ;;  %7461 = vst [vmem:[#allocation118_spill] sm:$0xff] %v5006_v1  ;;  %v5014_v60 = vld [vmem:[#allocation3 + $0x210] sm:$0xff]  ;;  %v7488_v40 = vld [vmem:[#allocation65_spill] sm:$0xff] }
 0x2b8   :  { %1503 = vmatpush.msra.mxu2 %v4350_v52  ;;  %1381 = vmatpush.msrb.mxu1 %v5006_v1  ;;  %7463 = vst [vmem:[#allocation117_spill] sm:$0xff] %v5014_v60  ;;  %v5017_v52 = vld [vmem:[#allocation3 + $0x218] sm:$0xff] }
 0x2b9   :  { %1464 = vmatpush.msra.mxu0 %v4356_v5  ;;  %1421 = vmatpush.msrb.mxu3 %v5009_v32  ;;  %7464 = vst [vmem:[#allocation122_spill] sm:$0xff] %v5017_v52  ;;  %v7465_v5 = vld [vmem:[#allocation45_spill] sm:$0xff]  ;;  %v7476_v56 = vld [vmem:[#allocation56_spill] sm:$0xff]  ;;  %v1060_v1 = vpop.f32.mrf.mxu3 }
 0x2ba   :  { %1504 = vmatpush.msra.mxu2 %v4362_v2  ;;  %1382 = vmatpush.msrb.mxu1 %v5014_v60  ;;  %v7466_v2 = vld [vmem:[#allocation43_spill] sm:$0xff]  ;;  %v7482_v60 = vld [vmem:[#allocation61_spill] sm:$0xff] }
 0x2bb   :  { %1551 = vmatpush.msrb.mxu0 %v4547_v57  ;;  %1422 = vmatpush.msrb.mxu3 %v5017_v52  ;;  %v7467_v57 = vld [vmem:[#allocation46_spill] sm:$0xff]  ;;  %v7480_v52 = vld [vmem:[#allocation55_spill] sm:$0xff] }
 0x2bc   :  { %1591 = vmatpush.msrb.mxu2 %v4550_v10  ;;  %v7468_v10 = vld [vmem:[#allocation48_spill] sm:$0xff] }
 0x2bd   :  { %1552 = vmatpush.msrb.mxu0 %v4553_v24  ;;  %v7469_v24 = vld [vmem:[#allocation49_spill] sm:$0xff] }
 0x2be   :  { %1592 = vmatpush.msrb.mxu2 %v4556_v27  ;;  %v7470_v27 = vld [vmem:[#allocation47_spill] sm:$0xff] }
 0x2bf   :  { %1553 = vmatpush.msrb.mxu0 %v4559_v34  ;;  %v1000_v34 = vpop.f32.mrf.mxu0 }
 0x2c0   :  { %1593 = vmatpush.msrb.mxu2 %v4562_v38  ;;  %v7471_v38 = vld [vmem:[#allocation50_spill] sm:$0xff] }
 0x2c1   :  { %1554 = vmatpush.msrb.mxu0 %v4565_v18  ;;  %v7472_v18 = vld [vmem:[#allocation52_spill] sm:$0xff] }
 0x2c2   :  { %1594 = vmatpush.msrb.mxu2 %v4568_v45  ;;  %v7473_v45 = vld [vmem:[#allocation53_spill] sm:$0xff] }
 0x2c3   :  { %1555 = vmatpush.msrb.mxu0 %v4573_v50  ;;  %v7474_v50 = vld [vmem:[#allocation51_spill] sm:$0xff] }
 0x2c4   :  { %1595 = vmatpush.msrb.mxu2 %v4576_v53  ;;  %v7475_v53 = vld [vmem:[#allocation54_spill] sm:$0xff] }
 0x2c5   :  { %1556 = vmatpush.msrb.mxu0 %v7465_v5  ;;  %v7477_v5 = vld [vmem:[#allocation14_spill] sm:$0xff] }
 0x2c6   :  { %1596 = vmatpush.msrb.mxu2 %v7466_v2  ;;  %v1001_v2 = vadd.f32 %v1000_v34, %v7477_v5  ;;  %v7485_v34 = vld [vmem:[#allocation59_spill] sm:$0xff]  ;;  %v7486_v5 = vld [vmem:[#allocation64_spill] sm:$0xff] }
 0x2c7   :  { %1557 = vmatpush.msrb.mxu0 %v7467_v57  ;;  %v1040_v57 = vpop.f32.mrf.mxu2 }
 0x2c8   :  { %1597 = vmatpush.msrb.mxu2 %v7468_v10  ;;  %v7478_v10 = vld [vmem:[#allocation57_spill] sm:$0xff] }
 0x2c9   :  { %1558 = vmatpush.msrb.mxu0 %v7469_v24  ;;  %v7479_v24 = vld [vmem:[#allocation58_spill] sm:$0xff] }
 0x2ca   :  { %1598 = vmatpush.msrb.mxu2 %v7470_v27  ;;  %v1020_v27 = vpop.f32.mrf.mxu1 }
 0x2cb   :  { %1559 = vmatpush.msrb.mxu0 %v7471_v38  ;;  %v7481_v38 = vld [vmem:[#allocation60_spill] sm:$0xff] }
 0x2cc   :  { %1599 = vmatpush.msrb.mxu2 %v7472_v18  ;;  %v1021_v18 = vadd.f32 %v1020_v27, %v1001_v2 }
 0x2cd   :  { %1560 = vmatpush.msrb.mxu0 %v7473_v45  ;;  %v1080_v45 = vpop.f32.mrf.mxu0 }
 0x2ce   :  { %1600 = vmatpush.msrb.mxu2 %v7474_v50  ;;  %v7483_v50 = vld [vmem:[#allocation62_spill] sm:$0xff] }
 0x2cf   :  { %1561 = vmatpush.msrb.mxu0 %v7475_v53  ;;  %v1143_v53 = vmul.f32 0.5, %v1021_v18  ;;  %v7490_v18 = vld [vmem:[#allocation17_spill] sm:$0xff] }
 0x2d0   :  { %1601 = vmatpush.msrb.mxu2 %v7476_v56  ;;  %v7484_v56 = vld [vmem:[#allocation15_spill] sm:$0xff] }
 0x2d1   :  { %1562 = vmatpush.msrb.mxu0 %v7478_v10  ;;  %v1041_v32 = vadd.f32 %v1040_v57, %v7484_v56  ;;  %v7487_v10 = vld [vmem:[#allocation16_spill] sm:$0xff]  ;;  %2870 = vtanh.f32 %v1143_v53 }
 0x2d2   :  { %1602 = vmatpush.msrb.mxu2 %v7479_v24  ;;  %v1081_v24 = vadd.f32 %v1080_v45, %v7487_v10  ;;  %v1100_v27 = vpop.f32.mrf.mxu1 }
 0x2d3   :  { %1563 = vmatpush.msrb.mxu0 %v7480_v52  ;;  %v7489_v52 = vld [vmem:[#allocation66_spill] sm:$0xff]  ;;  %v1061_v2 = vadd.f32 %v1060_v1, %v1041_v32  ;;  %v7491_v1 = vld [vmem:[#allocation44_spill] sm:$0xff] }
 0x2d4   :  { %1603 = vmatpush.msrb.mxu2 %v7481_v38 }
 0x2d5   :  { %1564 = vmatpush.msrb.mxu0 %v7482_v60  ;;  %v1120_v60 = vpop.f32.mrf.mxu2  ;;  %v1147_v38 = vmul.f32 0.5, %v1061_v2 }
 0x2d6   :  { %1604 = vmatpush.msrb.mxu2 %v7483_v50  ;;  %v1101_v50 = vadd.f32 %v1100_v27, %v1081_v24  ;;  %v1121_v57 = vadd.f32 %v1120_v60, %v7490_v18  ;;  %v5058_v27 = vld [vmem:[#allocation6 + $0x1e8] sm:$0xff] }
 0x2d7   :  { %1565 = vmatpush.msrb.mxu0 %v7485_v34  ;;  %2872 = vtanh.f32 %v1147_v38  ;;  %v2871_v56 = vpop.eup %2870  ;;  %v1140_v34 = vpop.f32.mrf.mxu3 }
 0x2d8   :  { %1605 = vmatpush.msrb.mxu2 %v7486_v5  ;;  %2874 = vtanh.f32 %v1101_v50  ;;  %v1141_v5 = vadd.f32 %v1140_v34, %v1121_v57  ;;  %v1145_v15 = vmul.f32 0.5, %v2871_v56  ;;  %v5069_v57 = vld [vmem:[#allocation6 + $0x1d8] sm:$0xff] }
 0x2d9   :  { %1566 = vmatpush.msrb.mxu0 %v7488_v40 }
 0x2da   :  { %1606 = vmatpush.msrb.mxu2 %v7489_v52  ;;  %v1152_v10 = vmul.f32 0.5, %v1141_v5  ;;  %v1146_v52 = vadd.f32 0.5, %v1145_v15 }
 0x2dc   :  { %2876 = vtanh.f32 %v1152_v10  ;;  %v5066_v10 = vld [vmem:[#allocation6 + $0x1c8] sm:$0xff] }
 0x2dd   :  { %v2873_v45 = vpop.eup %2872 }
 0x2de   :  { %v1149_v13 = vmul.f32 0.5, %v2873_v45  ;;  %v2875_v40 = vpop.eup %2874 }
 0x2df   :  { %v1157_v16 = vmul.f32 %v2875_v40, %v1146_v52  ;;  %v7493_v40 = vld [vmem:[#allocation23_spill] sm:$0xff] }
 0x2e0   :  { %v1150_v53 = vadd.f32 0.5, %v1149_v13  ;;  %v5061_v13 = vld [vmem:[#allocation6 + $0x1f8] sm:$0xff] }
 0x2e2   :  { %v1156_v32 = vmul.f32 %v1150_v53, %v7491_v1  ;;  %v2877_v38 = vpop.eup %2876  ;;  %v5072_v1 = vld [vmem:[#allocation6 + $0x1a8] sm:$0xff] }
 0x2e3   :  { %v1154_v60 = vmul.f32 0.5, %v2877_v38  ;;  %v5078_v38 = vld [vmem:[#allocation6 + $0x188] sm:$0xff] }
 0x2e4   :  { %v5055_v2 = vadd.f32 %v1157_v16, %v1156_v32  ;;  %v7492_v16 = vld [vmem:[#allocation21_spill] sm:$0xff] }
 0x2e5   :  { %v1155_v50 = vadd.f32 0.5, %v1154_v60  ;;  %v5075_v32 = vld [vmem:[#allocation6 + $0x1b8] sm:$0xff] }
 0x2e6   :  { %2878 = vtanh.f32 %v5055_v2  ;;  %v5081_v60 = vld [vmem:[#allocation6 + $0x198] sm:$0xff] }
 0x2e7   :  { %7494 = vst [vmem:[#allocation124_spill] sm:$0xff] %v5081_v60 }
 0x2ec   :  { %v2879_v24 = vpop.eup %2878 }
 0x2ed   :  { %v1160_v34 = vmul.f32 %v2879_v24, %v1155_v50 }
 0x2ef   :  { %1303 = vmatmul.f32.vlgmr.msra.gmra.mxu1 %v1160_v34  ;;  %1343 = vmatmul.f32.vlgmr.msra.gmra.mxu3 %v1160_v34 }
 0x2f0   :  { %1469 = vmatpush.msra.mxu1 %v5058_v27  ;;  %1509 = vmatpush.msra.mxu3 %v5061_v13 }
 0x2f1   :  { %v1182_v56 = vpop.f32.mrf.mxu0  ;;  %v1202_v5 = vpop.f32.mrf.mxu1 }
 0x2f2   :  { %v1245_v15 = vadd.f32 %v1182_v56, %v7492_v16  ;;  %v1246_v52 = vadd.f32 %v1202_v5, %v7493_v40  ;;  %1470 = vmatpush.msra.mxu1 %v5066_v10  ;;  %1510 = vmatpush.msra.mxu3 %v5069_v57  ;;  %v7495_v56 = vld [vmem:[#allocation24_spill] sm:$0xff]  ;;  %v5085_v16 = vld [vmem:[#allocation6 + $0x168] sm:$0xff]  ;;  %v7498_v40 = vld [vmem:[#allocation26_spill] sm:$0xff] }
 0x2f3   :  { %7496 = vst [vmem:[#allocation121_spill] sm:$0xff] %v5085_v16 }
 0x2f4   :  { %v1249_v45 = vmul.f32 0.5, %v1245_v15  ;;  %v1253_v53 = vmul.f32 0.5, %v1246_v52  ;;  %1471 = vmatpush.msra.mxu1 %v5072_v1  ;;  %1511 = vmatpush.msra.mxu3 %v5075_v32  ;;  %v5088_v15 = vld [vmem:[#allocation6 + $0x178] sm:$0xff] }
 0x2f5   :  { %7497 = vst [vmem:[#allocation126_spill] sm:$0xff] %v5088_v15 }
 0x2f6   :  { %2880 = vtanh.f32 %v1249_v45  ;;  %1472 = vmatpush.msra.mxu1 %v5078_v38  ;;  %1512 = vmatpush.msra.mxu3 %v5081_v60 }
 0x2f7   :  { %2882 = vtanh.f32 %v1253_v53  ;;  %1383 = vmatmul.f32.vlgmr.msrb.gmra.mxu1 %v1160_v34  ;;  %1423 = vmatmul.f32.vlgmr.msrb.gmra.mxu3 %v1160_v34  ;;  %v5092_v53 = vld [vmem:[#allocation6 + $0x148] sm:$0xff]  ;;  %v5095_v34 = vld [vmem:[#allocation6 + $0x158] sm:$0xff] }
 0x2f8   :  { %v1222_v50 = vpop.f32.mrf.mxu2  ;;  %v1242_v24 = vpop.f32.mrf.mxu3  ;;  %1473 = vmatpush.msra.mxu1 %v5085_v16  ;;  %1513 = vmatpush.msra.mxu3 %v5088_v15  ;;  %7499 = vst [vmem:[#allocation128_spill] sm:$0xff] %v5092_v53  ;;  %v5098_v16 = vld [vmem:[#allocation6 + $0x128] sm:$0xff]  ;;  %v5101_v15 = vld [vmem:[#allocation6 + $0x138] sm:$0xff] }
 0x2f9   :  { %v1247_v5 = vadd.f32 %v1222_v50, %v7495_v56  ;;  %v1248_v52 = vadd.f32 %v1242_v24, %v7498_v40  ;;  %7500 = vst [vmem:[#allocation130_spill] sm:$0xff] %v5095_v34  ;;  %v5104_v40 = vld [vmem:[#allocation6 + $0x108] sm:$0xff] }
 0x2fa   :  { %1474 = vmatpush.msra.mxu1 %v5092_v53  ;;  %1514 = vmatpush.msra.mxu3 %v5095_v34  ;;  %7501 = vst [vmem:[#allocation132_spill] sm:$0xff] %v5098_v16  ;;  %v5110_v34 = vld [vmem:[#allocation6 + $0xe8] sm:$0xff] }
 0x2fb   :  { %2884 = vtanh.f32 %v1247_v5  ;;  %v1258_v45 = vmul.f32 0.5, %v1248_v52  ;;  %7502 = vst [vmem:[#allocation134_spill] sm:$0xff] %v5101_v15  ;;  %v5107_v52 = vld [vmem:[#allocation6 + $0x118] sm:$0xff]  ;;  %v5117_v53 = vld [vmem:[#allocation6 + $0xc8] sm:$0xff] }
 0x2fc   :  { %v2881_v50 = vpop.eup %2880  ;;  %1475 = vmatpush.msra.mxu1 %v5098_v16  ;;  %1515 = vmatpush.msra.mxu3 %v5101_v15  ;;  %7503 = vst [vmem:[#allocation136_spill] sm:$0xff] %v5104_v40  ;;  %v5113_v16 = vld [vmem:[#allocation6 + $0xf8] sm:$0xff] }
 0x2fd   :  { %v2883_v56 = vpop.eup %2882  ;;  %v1251_v60 = vmul.f32 0.5, %v2881_v50  ;;  %2886 = vtanh.f32 %v1258_v45  ;;  %7504 = vst [vmem:[#allocation138_spill] sm:$0xff] %v5107_v52 }
 0x2fe   :  { %v1255_v24 = vmul.f32 0.5, %v2883_v56  ;;  %1476 = vmatpush.msra.mxu1 %v5104_v40  ;;  %1516 = vmatpush.msra.mxu3 %v5107_v52  ;;  %7505 = vst [vmem:[#allocation140_spill] sm:$0xff] %v5110_v34  ;;  %v5120_v40 = vld [vmem:[#allocation6 + $0xd8] sm:$0xff] }
 0x2ff   :  { %v1252_v5 = vadd.f32 0.5, %v1251_v60  ;;  %7506 = vst [vmem:[#allocation142_spill] sm:$0xff] %v5113_v16 }
 0x300   :  { %v1256_v50 = vadd.f32 0.5, %v1255_v24  ;;  %1477 = vmatpush.msra.mxu1 %v5110_v34  ;;  %1517 = vmatpush.msra.mxu3 %v5113_v16  ;;  %v5125_v34 = vld [vmem:[#allocation6 + $0xa8] sm:$0xff]  ;;  %v5128_v16 = vld [vmem:[#allocation6 + $0xb8] sm:$0xff] }
 0x301   :  { %v2885_v45 = vpop.eup %2884  ;;  %7507 = vst [vmem:[#allocation144_spill] sm:$0xff] %v5128_v16 }
 0x302   :  { %v1262_v60 = vmul.f32 %v1256_v50, %v4675_v47  ;;  %v1263_v56 = vmul.f32 %v2885_v45, %v1252_v5  ;;  %1478 = vmatpush.msra.mxu1 %v5117_v53  ;;  %1518 = vmatpush.msra.mxu3 %v5120_v40  ;;  %v5132_v47 = vld [vmem:[#allocation6 + $0x88] sm:$0xff]  ;;  %v5135_v5 = vld [vmem:[#allocation6 + $0x98] sm:$0xff] }
 0x303   :  { %v2887_v15 = vpop.eup %2886  ;;  %7508 = vst [vmem:[#allocation146_spill] sm:$0xff] %v5132_v47  ;;  %v5141_v45 = vld [vmem:[#allocation6 + $0x78] sm:$0xff] }
 0x304   :  { %v5123_v24 = vadd.f32 %v1263_v56, %v1262_v60  ;;  %v1260_v52 = vmul.f32 0.5, %v2887_v15  ;;  %1479 = vmatpush.msra.mxu1 %v5125_v34  ;;  %1519 = vmatpush.msra.mxu3 %v5128_v16  ;;  %v5138_v15 = vld [vmem:[#allocation6 + $0x68] sm:$0xff]  ;;  %v5147_v56 = vld [vmem:[#allocation6 + $0x58] sm:$0xff] }
 0x305   :  { %7509 = vst [vmem:[#allocation148_spill] sm:$0xff] %v5138_v15  ;;  %v5144_v60 = vld [vmem:[#allocation6 + $0x48] sm:$0xff] }
 0x306   :  { %2888 = vtanh.f32 %v5123_v24  ;;  %1480 = vmatpush.msra.mxu1 %v5132_v47  ;;  %1520 = vmatpush.msra.mxu3 %v5135_v5  ;;  %v1261_v50 = vadd.f32 0.5, %v1260_v52  ;;  %7510 = vst [vmem:[#allocation150_spill] sm:$0xff] %v5147_v56  ;;  %v5152_v52 = vld [vmem:[#allocation6 + $0x28] sm:$0xff] }
 0x308   :  { %1481 = vmatpush.msra.mxu1 %v5138_v15  ;;  %1521 = vmatpush.msra.mxu3 %v5141_v45  ;;  %v5155_v15 = vld [vmem:[#allocation6 + $0x38] sm:$0xff] }
 0x30a   :  { %1482 = vmatpush.msra.mxu1 %v5144_v60  ;;  %1522 = vmatpush.msra.mxu3 %v5147_v56  ;;  %v5162_v56 = vld [vmem:[#allocation6 + $0x8] sm:$0xff] }
 0x30c   :  { %v2889_v47 = vpop.eup %2888  ;;  %1483 = vmatpush.msra.mxu1 %v5152_v52  ;;  %1523 = vmatpush.msra.mxu3 %v5155_v15 }
 0x30d   :  { %v5150_v16 = vmul.f32 %v2889_v47, %v1261_v50  ;;  %v5165_v47 = vld [vmem:[#allocation6 + $0x18] sm:$0xff]  ;;  %v7526_v50 = vld [vmem:[#allocation92_spill] sm:$0xff] }
 0x30e   :  { %1484 = vmatpush.msra.mxu1 %v5162_v56  ;;  %1524 = vmatpush.msra.mxu3 %v5165_v47 }
 0x30f   :  { %1465 = vmatmul.f32.vlgmr.msra.gmra.mxu0 %v5150_v16  ;;  %1505 = vmatmul.f32.vlgmr.msra.gmra.mxu2 %v5150_v16 }
 0x310   :  { %1631 = vmatpush.msra.mxu0 %v4704_v54  ;;  %1671 = vmatpush.msra.mxu2 %v4707_v63  ;;  %v7513_v54 = vld [vmem:[#allocation68_spill] sm:$0xff] }
 0x311   :  { %1485 = vmatmul.f32.vlgmr.msra.gmra.mxu1 %v5150_v16  ;;  %1525 = vmatmul.f32.vlgmr.msra.gmra.mxu3 %v5150_v16  ;;  %v7514_v63 = vld [vmem:[#allocation80_spill] sm:$0xff] }
 0x312   :  { %1632 = vmatpush.msra.mxu0 %v4716_v30  ;;  %1672 = vmatpush.msra.mxu2 %v4719_v51  ;;  %v7515_v30 = vld [vmem:[#allocation81_spill] sm:$0xff] }
 0x313   :  { %1571 = vmatpush.msrb.mxu1 %v4686_v43  ;;  %1611 = vmatpush.msrb.mxu3 %v4689_v4  ;;  %v7511_v43 = vld [vmem:[#allocation77_spill] sm:$0xff]  ;;  %v7512_v4 = vld [vmem:[#allocation63_spill] sm:$0xff] }
 0x314   :  { %1633 = vmatpush.msra.mxu0 %v4728_v22  ;;  %1673 = vmatpush.msra.mxu2 %v4731_v33  ;;  %v7516_v51 = vld [vmem:[#allocation69_spill] sm:$0xff]  ;;  %v7517_v22 = vld [vmem:[#allocation70_spill] sm:$0xff]  ;;  %v7518_v33 = vld [vmem:[#allocation84_spill] sm:$0xff] }
 0x315   :  { %1572 = vmatpush.msrb.mxu1 %v4694_v62  ;;  %1612 = vmatpush.msrb.mxu3 %v4697_v8  ;;  %v7519_v62 = vld [vmem:[#allocation85_spill] sm:$0xff]  ;;  %v7520_v8 = vld [vmem:[#allocation67_spill] sm:$0xff] }
 0x316   :  { %1634 = vmatpush.msra.mxu0 %v4740_v42  ;;  %1674 = vmatpush.msra.mxu2 %v4743_v49  ;;  %v7522_v42 = vld [vmem:[#allocation88_spill] sm:$0xff]  ;;  %v7523_v49 = vld [vmem:[#allocation89_spill] sm:$0xff] }
 0x317   :  { %1567 = vmatmul.f32.vlgmr.msrb.gmra.mxu0 %v5150_v16  ;;  %1607 = vmatmul.f32.vlgmr.msrb.gmra.mxu2 %v5150_v16 }
 0x318   :  { %1635 = vmatpush.msra.mxu0 %v4752_v6  ;;  %1675 = vmatpush.msra.mxu2 %v4755_v46  ;;  %v7521_v46 = vld [vmem:[#allocation72_spill] sm:$0xff]  ;;  %v7525_v6 = vld [vmem:[#allocation74_spill] sm:$0xff] }
 0x319   :  { %1573 = vmatpush.msrb.mxu1 %v7512_v4  ;;  %1613 = vmatpush.msrb.mxu3 %v7513_v54  ;;  %v7528_v4 = vld [vmem:[#allocation71_spill] sm:$0xff]  ;;  %v7529_v54 = vld [vmem:[#allocation76_spill] sm:$0xff] }
 0x31a   :  { %1636 = vmatpush.msra.mxu0 %v4764_v48  ;;  %1676 = vmatpush.msra.mxu2 %v7511_v43  ;;  %v7524_v48 = vld [vmem:[#allocation73_spill] sm:$0xff] }
 0x31b   :  { %1574 = vmatpush.msrb.mxu1 %v7516_v51  ;;  %1614 = vmatpush.msrb.mxu3 %v7517_v22  ;;  %v7527_v43 = vld [vmem:[#allocation93_spill] sm:$0xff]  ;;  %v7532_v51 = vld [vmem:[#allocation78_spill] sm:$0xff]  ;;  %v7533_v22 = vld [vmem:[#allocation75_spill] sm:$0xff] }
 0x31c   :  { %1637 = vmatpush.msra.mxu0 %v7514_v63  ;;  %1677 = vmatpush.msra.mxu2 %v7515_v30  ;;  %v7530_v63 = vld [vmem:[#allocation96_spill] sm:$0xff]  ;;  %v7531_v30 = vld [vmem:[#allocation97_spill] sm:$0xff] }
 0x31d   :  { %1575 = vmatpush.msrb.mxu1 %v7520_v8  ;;  %1615 = vmatpush.msrb.mxu3 %v7521_v46  ;;  %v7536_v8 = vld [vmem:[#allocation82_spill] sm:$0xff]  ;;  %v7537_v46 = vld [vmem:[#allocation79_spill] sm:$0xff] }
 0x31e   :  { %1638 = vmatpush.msra.mxu0 %v7518_v33  ;;  %1678 = vmatpush.msra.mxu2 %v7519_v62  ;;  %v7534_v33 = vld [vmem:[#allocation98_spill] sm:$0xff]  ;;  %v7535_v62 = vld [vmem:[#allocation95_spill] sm:$0xff] }
 0x31f   :  { %1576 = vmatpush.msrb.mxu1 %v7524_v48  ;;  %1616 = vmatpush.msrb.mxu3 %v7525_v6  ;;  %v7540_v48 = vld [vmem:[#allocation86_spill] sm:$0xff]  ;;  %v7541_v6 = vld [vmem:[#allocation83_spill] sm:$0xff] }
 0x320   :  { %1639 = vmatpush.msra.mxu0 %v7522_v42  ;;  %1679 = vmatpush.msra.mxu2 %v7523_v49  ;;  %v7538_v42 = vld [vmem:[#allocation102_spill] sm:$0xff]  ;;  %v7539_v49 = vld [vmem:[#allocation99_spill] sm:$0xff] }
 0x321   :  { %1577 = vmatpush.msrb.mxu1 %v7528_v4  ;;  %1617 = vmatpush.msrb.mxu3 %v7529_v54  ;;  %v7544_v4 = vld [vmem:[#allocation90_spill] sm:$0xff]  ;;  %v7545_v54 = vld [vmem:[#allocation87_spill] sm:$0xff] }
 0x322   :  { %1640 = vmatpush.msra.mxu0 %v7526_v50  ;;  %1680 = vmatpush.msra.mxu2 %v7527_v43  ;;  %v7542_v50 = vld [vmem:[#allocation106_spill] sm:$0xff]  ;;  %v7543_v43 = vld [vmem:[#allocation103_spill] sm:$0xff] }
 0x323   :  { %1578 = vmatpush.msrb.mxu1 %v7532_v51  ;;  %1618 = vmatpush.msrb.mxu3 %v7533_v22  ;;  %v7548_v51 = vld [vmem:[#allocation91_spill] sm:$0xff]  ;;  %v7549_v22 = vld [vmem:[#allocation100_spill] sm:$0xff] }
 0x324   :  { %1641 = vmatpush.msra.mxu0 %v7530_v63  ;;  %1681 = vmatpush.msra.mxu2 %v7531_v30  ;;  %v7546_v63 = vld [vmem:[#allocation107_spill] sm:$0xff]  ;;  %v7547_v30 = vld [vmem:[#allocation94_spill] sm:$0xff] }
 0x325   :  { %1579 = vmatpush.msrb.mxu1 %v7536_v8  ;;  %1619 = vmatpush.msrb.mxu3 %v7537_v46  ;;  %v5231_v8 = vld [vmem:[#allocation6 + $0x1f0] sm:$0xff] }
 0x326   :  { %1642 = vmatpush.msra.mxu0 %v7534_v33  ;;  %1682 = vmatpush.msra.mxu2 %v7535_v62  ;;  %v7550_v33 = vld [vmem:[#allocation101_spill] sm:$0xff]  ;;  %v7551_v62 = vld [vmem:[#allocation110_spill] sm:$0xff]  ;;  %v7553_v46 = vld [vmem:[#allocation104_spill] sm:$0xff] }
 0x327   :  { %1580 = vmatpush.msrb.mxu1 %v7540_v48  ;;  %1620 = vmatpush.msrb.mxu3 %v7541_v6  ;;  %v5247_v48 = vld [vmem:[#allocation6 + $0x1b0] sm:$0xff]  ;;  %v7556_v6 = vld [vmem:[#allocation111_spill] sm:$0xff] }
 0x328   :  { %1643 = vmatpush.msra.mxu0 %v7538_v42  ;;  %1683 = vmatpush.msra.mxu2 %v7539_v49  ;;  %v7555_v42 = vld [vmem:[#allocation109_spill] sm:$0xff]  ;;  %v5244_v49 = vld [vmem:[#allocation6 + $0x1a0] sm:$0xff] }
 0x329   :  { %1581 = vmatpush.msrb.mxu1 %v7544_v4  ;;  %1621 = vmatpush.msrb.mxu3 %v7545_v54  ;;  %v5257_v4 = vld [vmem:[#allocation6 + $0x190] sm:$0xff]  ;;  %v5262_v54 = vld [vmem:[#allocation6 + $0x160] sm:$0xff] }
 0x32a   :  { %1644 = vmatpush.msra.mxu0 %v7542_v50  ;;  %1684 = vmatpush.msra.mxu2 %v7543_v43  ;;  %v7557_v50 = vld [vmem:[#allocation112_spill] sm:$0xff]  ;;  %v5254_v43 = vld [vmem:[#allocation6 + $0x180] sm:$0xff] }
 0x32b   :  { %1582 = vmatpush.msrb.mxu1 %v7547_v30  ;;  %1622 = vmatpush.msrb.mxu3 %v7548_v51  ;;  %v5350_v30 = vld [vmem:[#allocation6] sm:$0xff]  ;;  %v5353_v51 = vld [vmem:[#allocation6 + $0x10] sm:$0xff] }
 0x32c   :  { %1645 = vmatpush.msra.mxu0 %v7546_v63  ;;  %1685 = vmatpush.msra.mxu2 %v4871_v21  ;;  %v7552_v21 = vld [vmem:[#allocation105_spill] sm:$0xff]  ;;  %v5265_v63 = vld [vmem:[#allocation6 + $0x170] sm:$0xff]  ;;  %7565 = vst [vmem:[#allocation162_spill] sm:$0xff] %v5350_v30 }
 0x32d   :  { %1583 = vmatpush.msrb.mxu1 %v7549_v22  ;;  %1623 = vmatpush.msrb.mxu3 %v7550_v33  ;;  %7566 = vst [vmem:[#allocation164_spill] sm:$0xff] %v5353_v51  ;;  %v7569_v22 = vld [vmem:[#allocation116_spill] sm:$0xff]  ;;  %v7570_v33 = vld [vmem:[#allocation113_spill] sm:$0xff] }
 0x32e   :  { %1646 = vmatpush.msra.mxu0 %v4880_v59  ;;  %1686 = vmatpush.msra.mxu2 %v4883_v55  ;;  %v5236_v59 = vld [vmem:[#allocation6 + $0x1c0] sm:$0xff]  ;;  %v5239_v55 = vld [vmem:[#allocation6 + $0x1d0] sm:$0xff] }
 0x32f   :  { %1647 = vmatmul.f32.vlgmr.msra.gmra.mxu0 %v5150_v16  ;;  %1687 = vmatmul.f32.vlgmr.msra.gmra.mxu2 %v5150_v16  ;;  %v7554_v16 = vld [vmem:[#allocation108_spill] sm:$0xff] }
 0x330   :  { %1733 = vmatpush.msrb.mxu0 %v7551_v62  ;;  %1773 = vmatpush.msrb.mxu2 %v5231_v8  ;;  %v5364_v62 = vld [vmem:[#allocation3 + $0x1c0] sm:$0xff] }
 0x331   :  { %1584 = vmatpush.msrb.mxu1 %v7552_v21  ;;  %1624 = vmatpush.msrb.mxu3 %v7553_v46  ;;  %7571 = vst [vmem:[#allocation119_spill] sm:$0xff] %v5364_v62  ;;  %v5367_v21 = vld [vmem:[#allocation3 + $0x1c8] sm:$0xff] }
 0x332   :  { %1734 = vmatpush.msrb.mxu0 %v5236_v59  ;;  %1774 = vmatpush.msrb.mxu2 %v5239_v55  ;;  %7572 = vst [vmem:[#allocation125_spill] sm:$0xff] %v5367_v21  ;;  %v7573_v46 = vld [vmem:[#allocation118_spill] sm:$0xff] }
 0x333   :  { %1585 = vmatpush.msrb.mxu1 %v7554_v16  ;;  %1625 = vmatpush.msrb.mxu3 %v7555_v42  ;;  %v7574_v16 = vld [vmem:[#allocation120_spill] sm:$0xff]  ;;  %v5372_v42 = vld [vmem:[#allocation3 + $0x1a0] sm:$0xff] }
 0x334   :  { %1735 = vmatpush.msrb.mxu0 %v5244_v49  ;;  %1775 = vmatpush.msrb.mxu2 %v5247_v48  ;;  %7575 = vst [vmem:[#allocation123_spill] sm:$0xff] %v5372_v42 }
 0x335   :  { %1586 = vmatpush.msrb.mxu1 %v7556_v6  ;;  %1626 = vmatpush.msrb.mxu3 %v7557_v50  ;;  %v5375_v6 = vld [vmem:[#allocation3 + $0x1a8] sm:$0xff]  ;;  %v7577_v50 = vld [vmem:[#allocation117_spill] sm:$0xff] }
 0x336   :  { %1736 = vmatpush.msrb.mxu0 %v5254_v43  ;;  %1776 = vmatpush.msrb.mxu2 %v5257_v4  ;;  %7576 = vst [vmem:[#allocation129_spill] sm:$0xff] %v5375_v6 }
 0x337   :  { %1651 = vmatpush.msra.mxu1 %v4891_v44  ;;  %1691 = vmatpush.msra.mxu3 %v4897_v19  ;;  %v5270_v19 = vld [vmem:[#allocation6 + $0x140] sm:$0xff]  ;;  %v5273_v44 = vld [vmem:[#allocation6 + $0x150] sm:$0xff] }
 0x338   :  { %1737 = vmatpush.msrb.mxu0 %v5262_v54  ;;  %1777 = vmatpush.msrb.mxu2 %v5265_v63 }
 0x339   :  { %1652 = vmatpush.msra.mxu1 %v4902_v58  ;;  %1692 = vmatpush.msra.mxu3 %v4905_v26  ;;  %v5278_v26 = vld [vmem:[#allocation6 + $0x120] sm:$0xff]  ;;  %v5281_v58 = vld [vmem:[#allocation6 + $0x130] sm:$0xff] }
 0x33a   :  { %1738 = vmatpush.msrb.mxu0 %v5270_v19  ;;  %1778 = vmatpush.msrb.mxu2 %v5273_v44 }
 0x33b   :  { %1653 = vmatpush.msra.mxu1 %v4910_v61  ;;  %1693 = vmatpush.msra.mxu3 %v4913_v7  ;;  %v5286_v61 = vld [vmem:[#allocation6 + $0x100] sm:$0xff]  ;;  %v5289_v7 = vld [vmem:[#allocation6 + $0x110] sm:$0xff] }
 0x33c   :  { %1739 = vmatpush.msrb.mxu0 %v5278_v26  ;;  %1779 = vmatpush.msrb.mxu2 %v5281_v58 }
 0x33d   :  { %1654 = vmatpush.msra.mxu1 %v4918_v0  ;;  %1694 = vmatpush.msra.mxu3 %v4921_v3  ;;  %v5294_v0 = vld [vmem:[#allocation6 + $0xe0] sm:$0xff]  ;;  %v5297_v3 = vld [vmem:[#allocation6 + $0xf0] sm:$0xff] }
 0x33e   :  { %1740 = vmatpush.msrb.mxu0 %v5286_v61  ;;  %1780 = vmatpush.msrb.mxu2 %v5289_v7 }
 0x33f   :  { %1655 = vmatpush.msra.mxu1 %v4926_v9  ;;  %1695 = vmatpush.msra.mxu3 %v4929_v11  ;;  %v5302_v9 = vld [vmem:[#allocation6 + $0xc0] sm:$0xff]  ;;  %v5305_v11 = vld [vmem:[#allocation6 + $0xd0] sm:$0xff] }
 0x340   :  { %1741 = vmatpush.msrb.mxu0 %v5294_v0  ;;  %1781 = vmatpush.msrb.mxu2 %v5297_v3 }
 0x341   :  { %1656 = vmatpush.msra.mxu1 %v4934_v12  ;;  %1696 = vmatpush.msra.mxu3 %v4937_v14  ;;  %v5310_v12 = vld [vmem:[#allocation6 + $0xa0] sm:$0xff]  ;;  %v5313_v14 = vld [vmem:[#allocation6 + $0xb0] sm:$0xff] }
 0x342   :  { %1742 = vmatpush.msrb.mxu0 %v5302_v9  ;;  %1782 = vmatpush.msrb.mxu2 %v5305_v11 }
 0x343   :  { %1657 = vmatpush.msra.mxu1 %v4942_v20  ;;  %1697 = vmatpush.msra.mxu3 %v4945_v35  ;;  %v5318_v20 = vld [vmem:[#allocation6 + $0x80] sm:$0xff]  ;;  %v5321_v35 = vld [vmem:[#allocation6 + $0x90] sm:$0xff] }
 0x344   :  { %1743 = vmatpush.msrb.mxu0 %v5310_v12  ;;  %1783 = vmatpush.msrb.mxu2 %v5313_v14 }
 0x345   :  { %1658 = vmatpush.msra.mxu1 %v4950_v23  ;;  %1698 = vmatpush.msra.mxu3 %v4953_v41  ;;  %v5326_v23 = vld [vmem:[#allocation6 + $0x60] sm:$0xff]  ;;  %v5329_v41 = vld [vmem:[#allocation6 + $0x70] sm:$0xff] }
 0x346   :  { %1744 = vmatpush.msrb.mxu0 %v5318_v20  ;;  %1784 = vmatpush.msrb.mxu2 %v5321_v35  ;;  %7558 = vst [vmem:[#allocation152_spill] sm:$0xff] %v5329_v41 }
 0x347   :  { %1659 = vmatpush.msra.mxu1 %v4958_v37  ;;  %1699 = vmatpush.msra.mxu3 %v4961_v17  ;;  %v5334_v37 = vld [vmem:[#allocation6 + $0x40] sm:$0xff]  ;;  %v5337_v17 = vld [vmem:[#allocation6 + $0x50] sm:$0xff] }
 0x348   :  { %1745 = vmatpush.msrb.mxu0 %v5326_v23  ;;  %1785 = vmatpush.msrb.mxu2 %v5329_v41  ;;  %7559 = vst [vmem:[#allocation154_spill] sm:$0xff] %v5334_v37 }
 0x349   :  { %1660 = vmatpush.msra.mxu1 %v4966_v28  ;;  %1700 = vmatpush.msra.mxu3 %v4969_v31  ;;  %7560 = vst [vmem:[#allocation156_spill] sm:$0xff] %v5337_v17  ;;  %v5342_v28 = vld [vmem:[#allocation6 + $0x20] sm:$0xff]  ;;  %v5345_v31 = vld [vmem:[#allocation6 + $0x30] sm:$0xff] }
 0x34a   :  { %1746 = vmatpush.msrb.mxu0 %v5334_v37  ;;  %1786 = vmatpush.msrb.mxu2 %v5337_v17  ;;  %7561 = vst [vmem:[#allocation158_spill] sm:$0xff] %v5342_v28 }
 0x34b   :  { %1661 = vmatpush.msra.mxu1 %v4974_v39  ;;  %1701 = vmatpush.msra.mxu3 %v4977_v36  ;;  %7562 = vst [vmem:[#allocation160_spill] sm:$0xff] %v5345_v31  ;;  %v7563_v39 = vld [vmem:[#allocation114_spill] sm:$0xff]  ;;  %v7564_v36 = vld [vmem:[#allocation115_spill] sm:$0xff] }
 0x34c   :  { %1747 = vmatpush.msrb.mxu0 %v5342_v28  ;;  %1787 = vmatpush.msrb.mxu2 %v5345_v31  ;;  %v7607_v28 = vld [vmem:[#allocation16_spill] sm:$0xff] }
 0x34d   :  { %1662 = vmatpush.msra.mxu1 %v4982_v25  ;;  %1702 = vmatpush.msra.mxu3 %v4985_v29  ;;  %v5356_v25 = vld [vmem:[#allocation3 + $0x1e0] sm:$0xff]  ;;  %v5359_v29 = vld [vmem:[#allocation3 + $0x1e8] sm:$0xff] }
 0x34e   :  { %1748 = vmatpush.msrb.mxu0 %v5350_v30  ;;  %1788 = vmatpush.msrb.mxu2 %v5353_v51  ;;  %7567 = vst [vmem:[#allocation166_spill] sm:$0xff] %v5356_v25 }
 0x34f   :  { %1663 = vmatpush.msra.mxu1 %v7563_v39  ;;  %1703 = vmatpush.msra.mxu3 %v7564_v36  ;;  %7568 = vst [vmem:[#allocation168_spill] sm:$0xff] %v5359_v29  ;;  %v7578_v39 = vld [vmem:[#allocation122_spill] sm:$0xff] }
 0x350   :  { %1835 = vmatpush.msra.mxu0 %v5356_v25  ;;  %1875 = vmatpush.msra.mxu2 %v5359_v29  ;;  %v5380_v36 = vld [vmem:[#allocation3 + $0x180] sm:$0xff] }
 0x351   :  { %1664 = vmatpush.msra.mxu1 %v7569_v22  ;;  %1704 = vmatpush.msra.mxu3 %v7570_v33  ;;  %7579 = vst [vmem:[#allocation127_spill] sm:$0xff] %v5380_v36  ;;  %v5383_v22 = vld [vmem:[#allocation3 + $0x188] sm:$0xff]  ;;  %v5386_v33 = vld [vmem:[#allocation3 + $0x160] sm:$0xff] }
 0x352   :  { %1836 = vmatpush.msra.mxu0 %v5364_v62  ;;  %1876 = vmatpush.msra.mxu2 %v5367_v21  ;;  %7580 = vst [vmem:[#allocation133_spill] sm:$0xff] %v5383_v22  ;;  %v7595_v21 = vld [vmem:[#allocation57_spill] sm:$0xff]  ;;  %v7597_v62 = vld [vmem:[#allocation55_spill] sm:$0xff] }
 0x353   :  { %1665 = vmatpush.msra.mxu1 %v7573_v46  ;;  %1705 = vmatpush.msra.mxu3 %v7574_v16  ;;  %7581 = vst [vmem:[#allocation18_spill] sm:$0xff] %v5386_v33  ;;  %v5389_v46 = vld [vmem:[#allocation3 + $0x168] sm:$0xff]  ;;  %v5392_v16 = vld [vmem:[#allocation3 + $0x140] sm:$0xff] }
 0x354   :  { %1837 = vmatpush.msra.mxu0 %v5372_v42  ;;  %1877 = vmatpush.msra.mxu2 %v5375_v6  ;;  %7582 = vst [vmem:[#allocation131_spill] sm:$0xff] %v5389_v46  ;;  %v7592_v6 = vld [vmem:[#allocation51_spill] sm:$0xff]  ;;  %v7594_v42 = vld [vmem:[#allocation56_spill] sm:$0xff] }
 0x355   :  { %1666 = vmatpush.msra.mxu1 %v7577_v50  ;;  %1706 = vmatpush.msra.mxu3 %v7578_v39  ;;  %7583 = vst [vmem:[#allocation137_spill] sm:$0xff] %v5392_v16  ;;  %v5395_v50 = vld [vmem:[#allocation3 + $0x148] sm:$0xff]  ;;  %v5398_v39 = vld [vmem:[#allocation3 + $0x120] sm:$0xff] }
 0x356   :  { %1838 = vmatpush.msra.mxu0 %v5380_v36  ;;  %1878 = vmatpush.msra.mxu2 %v5383_v22  ;;  %7584 = vst [vmem:[#allocation19_spill] sm:$0xff] %v5395_v50  ;;  %v5401_v22 = vld [vmem:[#allocation3 + $0x128] sm:$0xff]  ;;  %v7590_v36 = vld [vmem:[#allocation52_spill] sm:$0xff] }
 0x357   :  { %7585 = vst [vmem:[#allocation135_spill] sm:$0xff] %v5398_v39 }
 0x358   :  { %1839 = vmatpush.msra.mxu0 %v5386_v33  ;;  %1879 = vmatpush.msra.mxu2 %v5389_v46  ;;  %7586 = vst [vmem:[#allocation141_spill] sm:$0xff] %v5401_v22  ;;  %v5404_v33 = vld [vmem:[#allocation3 + $0x100] sm:$0xff]  ;;  %v5407_v46 = vld [vmem:[#allocation3 + $0x108] sm:$0xff] }
 0x359   :  { %7587 = vst [vmem:[#allocation139_spill] sm:$0xff] %v5404_v33 }
 0x35a   :  { %1840 = vmatpush.msra.mxu0 %v5392_v16  ;;  %1880 = vmatpush.msra.mxu2 %v5395_v50  ;;  %7588 = vst [vmem:[#allocation145_spill] sm:$0xff] %v5407_v46  ;;  %v7589_v16 = vld [vmem:[#allocation50_spill] sm:$0xff]  ;;  %v7591_v50 = vld [vmem:[#allocation53_spill] sm:$0xff] }
 0x35c   :  { %1841 = vmatpush.msra.mxu0 %v5398_v39  ;;  %1881 = vmatpush.msra.mxu2 %v5401_v22  ;;  %v7593_v39 = vld [vmem:[#allocation54_spill] sm:$0xff]  ;;  %v1284_v22 = vpop.f32.mrf.mxu0 }
 0x35e   :  { %1842 = vmatpush.msra.mxu0 %v5404_v33  ;;  %1882 = vmatpush.msra.mxu2 %v5407_v46  ;;  %v7596_v33 = vld [vmem:[#allocation58_spill] sm:$0xff]  ;;  %v7598_v46 = vld [vmem:[#allocation60_spill] sm:$0xff] }
 0x360   :  { %1843 = vmatpush.msra.mxu0 %v7589_v16  ;;  %1883 = vmatpush.msra.mxu2 %v7590_v36  ;;  %v7599_v16 = vld [vmem:[#allocation61_spill] sm:$0xff]  ;;  %v7600_v36 = vld [vmem:[#allocation62_spill] sm:$0xff] }
 0x362   :  { %1844 = vmatpush.msra.mxu0 %v7591_v50  ;;  %1884 = vmatpush.msra.mxu2 %v7592_v6  ;;  %v7601_v50 = vld [vmem:[#allocation14_spill] sm:$0xff]  ;;  %v1324_v6 = vpop.f32.mrf.mxu2 }
 0x363   :  { %v1285_v29 = vadd.f32 %v1284_v22, %v7601_v50 }
 0x364   :  { %1845 = vmatpush.msra.mxu0 %v7593_v39  ;;  %1885 = vmatpush.msra.mxu2 %v7594_v42  ;;  %v7602_v39 = vld [vmem:[#allocation59_spill] sm:$0xff]  ;;  %v7603_v42 = vld [vmem:[#allocation64_spill] sm:$0xff]  ;;  %v1364_v30 = vpop.f32.mrf.mxu0 }
 0x366   :  { %1846 = vmatpush.msra.mxu0 %v7595_v21  ;;  %1886 = vmatpush.msra.mxu2 %v7596_v33  ;;  %v7604_v21 = vld [vmem:[#allocation65_spill] sm:$0xff]  ;;  %v7605_v33 = vld [vmem:[#allocation66_spill] sm:$0xff] }
 0x368   :  { %1847 = vmatpush.msra.mxu0 %v7597_v62  ;;  %1887 = vmatpush.msra.mxu2 %v7598_v46  ;;  %v7606_v46 = vld [vmem:[#allocation15_spill] sm:$0xff] }
 0x369   :  { %v1325_v31 = vadd.f32 %v1324_v6, %v7606_v46 }
 0x36a   :  { %1848 = vmatpush.msra.mxu0 %v7599_v16  ;;  %1888 = vmatpush.msra.mxu2 %v7600_v36  ;;  %v1365_v36 = vadd.f32 %v1364_v30, %v7607_v28 }
 0x36c   :  { %v1304_v25 = vpop.f32.mrf.mxu1  ;;  %1849 = vmatpush.msra.mxu0 %v7602_v39  ;;  %1889 = vmatpush.msra.mxu2 %v7603_v42  ;;  %v1404_v39 = vpop.f32.mrf.mxu2 }
 0x36d   :  { %v1305_v51 = vadd.f32 %v1304_v25, %v1285_v29  ;;  %v1405_v25 = vadd.f32 %v1404_v39, %v7490_v18 }
 0x36e   :  { %1850 = vmatpush.msra.mxu0 %v7604_v21  ;;  %1890 = vmatpush.msra.mxu2 %v7605_v33 }
 0x36f   :  { %v1427_v62 = vmul.f32 0.5, %v1305_v51 }
 0x371   :  { %2890 = vtanh.f32 %v1427_v62 }
 0x372   :  { %v1344_v16 = vpop.f32.mrf.mxu3 }
 0x373   :  { %v1345_v22 = vadd.f32 %v1344_v16, %v1325_v31 }
 0x374   :  { %v1384_v50 = vpop.f32.mrf.mxu1 }
 0x375   :  { %v1431_v17 = vmul.f32 0.5, %v1345_v22  ;;  %v1385_v37 = vadd.f32 %v1384_v50, %v1365_v36 }
 0x377   :  { %2892 = vtanh.f32 %v1431_v17  ;;  %v2891_v42 = vpop.eup %2890 }
 0x378   :  { %2894 = vtanh.f32 %v1385_v37  ;;  %v1429_v51 = vmul.f32 0.5, %v2891_v42  ;;  %v7608_v42 = vld [vmem:[#allocation25_spill] sm:$0xff] }
 0x37a   :  { %v1424_v29 = vpop.f32.mrf.mxu3  ;;  %v1430_v30 = vadd.f32 0.5, %v1429_v51 }
 0x37b   :  { %v1425_v21 = vadd.f32 %v1424_v29, %v1405_v25 }
 0x37d   :  { %v2893_v33 = vpop.eup %2892  ;;  %v1436_v41 = vmul.f32 0.5, %v1425_v21 }
 0x37e   :  { %v1433_v6 = vmul.f32 0.5, %v2893_v33  ;;  %v2895_v46 = vpop.eup %2894 }
 0x37f   :  { %2896 = vtanh.f32 %v1436_v41  ;;  %v1441_v16 = vmul.f32 %v2895_v46, %v1430_v30  ;;  %v7609_v41 = vld [vmem:[#allocation27_spill] sm:$0xff] }
 0x380   :  { %v1434_v62 = vadd.f32 0.5, %v1433_v6  ;;  %v7610_v6 = vld [vmem:[#allocation28_spill] sm:$0xff] }
 0x382   :  { %v1440_v31 = vmul.f32 %v1434_v62, %v5055_v2 }
 0x384   :  { %v5431_v50 = vadd.f32 %v1441_v16, %v1440_v31  ;;  %v7611_v16 = vld [vmem:[#allocation29_spill] sm:$0xff] }
 0x385   :  { %v2897_v17 = vpop.eup %2896 }
 0x386   :  { %2898 = vtanh.f32 %v5431_v50  ;;  %v1438_v36 = vmul.f32 0.5, %v2897_v17 }
 0x388   :  { %v1439_v37 = vadd.f32 0.5, %v1438_v36  ;;  %v7613_v36 = vld [vmem:[#allocation121_spill] sm:$0xff] }
 0x38c   :  { %v1466_v22 = vpop.f32.mrf.mxu0  ;;  %v2899_v39 = vpop.eup %2898 }
 0x38d   :  { %v1529_v25 = vadd.f32 %v1466_v22, %v7608_v42  ;;  %v1444_v29 = vmul.f32 %v2899_v39, %v1439_v37  ;;  %v7615_v37 = vld [vmem:[#allocation128_spill] sm:$0xff] }
 0x38e   :  { %v1486_v33 = vpop.f32.mrf.mxu1 }
 0x38f   :  { %v1533_v21 = vmul.f32 0.5, %v1529_v25  ;;  %1587 = vmatmul.f32.vlgmr.msrb.gmra.mxu1 %v1444_v29  ;;  %1627 = vmatmul.f32.vlgmr.msrb.gmra.mxu3 %v1444_v29  ;;  %v1530_v2 = vadd.f32 %v1486_v33, %v7609_v41  ;;  %v7618_v25 = vld [vmem:[#allocation134_spill] sm:$0xff] }
 0x390   :  { %1753 = vmatpush.msrb.mxu1 %v5058_v27  ;;  %1793 = vmatpush.msrb.mxu3 %v5061_v13  ;;  %v7612_v13 = vld [vmem:[#allocation124_spill] sm:$0xff]  ;;  %v7620_v33 = vld [vmem:[#allocation138_spill] sm:$0xff] }
 0x391   :  { %2900 = vtanh.f32 %v1533_v21  ;;  %v1537_v51 = vmul.f32 0.5, %v1530_v2 }
 0x392   :  { %v1506_v46 = vpop.f32.mrf.mxu2  ;;  %1754 = vmatpush.msrb.mxu1 %v5066_v10  ;;  %1794 = vmatpush.msrb.mxu3 %v5069_v57  ;;  %v7614_v57 = vld [vmem:[#allocation126_spill] sm:$0xff] }
 0x393   :  { %v1531_v30 = vadd.f32 %v1506_v46, %v7610_v6  ;;  %2902 = vtanh.f32 %v1537_v51  ;;  %v7621_v46 = vld [vmem:[#allocation140_spill] sm:$0xff]  ;;  %v7622_v51 = vld [vmem:[#allocation142_spill] sm:$0xff] }
 0x394   :  { %1755 = vmatpush.msrb.mxu1 %v5072_v1  ;;  %1795 = vmatpush.msrb.mxu3 %v5075_v32  ;;  %v1526_v62 = vpop.f32.mrf.mxu3  ;;  %v7616_v32 = vld [vmem:[#allocation130_spill] sm:$0xff] }
 0x395   :  { %2904 = vtanh.f32 %v1531_v30  ;;  %v1532_v27 = vadd.f32 %v1526_v62, %v7611_v16 }
 0x396   :  { %1756 = vmatpush.msrb.mxu1 %v5078_v38  ;;  %1796 = vmatpush.msrb.mxu3 %v7612_v13  ;;  %v7617_v38 = vld [vmem:[#allocation132_spill] sm:$0xff] }
 0x397   :  { %v2901_v31 = vpop.eup %2900  ;;  %1667 = vmatmul.f32.vlgmr.msra.gmra.mxu1 %v1444_v29  ;;  %1707 = vmatmul.f32.vlgmr.msra.gmra.mxu3 %v1444_v29  ;;  %v1542_v10 = vmul.f32 0.5, %v1532_v27  ;;  %v7619_v29 = vld [vmem:[#allocation136_spill] sm:$0xff] }
 0x398   :  { %v1535_v17 = vmul.f32 0.5, %v2901_v31  ;;  %1757 = vmatpush.msrb.mxu1 %v7613_v36  ;;  %1797 = vmatpush.msrb.mxu3 %v7614_v57  ;;  %v7623_v31 = vld [vmem:[#allocation144_spill] sm:$0xff]  ;;  %v5512_v36 = vld [vmem:[#allocation3 + $0x3e0] sm:$0xff]  ;;  %v5515_v57 = vld [vmem:[#allocation3 + $0x3e8] sm:$0xff] }
 0x399   :  { %v2903_v1 = vpop.eup %2902  ;;  %2906 = vtanh.f32 %v1542_v10  ;;  %v7625_v27 = vld [vmem:[#allocation148_spill] sm:$0xff] }
 0x39a   :  { %1758 = vmatpush.msrb.mxu1 %v7615_v37  ;;  %1798 = vmatpush.msrb.mxu3 %v7616_v32  ;;  %v1536_v22 = vadd.f32 0.5, %v1535_v17  ;;  %v1539_v39 = vmul.f32 0.5, %v2903_v1  ;;  %v5490_v17 = vld [vmem:[#allocation3 + $0x1b0] sm:$0xff]  ;;  %v5493_v10 = vld [vmem:[#allocation3 + $0x1b8] sm:$0xff]  ;;  %v5524_v32 = vld [vmem:[#allocation3 + $0x3c0] sm:$0xff] }
 0x39b   :  { %v2905_v42 = vpop.eup %2904  ;;  %v5518_v1 = vld [vmem:[#allocation3 + $0x150] sm:$0xff]  ;;  %v5521_v37 = vld [vmem:[#allocation3 + $0x158] sm:$0xff] }
 0x39c   :  { %1759 = vmatpush.msrb.mxu1 %v7617_v38  ;;  %1799 = vmatpush.msrb.mxu3 %v7618_v25  ;;  %v1540_v21 = vadd.f32 0.5, %v1539_v39  ;;  %v1547_v2 = vmul.f32 %v2905_v42, %v1536_v22  ;;  %v5527_v22 = vld [vmem:[#allocation3 + $0x3c8] sm:$0xff]  ;;  %v5530_v39 = vld [vmem:[#allocation3 + $0x130] sm:$0xff]  ;;  %v5533_v42 = vld [vmem:[#allocation3 + $0x138] sm:$0xff] }
 0x39d   :  { %v5536_v38 = vld [vmem:[#allocation3 + $0x3a0] sm:$0xff]  ;;  %v5539_v25 = vld [vmem:[#allocation3 + $0x3a8] sm:$0xff] }
 0x39e   :  { %1760 = vmatpush.msrb.mxu1 %v7619_v29  ;;  %1800 = vmatpush.msrb.mxu3 %v7620_v33  ;;  %v1546_v41 = vmul.f32 %v1540_v21, %v5123_v24  ;;  %v7624_v24 = vld [vmem:[#allocation146_spill] sm:$0xff]  ;;  %v5542_v21 = vld [vmem:[#allocation3 + $0x110] sm:$0xff]  ;;  %v5545_v29 = vld [vmem:[#allocation3 + $0x118] sm:$0xff] }
 0x39f   :  { %v2907_v6 = vpop.eup %2906  ;;  %v5548_v33 = vld [vmem:[#allocation3 + $0x380] sm:$0xff] }
 0x3a0   :  { %1761 = vmatpush.msrb.mxu1 %v7621_v46  ;;  %1801 = vmatpush.msrb.mxu3 %v7622_v51  ;;  %v5457_v30 = vadd.f32 %v1547_v2, %v1546_v41  ;;  %v1544_v62 = vmul.f32 0.5, %v2907_v6  ;;  %v5551_v41 = vld [vmem:[#allocation3 + $0x388] sm:$0xff]  ;;  %v5554_v2 = vld [vmem:[#allocation3 + $0xf0] sm:$0xff]  ;;  %v5557_v46 = vld [vmem:[#allocation3 + $0xf8] sm:$0xff] }
 0x3a1   :  { %v5560_v51 = vld [vmem:[#allocation3 + $0x360] sm:$0xff]  ;;  %v5563_v6 = vld [vmem:[#allocation3 + $0x368] sm:$0xff] }
 0x3a2   :  { %1762 = vmatpush.msrb.mxu1 %v5117_v53  ;;  %1802 = vmatpush.msrb.mxu3 %v5120_v40  ;;  %2908 = vtanh.f32 %v5457_v30  ;;  %v1545_v16 = vadd.f32 0.5, %v1544_v62  ;;  %v7626_v40 = vld [vmem:[#allocation150_spill] sm:$0xff]  ;;  %v5566_v62 = vld [vmem:[#allocation3 + $0xd0] sm:$0xff] }
 0x3a4   :  { %1763 = vmatpush.msrb.mxu1 %v5125_v34  ;;  %1803 = vmatpush.msrb.mxu3 %v7623_v31  ;;  %v5474_v34 = vld [vmem:[#allocation3 + $0x1f0] sm:$0xff]  ;;  %v5569_v31 = vld [vmem:[#allocation3 + $0xd8] sm:$0xff] }
 0x3a5   :  { %7627 = vst [vmem:[#allocation143_spill] sm:$0xff] %v5569_v31 }
 0x3a6   :  { %1764 = vmatpush.msrb.mxu1 %v7624_v24  ;;  %1804 = vmatpush.msrb.mxu3 %v5135_v5  ;;  %v5477_v5 = vld [vmem:[#allocation3 + $0x1f8] sm:$0xff]  ;;  %v5572_v24 = vld [vmem:[#allocation3 + $0x340] sm:$0xff] }
 0x3a7   :  { %7628 = vst [vmem:[#allocation149_spill] sm:$0xff] %v5572_v24 }
 0x3a8   :  { %1765 = vmatpush.msrb.mxu1 %v7625_v27  ;;  %1805 = vmatpush.msrb.mxu3 %v5141_v45  ;;  %v2909_v13 = vpop.eup %2908  ;;  %v5482_v45 = vld [vmem:[#allocation3 + $0x1d0] sm:$0xff] }
 0x3a9   :  { %v5468_v53 = vmul.f32 %v2909_v13, %v1545_v16  ;;  %v5575_v16 = vld [vmem:[#allocation3 + $0x348] sm:$0xff]  ;;  %v5578_v27 = vld [vmem:[#allocation3 + $0xb0] sm:$0xff]  ;;  %v5581_v13 = vld [vmem:[#allocation3 + $0xb8] sm:$0xff] }
 0x3aa   :  { %1766 = vmatpush.msrb.mxu1 %v5144_v60  ;;  %1806 = vmatpush.msrb.mxu3 %v7626_v40  ;;  %v5485_v60 = vld [vmem:[#allocation3 + $0x1d8] sm:$0xff]  ;;  %7629 = vst [vmem:[#allocation20_spill] sm:$0xff] %v5575_v16  ;;  %v5584_v40 = vld [vmem:[#allocation3 + $0x320] sm:$0xff] }
 0x3ab   :  { %1749 = vmatmul.f32.vlgmr.msrb.gmra.mxu0 %v5468_v53  ;;  %1789 = vmatmul.f32.vlgmr.msrb.gmra.mxu2 %v5468_v53  ;;  %7630 = vst [vmem:[#allocation147_spill] sm:$0xff] %v5578_v27 }
 0x3ac   :  { %1915 = vmatpush.msrb.mxu0 %v5474_v34  ;;  %1955 = vmatpush.msrb.mxu2 %v5477_v5  ;;  %7631 = vst [vmem:[#allocation153_spill] sm:$0xff] %v5581_v13 }
 0x3ad   :  { %1767 = vmatpush.msrb.mxu1 %v5152_v52  ;;  %1807 = vmatpush.msrb.mxu3 %v5155_v15  ;;  %v5498_v15 = vld [vmem:[#allocation3 + $0x190] sm:$0xff]  ;;  %v5501_v52 = vld [vmem:[#allocation3 + $0x198] sm:$0xff]  ;;  %7632 = vst [vmem:[#allocation151_spill] sm:$0xff] %v5584_v40 }
 0x3ae   :  { %1916 = vmatpush.msrb.mxu0 %v5482_v45  ;;  %1956 = vmatpush.msrb.mxu2 %v5485_v60 }
 0x3af   :  { %1768 = vmatpush.msrb.mxu1 %v5162_v56  ;;  %1808 = vmatpush.msrb.mxu3 %v5165_v47  ;;  %v5506_v56 = vld [vmem:[#allocation3 + $0x170] sm:$0xff]  ;;  %v5509_v47 = vld [vmem:[#allocation3 + $0x178] sm:$0xff] }
 0x3b0   :  { %1917 = vmatpush.msrb.mxu0 %v5490_v17  ;;  %1957 = vmatpush.msrb.mxu2 %v5493_v10 }
 0x3b1   :  { %1769 = vmatmul.f32.vlgmr.msrb.gmra.mxu1 %v5468_v53  ;;  %1809 = vmatmul.f32.vlgmr.msrb.gmra.mxu3 %v5468_v53 }
 0x3b2   :  { %1918 = vmatpush.msrb.mxu0 %v5498_v15  ;;  %1958 = vmatpush.msrb.mxu2 %v5501_v52 }
 0x3b3   :  { %1851 = vmatmul.f32.vlgmr.msra.gmra.mxu0 %v5468_v53  ;;  %1891 = vmatmul.f32.vlgmr.msra.gmra.mxu2 %v5468_v53 }
 0x3b4   :  { %1919 = vmatpush.msrb.mxu0 %v5506_v56  ;;  %1959 = vmatpush.msrb.mxu2 %v5509_v47 }
 0x3b5   :  { %1855 = vmatpush.msra.mxu1 %v5512_v36  ;;  %1895 = vmatpush.msra.mxu3 %v5515_v57 }
 0x3b6   :  { %1920 = vmatpush.msrb.mxu0 %v5518_v1  ;;  %1960 = vmatpush.msrb.mxu2 %v5521_v37 }
 0x3b7   :  { %1856 = vmatpush.msra.mxu1 %v5524_v32  ;;  %1896 = vmatpush.msra.mxu3 %v5527_v22 }
 0x3b8   :  { %1921 = vmatpush.msrb.mxu0 %v5530_v39  ;;  %1961 = vmatpush.msrb.mxu2 %v5533_v42 }
 0x3b9   :  { %1857 = vmatpush.msra.mxu1 %v5536_v38  ;;  %1897 = vmatpush.msra.mxu3 %v5539_v25 }
 0x3ba   :  { %1922 = vmatpush.msrb.mxu0 %v5542_v21  ;;  %1962 = vmatpush.msrb.mxu2 %v5545_v29 }
 0x3bb   :  { %1858 = vmatpush.msra.mxu1 %v5548_v33  ;;  %1898 = vmatpush.msra.mxu3 %v5551_v41 }
 0x3bc   :  { %1923 = vmatpush.msrb.mxu0 %v5554_v2  ;;  %1963 = vmatpush.msrb.mxu2 %v5557_v46 }
 0x3bd   :  { %1859 = vmatpush.msra.mxu1 %v5560_v51  ;;  %1899 = vmatpush.msra.mxu3 %v5563_v6 }
 0x3be   :  { %1924 = vmatpush.msrb.mxu0 %v5566_v62  ;;  %1964 = vmatpush.msrb.mxu2 %v5569_v31  ;;  %v5587_v31 = vld [vmem:[#allocation3 + $0x328] sm:$0xff] }
 0x3bf   :  { %1860 = vmatpush.msra.mxu1 %v5572_v24  ;;  %1900 = vmatpush.msra.mxu3 %v5575_v16  ;;  %7633 = vst [vmem:[#allocation157_spill] sm:$0xff] %v5587_v31  ;;  %v5590_v24 = vld [vmem:[#allocation3 + $0x90] sm:$0xff]  ;;  %v5593_v16 = vld [vmem:[#allocation3 + $0x98] sm:$0xff] }
 0x3c0   :  { %1925 = vmatpush.msrb.mxu0 %v5578_v27  ;;  %1965 = vmatpush.msrb.mxu2 %v5581_v13  ;;  %7634 = vst [vmem:[#allocation22_spill] sm:$0xff] %v5590_v24  ;;  %v5596_v27 = vld [vmem:[#allocation3 + $0x300] sm:$0xff]  ;;  %v5599_v13 = vld [vmem:[#allocation3 + $0x308] sm:$0xff] }
 0x3c1   :  { %1861 = vmatpush.msra.mxu1 %v5584_v40  ;;  %1901 = vmatpush.msra.mxu3 %v5587_v31  ;;  %7635 = vst [vmem:[#allocation155_spill] sm:$0xff] %v5593_v16  ;;  %v5602_v40 = vld [vmem:[#allocation3 + $0x70] sm:$0xff]  ;;  %v5605_v31 = vld [vmem:[#allocation3 + $0x78] sm:$0xff] }
 0x3c2   :  { %1926 = vmatpush.msrb.mxu0 %v5590_v24  ;;  %1966 = vmatpush.msrb.mxu2 %v5593_v16  ;;  %7636 = vst [vmem:[#allocation161_spill] sm:$0xff] %v5596_v27  ;;  %v5608_v24 = vld [vmem:[#allocation3 + $0x2e0] sm:$0xff]  ;;  %v5611_v16 = vld [vmem:[#allocation3 + $0x2e8] sm:$0xff] }
 0x3c3   :  { %1862 = vmatpush.msra.mxu1 %v5596_v27  ;;  %7637 = vst [vmem:[#allocation159_spill] sm:$0xff] %v5599_v13  ;;  %1902 = vmatpush.msra.mxu3 %v5599_v13  ;;  %v5614_v27 = vld [vmem:[#allocation3 + $0x50] sm:$0xff]  ;;  %v5617_v13 = vld [vmem:[#allocation3 + $0x58] sm:$0xff] }
 0x3c4   :  { %7638 = vst [vmem:[#allocation165_spill] sm:$0xff] %v5602_v40  ;;  %1927 = vmatpush.msrb.mxu0 %v5602_v40  ;;  %1967 = vmatpush.msrb.mxu2 %v5605_v31  ;;  %v5620_v40 = vld [vmem:[#allocation3 + $0x2c0] sm:$0xff] }
 0x3c5   :  { %7639 = vst [vmem:[#allocation42_spill] sm:$0xff] %v5605_v31  ;;  %1863 = vmatpush.msra.mxu1 %v5608_v24  ;;  %1903 = vmatpush.msra.mxu3 %v5611_v16  ;;  %v5623_v31 = vld [vmem:[#allocation3 + $0x2c8] sm:$0xff] }
 0x3c6   :  { %7640 = vst [vmem:[#allocation163_spill] sm:$0xff] %v5608_v24  ;;  %1928 = vmatpush.msrb.mxu0 %v5614_v27  ;;  %1968 = vmatpush.msrb.mxu2 %v5617_v13  ;;  %v5626_v24 = vld [vmem:[#allocation3 + $0x30] sm:$0xff] }
 0x3c7   :  { %7641 = vst [vmem:[#allocation169_spill] sm:$0xff] %v5611_v16  ;;  %1864 = vmatpush.msra.mxu1 %v5620_v40  ;;  %1904 = vmatpush.msra.mxu3 %v5623_v31  ;;  %v5629_v16 = vld [vmem:[#allocation3 + $0x38] sm:$0xff] }
 0x3c8   :  { %7642 = vst [vmem:[#allocation167_spill] sm:$0xff] %v5614_v27  ;;  %1929 = vmatpush.msrb.mxu0 %v5626_v24  ;;  %1969 = vmatpush.msrb.mxu2 %v5629_v16  ;;  %v5632_v27 = vld [vmem:[#allocation3 + $0x2a0] sm:$0xff] }
 0x3c9   :  { %7643 = vst [vmem:[#allocation170_spill] sm:$0xff] %v5617_v13  ;;  %1865 = vmatpush.msra.mxu1 %v5632_v27  ;;  %v5635_v13 = vld [vmem:[#allocation3 + $0x2a8] sm:$0xff] }
 0x3ca   :  { %7644 = vst [vmem:[#allocation171_spill] sm:$0xff] %v5620_v40  ;;  %1905 = vmatpush.msra.mxu3 %v5635_v13  ;;  %v5638_v40 = vld [vmem:[#allocation3 + $0x10] sm:$0xff] }
 0x3cb   :  { %7645 = vst [vmem:[#allocation45_spill] sm:$0xff] %v5623_v31  ;;  %1930 = vmatpush.msrb.mxu0 %v5638_v40  ;;  %v5641_v31 = vld [vmem:[#allocation3 + $0x18] sm:$0xff] }
 0x3cc   :  { %7646 = vst [vmem:[#allocation43_spill] sm:$0xff] %v5629_v16  ;;  %1970 = vmatpush.msrb.mxu2 %v5641_v31  ;;  %1931 = vmatmul.f32.vlgmr.msrb.gmra.mxu0 %v5468_v53  ;;  %v5646_v16 = vld [vmem:[#allocation3 + $0x280] sm:$0xff] }
 0x3cd   :  { %7647 = vst [vmem:[#allocation46_spill] sm:$0xff] %v5632_v27  ;;  %1971 = vmatmul.f32.vlgmr.msrb.gmra.mxu2 %v5468_v53  ;;  %1866 = vmatpush.msra.mxu1 %v5646_v16  ;;  %v5649_v27 = vld [vmem:[#allocation3 + $0x288] sm:$0xff]  ;;  %v5664_v53 = vld [vmem:[#allocation3 + $0x240] sm:$0xff] }
 0x3ce   :  { %7648 = vst [vmem:[#allocation48_spill] sm:$0xff] %v5635_v13  ;;  %1906 = vmatpush.msra.mxu3 %v5649_v27  ;;  %v5652_v13 = vld [vmem:[#allocation6 + $0x1e0] sm:$0xff]  ;;  %2057 = vmatpush.msra.mxu2 %v5231_v8 }
 0x3cf   :  { %7649 = vst [vmem:[#allocation49_spill] sm:$0xff] %v5638_v40  ;;  %2017 = vmatpush.msra.mxu0 %v5652_v13  ;;  %v5656_v40 = vld [vmem:[#allocation3 + $0x260] sm:$0xff] }
 0x3d0   :  { %7650 = vst [vmem:[#allocation47_spill] sm:$0xff] %v5641_v31  ;;  %1867 = vmatpush.msra.mxu1 %v5656_v40  ;;  %v5659_v31 = vld [vmem:[#allocation3 + $0x268] sm:$0xff]  ;;  %2058 = vmatpush.msra.mxu2 %v5239_v55  ;;  %v5672_v8 = vld [vmem:[#allocation3 + $0x220] sm:$0xff] }
 0x3d1   :  { %7651 = vst [vmem:[#allocation17_spill] sm:$0xff] %v5649_v27  ;;  %1907 = vmatpush.msra.mxu3 %v5659_v31  ;;  %2018 = vmatpush.msra.mxu0 %v5236_v59  ;;  %v5667_v27 = vld [vmem:[#allocation3 + $0x248] sm:$0xff]  ;;  %v5680_v59 = vld [vmem:[#allocation3 + $0x200] sm:$0xff] }
 0x3d2   :  { %7652 = vst [vmem:[#allocation44_spill] sm:$0xff] %v5659_v31  ;;  %1868 = vmatpush.msra.mxu1 %v5664_v53  ;;  %2059 = vmatpush.msra.mxu2 %v5247_v48  ;;  %v5675_v31 = vld [vmem:[#allocation3 + $0x228] sm:$0xff]  ;;  %v5689_v48 = vld [vmem:[#allocation3 + $0x3f8] sm:$0xff] }
 0x3d3   :  { %1908 = vmatpush.msra.mxu3 %v5667_v27  ;;  %2019 = vmatpush.msra.mxu0 %v5244_v49  ;;  %v5683_v55 = vld [vmem:[#allocation3 + $0x208] sm:$0xff]  ;;  %v5686_v49 = vld [vmem:[#allocation3 + $0x3f0] sm:$0xff]  ;;  %7654 = vst [vmem:[#allocation23_spill] sm:$0xff] %v5689_v48 }
 0x3d4   :  { %1869 = vmatpush.msra.mxu1 %v5672_v8  ;;  %2060 = vmatpush.msra.mxu2 %v5257_v4  ;;  %7653 = vst [vmem:[#allocation21_spill] sm:$0xff] %v5686_v49  ;;  %v5697_v4 = vld [vmem:[#allocation3 + $0x3d8] sm:$0xff] }
 0x3d5   :  { %1909 = vmatpush.msra.mxu3 %v5675_v31  ;;  %2020 = vmatpush.msra.mxu0 %v5254_v43  ;;  %v5694_v43 = vld [vmem:[#allocation3 + $0x3d0] sm:$0xff] }
 0x3d6   :  { %1870 = vmatpush.msra.mxu1 %v5680_v59  ;;  %2061 = vmatpush.msra.mxu2 %v5265_v63  ;;  %v5713_v63 = vld [vmem:[#allocation3 + $0x398] sm:$0xff] }
 0x3d7   :  { %1910 = vmatpush.msra.mxu3 %v5683_v55  ;;  %2021 = vmatpush.msra.mxu0 %v5262_v54  ;;  %v5710_v54 = vld [vmem:[#allocation3 + $0x390] sm:$0xff]  ;;  %7658 = vst [vmem:[#allocation63_spill] sm:$0xff] %v5713_v63 }
 0x3d8   :  { %1935 = vmatpush.msrb.mxu1 %v5686_v49  ;;  %2062 = vmatpush.msra.mxu2 %v5273_v44  ;;  %v5702_v49 = vld [vmem:[#allocation3 + $0x3b0] sm:$0xff]  ;;  %7657 = vst [vmem:[#allocation77_spill] sm:$0xff] %v5710_v54  ;;  %v5721_v44 = vld [vmem:[#allocation3 + $0x378] sm:$0xff] }
 0x3d9   :  { %1975 = vmatpush.msrb.mxu3 %v5689_v48  ;;  %2022 = vmatpush.msra.mxu0 %v5270_v19  ;;  %7655 = vst [vmem:[#allocation24_spill] sm:$0xff] %v5702_v49  ;;  %v5705_v48 = vld [vmem:[#allocation3 + $0x3b8] sm:$0xff]  ;;  %v5718_v19 = vld [vmem:[#allocation3 + $0x370] sm:$0xff] }
 0x3da   :  { %1936 = vmatpush.msrb.mxu1 %v5694_v43  ;;  %7656 = vst [vmem:[#allocation26_spill] sm:$0xff] %v5705_v48  ;;  %2063 = vmatpush.msra.mxu2 %v5281_v58  ;;  %v5729_v58 = vld [vmem:[#allocation3 + $0x358] sm:$0xff] }
 0x3db   :  { %1976 = vmatpush.msrb.mxu3 %v5697_v4  ;;  %2023 = vmatpush.msra.mxu0 %v5278_v26  ;;  %7659 = vst [vmem:[#allocation68_spill] sm:$0xff] %v5718_v19  ;;  %v5726_v26 = vld [vmem:[#allocation3 + $0x350] sm:$0xff] }
 0x3dc   :  { %1937 = vmatpush.msrb.mxu1 %v5702_v49  ;;  %2064 = vmatpush.msra.mxu2 %v5289_v7  ;;  %7660 = vst [vmem:[#allocation80_spill] sm:$0xff] %v5721_v44  ;;  %v5737_v7 = vld [vmem:[#allocation3 + $0x338] sm:$0xff] }
 0x3dd   :  { %1977 = vmatpush.msrb.mxu3 %v5705_v48  ;;  %2024 = vmatpush.msra.mxu0 %v5286_v61  ;;  %7661 = vst [vmem:[#allocation81_spill] sm:$0xff] %v5726_v26  ;;  %v5734_v61 = vld [vmem:[#allocation3 + $0x330] sm:$0xff] }
 0x3de   :  { %1938 = vmatpush.msrb.mxu1 %v5710_v54  ;;  %2065 = vmatpush.msra.mxu2 %v5297_v3  ;;  %7662 = vst [vmem:[#allocation69_spill] sm:$0xff] %v5729_v58  ;;  %v5745_v3 = vld [vmem:[#allocation3 + $0x318] sm:$0xff] }
 0x3df   :  { %1978 = vmatpush.msrb.mxu3 %v5713_v63  ;;  %2025 = vmatpush.msra.mxu0 %v5294_v0  ;;  %7663 = vst [vmem:[#allocation70_spill] sm:$0xff] %v5734_v61  ;;  %v5742_v0 = vld [vmem:[#allocation3 + $0x310] sm:$0xff] }
 0x3e0   :  { %1939 = vmatpush.msrb.mxu1 %v5718_v19  ;;  %2066 = vmatpush.msra.mxu2 %v5305_v11  ;;  %7664 = vst [vmem:[#allocation84_spill] sm:$0xff] %v5737_v7  ;;  %v5753_v11 = vld [vmem:[#allocation3 + $0x2f8] sm:$0xff] }
 0x3e1   :  { %1979 = vmatpush.msrb.mxu3 %v5721_v44  ;;  %2026 = vmatpush.msra.mxu0 %v5302_v9  ;;  %7665 = vst [vmem:[#allocation85_spill] sm:$0xff] %v5742_v0  ;;  %v5750_v9 = vld [vmem:[#allocation3 + $0x2f0] sm:$0xff] }
 0x3e2   :  { %1940 = vmatpush.msrb.mxu1 %v5726_v26  ;;  %2067 = vmatpush.msra.mxu2 %v5313_v14  ;;  %7666 = vst [vmem:[#allocation67_spill] sm:$0xff] %v5745_v3  ;;  %v5758_v14 = vld [vmem:[#allocation3 + $0x2d0] sm:$0xff] }
 0x3e3   :  { %1980 = vmatpush.msrb.mxu3 %v5729_v58  ;;  %2027 = vmatpush.msra.mxu0 %v5310_v12  ;;  %7667 = vst [vmem:[#allocation72_spill] sm:$0xff] %v5750_v9  ;;  %v7669_v12 = vld [vmem:[#allocation152_spill] sm:$0xff] }
 0x3e4   :  { %1941 = vmatpush.msrb.mxu1 %v5734_v61  ;;  %2068 = vmatpush.msra.mxu2 %v5321_v35  ;;  %7668 = vst [vmem:[#allocation88_spill] sm:$0xff] %v5753_v11  ;;  %v7673_v35 = vld [vmem:[#allocation156_spill] sm:$0xff]  ;;  %v7705_v61 = vld [vmem:[#allocation145_spill] sm:$0xff] }
 0x3e5   :  { %1981 = vmatpush.msrb.mxu3 %v5737_v7  ;;  %2028 = vmatpush.msra.mxu0 %v5318_v20  ;;  %7670 = vst [vmem:[#allocation89_spill] sm:$0xff] %v5758_v14  ;;  %v7672_v20 = vld [vmem:[#allocation154_spill] sm:$0xff]  ;;  %v7703_v7 = vld [vmem:[#allocation141_spill] sm:$0xff] }
 0x3e6   :  { %1942 = vmatpush.msrb.mxu1 %v5742_v0  ;;  %2069 = vmatpush.msra.mxu2 %v7669_v12  ;;  %v7677_v12 = vld [vmem:[#allocation160_spill] sm:$0xff]  ;;  %v7699_v0 = vld [vmem:[#allocation131_spill] sm:$0xff] }
 0x3e7   :  { %1982 = vmatpush.msrb.mxu3 %v5745_v3  ;;  %2029 = vmatpush.msra.mxu0 %v5326_v23  ;;  %v5761_v3 = vld [vmem:[#allocation3 + $0x2d8] sm:$0xff]  ;;  %v7676_v23 = vld [vmem:[#allocation158_spill] sm:$0xff] }
 0x3e8   :  { %1943 = vmatpush.msrb.mxu1 %v5750_v9  ;;  %7671 = vst [vmem:[#allocation73_spill] sm:$0xff] %v5761_v3  ;;  %2070 = vmatpush.msra.mxu2 %v7673_v35  ;;  %v5766_v9 = vld [vmem:[#allocation3 + $0x2b0] sm:$0xff] }
 0x3e9   :  { %1983 = vmatpush.msrb.mxu3 %v5753_v11  ;;  %2030 = vmatpush.msra.mxu0 %v7672_v20  ;;  %7674 = vst [vmem:[#allocation74_spill] sm:$0xff] %v5766_v9  ;;  %v5769_v11 = vld [vmem:[#allocation3 + $0x2b8] sm:$0xff]  ;;  %v7680_v20 = vld [vmem:[#allocation162_spill] sm:$0xff] }
 0x3ea   :  { %1944 = vmatpush.msrb.mxu1 %v5758_v14  ;;  %7675 = vst [vmem:[#allocation92_spill] sm:$0xff] %v5769_v11  ;;  %2071 = vmatpush.msra.mxu2 %v7677_v12  ;;  %v5774_v14 = vld [vmem:[#allocation3 + $0x290] sm:$0xff] }
 0x3eb   :  { %1984 = vmatpush.msrb.mxu3 %v5761_v3  ;;  %2031 = vmatpush.msra.mxu0 %v7676_v23  ;;  %7678 = vst [vmem:[#allocation93_spill] sm:$0xff] %v5774_v14  ;;  %v5777_v3 = vld [vmem:[#allocation3 + $0x298] sm:$0xff]  ;;  %v7684_v23 = vld [vmem:[#allocation166_spill] sm:$0xff] }
 0x3ec   :  { %1945 = vmatpush.msrb.mxu1 %v5766_v9  ;;  %7679 = vst [vmem:[#allocation71_spill] sm:$0xff] %v5777_v3  ;;  %v7681_v35 = vld [vmem:[#allocation164_spill] sm:$0xff] }
 0x3ed   :  { %1985 = vmatpush.msrb.mxu3 %v5769_v11  ;;  %2032 = vmatpush.msra.mxu0 %v7680_v20  ;;  %v5782_v9 = vld [vmem:[#allocation3 + $0x270] sm:$0xff]  ;;  %v5785_v11 = vld [vmem:[#allocation3 + $0x278] sm:$0xff] }
 0x3ee   :  { %1946 = vmatpush.msrb.mxu1 %v5774_v14  ;;  %2072 = vmatpush.msra.mxu2 %v7681_v35  ;;  %7682 = vst [vmem:[#allocation76_spill] sm:$0xff] %v5782_v9  ;;  %v7685_v12 = vld [vmem:[#allocation168_spill] sm:$0xff]  ;;  %v7688_v20 = vld [vmem:[#allocation119_spill] sm:$0xff]  ;;  %v7689_v35 = vld [vmem:[#allocation125_spill] sm:$0xff] }
 0x3ef   :  { %1986 = vmatpush.msrb.mxu3 %v5777_v3  ;;  %7683 = vst [vmem:[#allocation96_spill] sm:$0xff] %v5785_v11  ;;  %2119 = vmatpush.msrb.mxu0 %v7684_v23  ;;  %v5790_v14 = vld [vmem:[#allocation3 + $0x250] sm:$0xff]  ;;  %v5793_v3 = vld [vmem:[#allocation3 + $0x258] sm:$0xff] }
 0x3f0   :  { %1947 = vmatpush.msrb.mxu1 %v5782_v9  ;;  %2159 = vmatpush.msrb.mxu2 %v7685_v12  ;;  %7686 = vst [vmem:[#allocation97_spill] sm:$0xff] %v5790_v14  ;;  %v5798_v9 = vld [vmem:[#allocation3 + $0x230] sm:$0xff]  ;;  %v7693_v12 = vld [vmem:[#allocation129_spill] sm:$0xff] }
 0x3f1   :  { %1987 = vmatpush.msrb.mxu3 %v5785_v11  ;;  %7687 = vst [vmem:[#allocation78_spill] sm:$0xff] %v5793_v3  ;;  %2120 = vmatpush.msrb.mxu0 %v7688_v20  ;;  %v5801_v11 = vld [vmem:[#allocation3 + $0x238] sm:$0xff]  ;;  %v7692_v23 = vld [vmem:[#allocation123_spill] sm:$0xff] }
 0x3f2   :  { %1948 = vmatpush.msrb.mxu1 %v5790_v14  ;;  %2160 = vmatpush.msrb.mxu2 %v7689_v35  ;;  %7690 = vst [vmem:[#allocation75_spill] sm:$0xff] %v5798_v9  ;;  %v5806_v14 = vld [vmem:[#allocation3 + $0x210] sm:$0xff]  ;;  %v7697_v35 = vld [vmem:[#allocation133_spill] sm:$0xff] }
 0x3f3   :  { %1988 = vmatpush.msrb.mxu3 %v5793_v3  ;;  %7691 = vst [vmem:[#allocation98_spill] sm:$0xff] %v5801_v11  ;;  %2121 = vmatpush.msrb.mxu0 %v7692_v23  ;;  %v5809_v3 = vld [vmem:[#allocation3 + $0x218] sm:$0xff]  ;;  %v7696_v20 = vld [vmem:[#allocation127_spill] sm:$0xff] }
 0x3f4   :  { %1949 = vmatpush.msrb.mxu1 %v5798_v9  ;;  %2161 = vmatpush.msrb.mxu2 %v7693_v12  ;;  %7694 = vst [vmem:[#allocation95_spill] sm:$0xff] %v5806_v14  ;;  %v7698_v9 = vld [vmem:[#allocation18_spill] sm:$0xff]  ;;  %v7701_v23 = vld [vmem:[#allocation19_spill] sm:$0xff] }
 0x3f5   :  { %1989 = vmatpush.msrb.mxu3 %v5801_v11  ;;  %7695 = vst [vmem:[#allocation82_spill] sm:$0xff] %v5809_v3  ;;  %2122 = vmatpush.msrb.mxu0 %v7696_v20  ;;  %v7700_v11 = vld [vmem:[#allocation137_spill] sm:$0xff]  ;;  %v7702_v12 = vld [vmem:[#allocation135_spill] sm:$0xff] }
 0x3f6   :  { %1950 = vmatpush.msrb.mxu1 %v5806_v14  ;;  %2162 = vmatpush.msrb.mxu2 %v7697_v35  ;;  %v7704_v14 = vld [vmem:[#allocation139_spill] sm:$0xff]  ;;  %v5846_v35 = vld [vmem:[#allocation3 + $0x60] sm:$0xff] }
 0x3f7   :  { %1990 = vmatpush.msrb.mxu3 %v5809_v3  ;;  %2123 = vmatpush.msrb.mxu0 %v7698_v9  ;;  %v5822_v3 = vld [vmem:[#allocation3 + $0xe0] sm:$0xff]  ;;  %v5825_v20 = vld [vmem:[#allocation3 + $0xe8] sm:$0xff]  ;;  %7714 = vst [vmem:[#allocation87_spill] sm:$0xff] %v5846_v35 }
 0x3f8   :  { %2163 = vmatpush.msrb.mxu2 %v7699_v0  ;;  %7706 = vst [vmem:[#allocation79_spill] sm:$0xff] %v5822_v3  ;;  %v5828_v0 = vld [vmem:[#allocation3 + $0xc0] sm:$0xff]  ;;  %v5831_v9 = vld [vmem:[#allocation3 + $0xc8] sm:$0xff] }
 0x3f9   :  { %2124 = vmatpush.msrb.mxu0 %v7700_v11  ;;  %7707 = vst [vmem:[#allocation102_spill] sm:$0xff] %v5825_v20  ;;  %v5840_v11 = vld [vmem:[#allocation3 + $0x80] sm:$0xff] }
 0x3fa   :  { %2164 = vmatpush.msrb.mxu2 %v7701_v23  ;;  %7708 = vst [vmem:[#allocation99_spill] sm:$0xff] %v5828_v0  ;;  %v5849_v23 = vld [vmem:[#allocation3 + $0x68] sm:$0xff] }
 0x3fb   :  { %2125 = vmatpush.msrb.mxu0 %v7702_v12  ;;  %7709 = vst [vmem:[#allocation86_spill] sm:$0xff] %v5831_v9  ;;  %v1568_v12 = vpop.f32.mrf.mxu0 }
 0x3fc   :  { %2165 = vmatpush.msrb.mxu2 %v7703_v7  ;;  %v5834_v7 = vld [vmem:[#allocation3 + $0xa0] sm:$0xff]  ;;  %7712 = vst [vmem:[#allocation103_spill] sm:$0xff] %v5840_v11 }
 0x3fd   :  { %2126 = vmatpush.msrb.mxu0 %v7704_v14  ;;  %7710 = vst [vmem:[#allocation83_spill] sm:$0xff] %v5834_v7  ;;  %v5843_v14 = vld [vmem:[#allocation3 + $0x88] sm:$0xff] }
 0x3fe   :  { %2166 = vmatpush.msrb.mxu2 %v7705_v61  ;;  %v5837_v61 = vld [vmem:[#allocation3 + $0xa8] sm:$0xff]  ;;  %7713 = vst [vmem:[#allocation90_spill] sm:$0xff] %v5843_v14 }
 0x3ff   :  { %2127 = vmatpush.msrb.mxu0 %v5822_v3  ;;  %7711 = vst [vmem:[#allocation106_spill] sm:$0xff] %v5837_v61  ;;  %v7723_v3 = vld [vmem:[#allocation15_spill] sm:$0xff] }
 0x400   :  { %2167 = vmatpush.msrb.mxu2 %v5825_v20  ;;  %7715 = vst [vmem:[#allocation107_spill] sm:$0xff] %v5849_v23  ;;  %v5865_v20 = vld [vmem:[#allocation3] sm:$0xff] }
 0x401   :  { %2128 = vmatpush.msrb.mxu0 %v5828_v0  ;;  %7721 = vst [vmem:[#allocation110_spill] sm:$0xff] %v5865_v20 }
 0x402   :  { %2168 = vmatpush.msrb.mxu2 %v5831_v9 }
 0x403   :  { %2129 = vmatpush.msrb.mxu0 %v5834_v7  ;;  %v5852_v7 = vld [vmem:[#allocation3 + $0x40] sm:$0xff] }
 0x404   :  { %2169 = vmatpush.msrb.mxu2 %v5837_v61  ;;  %7716 = vst [vmem:[#allocation94_spill] sm:$0xff] %v5852_v7  ;;  %v5855_v61 = vld [vmem:[#allocation3 + $0x48] sm:$0xff] }
 0x405   :  { %2130 = vmatpush.msrb.mxu0 %v5840_v11  ;;  %7717 = vst [vmem:[#allocation91_spill] sm:$0xff] %v5855_v61  ;;  %v7718_v11 = vld [vmem:[#allocation14_spill] sm:$0xff] }
 0x406   :  { %2170 = vmatpush.msrb.mxu2 %v5843_v14  ;;  %v1569_v9 = vadd.f32 %v1568_v12, %v7718_v11  ;;  %v5859_v14 = vld [vmem:[#allocation3 + $0x20] sm:$0xff]  ;;  %v1648_v11 = vpop.f32.mrf.mxu0 }
 0x407   :  { %2131 = vmatpush.msrb.mxu0 %v5846_v35  ;;  %7719 = vst [vmem:[#allocation100_spill] sm:$0xff] %v5859_v14  ;;  %v5862_v35 = vld [vmem:[#allocation3 + $0x28] sm:$0xff]  ;;  %v1649_v26 = vadd.f32 %v1648_v11, %v7607_v28 }
 0x408   :  { %2171 = vmatpush.msrb.mxu2 %v5849_v23  ;;  %7720 = vst [vmem:[#allocation101_spill] sm:$0xff] %v5862_v35 }
 0x409   :  { %2132 = vmatpush.msrb.mxu0 %v5852_v7  ;;  %v5868_v7 = vld [vmem:[#allocation3 + $0x8] sm:$0xff] }
 0x40a   :  { %2172 = vmatpush.msrb.mxu2 %v5855_v61  ;;  %7722 = vst [vmem:[#allocation105_spill] sm:$0xff] %v5868_v7  ;;  %v1608_v61 = vpop.f32.mrf.mxu2 }
 0x40b   :  { %2133 = vmatpush.msrb.mxu0 %v5859_v14  ;;  %v1609_v58 = vadd.f32 %v1608_v61, %v7723_v3 }
 0x40c   :  { %2173 = vmatpush.msrb.mxu2 %v5862_v35  ;;  %v1588_v23 = vpop.f32.mrf.mxu1 }
 0x40d   :  { %v1589_v0 = vadd.f32 %v1588_v23, %v1569_v9  ;;  %2134 = vmatpush.msrb.mxu0 %v5865_v20 }
 0x40e   :  { %2174 = vmatpush.msrb.mxu2 %v5868_v7 }
 0x40f   :  { %v1711_v12 = vmul.f32 0.5, %v1589_v0 }
 0x411   :  { %2910 = vtanh.f32 %v1711_v12 }
 0x412   :  { %v1628_v14 = vpop.f32.mrf.mxu3  ;;  %v1688_v19 = vpop.f32.mrf.mxu2 }
 0x413   :  { %v1629_v35 = vadd.f32 %v1628_v14, %v1609_v58  ;;  %v1689_v63 = vadd.f32 %v1688_v19, %v7490_v18 }
 0x414   :  { %v1668_v44 = vpop.f32.mrf.mxu1 }
 0x415   :  { %v1715_v9 = vmul.f32 0.5, %v1629_v35  ;;  %v1669_v23 = vadd.f32 %v1668_v44, %v1649_v26 }
 0x417   :  { %2912 = vtanh.f32 %v1715_v9  ;;  %v2911_v20 = vpop.eup %2910  ;;  %v7724_v9 = vld [vmem:[#allocation30_spill] sm:$0xff] }
 0x418   :  { %2914 = vtanh.f32 %v1669_v23  ;;  %v1713_v0 = vmul.f32 0.5, %v2911_v20 }
 0x41a   :  { %v1708_v7 = vpop.f32.mrf.mxu3  ;;  %v1714_v11 = vadd.f32 0.5, %v1713_v0  ;;  %v5880_v0 = vld [vmem:[#allocation6 + $0x1e8] sm:$0xff] }
 0x41b   :  { %v1709_v54 = vadd.f32 %v1708_v7, %v1689_v63 }
 0x41d   :  { %v2913_v48 = vpop.eup %2912  ;;  %v1720_v49 = vmul.f32 0.5, %v1709_v54 }
 0x41e   :  { %v1717_v61 = vmul.f32 0.5, %v2913_v48  ;;  %v2915_v3 = vpop.eup %2914 }
 0x41f   :  { %2916 = vtanh.f32 %v1720_v49  ;;  %v1725_v14 = vmul.f32 %v2915_v3, %v1714_v11 }
 0x420   :  { %v1718_v12 = vadd.f32 0.5, %v1717_v61  ;;  %v5883_v61 = vld [vmem:[#allocation6 + $0x1f8] sm:$0xff] }
 0x422   :  { %v1724_v58 = vmul.f32 %v1718_v12, %v5431_v50  ;;  %v7725_v50 = vld [vmem:[#allocation31_spill] sm:$0xff]  ;;  %v7726_v12 = vld [vmem:[#allocation32_spill] sm:$0xff] }
 0x424   :  { %v5875_v44 = vadd.f32 %v1725_v14, %v1724_v58  ;;  %v5887_v14 = vld [vmem:[#allocation6 + $0x1c8] sm:$0xff] }
 0x425   :  { %v2917_v26 = vpop.eup %2916 }
 0x426   :  { %2918 = vtanh.f32 %v5875_v44  ;;  %v1722_v19 = vmul.f32 0.5, %v2917_v26  ;;  %v5890_v26 = vld [vmem:[#allocation6 + $0x1d8] sm:$0xff] }
 0x428   :  { %v1750_v35 = vpop.f32.mrf.mxu0  ;;  %v1723_v20 = vadd.f32 0.5, %v1722_v19 }
 0x429   :  { %v1813_v63 = vadd.f32 %v1750_v35, %v7724_v9  ;;  %v5893_v35 = vld [vmem:[#allocation6 + $0x1a8] sm:$0xff]  ;;  %v5896_v9 = vld [vmem:[#allocation6 + $0x1b8] sm:$0xff] }
 0x42b   :  { %v1817_v54 = vmul.f32 0.5, %v1813_v63 }
 0x42c   :  { %v2919_v7 = vpop.eup %2918 }
 0x42d   :  { %v1728_v48 = vmul.f32 %v2919_v7, %v1723_v20  ;;  %2920 = vtanh.f32 %v1817_v54  ;;  %v7727_v20 = vld [vmem:[#allocation33_spill] sm:$0xff]  ;;  %v5900_v54 = vld [vmem:[#allocation6 + $0x188] sm:$0xff] }
 0x42e   :  { %v1770_v49 = vpop.f32.mrf.mxu1  ;;  %v1790_v23 = vpop.f32.mrf.mxu2 }
 0x42f   :  { %1871 = vmatmul.f32.vlgmr.msra.gmra.mxu1 %v1728_v48  ;;  %1911 = vmatmul.f32.vlgmr.msra.gmra.mxu3 %v1728_v48  ;;  %v1814_v3 = vadd.f32 %v1770_v49, %v7725_v50  ;;  %v1815_v58 = vadd.f32 %v1790_v23, %v7726_v12  ;;  %v5903_v49 = vld [vmem:[#allocation6 + $0x198] sm:$0xff] }
 0x430   :  { %2037 = vmatpush.msra.mxu1 %v5880_v0  ;;  %2077 = vmatpush.msra.mxu3 %v5883_v61  ;;  %7728 = vst [vmem:[#allocation104_spill] sm:$0xff] %v5903_v49 }
 0x431   :  { %v1821_v11 = vmul.f32 0.5, %v1814_v3  ;;  %v5906_v3 = vld [vmem:[#allocation6 + $0x168] sm:$0xff] }
 0x432   :  { %2038 = vmatpush.msra.mxu1 %v5887_v14  ;;  %2078 = vmatpush.msra.mxu3 %v5890_v26  ;;  %7729 = vst [vmem:[#allocation108_spill] sm:$0xff] %v5906_v3 }
 0x433   :  { %v2921_v19 = vpop.eup %2920  ;;  %2922 = vtanh.f32 %v1821_v11  ;;  %v5909_v11 = vld [vmem:[#allocation6 + $0x178] sm:$0xff] }
 0x434   :  { %2039 = vmatpush.msra.mxu1 %v5893_v35  ;;  %2079 = vmatpush.msra.mxu3 %v5896_v9  ;;  %v1810_v63 = vpop.f32.mrf.mxu3  ;;  %2924 = vtanh.f32 %v1815_v58  ;;  %v1819_v23 = vmul.f32 0.5, %v2921_v19  ;;  %7730 = vst [vmem:[#allocation109_spill] sm:$0xff] %v5909_v11  ;;  %v5912_v58 = vld [vmem:[#allocation6 + $0x148] sm:$0xff] }
 0x435   :  { %v1816_v7 = vadd.f32 %v1810_v63, %v7727_v20  ;;  %7731 = vst [vmem:[#allocation111_spill] sm:$0xff] %v5912_v58  ;;  %v5915_v63 = vld [vmem:[#allocation6 + $0x158] sm:$0xff] }
 0x436   :  { %2040 = vmatpush.msra.mxu1 %v5900_v54  ;;  %2080 = vmatpush.msra.mxu3 %v5903_v49  ;;  %7732 = vst [vmem:[#allocation112_spill] sm:$0xff] %v5915_v63  ;;  %v1820_v19 = vadd.f32 0.5, %v1819_v23  ;;  %v5924_v49 = vld [vmem:[#allocation6 + $0x108] sm:$0xff] }
 0x437   :  { %1951 = vmatmul.f32.vlgmr.msrb.gmra.mxu1 %v1728_v48  ;;  %1991 = vmatmul.f32.vlgmr.msrb.gmra.mxu3 %v1728_v48  ;;  %v1826_v50 = vmul.f32 0.5, %v1816_v7  ;;  %v5918_v7 = vld [vmem:[#allocation6 + $0x128] sm:$0xff]  ;;  %7735 = vst [vmem:[#allocation116_spill] sm:$0xff] %v5924_v49 }
 0x438   :  { %2041 = vmatpush.msra.mxu1 %v5906_v3  ;;  %2081 = vmatpush.msra.mxu3 %v5909_v11  ;;  %7733 = vst [vmem:[#allocation114_spill] sm:$0xff] %v5918_v7  ;;  %v5921_v3 = vld [vmem:[#allocation6 + $0x138] sm:$0xff] }
 0x439   :  { %v2923_v12 = vpop.eup %2922  ;;  %2926 = vtanh.f32 %v1826_v50  ;;  %7734 = vst [vmem:[#allocation115_spill] sm:$0xff] %v5921_v3 }
 0x43a   :  { %2042 = vmatpush.msra.mxu1 %v5912_v58  ;;  %2082 = vmatpush.msra.mxu3 %v5915_v63  ;;  %v1823_v48 = vmul.f32 0.5, %v2923_v12  ;;  %v2925_v20 = vpop.eup %2924  ;;  %v5927_v58 = vld [vmem:[#allocation6 + $0x118] sm:$0xff]  ;;  %v5931_v12 = vld [vmem:[#allocation6 + $0xe8] sm:$0xff] }
 0x43b   :  { %v1831_v50 = vmul.f32 %v2925_v20, %v1820_v19  ;;  %v5939_v63 = vld [vmem:[#allocation6 + $0xc8] sm:$0xff]  ;;  %v5949_v19 = vld [vmem:[#allocation6 + $0xb8] sm:$0xff] }
 0x43c   :  { %2043 = vmatpush.msra.mxu1 %v5918_v7  ;;  %2083 = vmatpush.msra.mxu3 %v5921_v3  ;;  %v1824_v11 = vadd.f32 0.5, %v1823_v48  ;;  %v5934_v7 = vld [vmem:[#allocation6 + $0xf8] sm:$0xff]  ;;  %7736 = vst [vmem:[#allocation113_spill] sm:$0xff] %v5939_v63  ;;  %v5952_v20 = vld [vmem:[#allocation6 + $0x88] sm:$0xff] }
 0x43d   :  { %7739 = vst [vmem:[#allocation117_spill] sm:$0xff] %v5949_v19 }
 0x43e   :  { %2044 = vmatpush.msra.mxu1 %v5924_v49  ;;  %2084 = vmatpush.msra.mxu3 %v5927_v58  ;;  %v1830_v23 = vmul.f32 %v1824_v11, %v5457_v30  ;;  %v5942_v49 = vld [vmem:[#allocation6 + $0xd8] sm:$0xff]  ;;  %v5946_v11 = vld [vmem:[#allocation6 + $0xa8] sm:$0xff]  ;;  %7740 = vst [vmem:[#allocation122_spill] sm:$0xff] %v5952_v20 }
 0x43f   :  { %v2927_v48 = vpop.eup %2926  ;;  %7737 = vst [vmem:[#allocation118_spill] sm:$0xff] %v5942_v49 }
 0x440   :  { %2045 = vmatpush.msra.mxu1 %v5931_v12  ;;  %2085 = vmatpush.msra.mxu3 %v5934_v7  ;;  %v5937_v3 = vadd.f32 %v1831_v50, %v1830_v23  ;;  %v1828_v30 = vmul.f32 0.5, %v2927_v48  ;;  %7738 = vst [vmem:[#allocation120_spill] sm:$0xff] %v5946_v11  ;;  %v5955_v23 = vld [vmem:[#allocation6 + $0x98] sm:$0xff] }
 0x441   :  { %v5961_v48 = vld [vmem:[#allocation6 + $0x78] sm:$0xff] }
 0x442   :  { %2046 = vmatpush.msra.mxu1 %v5939_v63  ;;  %2086 = vmatpush.msra.mxu3 %v5942_v49  ;;  %2928 = vtanh.f32 %v5937_v3  ;;  %v1829_v50 = vadd.f32 0.5, %v1828_v30  ;;  %v5958_v49 = vld [vmem:[#allocation6 + $0x68] sm:$0xff] }
 0x443   :  { %v5976_v30 = vld [vmem:[#allocation6 + $0x28] sm:$0xff] }
 0x444   :  { %2047 = vmatpush.msra.mxu1 %v5946_v11  ;;  %2087 = vmatpush.msra.mxu3 %v5949_v19  ;;  %v5966_v19 = vld [vmem:[#allocation6 + $0x48] sm:$0xff] }
 0x446   :  { %2048 = vmatpush.msra.mxu1 %v5952_v20  ;;  %2088 = vmatpush.msra.mxu3 %v5955_v23  ;;  %v5969_v20 = vld [vmem:[#allocation6 + $0x58] sm:$0xff] }
 0x447   :  { %7741 = vst [vmem:[#allocation50_spill] sm:$0xff] %v5969_v20 }
 0x448   :  { %2049 = vmatpush.msra.mxu1 %v5958_v49  ;;  %2089 = vmatpush.msra.mxu3 %v5961_v48  ;;  %v2929_v11 = vpop.eup %2928 }
 0x449   :  { %v5964_v63 = vmul.f32 %v2929_v11, %v1829_v50  ;;  %v5979_v11 = vld [vmem:[#allocation6 + $0x38] sm:$0xff]  ;;  %v5984_v50 = vld [vmem:[#allocation6 + $0x8] sm:$0xff] }
 0x44a   :  { %2050 = vmatpush.msra.mxu1 %v5966_v19  ;;  %2090 = vmatpush.msra.mxu3 %v5969_v20  ;;  %v5987_v20 = vld [vmem:[#allocation6 + $0x18] sm:$0xff] }
 0x44b   :  { %2033 = vmatmul.f32.vlgmr.msra.gmra.mxu0 %v5964_v63  ;;  %2073 = vmatmul.f32.vlgmr.msra.gmra.mxu2 %v5964_v63 }
 0x44c   :  { %2199 = vmatpush.msra.mxu0 %v5474_v34  ;;  %2239 = vmatpush.msra.mxu2 %v5477_v5  ;;  %v7742_v34 = vld [vmem:[#allocation143_spill] sm:$0xff]  ;;  %v7743_v5 = vld [vmem:[#allocation149_spill] sm:$0xff] }
 0x44d   :  { %2051 = vmatpush.msra.mxu1 %v5976_v30  ;;  %2091 = vmatpush.msra.mxu3 %v5979_v11 }
 0x44e   :  { %2200 = vmatpush.msra.mxu0 %v5482_v45  ;;  %2240 = vmatpush.msra.mxu2 %v5485_v60  ;;  %v7744_v45 = vld [vmem:[#allocation20_spill] sm:$0xff]  ;;  %v7745_v60 = vld [vmem:[#allocation147_spill] sm:$0xff] }
 0x44f   :  { %2052 = vmatpush.msra.mxu1 %v5984_v50  ;;  %2092 = vmatpush.msra.mxu3 %v5987_v20 }
 0x450   :  { %2201 = vmatpush.msra.mxu0 %v5490_v17  ;;  %2241 = vmatpush.msra.mxu2 %v5493_v10  ;;  %v7746_v17 = vld [vmem:[#allocation153_spill] sm:$0xff]  ;;  %v7747_v10 = vld [vmem:[#allocation151_spill] sm:$0xff] }
 0x451   :  { %2053 = vmatmul.f32.vlgmr.msra.gmra.mxu1 %v5964_v63  ;;  %2093 = vmatmul.f32.vlgmr.msra.gmra.mxu3 %v5964_v63 }
 0x452   :  { %2202 = vmatpush.msra.mxu0 %v5498_v15  ;;  %2242 = vmatpush.msra.mxu2 %v5501_v52  ;;  %v7748_v15 = vld [vmem:[#allocation157_spill] sm:$0xff]  ;;  %v7749_v52 = vld [vmem:[#allocation22_spill] sm:$0xff] }
 0x453   :  { %2135 = vmatmul.f32.vlgmr.msrb.gmra.mxu0 %v5964_v63  ;;  %2175 = vmatmul.f32.vlgmr.msrb.gmra.mxu2 %v5964_v63 }
 0x454   :  { %2203 = vmatpush.msra.mxu0 %v5506_v56  ;;  %2243 = vmatpush.msra.mxu2 %v5509_v47  ;;  %v7750_v56 = vld [vmem:[#allocation155_spill] sm:$0xff]  ;;  %v7751_v47 = vld [vmem:[#allocation161_spill] sm:$0xff] }
 0x455   :  { %2139 = vmatpush.msrb.mxu1 %v5512_v36  ;;  %2179 = vmatpush.msrb.mxu3 %v5515_v57  ;;  %v7752_v36 = vld [vmem:[#allocation159_spill] sm:$0xff]  ;;  %v7753_v57 = vld [vmem:[#allocation165_spill] sm:$0xff] }
 0x456   :  { %2204 = vmatpush.msra.mxu0 %v5518_v1  ;;  %2244 = vmatpush.msra.mxu2 %v5521_v37  ;;  %v7754_v1 = vld [vmem:[#allocation42_spill] sm:$0xff]  ;;  %v7755_v37 = vld [vmem:[#allocation163_spill] sm:$0xff] }
 0x457   :  { %2140 = vmatpush.msrb.mxu1 %v5524_v32  ;;  %2180 = vmatpush.msrb.mxu3 %v5527_v22  ;;  %v7756_v32 = vld [vmem:[#allocation169_spill] sm:$0xff]  ;;  %v7757_v22 = vld [vmem:[#allocation167_spill] sm:$0xff] }
 0x458   :  { %2205 = vmatpush.msra.mxu0 %v5530_v39  ;;  %2245 = vmatpush.msra.mxu2 %v5533_v42  ;;  %v7758_v39 = vld [vmem:[#allocation170_spill] sm:$0xff]  ;;  %v7759_v42 = vld [vmem:[#allocation171_spill] sm:$0xff] }
 0x459   :  { %2141 = vmatpush.msrb.mxu1 %v5536_v38  ;;  %2181 = vmatpush.msrb.mxu3 %v5539_v25  ;;  %v7760_v38 = vld [vmem:[#allocation45_spill] sm:$0xff]  ;;  %v7761_v25 = vld [vmem:[#allocation43_spill] sm:$0xff] }
 0x45a   :  { %2206 = vmatpush.msra.mxu0 %v5542_v21  ;;  %2246 = vmatpush.msra.mxu2 %v5545_v29  ;;  %v7762_v21 = vld [vmem:[#allocation46_spill] sm:$0xff]  ;;  %v7763_v29 = vld [vmem:[#allocation48_spill] sm:$0xff] }
 0x45b   :  { %2142 = vmatpush.msrb.mxu1 %v5548_v33  ;;  %2182 = vmatpush.msrb.mxu3 %v5551_v41  ;;  %v7764_v33 = vld [vmem:[#allocation49_spill] sm:$0xff]  ;;  %v7765_v41 = vld [vmem:[#allocation47_spill] sm:$0xff] }
 0x45c   :  { %2207 = vmatpush.msra.mxu0 %v5554_v2  ;;  %2247 = vmatpush.msra.mxu2 %v5557_v46  ;;  %v7766_v2 = vld [vmem:[#allocation17_spill] sm:$0xff]  ;;  %v3343_v46 = vld [vmem:[#allocation6 + $0x1f0] sm:$0xff] }
 0x45d   :  { %2143 = vmatpush.msrb.mxu1 %v5560_v51  ;;  %2183 = vmatpush.msrb.mxu3 %v5563_v6  ;;  %v7767_v51 = vld [vmem:[#allocation44_spill] sm:$0xff]  ;;  %v3344_v6 = vld [vmem:[#allocation6 + $0x1c0] sm:$0xff] }
 0x45e   :  { %2208 = vmatpush.msra.mxu0 %v5566_v62  ;;  %2248 = vmatpush.msra.mxu2 %v7742_v34  ;;  %v3345_v62 = vld [vmem:[#allocation6 + $0x1d0] sm:$0xff] }
 0x45f   :  { %2144 = vmatpush.msrb.mxu1 %v7743_v5  ;;  %2184 = vmatpush.msrb.mxu3 %v7744_v45  ;;  %v3351_v34 = vld [vmem:[#allocation6 + $0x170] sm:$0xff] }
 0x460   :  { %2209 = vmatpush.msra.mxu0 %v7745_v60  ;;  %2249 = vmatpush.msra.mxu2 %v7746_v17  ;;  %v7770_v5 = vld [vmem:[#allocation24_spill] sm:$0xff]  ;;  %v7772_v60 = vld [vmem:[#allocation77_spill] sm:$0xff]  ;;  %v7773_v17 = vld [vmem:[#allocation63_spill] sm:$0xff] }
 0x461   :  { %2145 = vmatpush.msrb.mxu1 %v7747_v10  ;;  %2185 = vmatpush.msrb.mxu3 %v7748_v15  ;;  %v3355_v45 = vld [vmem:[#allocation6 + $0x130] sm:$0xff]  ;;  %v3356_v10 = vld [vmem:[#allocation6 + $0x100] sm:$0xff] }
 0x462   :  { %2210 = vmatpush.msra.mxu0 %v7749_v52  ;;  %2250 = vmatpush.msra.mxu2 %v7750_v56  ;;  %v7775_v15 = vld [vmem:[#allocation80_spill] sm:$0xff]  ;;  %v3358_v52 = vld [vmem:[#allocation6 + $0xe0] sm:$0xff] }
 0x463   :  { %2146 = vmatpush.msrb.mxu1 %v7751_v47  ;;  %2186 = vmatpush.msrb.mxu3 %v7752_v36  ;;  %v3359_v56 = vld [vmem:[#allocation6 + $0xf0] sm:$0xff]  ;;  %v7776_v47 = vld [vmem:[#allocation81_spill] sm:$0xff] }
 0x464   :  { %2211 = vmatpush.msra.mxu0 %v7753_v57  ;;  %2251 = vmatpush.msra.mxu2 %v7754_v1  ;;  %v7777_v36 = vld [vmem:[#allocation69_spill] sm:$0xff]  ;;  %v3360_v57 = vld [vmem:[#allocation6 + $0xc0] sm:$0xff]  ;;  %v3361_v1 = vld [vmem:[#allocation6 + $0xd0] sm:$0xff] }
 0x465   :  { %2147 = vmatpush.msrb.mxu1 %v7755_v37  ;;  %2187 = vmatpush.msrb.mxu3 %v7756_v32  ;;  %v7778_v37 = vld [vmem:[#allocation70_spill] sm:$0xff]  ;;  %v7779_v32 = vld [vmem:[#allocation84_spill] sm:$0xff] }
 0x466   :  { %2212 = vmatpush.msra.mxu0 %v7757_v22  ;;  %2252 = vmatpush.msra.mxu2 %v7758_v39  ;;  %v3362_v22 = vld [vmem:[#allocation6 + $0xa0] sm:$0xff]  ;;  %v3363_v39 = vld [vmem:[#allocation6 + $0xb0] sm:$0xff] }
 0x467   :  { %2148 = vmatpush.msrb.mxu1 %v7759_v42  ;;  %2188 = vmatpush.msrb.mxu3 %v7760_v38  ;;  %v7780_v42 = vld [vmem:[#allocation85_spill] sm:$0xff]  ;;  %v7781_v38 = vld [vmem:[#allocation67_spill] sm:$0xff] }
 0x468   :  { %2213 = vmatpush.msra.mxu0 %v5626_v24  ;;  %2253 = vmatpush.msra.mxu2 %v7761_v25  ;;  %v3346_v24 = vld [vmem:[#allocation6 + $0x1a0] sm:$0xff] }
 0x469   :  { %2149 = vmatpush.msrb.mxu1 %v7762_v21  ;;  %2189 = vmatpush.msrb.mxu3 %v7763_v29  ;;  %v3364_v25 = vld [vmem:[#allocation6 + $0x80] sm:$0xff]  ;;  %v3365_v21 = vld [vmem:[#allocation6 + $0x90] sm:$0xff] }
 0x46a   :  { %2214 = vmatpush.msra.mxu0 %v7764_v33  ;;  %2254 = vmatpush.msra.mxu2 %v7765_v41  ;;  %v7782_v29 = vld [vmem:[#allocation72_spill] sm:$0xff]  ;;  %v3366_v41 = vld [vmem:[#allocation6 + $0x60] sm:$0xff] }
 0x46b   :  { %2215 = vmatmul.f32.vlgmr.msra.gmra.mxu0 %v5964_v63  ;;  %2255 = vmatmul.f32.vlgmr.msra.gmra.mxu2 %v5964_v63  ;;  %v7768_v63 = vld [vmem:[#allocation21_spill] sm:$0xff]  ;;  %v7783_v33 = vld [vmem:[#allocation88_spill] sm:$0xff] }
 0x46c   :  { %2150 = vmatpush.msrb.mxu1 %v5646_v16  ;;  %2190 = vmatpush.msrb.mxu3 %v7766_v2  ;;  %v3347_v16 = vld [vmem:[#allocation6 + $0x1b0] sm:$0xff] }
 0x46d   :  { %2301 = vmatpush.msrb.mxu0 %v5652_v13  ;;  %2341 = vmatpush.msrb.mxu2 %v3343_v46  ;;  %v3348_v13 = vld [vmem:[#allocation6 + $0x180] sm:$0xff]  ;;  %v3367_v2 = vld [vmem:[#allocation6 + $0x70] sm:$0xff]  ;;  %v7784_v46 = vld [vmem:[#allocation89_spill] sm:$0xff] }
 0x46e   :  { %2151 = vmatpush.msrb.mxu1 %v5656_v40  ;;  %2191 = vmatpush.msrb.mxu3 %v7767_v51  ;;  %v3349_v40 = vld [vmem:[#allocation6 + $0x190] sm:$0xff]  ;;  %v7785_v51 = vld [vmem:[#allocation73_spill] sm:$0xff] }
 0x46f   :  { %2302 = vmatpush.msrb.mxu0 %v3344_v6  ;;  %2342 = vmatpush.msrb.mxu2 %v3345_v62  ;;  %v3368_v6 = vld [vmem:[#allocation6 + $0x40] sm:$0xff]  ;;  %v3369_v62 = vld [vmem:[#allocation6 + $0x50] sm:$0xff] }
 0x470   :  { %2152 = vmatpush.msrb.mxu1 %v5664_v53  ;;  %2192 = vmatpush.msrb.mxu3 %v5667_v27  ;;  %v7769_v53 = vld [vmem:[#allocation23_spill] sm:$0xff]  ;;  %v3350_v27 = vld [vmem:[#allocation6 + $0x160] sm:$0xff] }
 0x471   :  { %2303 = vmatpush.msrb.mxu0 %v3346_v24  ;;  %2343 = vmatpush.msrb.mxu2 %v3347_v16  ;;  %v7786_v24 = vld [vmem:[#allocation74_spill] sm:$0xff]  ;;  %v7787_v16 = vld [vmem:[#allocation92_spill] sm:$0xff] }
 0x472   :  { %2153 = vmatpush.msrb.mxu1 %v5672_v8  ;;  %2193 = vmatpush.msrb.mxu3 %v5675_v31  ;;  %v3352_v31 = vld [vmem:[#allocation6 + $0x140] sm:$0xff]  ;;  %v3353_v8 = vld [vmem:[#allocation6 + $0x150] sm:$0xff] }
 0x473   :  { %2304 = vmatpush.msrb.mxu0 %v3348_v13  ;;  %2344 = vmatpush.msrb.mxu2 %v3349_v40  ;;  %v3370_v13 = vld [vmem:[#allocation6 + $0x20] sm:$0xff]  ;;  %v3371_v40 = vld [vmem:[#allocation6 + $0x30] sm:$0xff] }
 0x474   :  { %2154 = vmatpush.msrb.mxu1 %v5680_v59  ;;  %2194 = vmatpush.msrb.mxu3 %v5683_v55  ;;  %v7771_v59 = vld [vmem:[#allocation26_spill] sm:$0xff] }
 0x475   :  { %2305 = vmatpush.msrb.mxu0 %v3350_v27  ;;  %2345 = vmatpush.msrb.mxu2 %v3351_v34  ;;  %v3354_v55 = vld [vmem:[#allocation6 + $0x120] sm:$0xff]  ;;  %v3373_v34 = vld [vmem:[#allocation6 + $0x10] sm:$0xff] }
 0x476   :  { %2219 = vmatpush.msra.mxu1 %v7768_v63  ;;  %2259 = vmatpush.msra.mxu3 %v7769_v53  ;;  %v7788_v63 = vld [vmem:[#allocation93_spill] sm:$0xff]  ;;  %v7789_v53 = vld [vmem:[#allocation71_spill] sm:$0xff]  ;;  %v3372_v27 = vld [vmem:[#allocation6] sm:$0xff] }
 0x477   :  { %2306 = vmatpush.msrb.mxu0 %v3352_v31  ;;  %2346 = vmatpush.msrb.mxu2 %v3353_v8  ;;  %v7790_v31 = vld [vmem:[#allocation76_spill] sm:$0xff] }
 0x478   :  { %2220 = vmatpush.msra.mxu1 %v5694_v43  ;;  %2260 = vmatpush.msra.mxu3 %v5697_v4  ;;  %v3357_v43 = vld [vmem:[#allocation6 + $0x110] sm:$0xff] }
 0x479   :  { %2307 = vmatpush.msrb.mxu0 %v3354_v55  ;;  %2347 = vmatpush.msrb.mxu2 %v3355_v45  ;;  %v7774_v4 = vld [vmem:[#allocation68_spill] sm:$0xff]  ;;  %v7792_v55 = vld [vmem:[#allocation97_spill] sm:$0xff]  ;;  %v7793_v45 = vld [vmem:[#allocation78_spill] sm:$0xff] }
 0x47a   :  { %2221 = vmatpush.msra.mxu1 %v7770_v5  ;;  %2261 = vmatpush.msra.mxu3 %v7771_v59  ;;  %v7791_v8 = vld [vmem:[#allocation96_spill] sm:$0xff]  ;;  %v6083_v5 = vld [vmem:[#allocation3 + $0x1e0] sm:$0xff]  ;;  %v6086_v59 = vld [vmem:[#allocation3 + $0x1e8] sm:$0xff] }
 0x47b   :  { %2308 = vmatpush.msrb.mxu0 %v3356_v10  ;;  %2348 = vmatpush.msrb.mxu2 %v3357_v43  ;;  %v7794_v10 = vld [vmem:[#allocation75_spill] sm:$0xff]  ;;  %v7795_v43 = vld [vmem:[#allocation98_spill] sm:$0xff] }
 0x47c   :  { %2222 = vmatpush.msra.mxu1 %v7772_v60  ;;  %2262 = vmatpush.msra.mxu3 %v7773_v17  ;;  %v6091_v60 = vld [vmem:[#allocation3 + $0x1c0] sm:$0xff]  ;;  %v6094_v17 = vld [vmem:[#allocation3 + $0x1c8] sm:$0xff] }
 0x47d   :  { %2309 = vmatpush.msrb.mxu0 %v3358_v52  ;;  %2349 = vmatpush.msrb.mxu2 %v3359_v56  ;;  %v7796_v52 = vld [vmem:[#allocation95_spill] sm:$0xff]  ;;  %v7797_v56 = vld [vmem:[#allocation82_spill] sm:$0xff] }
 0x47e   :  { %2223 = vmatpush.msra.mxu1 %v7774_v4  ;;  %2263 = vmatpush.msra.mxu3 %v7775_v15  ;;  %v6099_v4 = vld [vmem:[#allocation3 + $0x1a0] sm:$0xff]  ;;  %v6102_v15 = vld [vmem:[#allocation3 + $0x1a8] sm:$0xff] }
 0x47f   :  { %2310 = vmatpush.msrb.mxu0 %v3360_v57  ;;  %2350 = vmatpush.msrb.mxu2 %v3361_v1  ;;  %v6113_v57 = vld [vmem:[#allocation3 + $0x160] sm:$0xff]  ;;  %v6116_v1 = vld [vmem:[#allocation3 + $0x168] sm:$0xff] }
 0x480   :  { %2224 = vmatpush.msra.mxu1 %v7776_v47  ;;  %2264 = vmatpush.msra.mxu3 %v7777_v36  ;;  %v6107_v47 = vld [vmem:[#allocation3 + $0x180] sm:$0xff]  ;;  %v6110_v36 = vld [vmem:[#allocation3 + $0x188] sm:$0xff] }
 0x481   :  { %2311 = vmatpush.msrb.mxu0 %v3362_v22  ;;  %2351 = vmatpush.msrb.mxu2 %v3363_v39  ;;  %v6125_v22 = vld [vmem:[#allocation3 + $0x120] sm:$0xff]  ;;  %v6128_v39 = vld [vmem:[#allocation3 + $0x128] sm:$0xff] }
 0x482   :  { %2225 = vmatpush.msra.mxu1 %v7778_v37  ;;  %2265 = vmatpush.msra.mxu3 %v7779_v32  ;;  %v6119_v37 = vld [vmem:[#allocation3 + $0x140] sm:$0xff]  ;;  %v6122_v32 = vld [vmem:[#allocation3 + $0x148] sm:$0xff] }
 0x483   :  { %2312 = vmatpush.msrb.mxu0 %v3364_v25  ;;  %2352 = vmatpush.msrb.mxu2 %v3365_v21  ;;  %v7798_v25 = vld [vmem:[#allocation79_spill] sm:$0xff]  ;;  %v7799_v21 = vld [vmem:[#allocation102_spill] sm:$0xff] }
 0x484   :  { %2226 = vmatpush.msra.mxu1 %v7780_v42  ;;  %2266 = vmatpush.msra.mxu3 %v7781_v38  ;;  %v6131_v42 = vld [vmem:[#allocation3 + $0x100] sm:$0xff]  ;;  %v6134_v38 = vld [vmem:[#allocation3 + $0x108] sm:$0xff] }
 0x485   :  { %2313 = vmatpush.msrb.mxu0 %v3366_v41  ;;  %2353 = vmatpush.msrb.mxu2 %v3367_v2  ;;  %v7802_v41 = vld [vmem:[#allocation83_spill] sm:$0xff]  ;;  %v7803_v2 = vld [vmem:[#allocation106_spill] sm:$0xff] }
 0x486   :  { %2227 = vmatpush.msra.mxu1 %v7782_v29  ;;  %2267 = vmatpush.msra.mxu3 %v7783_v33  ;;  %v7800_v29 = vld [vmem:[#allocation99_spill] sm:$0xff]  ;;  %v7801_v33 = vld [vmem:[#allocation86_spill] sm:$0xff] }
 0x487   :  { %2314 = vmatpush.msrb.mxu0 %v3368_v6  ;;  %2354 = vmatpush.msrb.mxu2 %v3369_v62  ;;  %v7806_v6 = vld [vmem:[#allocation87_spill] sm:$0xff] }
 0x488   :  { %2228 = vmatpush.msra.mxu1 %v7784_v46  ;;  %2268 = vmatpush.msra.mxu3 %v7785_v51  ;;  %v7804_v46 = vld [vmem:[#allocation103_spill] sm:$0xff]  ;;  %v7805_v51 = vld [vmem:[#allocation90_spill] sm:$0xff] }
 0x489   :  { %2315 = vmatpush.msrb.mxu0 %v3370_v13  ;;  %2355 = vmatpush.msrb.mxu2 %v3371_v40  ;;  %v7807_v62 = vld [vmem:[#allocation107_spill] sm:$0xff]  ;;  %v7810_v40 = vld [vmem:[#allocation14_spill] sm:$0xff] }
 0x48a   :  { %2229 = vmatpush.msra.mxu1 %v7786_v24  ;;  %2269 = vmatpush.msra.mxu3 %v7787_v16  ;;  %v1852_v24 = vpop.f32.mrf.mxu0  ;;  %v7808_v16 = vld [vmem:[#allocation94_spill] sm:$0xff]  ;;  %v7809_v13 = vld [vmem:[#allocation91_spill] sm:$0xff] }
 0x48b   :  { %2316 = vmatpush.msrb.mxu0 %v3372_v27  ;;  %2356 = vmatpush.msrb.mxu2 %v3373_v34  ;;  %v7812_v27 = vld [vmem:[#allocation101_spill] sm:$0xff] }
 0x48c   :  { %2230 = vmatpush.msra.mxu1 %v7788_v63  ;;  %2270 = vmatpush.msra.mxu3 %v7789_v53  ;;  %v1853_v63 = vadd.f32 %v1852_v24, %v7810_v40  ;;  %v7811_v53 = vld [vmem:[#allocation100_spill] sm:$0xff] }
 0x48d   :  { %2403 = vmatpush.msra.mxu0 %v6083_v5  ;;  %2443 = vmatpush.msra.mxu2 %v6086_v59 }
 0x48e   :  { %2231 = vmatpush.msra.mxu1 %v7790_v31  ;;  %2271 = vmatpush.msra.mxu3 %v7791_v8  ;;  %v7813_v8 = vld [vmem:[#allocation110_spill] sm:$0xff] }
 0x48f   :  { %2404 = vmatpush.msra.mxu0 %v6091_v60  ;;  %2444 = vmatpush.msra.mxu2 %v6094_v17 }
 0x490   :  { %2232 = vmatpush.msra.mxu1 %v7792_v55  ;;  %2272 = vmatpush.msra.mxu3 %v7793_v45  ;;  %v7814_v55 = vld [vmem:[#allocation105_spill] sm:$0xff]  ;;  %v1892_v45 = vpop.f32.mrf.mxu2 }
 0x491   :  { %2405 = vmatpush.msra.mxu0 %v6099_v4  ;;  %2445 = vmatpush.msra.mxu2 %v6102_v15 }
 0x492   :  { %2233 = vmatpush.msra.mxu1 %v7794_v10  ;;  %2273 = vmatpush.msra.mxu3 %v7795_v43  ;;  %v1932_v43 = vpop.f32.mrf.mxu0 }
 0x493   :  { %2406 = vmatpush.msra.mxu0 %v6107_v47  ;;  %2446 = vmatpush.msra.mxu2 %v6110_v36 }
 0x494   :  { %2234 = vmatpush.msra.mxu1 %v7796_v52  ;;  %2274 = vmatpush.msra.mxu3 %v7797_v56  ;;  %v7815_v52 = vld [vmem:[#allocation15_spill] sm:$0xff] }
 0x495   :  { %2407 = vmatpush.msra.mxu0 %v6113_v57  ;;  %2447 = vmatpush.msra.mxu2 %v6116_v1  ;;  %v1893_v56 = vadd.f32 %v1892_v45, %v7815_v52 }
 0x497   :  { %2408 = vmatpush.msra.mxu0 %v6119_v37  ;;  %2448 = vmatpush.msra.mxu2 %v6122_v32 }
 0x499   :  { %2409 = vmatpush.msra.mxu0 %v6125_v22  ;;  %2449 = vmatpush.msra.mxu2 %v6128_v39 }
 0x49b   :  { %2410 = vmatpush.msra.mxu0 %v6131_v42  ;;  %2450 = vmatpush.msra.mxu2 %v6134_v38 }
 0x49d   :  { %2411 = vmatpush.msra.mxu0 %v7798_v25  ;;  %2451 = vmatpush.msra.mxu2 %v7799_v21 }
 0x49f   :  { %2412 = vmatpush.msra.mxu0 %v7800_v29  ;;  %2452 = vmatpush.msra.mxu2 %v7801_v33 }
 0x4a1   :  { %2413 = vmatpush.msra.mxu0 %v7802_v41  ;;  %2453 = vmatpush.msra.mxu2 %v7803_v2 }
 0x4a3   :  { %2414 = vmatpush.msra.mxu0 %v7804_v46  ;;  %2454 = vmatpush.msra.mxu2 %v7805_v51 }
 0x4a5   :  { %2415 = vmatpush.msra.mxu0 %v7806_v6  ;;  %2455 = vmatpush.msra.mxu2 %v7807_v62 }
 0x4a7   :  { %2416 = vmatpush.msra.mxu0 %v7808_v16  ;;  %2456 = vmatpush.msra.mxu2 %v7809_v13  ;;  %v1933_v13 = vadd.f32 %v1932_v43, %v7607_v28 }
 0x4a9   :  { %2417 = vmatpush.msra.mxu0 %v7811_v53  ;;  %2457 = vmatpush.msra.mxu2 %v7812_v27  ;;  %v1972_v27 = vpop.f32.mrf.mxu2 }
 0x4ab   :  { %2418 = vmatpush.msra.mxu0 %v7813_v8  ;;  %2458 = vmatpush.msra.mxu2 %v7814_v55 }
 0x4ac   :  { %v1872_v34 = vpop.f32.mrf.mxu1 }
 0x4ad   :  { %v1873_v31 = vadd.f32 %v1872_v34, %v1853_v63  ;;  %v1973_v34 = vadd.f32 %v1972_v27, %v7490_v18  ;;  %v7816_v27 = vld [vmem:[#allocation34_spill] sm:$0xff] }
 0x4af   :  { %v1995_v10 = vmul.f32 0.5, %v1873_v31 }
 0x4b1   :  { %2930 = vtanh.f32 %v1995_v10 }
 0x4b2   :  { %v1912_v16 = vpop.f32.mrf.mxu3 }
 0x4b3   :  { %v1913_v24 = vadd.f32 %v1912_v16, %v1893_v56 }
 0x4b4   :  { %v1952_v40 = vpop.f32.mrf.mxu1 }
 0x4b5   :  { %v1999_v53 = vmul.f32 0.5, %v1913_v24  ;;  %v1953_v62 = vadd.f32 %v1952_v40, %v1933_v13 }
 0x4b7   :  { %2932 = vtanh.f32 %v1999_v53  ;;  %v2931_v63 = vpop.eup %2930 }
 0x4b8   :  { %2934 = vtanh.f32 %v1953_v62  ;;  %v1997_v31 = vmul.f32 0.5, %v2931_v63 }
 0x4ba   :  { %v1992_v55 = vpop.f32.mrf.mxu3  ;;  %v1998_v43 = vadd.f32 0.5, %v1997_v31 }
 0x4bb   :  { %v1993_v8 = vadd.f32 %v1992_v55, %v1973_v34 }
 0x4bd   :  { %v2933_v6 = vpop.eup %2932  ;;  %v2004_v51 = vmul.f32 0.5, %v1993_v8 }
 0x4be   :  { %v2001_v45 = vmul.f32 0.5, %v2933_v6  ;;  %v2935_v52 = vpop.eup %2934 }
 0x4bf   :  { %2936 = vtanh.f32 %v2004_v51  ;;  %v2009_v56 = vmul.f32 %v2935_v52, %v1998_v43 }
 0x4c0   :  { %v2002_v10 = vadd.f32 0.5, %v2001_v45  ;;  %v7818_v45 = vld [vmem:[#allocation36_spill] sm:$0xff] }
 0x4c2   :  { %v2008_v16 = vmul.f32 %v2002_v10, %v5875_v44  ;;  %v7817_v44 = vld [vmem:[#allocation35_spill] sm:$0xff] }
 0x4c4   :  { %v6158_v13 = vadd.f32 %v2009_v56, %v2008_v16  ;;  %v7819_v56 = vld [vmem:[#allocation37_spill] sm:$0xff] }
 0x4c5   :  { %v2937_v40 = vpop.eup %2936 }
 0x4c6   :  { %2938 = vtanh.f32 %v6158_v13  ;;  %v2006_v53 = vmul.f32 0.5, %v2937_v40 }
 0x4c8   :  { %v2034_v62 = vpop.f32.mrf.mxu0  ;;  %v2007_v24 = vadd.f32 0.5, %v2006_v53  ;;  %v7821_v53 = vld [vmem:[#allocation108_spill] sm:$0xff] }
 0x4c9   :  { %v2097_v55 = vadd.f32 %v2034_v62, %v7816_v27 }
 0x4cb   :  { %v2101_v8 = vmul.f32 0.5, %v2097_v55 }
 0x4cc   :  { %v2939_v63 = vpop.eup %2938 }
 0x4cd   :  { %v2012_v6 = vmul.f32 %v2939_v63, %v2007_v24  ;;  %2940 = vtanh.f32 %v2101_v8  ;;  %v7826_v63 = vld [vmem:[#allocation115_spill] sm:$0xff] }
 0x4ce   :  { %v2054_v51 = vpop.f32.mrf.mxu1  ;;  %v2074_v34 = vpop.f32.mrf.mxu2 }
 0x4cf   :  { %2155 = vmatmul.f32.vlgmr.msrb.gmra.mxu1 %v2012_v6  ;;  %2195 = vmatmul.f32.vlgmr.msrb.gmra.mxu3 %v2012_v6  ;;  %v2098_v52 = vadd.f32 %v2054_v51, %v7817_v44  ;;  %v2099_v43 = vadd.f32 %v2074_v34, %v7818_v45  ;;  %v7830_v45 = vld [vmem:[#allocation118_spill] sm:$0xff] }
 0x4d0   :  { %2321 = vmatpush.msrb.mxu1 %v5880_v0  ;;  %2361 = vmatpush.msrb.mxu3 %v5883_v61  ;;  %v7820_v0 = vld [vmem:[#allocation104_spill] sm:$0xff] }
 0x4d1   :  { %v2105_v31 = vmul.f32 0.5, %v2098_v52 }
 0x4d2   :  { %2322 = vmatpush.msrb.mxu1 %v5887_v14  ;;  %2362 = vmatpush.msrb.mxu3 %v5890_v26  ;;  %v7822_v26 = vld [vmem:[#allocation109_spill] sm:$0xff] }
 0x4d3   :  { %v2941_v10 = vpop.eup %2940  ;;  %2942 = vtanh.f32 %v2105_v31  ;;  %v7829_v31 = vld [vmem:[#allocation113_spill] sm:$0xff] }
 0x4d4   :  { %2323 = vmatpush.msrb.mxu1 %v5893_v35  ;;  %2363 = vmatpush.msrb.mxu3 %v5896_v9  ;;  %v2094_v16 = vpop.f32.mrf.mxu3  ;;  %2944 = vtanh.f32 %v2099_v43  ;;  %v2103_v61 = vmul.f32 0.5, %v2941_v10  ;;  %v7823_v35 = vld [vmem:[#allocation111_spill] sm:$0xff]  ;;  %v7824_v9 = vld [vmem:[#allocation112_spill] sm:$0xff] }
 0x4d5   :  { %v2100_v40 = vadd.f32 %v2094_v16, %v7819_v56  ;;  %v7831_v10 = vld [vmem:[#allocation120_spill] sm:$0xff]  ;;  %v7834_v56 = vld [vmem:[#allocation50_spill] sm:$0xff] }
 0x4d6   :  { %2324 = vmatpush.msrb.mxu1 %v5900_v54  ;;  %2364 = vmatpush.msrb.mxu3 %v7820_v0  ;;  %v2104_v27 = vadd.f32 0.5, %v2103_v61  ;;  %v7825_v54 = vld [vmem:[#allocation114_spill] sm:$0xff]  ;;  %v6220_v0 = vld [vmem:[#allocation3 + $0x1b8] sm:$0xff] }
 0x4d7   :  { %2235 = vmatmul.f32.vlgmr.msra.gmra.mxu1 %v2012_v6  ;;  %2275 = vmatmul.f32.vlgmr.msra.gmra.mxu3 %v2012_v6  ;;  %v2110_v14 = vmul.f32 0.5, %v2100_v40  ;;  %v7827_v6 = vld [vmem:[#allocation116_spill] sm:$0xff]  ;;  %v6239_v61 = vld [vmem:[#allocation3 + $0x3e0] sm:$0xff] }
 0x4d8   :  { %2325 = vmatpush.msrb.mxu1 %v7821_v53  ;;  %2365 = vmatpush.msrb.mxu3 %v7822_v26  ;;  %v6201_v40 = vld [vmem:[#allocation3 + $0x1f0] sm:$0xff]  ;;  %v6248_v26 = vld [vmem:[#allocation3 + $0x158] sm:$0xff] }
 0x4d9   :  { %v2943_v62 = vpop.eup %2942  ;;  %2946 = vtanh.f32 %v2110_v14  ;;  %v6242_v14 = vld [vmem:[#allocation3 + $0x3e8] sm:$0xff]  ;;  %v6245_v53 = vld [vmem:[#allocation3 + $0x150] sm:$0xff] }
 0x4da   :  { %2326 = vmatpush.msrb.mxu1 %v7823_v35  ;;  %2366 = vmatpush.msrb.mxu3 %v7824_v9  ;;  %v2107_v55 = vmul.f32 0.5, %v2943_v62  ;;  %v2945_v24 = vpop.eup %2944  ;;  %7835 = vst [vmem:[#allocation53_spill] sm:$0xff] %v6242_v14  ;;  %v6251_v62 = vld [vmem:[#allocation3 + $0x3c0] sm:$0xff]  ;;  %v6254_v35 = vld [vmem:[#allocation3 + $0x3c8] sm:$0xff]  ;;  %v6257_v9 = vld [vmem:[#allocation3 + $0x130] sm:$0xff] }
 0x4db   :  { %v2115_v34 = vmul.f32 %v2945_v24, %v2104_v27  ;;  %7836 = vst [vmem:[#allocation51_spill] sm:$0xff] %v6251_v62  ;;  %v6260_v27 = vld [vmem:[#allocation3 + $0x138] sm:$0xff]  ;;  %v6266_v24 = vld [vmem:[#allocation3 + $0x3a8] sm:$0xff] }
 0x4dc   :  { %2327 = vmatpush.msrb.mxu1 %v7825_v54  ;;  %2367 = vmatpush.msrb.mxu3 %v7826_v63  ;;  %v2108_v8 = vadd.f32 0.5, %v2107_v55  ;;  %7837 = vst [vmem:[#allocation54_spill] sm:$0xff] %v6254_v35  ;;  %v6263_v55 = vld [vmem:[#allocation3 + $0x3a0] sm:$0xff]  ;;  %v6269_v54 = vld [vmem:[#allocation3 + $0x110] sm:$0xff]  ;;  %v6272_v63 = vld [vmem:[#allocation3 + $0x118] sm:$0xff] }
 0x4dd   :  { %7838 = vst [vmem:[#allocation56_spill] sm:$0xff] %v6263_v55 }
 0x4de   :  { %2328 = vmatpush.msrb.mxu1 %v7827_v6  ;;  %2368 = vmatpush.msrb.mxu3 %v5927_v58  ;;  %v2114_v51 = vmul.f32 %v2108_v8, %v5937_v3  ;;  %v7832_v58 = vld [vmem:[#allocation117_spill] sm:$0xff]  ;;  %v7833_v3 = vld [vmem:[#allocation122_spill] sm:$0xff]  ;;  %7839 = vst [vmem:[#allocation57_spill] sm:$0xff] %v6266_v24 }
 0x4df   :  { %v2947_v44 = vpop.eup %2946  ;;  %v6275_v8 = vld [vmem:[#allocation3 + $0x380] sm:$0xff]  ;;  %v6278_v6 = vld [vmem:[#allocation3 + $0x388] sm:$0xff] }
 0x4e0   :  { %2329 = vmatpush.msrb.mxu1 %v5931_v12  ;;  %2369 = vmatpush.msrb.mxu3 %v5934_v7  ;;  %v6184_v52 = vadd.f32 %v2115_v34, %v2114_v51  ;;  %v2112_v43 = vmul.f32 0.5, %v2947_v44  ;;  %7840 = vst [vmem:[#allocation58_spill] sm:$0xff] %v6275_v8  ;;  %v6281_v51 = vld [vmem:[#allocation3 + $0xf0] sm:$0xff]  ;;  %v6284_v34 = vld [vmem:[#allocation3 + $0xf8] sm:$0xff]  ;;  %v6287_v44 = vld [vmem:[#allocation3 + $0x360] sm:$0xff] }
 0x4e1   :  { %7841 = vst [vmem:[#allocation55_spill] sm:$0xff] %v6278_v6 }
 0x4e2   :  { %7828 = vst [vmem:[#allocation52_spill] sm:$0xff] %v6184_v52  ;;  %2330 = vmatpush.msrb.mxu1 %v7829_v31  ;;  %2370 = vmatpush.msrb.mxu3 %v7830_v45  ;;  %2948 = vtanh.f32 %v6184_v52  ;;  %v2113_v12 = vadd.f32 0.5, %v2112_v43  ;;  %v6290_v31 = vld [vmem:[#allocation3 + $0x368] sm:$0xff]  ;;  %v6293_v45 = vld [vmem:[#allocation3 + $0xd0] sm:$0xff]  ;;  %v6296_v43 = vld [vmem:[#allocation3 + $0xd8] sm:$0xff] }
 0x4e3   :  { %7842 = vst [vmem:[#allocation60_spill] sm:$0xff] %v6287_v44  ;;  %v6317_v52 = vld [vmem:[#allocation3 + $0x90] sm:$0xff] }
 0x4e4   :  { %2331 = vmatpush.msrb.mxu1 %v7831_v10  ;;  %2371 = vmatpush.msrb.mxu3 %v7832_v58  ;;  %7843 = vst [vmem:[#allocation61_spill] sm:$0xff] %v6290_v31  ;;  %v6299_v10 = vld [vmem:[#allocation3 + $0x340] sm:$0xff]  ;;  %v6302_v58 = vld [vmem:[#allocation3 + $0x348] sm:$0xff] }
 0x4e5   :  { %7844 = vst [vmem:[#allocation62_spill] sm:$0xff] %v6299_v10 }
 0x4e6   :  { %2332 = vmatpush.msrb.mxu1 %v7833_v3  ;;  %2372 = vmatpush.msrb.mxu3 %v5955_v23  ;;  %v6204_v23 = vld [vmem:[#allocation3 + $0x1f8] sm:$0xff]  ;;  %7845 = vst [vmem:[#allocation59_spill] sm:$0xff] %v6302_v58  ;;  %v6305_v3 = vld [vmem:[#allocation3 + $0xb0] sm:$0xff] }
 0x4e8   :  { %2333 = vmatpush.msrb.mxu1 %v5958_v49  ;;  %2373 = vmatpush.msrb.mxu3 %v5961_v48  ;;  %v2949_v7 = vpop.eup %2948  ;;  %v6209_v49 = vld [vmem:[#allocation3 + $0x1d0] sm:$0xff] }
 0x4e9   :  { %v6195_v16 = vmul.f32 %v2949_v7, %v2113_v12  ;;  %v6217_v48 = vld [vmem:[#allocation3 + $0x1b0] sm:$0xff]  ;;  %v6308_v12 = vld [vmem:[#allocation3 + $0xb8] sm:$0xff]  ;;  %v6311_v7 = vld [vmem:[#allocation3 + $0x320] sm:$0xff] }
 0x4ea   :  { %2334 = vmatpush.msrb.mxu1 %v5966_v19  ;;  %2374 = vmatpush.msrb.mxu3 %v7834_v56  ;;  %v6212_v19 = vld [vmem:[#allocation3 + $0x1d8] sm:$0xff]  ;;  %7846 = vst [vmem:[#allocation64_spill] sm:$0xff] %v6311_v7  ;;  %v6314_v56 = vld [vmem:[#allocation3 + $0x328] sm:$0xff] }
 0x4eb   :  { %2317 = vmatmul.f32.vlgmr.msrb.gmra.mxu0 %v6195_v16  ;;  %2357 = vmatmul.f32.vlgmr.msrb.gmra.mxu2 %v6195_v16  ;;  %7847 = vst [vmem:[#allocation65_spill] sm:$0xff] %v6314_v56 }
 0x4ec   :  { %2483 = vmatpush.msrb.mxu0 %v6201_v40  ;;  %2523 = vmatpush.msrb.mxu2 %v6204_v23 }
 0x4ed   :  { %2335 = vmatpush.msrb.mxu1 %v5976_v30  ;;  %2375 = vmatpush.msrb.mxu3 %v5979_v11  ;;  %v6225_v30 = vld [vmem:[#allocation3 + $0x190] sm:$0xff]  ;;  %v6228_v11 = vld [vmem:[#allocation3 + $0x198] sm:$0xff] }
 0x4ee   :  { %2484 = vmatpush.msrb.mxu0 %v6209_v49  ;;  %2524 = vmatpush.msrb.mxu2 %v6212_v19 }
 0x4ef   :  { %2336 = vmatpush.msrb.mxu1 %v5984_v50  ;;  %2376 = vmatpush.msrb.mxu3 %v5987_v20  ;;  %v6233_v20 = vld [vmem:[#allocation3 + $0x170] sm:$0xff]  ;;  %v6236_v50 = vld [vmem:[#allocation3 + $0x178] sm:$0xff] }
 0x4f0   :  { %2485 = vmatpush.msrb.mxu0 %v6217_v48  ;;  %2525 = vmatpush.msrb.mxu2 %v6220_v0 }
 0x4f1   :  { %2337 = vmatmul.f32.vlgmr.msrb.gmra.mxu1 %v6195_v16  ;;  %2377 = vmatmul.f32.vlgmr.msrb.gmra.mxu3 %v6195_v16 }
 0x4f2   :  { %2486 = vmatpush.msrb.mxu0 %v6225_v30  ;;  %2526 = vmatpush.msrb.mxu2 %v6228_v11 }
 0x4f3   :  { %2419 = vmatmul.f32.vlgmr.msra.gmra.mxu0 %v6195_v16  ;;  %2459 = vmatmul.f32.vlgmr.msra.gmra.mxu2 %v6195_v16 }
 0x4f4   :  { %2487 = vmatpush.msrb.mxu0 %v6233_v20  ;;  %2527 = vmatpush.msrb.mxu2 %v6236_v50 }
 0x4f5   :  { %2423 = vmatpush.msra.mxu1 %v6239_v61  ;;  %2463 = vmatpush.msra.mxu3 %v6242_v14  ;;  %v6384_v14 = vld [vmem:[#allocation3 + $0x268] sm:$0xff] }
 0x4f6   :  { %2488 = vmatpush.msrb.mxu0 %v6245_v53  ;;  %2528 = vmatpush.msrb.mxu2 %v6248_v26 }
 0x4f7   :  { %2424 = vmatpush.msra.mxu1 %v6251_v62  ;;  %2464 = vmatpush.msra.mxu3 %v6254_v35  ;;  %v6362_v35 = vld [vmem:[#allocation3 + $0x2a8] sm:$0xff]  ;;  %v6373_v62 = vld [vmem:[#allocation3 + $0x280] sm:$0xff] }
 0x4f8   :  { %2489 = vmatpush.msrb.mxu0 %v6257_v9  ;;  %2529 = vmatpush.msrb.mxu2 %v6260_v27  ;;  %7855 = vst [vmem:[#allocation121_spill] sm:$0xff] %v6362_v35 }
 0x4f9   :  { %2425 = vmatpush.msra.mxu1 %v6263_v55  ;;  %2465 = vmatpush.msra.mxu3 %v6266_v24  ;;  %v6350_v24 = vld [vmem:[#allocation3 + $0x2c8] sm:$0xff]  ;;  %v6359_v55 = vld [vmem:[#allocation3 + $0x2a0] sm:$0xff] }
 0x4fa   :  { %2490 = vmatpush.msrb.mxu0 %v6269_v54  ;;  %2530 = vmatpush.msrb.mxu2 %v6272_v63  ;;  %7853 = vst [vmem:[#allocation29_spill] sm:$0xff] %v6350_v24 }
 0x4fb   :  { %2426 = vmatpush.msra.mxu1 %v6275_v8  ;;  %2466 = vmatpush.msra.mxu3 %v6278_v6  ;;  %v6338_v6 = vld [vmem:[#allocation3 + $0x2e8] sm:$0xff]  ;;  %v6347_v8 = vld [vmem:[#allocation3 + $0x2c0] sm:$0xff]  ;;  %7854 = vst [vmem:[#allocation124_spill] sm:$0xff] %v6359_v55 }
 0x4fc   :  { %2491 = vmatpush.msrb.mxu0 %v6281_v51  ;;  %2531 = vmatpush.msrb.mxu2 %v6284_v34  ;;  %7851 = vst [vmem:[#allocation27_spill] sm:$0xff] %v6338_v6 }
 0x4fd   :  { %2427 = vmatpush.msra.mxu1 %v6287_v44  ;;  %2467 = vmatpush.msra.mxu3 %v6290_v31  ;;  %v6326_v31 = vld [vmem:[#allocation3 + $0x308] sm:$0xff]  ;;  %v6335_v44 = vld [vmem:[#allocation3 + $0x2e0] sm:$0xff]  ;;  %7852 = vst [vmem:[#allocation28_spill] sm:$0xff] %v6347_v8 }
 0x4fe   :  { %2492 = vmatpush.msrb.mxu0 %v6293_v45  ;;  %2532 = vmatpush.msrb.mxu2 %v6296_v43  ;;  %7849 = vst [vmem:[#allocation16_spill] sm:$0xff] %v6326_v31 }
 0x4ff   :  { %2428 = vmatpush.msra.mxu1 %v6299_v10  ;;  %2468 = vmatpush.msra.mxu3 %v6302_v58  ;;  %v6320_v58 = vld [vmem:[#allocation3 + $0x98] sm:$0xff]  ;;  %v6323_v10 = vld [vmem:[#allocation3 + $0x300] sm:$0xff]  ;;  %7850 = vst [vmem:[#allocation25_spill] sm:$0xff] %v6335_v44 }
 0x500   :  { %2493 = vmatpush.msrb.mxu0 %v6305_v3  ;;  %2533 = vmatpush.msrb.mxu2 %v6308_v12  ;;  %7848 = vst [vmem:[#allocation66_spill] sm:$0xff] %v6323_v10 }
 0x501   :  { %2429 = vmatpush.msra.mxu1 %v6311_v7  ;;  %2469 = vmatpush.msra.mxu3 %v6314_v56  ;;  %v6329_v7 = vld [vmem:[#allocation3 + $0x70] sm:$0xff]  ;;  %v6332_v56 = vld [vmem:[#allocation3 + $0x78] sm:$0xff] }
 0x502   :  { %2494 = vmatpush.msrb.mxu0 %v6317_v52  ;;  %2534 = vmatpush.msrb.mxu2 %v6320_v58 }
 0x503   :  { %2430 = vmatpush.msra.mxu1 %v6323_v10  ;;  %2470 = vmatpush.msra.mxu3 %v6326_v31  ;;  %v6341_v10 = vld [vmem:[#allocation3 + $0x50] sm:$0xff]  ;;  %v6344_v31 = vld [vmem:[#allocation3 + $0x58] sm:$0xff] }
 0x504   :  { %2495 = vmatpush.msrb.mxu0 %v6329_v7  ;;  %2535 = vmatpush.msrb.mxu2 %v6332_v56 }
 0x505   :  { %2431 = vmatpush.msra.mxu1 %v6335_v44  ;;  %2471 = vmatpush.msra.mxu3 %v6338_v6  ;;  %v6353_v44 = vld [vmem:[#allocation3 + $0x30] sm:$0xff]  ;;  %v6356_v6 = vld [vmem:[#allocation3 + $0x38] sm:$0xff] }
 0x506   :  { %2496 = vmatpush.msrb.mxu0 %v6341_v10  ;;  %2536 = vmatpush.msrb.mxu2 %v6344_v31 }
 0x507   :  { %2432 = vmatpush.msra.mxu1 %v6347_v8  ;;  %2472 = vmatpush.msra.mxu3 %v6350_v24  ;;  %v6365_v8 = vld [vmem:[#allocation3 + $0x10] sm:$0xff]  ;;  %v6368_v24 = vld [vmem:[#allocation3 + $0x18] sm:$0xff] }
 0x508   :  { %2497 = vmatpush.msrb.mxu0 %v6353_v44  ;;  %2537 = vmatpush.msrb.mxu2 %v6356_v6 }
 0x509   :  { %2433 = vmatpush.msra.mxu1 %v6359_v55  ;;  %2473 = vmatpush.msra.mxu3 %v6362_v35  ;;  %v6376_v55 = vld [vmem:[#allocation3 + $0x288] sm:$0xff]  ;;  %v6381_v35 = vld [vmem:[#allocation3 + $0x260] sm:$0xff] }
 0x50a   :  { %2498 = vmatpush.msrb.mxu0 %v6365_v8  ;;  %2538 = vmatpush.msrb.mxu2 %v6368_v24  ;;  %7856 = vst [vmem:[#allocation126_spill] sm:$0xff] %v6376_v55 }
 0x50b   :  { %2499 = vmatmul.f32.vlgmr.msrb.gmra.mxu0 %v6195_v16  ;;  %2539 = vmatmul.f32.vlgmr.msrb.gmra.mxu2 %v6195_v16  ;;  %v6389_v16 = vld [vmem:[#allocation3 + $0x240] sm:$0xff] }
 0x50c   :  { %2434 = vmatpush.msra.mxu1 %v6373_v62  ;;  %2474 = vmatpush.msra.mxu3 %v6376_v55  ;;  %v6392_v55 = vld [vmem:[#allocation3 + $0x248] sm:$0xff] }
 0x50d   :  { %2581 = vmatpush.msra.mxu0 %v6083_v5  ;;  %2621 = vmatpush.msra.mxu2 %v6086_v59  ;;  %v6397_v5 = vld [vmem:[#allocation3 + $0x220] sm:$0xff]  ;;  %v6400_v59 = vld [vmem:[#allocation3 + $0x228] sm:$0xff] }
 0x50e   :  { %2435 = vmatpush.msra.mxu1 %v6381_v35  ;;  %2475 = vmatpush.msra.mxu3 %v6384_v14 }
 0x50f   :  { %2582 = vmatpush.msra.mxu0 %v6091_v60  ;;  %2622 = vmatpush.msra.mxu2 %v6094_v17  ;;  %v6405_v60 = vld [vmem:[#allocation3 + $0x200] sm:$0xff]  ;;  %v6408_v17 = vld [vmem:[#allocation3 + $0x208] sm:$0xff] }
 0x510   :  { %2436 = vmatpush.msra.mxu1 %v6389_v16  ;;  %2476 = vmatpush.msra.mxu3 %v6392_v55 }
 0x511   :  { %2583 = vmatpush.msra.mxu0 %v6099_v4  ;;  %2623 = vmatpush.msra.mxu2 %v6102_v15  ;;  %v6411_v4 = vld [vmem:[#allocation3 + $0x3f0] sm:$0xff]  ;;  %v6414_v15 = vld [vmem:[#allocation3 + $0x3f8] sm:$0xff] }
 0x512   :  { %2437 = vmatpush.msra.mxu1 %v6397_v5  ;;  %2477 = vmatpush.msra.mxu3 %v6400_v59  ;;  %7857 = vst [vmem:[#allocation128_spill] sm:$0xff] %v6411_v4 }
 0x513   :  { %2584 = vmatpush.msra.mxu0 %v6107_v47  ;;  %2624 = vmatpush.msra.mxu2 %v6110_v36  ;;  %7858 = vst [vmem:[#allocation130_spill] sm:$0xff] %v6414_v15  ;;  %v6419_v47 = vld [vmem:[#allocation3 + $0x3d0] sm:$0xff]  ;;  %v6422_v36 = vld [vmem:[#allocation3 + $0x3d8] sm:$0xff] }
 0x514   :  { %2438 = vmatpush.msra.mxu1 %v6405_v60  ;;  %2478 = vmatpush.msra.mxu3 %v6408_v17 }
 0x515   :  { %2585 = vmatpush.msra.mxu0 %v6113_v57  ;;  %2625 = vmatpush.msra.mxu2 %v6116_v1  ;;  %v6435_v57 = vld [vmem:[#allocation3 + $0x390] sm:$0xff]  ;;  %v6438_v1 = vld [vmem:[#allocation3 + $0x398] sm:$0xff] }
 0x516   :  { %2503 = vmatpush.msrb.mxu1 %v6411_v4  ;;  %2543 = vmatpush.msrb.mxu3 %v6414_v15  ;;  %v6427_v4 = vld [vmem:[#allocation3 + $0x3b0] sm:$0xff]  ;;  %v6430_v15 = vld [vmem:[#allocation3 + $0x3b8] sm:$0xff] }
 0x517   :  { %2586 = vmatpush.msra.mxu0 %v6119_v37  ;;  %2626 = vmatpush.msra.mxu2 %v6122_v32  ;;  %v6443_v37 = vld [vmem:[#allocation3 + $0x370] sm:$0xff]  ;;  %v6446_v32 = vld [vmem:[#allocation3 + $0x378] sm:$0xff] }
 0x518   :  { %2504 = vmatpush.msrb.mxu1 %v6419_v47  ;;  %2544 = vmatpush.msrb.mxu3 %v6422_v36 }
 0x519   :  { %2587 = vmatpush.msra.mxu0 %v6125_v22  ;;  %2627 = vmatpush.msra.mxu2 %v6128_v39  ;;  %v6451_v22 = vld [vmem:[#allocation3 + $0x350] sm:$0xff]  ;;  %v6454_v39 = vld [vmem:[#allocation3 + $0x358] sm:$0xff] }
 0x51a   :  { %2505 = vmatpush.msrb.mxu1 %v6427_v4  ;;  %2545 = vmatpush.msrb.mxu3 %v6430_v15 }
 0x51b   :  { %2588 = vmatpush.msra.mxu0 %v6131_v42  ;;  %2628 = vmatpush.msra.mxu2 %v6134_v38  ;;  %v6459_v42 = vld [vmem:[#allocation3 + $0x330] sm:$0xff]  ;;  %v6462_v38 = vld [vmem:[#allocation3 + $0x338] sm:$0xff] }
 0x51c   :  { %2506 = vmatpush.msrb.mxu1 %v6435_v57  ;;  %2546 = vmatpush.msrb.mxu3 %v6438_v1  ;;  %7859 = vst [vmem:[#allocation132_spill] sm:$0xff] %v6462_v38 }
 0x51d   :  { %2589 = vmatpush.msra.mxu0 %v7798_v25  ;;  %2629 = vmatpush.msra.mxu2 %v7799_v21  ;;  %v6467_v25 = vld [vmem:[#allocation3 + $0x310] sm:$0xff]  ;;  %v6470_v21 = vld [vmem:[#allocation3 + $0x318] sm:$0xff] }
 0x51e   :  { %2507 = vmatpush.msrb.mxu1 %v6443_v37  ;;  %2547 = vmatpush.msrb.mxu3 %v6446_v32  ;;  %7860 = vst [vmem:[#allocation134_spill] sm:$0xff] %v6467_v25 }
 0x51f   :  { %2590 = vmatpush.msra.mxu0 %v7800_v29  ;;  %2630 = vmatpush.msra.mxu2 %v7801_v33  ;;  %7861 = vst [vmem:[#allocation136_spill] sm:$0xff] %v6470_v21  ;;  %v7862_v29 = vld [vmem:[#allocation90_spill] sm:$0xff]  ;;  %v6475_v33 = vld [vmem:[#allocation3 + $0x2f0] sm:$0xff] }
 0x520   :  { %2508 = vmatpush.msrb.mxu1 %v6451_v22  ;;  %2548 = vmatpush.msrb.mxu3 %v6454_v39  ;;  %7863 = vst [vmem:[#allocation138_spill] sm:$0xff] %v6475_v33 }
 0x521   :  { %2591 = vmatpush.msra.mxu0 %v7802_v41  ;;  %2631 = vmatpush.msra.mxu2 %v7803_v2  ;;  %v7865_v41 = vld [vmem:[#allocation87_spill] sm:$0xff] }
 0x522   :  { %2509 = vmatpush.msrb.mxu1 %v6459_v42  ;;  %2549 = vmatpush.msrb.mxu3 %v6462_v38  ;;  %v6478_v38 = vld [vmem:[#allocation3 + $0x2f8] sm:$0xff]  ;;  %v7866_v2 = vld [vmem:[#allocation107_spill] sm:$0xff] }
 0x523   :  { %2592 = vmatpush.msra.mxu0 %v7804_v46  ;;  %2632 = vmatpush.msra.mxu2 %v7862_v29  ;;  %7864 = vst [vmem:[#allocation140_spill] sm:$0xff] %v6478_v38  ;;  %v7869_v46 = vld [vmem:[#allocation94_spill] sm:$0xff]  ;;  %v7870_v29 = vld [vmem:[#allocation91_spill] sm:$0xff] }
 0x524   :  { %2510 = vmatpush.msrb.mxu1 %v6467_v25  ;;  %2550 = vmatpush.msrb.mxu3 %v6470_v21  ;;  %v6483_v25 = vld [vmem:[#allocation3 + $0x2d0] sm:$0xff]  ;;  %v6486_v21 = vld [vmem:[#allocation3 + $0x2d8] sm:$0xff] }
 0x525   :  { %2593 = vmatpush.msra.mxu0 %v7865_v41  ;;  %2633 = vmatpush.msra.mxu2 %v7866_v2  ;;  %7867 = vst [vmem:[#allocation142_spill] sm:$0xff] %v6483_v25  ;;  %v7873_v41 = vld [vmem:[#allocation100_spill] sm:$0xff]  ;;  %v7874_v2 = vld [vmem:[#allocation101_spill] sm:$0xff] }
 0x526   :  { %2511 = vmatpush.msrb.mxu1 %v6475_v33  ;;  %2551 = vmatpush.msrb.mxu3 %v6478_v38  ;;  %7868 = vst [vmem:[#allocation144_spill] sm:$0xff] %v6486_v21  ;;  %v6491_v33 = vld [vmem:[#allocation3 + $0x2b0] sm:$0xff]  ;;  %v6494_v38 = vld [vmem:[#allocation3 + $0x2b8] sm:$0xff] }
 0x527   :  { %2594 = vmatpush.msra.mxu0 %v7869_v46  ;;  %2634 = vmatpush.msra.mxu2 %v7870_v29  ;;  %7871 = vst [vmem:[#allocation146_spill] sm:$0xff] %v6491_v33  ;;  %v7875_v46 = vld [vmem:[#allocation110_spill] sm:$0xff]  ;;  %v7876_v29 = vld [vmem:[#allocation105_spill] sm:$0xff] }
 0x528   :  { %2512 = vmatpush.msrb.mxu1 %v6483_v25  ;;  %2552 = vmatpush.msrb.mxu3 %v6486_v21  ;;  %7872 = vst [vmem:[#allocation148_spill] sm:$0xff] %v6494_v38  ;;  %v6499_v25 = vld [vmem:[#allocation3 + $0x290] sm:$0xff]  ;;  %v6502_v21 = vld [vmem:[#allocation3 + $0x298] sm:$0xff] }
 0x529   :  { %2595 = vmatpush.msra.mxu0 %v7873_v41  ;;  %2635 = vmatpush.msra.mxu2 %v7874_v2  ;;  %v6515_v41 = vld [vmem:[#allocation3 + $0x250] sm:$0xff]  ;;  %v6518_v2 = vld [vmem:[#allocation3 + $0x258] sm:$0xff] }
 0x52a   :  { %2513 = vmatpush.msrb.mxu1 %v6491_v33  ;;  %2553 = vmatpush.msrb.mxu3 %v6494_v38  ;;  %v6507_v33 = vld [vmem:[#allocation3 + $0x270] sm:$0xff]  ;;  %v6510_v38 = vld [vmem:[#allocation3 + $0x278] sm:$0xff] }
 0x52b   :  { %2596 = vmatpush.msra.mxu0 %v7875_v46  ;;  %2636 = vmatpush.msra.mxu2 %v7876_v29  ;;  %v6523_v46 = vld [vmem:[#allocation3 + $0x230] sm:$0xff]  ;;  %v6526_v29 = vld [vmem:[#allocation3 + $0x238] sm:$0xff] }
 0x52c   :  { %2514 = vmatpush.msrb.mxu1 %v6499_v25  ;;  %2554 = vmatpush.msrb.mxu3 %v6502_v21 }
 0x52d   :  { %2661 = vmatpush.msrb.mxu0 %v6201_v40  ;;  %2701 = vmatpush.msrb.mxu2 %v6204_v23  ;;  %v6531_v40 = vld [vmem:[#allocation3 + $0x210] sm:$0xff]  ;;  %v6534_v23 = vld [vmem:[#allocation3 + $0x218] sm:$0xff] }
 0x52e   :  { %2515 = vmatpush.msrb.mxu1 %v6507_v33  ;;  %2555 = vmatpush.msrb.mxu3 %v6510_v38 }
 0x52f   :  { %2662 = vmatpush.msrb.mxu0 %v6209_v49  ;;  %2702 = vmatpush.msrb.mxu2 %v6212_v19  ;;  %v2136_v49 = vpop.f32.mrf.mxu0  ;;  %v7877_v19 = vld [vmem:[#allocation14_spill] sm:$0xff] }
 0x530   :  { %2516 = vmatpush.msrb.mxu1 %v6515_v41  ;;  %2556 = vmatpush.msrb.mxu3 %v6518_v2 }
 0x531   :  { %2663 = vmatpush.msrb.mxu0 %v6217_v48  ;;  %2703 = vmatpush.msrb.mxu2 %v6220_v0  ;;  %v2137_v48 = vadd.f32 %v2136_v49, %v7877_v19 }
 0x532   :  { %2517 = vmatpush.msrb.mxu1 %v6523_v46  ;;  %2557 = vmatpush.msrb.mxu3 %v6526_v29 }
 0x533   :  { %2664 = vmatpush.msrb.mxu0 %v6225_v30  ;;  %2704 = vmatpush.msrb.mxu2 %v6228_v11 }
 0x534   :  { %2518 = vmatpush.msrb.mxu1 %v6531_v40  ;;  %2558 = vmatpush.msrb.mxu3 %v6534_v23 }
 0x535   :  { %2665 = vmatpush.msrb.mxu0 %v6233_v20  ;;  %2705 = vmatpush.msrb.mxu2 %v6236_v50  ;;  %v7878_v50 = vld [vmem:[#allocation15_spill] sm:$0xff] }
 0x537   :  { %2666 = vmatpush.msrb.mxu0 %v6245_v53  ;;  %2706 = vmatpush.msrb.mxu2 %v6248_v26  ;;  %v2216_v20 = vpop.f32.mrf.mxu0 }
 0x539   :  { %2667 = vmatpush.msrb.mxu0 %v6257_v9  ;;  %2707 = vmatpush.msrb.mxu2 %v6260_v27  ;;  %v2217_v9 = vadd.f32 %v2216_v20, %v7607_v28 }
 0x53b   :  { %2668 = vmatpush.msrb.mxu0 %v6269_v54  ;;  %2708 = vmatpush.msrb.mxu2 %v6272_v63 }
 0x53d   :  { %2669 = vmatpush.msrb.mxu0 %v6281_v51  ;;  %2709 = vmatpush.msrb.mxu2 %v6284_v34 }
 0x53f   :  { %2670 = vmatpush.msrb.mxu0 %v6293_v45  ;;  %2710 = vmatpush.msrb.mxu2 %v6296_v43 }
 0x541   :  { %2671 = vmatpush.msrb.mxu0 %v6305_v3  ;;  %2711 = vmatpush.msrb.mxu2 %v6308_v12 }
 0x543   :  { %2672 = vmatpush.msrb.mxu0 %v6317_v52  ;;  %2712 = vmatpush.msrb.mxu2 %v6320_v58  ;;  %v2176_v52 = vpop.f32.mrf.mxu2 }
 0x544   :  { %v2177_v53 = vadd.f32 %v2176_v52, %v7878_v50  ;;  %v7879_v52 = vld [vmem:[#allocation38_spill] sm:$0xff] }
 0x545   :  { %2673 = vmatpush.msrb.mxu0 %v6329_v7  ;;  %2713 = vmatpush.msrb.mxu2 %v6332_v56 }
 0x547   :  { %2674 = vmatpush.msrb.mxu0 %v6341_v10  ;;  %2714 = vmatpush.msrb.mxu2 %v6344_v31 }
 0x549   :  { %2675 = vmatpush.msrb.mxu0 %v6353_v44  ;;  %2715 = vmatpush.msrb.mxu2 %v6356_v6 }
 0x54b   :  { %2676 = vmatpush.msrb.mxu0 %v6365_v8  ;;  %2716 = vmatpush.msrb.mxu2 %v6368_v24  ;;  %v2256_v6 = vpop.f32.mrf.mxu2 }
 0x54c   :  { %v2156_v0 = vpop.f32.mrf.mxu1  ;;  %v2257_v8 = vadd.f32 %v2256_v6, %v7490_v18 }
 0x54d   :  { %v2157_v30 = vadd.f32 %v2156_v0, %v2137_v48 }
 0x54f   :  { %v2279_v11 = vmul.f32 0.5, %v2157_v30 }
 0x551   :  { %2950 = vtanh.f32 %v2279_v11 }
 0x552   :  { %v2196_v26 = vpop.f32.mrf.mxu3 }
 0x553   :  { %v2197_v27 = vadd.f32 %v2196_v26, %v2177_v53 }
 0x554   :  { %v2236_v54 = vpop.f32.mrf.mxu1 }
 0x555   :  { %v2283_v63 = vmul.f32 0.5, %v2197_v27  ;;  %v2237_v51 = vadd.f32 %v2236_v54, %v2217_v9 }
 0x557   :  { %2952 = vtanh.f32 %v2283_v63  ;;  %v2951_v34 = vpop.eup %2950 }
 0x558   :  { %2954 = vtanh.f32 %v2237_v51  ;;  %v2281_v31 = vmul.f32 0.5, %v2951_v34  ;;  %v7881_v51 = vld [vmem:[#allocation53_spill] sm:$0xff]  ;;  %v7882_v34 = vld [vmem:[#allocation40_spill] sm:$0xff] }
 0x55a   :  { %v2276_v24 = vpop.f32.mrf.mxu3  ;;  %v2282_v3 = vadd.f32 0.5, %v2281_v31 }
 0x55b   :  { %v2277_v44 = vadd.f32 %v2276_v24, %v2257_v8  ;;  %v7883_v24 = vld [vmem:[#allocation51_spill] sm:$0xff] }
 0x55d   :  { %v2953_v45 = vpop.eup %2952  ;;  %v2288_v43 = vmul.f32 0.5, %v2277_v44  ;;  %v7884_v44 = vld [vmem:[#allocation54_spill] sm:$0xff] }
 0x55e   :  { %v2285_v10 = vmul.f32 0.5, %v2953_v45  ;;  %v2955_v58 = vpop.eup %2954  ;;  %v7885_v45 = vld [vmem:[#allocation56_spill] sm:$0xff] }
 0x55f   :  { %2956 = vtanh.f32 %v2288_v43  ;;  %v2293_v56 = vmul.f32 %v2955_v58, %v2282_v3  ;;  %v7886_v43 = vld [vmem:[#allocation57_spill] sm:$0xff] }
 0x560   :  { %v2286_v12 = vadd.f32 0.5, %v2285_v10  ;;  %v7887_v58 = vld [vmem:[#allocation41_spill] sm:$0xff] }
 0x562   :  { %v2292_v7 = vmul.f32 %v2286_v12, %v6158_v13  ;;  %v7880_v13 = vld [vmem:[#allocation39_spill] sm:$0xff] }
 0x563   :  { %v7889_v12 = vld [vmem:[#allocation55_spill] sm:$0xff] }
 0x564   :  { %v6568_v49 = vadd.f32 %v2293_v56, %v2292_v7 }
 0x565   :  { %v2957_v48 = vpop.eup %2956 }
 0x566   :  { %2958 = vtanh.f32 %v6568_v49  ;;  %v2290_v0 = vmul.f32 0.5, %v2957_v48  ;;  %v7890_v48 = vld [vmem:[#allocation60_spill] sm:$0xff] }
 0x568   :  { %v2318_v30 = vpop.f32.mrf.mxu0  ;;  %v2291_v20 = vadd.f32 0.5, %v2290_v0  ;;  %v7891_v0 = vld [vmem:[#allocation61_spill] sm:$0xff] }
 0x569   :  { %v2381_v11 = vadd.f32 %v2318_v30, %v7879_v52  ;;  %v7892_v52 = vld [vmem:[#allocation62_spill] sm:$0xff] }
 0x56b   :  { %v2385_v26 = vmul.f32 0.5, %v2381_v11  ;;  %v7893_v11 = vld [vmem:[#allocation59_spill] sm:$0xff] }
 0x56c   :  { %v2959_v53 = vpop.eup %2958 }
 0x56d   :  { %v2296_v9 = vmul.f32 %v2959_v53, %v2291_v20  ;;  %2960 = vtanh.f32 %v2385_v26 }
 0x56e   :  { %v2338_v27 = vpop.f32.mrf.mxu1  ;;  %v2358_v54 = vpop.f32.mrf.mxu2 }
 0x56f   :  { %2439 = vmatmul.f32.vlgmr.msra.gmra.mxu1 %v2296_v9  ;;  %2479 = vmatmul.f32.vlgmr.msra.gmra.mxu3 %v2296_v9  ;;  %v2382_v63 = vadd.f32 %v2338_v27, %v7880_v13  ;;  %v2383_v8 = vadd.f32 %v2358_v54, %v7882_v34  ;;  %v7894_v27 = vld [vmem:[#allocation64_spill] sm:$0xff]  ;;  %v7895_v54 = vld [vmem:[#allocation65_spill] sm:$0xff] }
 0x570   :  { %2601 = vmatpush.msra.mxu1 %v6239_v61  ;;  %2641 = vmatpush.msra.mxu3 %v7881_v51  ;;  %v7888_v61 = vld [vmem:[#allocation58_spill] sm:$0xff]  ;;  %v7898_v51 = vld [vmem:[#allocation52_spill] sm:$0xff] }
 0x571   :  { %v2389_v6 = vmul.f32 0.5, %v2382_v63  ;;  %v7897_v63 = vld [vmem:[#allocation16_spill] sm:$0xff] }
 0x572   :  { %2602 = vmatpush.msra.mxu1 %v7883_v24  ;;  %2642 = vmatpush.msra.mxu3 %v7884_v44  ;;  %v7900_v24 = vld [vmem:[#allocation27_spill] sm:$0xff] }
 0x573   :  { %v2961_v31 = vpop.eup %2960  ;;  %2962 = vtanh.f32 %v2389_v6 }
 0x574   :  { %2603 = vmatpush.msra.mxu1 %v7885_v45  ;;  %2643 = vmatpush.msra.mxu3 %v7886_v43  ;;  %v2378_v10 = vpop.f32.mrf.mxu3  ;;  %2964 = vtanh.f32 %v2383_v8  ;;  %v2387_v7 = vmul.f32 0.5, %v2961_v31  ;;  %v7899_v8 = vld [vmem:[#allocation25_spill] sm:$0xff]  ;;  %v7901_v45 = vld [vmem:[#allocation28_spill] sm:$0xff] }
 0x575   :  { %v2384_v3 = vadd.f32 %v2378_v10, %v7887_v58  ;;  %v7902_v43 = vld [vmem:[#allocation29_spill] sm:$0xff]  ;;  %v7903_v58 = vld [vmem:[#allocation124_spill] sm:$0xff] }
 0x576   :  { %2604 = vmatpush.msra.mxu1 %v7888_v61  ;;  %2644 = vmatpush.msra.mxu3 %v7889_v12  ;;  %v2388_v20 = vadd.f32 0.5, %v2387_v7  ;;  %v7905_v61 = vld [vmem:[#allocation126_spill] sm:$0xff] }
 0x577   :  { %2519 = vmatmul.f32.vlgmr.msrb.gmra.mxu1 %v2296_v9  ;;  %2559 = vmatmul.f32.vlgmr.msrb.gmra.mxu3 %v2296_v9  ;;  %v2394_v56 = vmul.f32 0.5, %v2384_v3  ;;  %v7896_v9 = vld [vmem:[#allocation66_spill] sm:$0xff]  ;;  %v7904_v3 = vld [vmem:[#allocation121_spill] sm:$0xff] }
 0x578   :  { %2605 = vmatpush.msra.mxu1 %v7890_v48  ;;  %2645 = vmatpush.msra.mxu3 %v7891_v0 }
 0x579   :  { %v2963_v30 = vpop.eup %2962  ;;  %2966 = vtanh.f32 %v2394_v56 }
 0x57a   :  { %2606 = vmatpush.msra.mxu1 %v7892_v52  ;;  %2646 = vmatpush.msra.mxu3 %v7893_v11  ;;  %v2391_v53 = vmul.f32 0.5, %v2963_v30  ;;  %v2965_v26 = vpop.eup %2964 }
 0x57b   :  { %v2399_v34 = vmul.f32 %v2965_v26, %v2388_v20 }
 0x57c   :  { %2607 = vmatpush.msra.mxu1 %v7894_v27  ;;  %2647 = vmatpush.msra.mxu3 %v7895_v54  ;;  %v2392_v13 = vadd.f32 0.5, %v2391_v53 }
 0x57e   :  { %2608 = vmatpush.msra.mxu1 %v7896_v9  ;;  %2648 = vmatpush.msra.mxu3 %v7897_v63  ;;  %v2398_v6 = vmul.f32 %v2392_v13, %v7898_v51 }
 0x57f   :  { %v2967_v44 = vpop.eup %2966 }
 0x580   :  { %2609 = vmatpush.msra.mxu1 %v7899_v8  ;;  %2649 = vmatpush.msra.mxu3 %v7900_v24  ;;  %v2400_v31 = vadd.f32 %v2399_v34, %v2398_v6  ;;  %v2396_v10 = vmul.f32 0.5, %v2967_v44 }
 0x582   :  { %2610 = vmatpush.msra.mxu1 %v7901_v45  ;;  %2650 = vmatpush.msra.mxu3 %v7902_v43  ;;  %2968 = vtanh.f32 %v2400_v31  ;;  %v2397_v12 = vadd.f32 0.5, %v2396_v10 }
 0x584   :  { %2611 = vmatpush.msra.mxu1 %v7903_v58  ;;  %2651 = vmatpush.msra.mxu3 %v7904_v3 }
 0x586   :  { %2612 = vmatpush.msra.mxu1 %v6373_v62  ;;  %2652 = vmatpush.msra.mxu3 %v7905_v61  ;;  %v7906_v62 = vld [vmem:[#allocation128_spill] sm:$0xff] }
 0x588   :  { %2613 = vmatpush.msra.mxu1 %v6381_v35  ;;  %2653 = vmatpush.msra.mxu3 %v6384_v14  ;;  %v2969_v7 = vpop.eup %2968  ;;  %v7907_v35 = vld [vmem:[#allocation130_spill] sm:$0xff]  ;;  %v7908_v14 = vld [vmem:[#allocation132_spill] sm:$0xff] }
 0x589   :  { %v2402_v56 = vmul.f32 %v2969_v7, %v2397_v12 }
 0x58a   :  { %2614 = vmatpush.msra.mxu1 %v6389_v16  ;;  %2654 = vmatpush.msra.mxu3 %v6392_v55  ;;  %v7909_v55 = vld [vmem:[#allocation134_spill] sm:$0xff]  ;;  %v7910_v16 = vld [vmem:[#allocation136_spill] sm:$0xff] }
 0x58b   :  { %2597 = vmatmul.f32.vlgmr.msra.gmra.mxu0 %v2402_v56  ;;  %2637 = vmatmul.f32.vlgmr.msra.gmra.mxu2 %v2402_v56 }
 0x58c   :  { %2615 = vmatpush.msra.mxu1 %v6397_v5  ;;  %2655 = vmatpush.msra.mxu3 %v6400_v59  ;;  %v7911_v5 = vld [vmem:[#allocation138_spill] sm:$0xff]  ;;  %v7912_v59 = vld [vmem:[#allocation140_spill] sm:$0xff] }
 0x58e   :  { %2616 = vmatpush.msra.mxu1 %v6405_v60  ;;  %2656 = vmatpush.msra.mxu3 %v6408_v17  ;;  %v7913_v60 = vld [vmem:[#allocation142_spill] sm:$0xff]  ;;  %v7914_v17 = vld [vmem:[#allocation144_spill] sm:$0xff] }
 0x590   :  { %2681 = vmatpush.msrb.mxu1 %v7906_v62  ;;  %2721 = vmatpush.msrb.mxu3 %v7907_v35 }
 0x592   :  { %2682 = vmatpush.msrb.mxu1 %v6419_v47  ;;  %2722 = vmatpush.msrb.mxu3 %v6422_v36  ;;  %v2420_v47 = vpop.f32.mrf.mxu0 }
 0x593   :  { %2677 = vmatmul.f32.vlgmr.msrb.gmra.mxu0 %v2402_v56  ;;  %2717 = vmatmul.f32.vlgmr.msrb.gmra.mxu2 %v2402_v56  ;;  %v2421_v36 = vadd.f32 %v2420_v47, %v7877_v19 }
 0x594   :  { %2683 = vmatpush.msrb.mxu1 %v6427_v4  ;;  %2723 = vmatpush.msrb.mxu3 %v6430_v15  ;;  %v7915_v4 = vld [vmem:[#allocation146_spill] sm:$0xff]  ;;  %v7916_v15 = vld [vmem:[#allocation148_spill] sm:$0xff] }
 0x596   :  { %2684 = vmatpush.msrb.mxu1 %v6435_v57  ;;  %2724 = vmatpush.msrb.mxu3 %v6438_v1 }
 0x598   :  { %2685 = vmatpush.msrb.mxu1 %v6443_v37  ;;  %2725 = vmatpush.msrb.mxu3 %v6446_v32  ;;  %v2460_v37 = vpop.f32.mrf.mxu2 }
 0x59a   :  { %2686 = vmatpush.msrb.mxu1 %v6451_v22  ;;  %2726 = vmatpush.msrb.mxu3 %v6454_v39  ;;  %v2500_v22 = vpop.f32.mrf.mxu0  ;;  %v2461_v39 = vadd.f32 %v2460_v37, %v7878_v50 }
 0x59c   :  { %2687 = vmatpush.msrb.mxu1 %v6459_v42  ;;  %2727 = vmatpush.msrb.mxu3 %v7908_v14 }
 0x59e   :  { %2688 = vmatpush.msrb.mxu1 %v7909_v55  ;;  %2728 = vmatpush.msrb.mxu3 %v7910_v16 }
 0x5a0   :  { %2689 = vmatpush.msrb.mxu1 %v7911_v5  ;;  %2729 = vmatpush.msrb.mxu3 %v7912_v59 }
 0x5a2   :  { %2690 = vmatpush.msrb.mxu1 %v7913_v60  ;;  %2730 = vmatpush.msrb.mxu3 %v7914_v17 }
 0x5a4   :  { %2691 = vmatpush.msrb.mxu1 %v7915_v4  ;;  %2731 = vmatpush.msrb.mxu3 %v7916_v15 }
 0x5a6   :  { %2692 = vmatpush.msrb.mxu1 %v6499_v25  ;;  %2732 = vmatpush.msrb.mxu3 %v6502_v21 }
 0x5a8   :  { %2693 = vmatpush.msrb.mxu1 %v6507_v33  ;;  %2733 = vmatpush.msrb.mxu3 %v6510_v38  ;;  %v2501_v38 = vadd.f32 %v2500_v22, %v7607_v28  ;;  %v3543_v22 = vmov 0  }
 0x5a9   :  { %2847 = vset.pattern.permute.xlu0 %v3543_v22 }
 0x5aa   :  { %2694 = vmatpush.msrb.mxu1 %v6515_v41  ;;  %2734 = vmatpush.msrb.mxu3 %v6518_v2  ;;  %v2540_v2 = vpop.f32.mrf.mxu2 }
 0x5ac   :  { %2695 = vmatpush.msrb.mxu1 %v6523_v46  ;;  %2735 = vmatpush.msrb.mxu3 %v6526_v29  ;;  %v2541_v29 = vadd.f32 %v2540_v2, %v7490_v18 }
 0x5ae   :  { %2696 = vmatpush.msrb.mxu1 %v6531_v40  ;;  %2736 = vmatpush.msrb.mxu3 %v6534_v23 }
 0x5ec   :  { %v2440_v57 = vpop.f32.mrf.mxu1 }
 0x5ed   :  { %v2441_v1 = vadd.f32 %v2440_v57, %v2421_v36 }
 0x5ef   :  { %v2563_v32 = vmul.f32 0.5, %v2441_v1 }
 0x5f1   :  { %2970 = vtanh.f32 %v2563_v32 }
 0x5f2   :  { %v2480_v42 = vpop.f32.mrf.mxu3 }
 0x5f3   :  { %v2481_v25 = vadd.f32 %v2480_v42, %v2461_v39  ;;  %v2849_v39 = vld [vmem:[#allocation5] ss:$0 sm:$0xff] }
 0x5f4   :  { %v2520_v21 = vpop.f32.mrf.mxu1 }
 0x5f5   :  { %v2567_v33 = vmul.f32 0.5, %v2481_v25  ;;  %v2521_v41 = vadd.f32 %v2520_v21, %v2501_v38 }
 0x5f7   :  { %2972 = vtanh.f32 %v2567_v33  ;;  %v2971_v46 = vpop.eup %2970 }
 0x5f8   :  { %2974 = vtanh.f32 %v2521_v41  ;;  %v2565_v48 = vmul.f32 0.5, %v2971_v46 }
 0x5fa   :  { %v2560_v40 = vpop.f32.mrf.mxu3  ;;  %v2566_v20 = vadd.f32 0.5, %v2565_v48 }
 0x5fb   :  { %v2561_v23 = vadd.f32 %v2560_v40, %v2541_v29 }
 0x5fd   :  { %v2973_v0 = vpop.eup %2972  ;;  %v2572_v30 = vmul.f32 0.5, %v2561_v23 }
 0x5fe   :  { %v2569_v52 = vmul.f32 0.5, %v2973_v0  ;;  %v2975_v11 = vpop.eup %2974 }
 0x5ff   :  { %2976 = vtanh.f32 %v2572_v30  ;;  %v2577_v27 = vmul.f32 %v2975_v11, %v2566_v20 }
 0x600   :  { %v2570_v53 = vadd.f32 0.5, %v2569_v52 }
 0x602   :  { %v2576_v26 = vmul.f32 %v2570_v53, %v6568_v49 }
 0x604   :  { %v2578_v54 = vadd.f32 %v2577_v27, %v2576_v26 }
 0x605   :  { %v2977_v13 = vpop.eup %2976 }
 0x606   :  { %2978 = vtanh.f32 %v2578_v54  ;;  %v2574_v9 = vmul.f32 0.5, %v2977_v13 }
 0x608   :  { %v2575_v63 = vadd.f32 0.5, %v2574_v9  ;;  %v2598_v34 = vpop.f32.mrf.mxu0 }
 0x609   :  { %v2599_v8 = vadd.f32 %v2598_v34, %v7877_v19 }
 0x60c   :  { %v2979_v51 = vpop.eup %2978 }
 0x60d   :  { %v2580_v6 = vmul.f32 %v2979_v51, %v2575_v63 }
 0x60e   :  { %v2638_v24 = vpop.f32.mrf.mxu2 }
 0x60f   :  { %2617 = vmatmul.f32.vlgmr.msra.gmra.mxu1 %v2580_v6  ;;  %2657 = vmatmul.f32.vlgmr.msra.gmra.mxu3 %v2580_v6  ;;  %v2639_v43 = vadd.f32 %v2638_v24, %v7878_v50 }
 0x610   :  { %v2678_v49 = vpop.f32.mrf.mxu0 }
 0x611   :  { %v2679_v58 = vadd.f32 %v2678_v49, %v7607_v28 }
 0x616   :  { %v2718_v56 = vpop.f32.mrf.mxu2 }
 0x617   :  { %2697 = vmatmul.f32.vlgmr.msrb.gmra.mxu1 %v2580_v6  ;;  %2737 = vmatmul.f32.vlgmr.msrb.gmra.mxu3 %v2580_v6  ;;  %v2719_v19 = vadd.f32 %v2718_v56, %v7490_v18  ;;  %v2848_v18 = vld [vmem:[%s6661_s6] ss:$0 sm:$0xff] }
 0x68c   :  { %v2618_v44 = vpop.f32.mrf.mxu1 }
 0x68d   :  { %v2619_v31 = vadd.f32 %v2618_v44, %v2599_v8 }
 0x68f   :  { %v2741_v45 = vmul.f32 0.5, %v2619_v31 }
 0x691   :  { %2980 = vtanh.f32 %v2741_v45 }
 0x692   :  { %v2658_v10 = vpop.f32.mrf.mxu3 }
 0x693   :  { %v2659_v3 = vadd.f32 %v2658_v10, %v2639_v43 }
 0x694   :  { %v2698_v61 = vpop.f32.mrf.mxu1 }
 0x695   :  { %v2745_v12 = vmul.f32 0.5, %v2659_v3  ;;  %v2699_v7 = vadd.f32 %v2698_v61, %v2679_v58 }
 0x697   :  { %2982 = vtanh.f32 %v2745_v12  ;;  %v2981_v62 = vpop.eup %2980 }
 0x698   :  { %2984 = vtanh.f32 %v2699_v7  ;;  %v2743_v55 = vmul.f32 0.5, %v2981_v62 }
 0x69a   :  { %v2738_v35 = vpop.f32.mrf.mxu3  ;;  %v2744_v28 = vadd.f32 0.5, %v2743_v55 }
 0x69b   :  { %v2739_v14 = vadd.f32 %v2738_v35, %v2719_v19 }
 0x69d   :  { %v2983_v16 = vpop.eup %2982  ;;  %v2750_v5 = vmul.f32 0.5, %v2739_v14 }
 0x69e   :  { %v2747_v50 = vmul.f32 0.5, %v2983_v16  ;;  %v2985_v59 = vpop.eup %2984 }
 0x69f   :  { %2986 = vtanh.f32 %v2750_v5  ;;  %v2755_v4 = vmul.f32 %v2985_v59, %v2744_v28 }
 0x6a0   :  { %v2748_v60 = vadd.f32 0.5, %v2747_v50 }
 0x6a2   :  { %v2754_v17 = vmul.f32 %v2748_v60, %v2578_v54 }
 0x6a4   :  { %v2756_v15 = vadd.f32 %v2755_v4, %v2754_v17 }
 0x6a5   :  { %v2987_v47 = vpop.eup %2986 }
 0x6a6   :  { %2988 = vtanh.f32 %v2756_v15  ;;  %v2752_v36 = vmul.f32 0.5, %v2987_v47 }
 0x6a8   :  { %v2753_v57 = vadd.f32 0.5, %v2752_v36 }
 0x6ac   :  { %v2989_v1 = vpop.eup %2988 }
 0x6ad   :  { %v2758_v37 = vmul.f32 %v2989_v1, %v2753_v57 }
 0x6af   :  { %v2763_v32 = vmul.f32 %v2848_v18, %v2758_v37 }
 0x6b1   :  { %2764 = vadd.xlane.f32.xlu0 %v2763_v32 }
 0x724   :  { %v2765_v42 = vpop.xlane.xlu0 %2764 }
 0x725   :  { %v2770_v38 = vadd.f32 %v2849_v39, %v2765_v42 }
 0x727   :  { %2773 = vperm.xlu0 %2847, %v2770_v38  }
 0x799   :  { %v2774_v25 = vpop.permute.xlu0 %2773 }
 0x79a   :  { %2776 = vst [vmem:[%s6663_s8] sm:$0xff] %v2774_v25 }
 0x79b   :  { %2781 = vsyncpa [#allocation7], 1 }
 0x79c   :  { %2782 = vsyncmov [#allocation4] }
 0x79f   :  { %s2783_s19 = vpop.sfrf %2782 }
 0x7a0   :  { %p2820_p0 = scmp.ne.s32.totalorder %s2783_s19, 0 }
 0x7a2   :  { %2787 = shalt.err (%p2820_p0)  }

</bundles_post_ra>
